<compile_context>
chip_gen: v6e
topology: v6e:2x2x1
jax: 0.10.0
libtpu: 0.0.40
codegen_flags: <defaults>
</compile_context>

<pallas_src>
import jax
import jax.numpy as jnp
from jax.experimental import pallas as pl
from jax.experimental.pallas import tpu as pltpu

_K = 5          # conv kernel size (all three convs)
_COUT_PAD = 128  # lane-dense output-channel padding for every matmul


# ------------------------------ in-kernel ops --------------------------------

def _pool_2x2_sum(a):
    """2x2 / stride-2 SUM pool (the 1/4 avg scale is folded into next weights)."""
    B, H, W, C = a.shape
    a = a.reshape(B, H, W // 2, 2, C)
    a = a[:, :, :, 0, :] + a[:, :, :, 1, :]          # pool along W (sublane pair)
    a = a.reshape(B, H // 2, 2, W // 2, C)
    return a[:, :, 0, :, :] + a[:, :, 1, :, :]       # pool along H (leading dim)


def _lenet_kernel(x1_ref, w1_ref, b1_ref, w2_ref, b2_ref, w3_ref, b3_ref, o_ref):
    BB = x1_ref.shape[0]

    # ---- conv1 + ReLU : one im2col matmul (BB*784, 32) x (32, 128) ----------
    x1 = x1_ref[...].reshape(BB * 784, 32)                     # bf16
    a1 = jnp.dot(x1, w1_ref[...], preferred_element_type=jnp.float32)
    a1 = jnp.maximum(a1 + b1_ref[...], 0.0).astype(jnp.bfloat16)
    a1 = a1.reshape(BB, 28, 28, 128)

    # ---- pool1 (2x2 sum) -----------------------------------------------------
    p1 = _pool_2x2_sum(a1)                                     # (BB, 14, 14, 128)
    p1 = p1[:, :, :, :8]                                       # 6 real ch + 2 zero

    # ---- conv2 + ReLU : deep-K im2col matmul (BB*100, 200) x (200, 128) -----
    cols = []
    for kh in range(_K):
        for kw in range(_K):
            cols.append(p1[:, kh:kh + 10, kw:kw + 10, :])      # (BB,10,10,8)
    x2 = jnp.concatenate(cols, axis=-1).reshape(BB * 100, 200)
    a2 = jnp.dot(x2, w2_ref[...], preferred_element_type=jnp.float32)
    a2 = jnp.maximum(a2 + b2_ref[...], 0.0).astype(jnp.bfloat16)
    a2 = a2.reshape(BB, 10, 10, 128)

    # ---- pool2 + conv3-as-FC + ReLU : (BB, 400) x (400, 128) ----------------
    p2 = _pool_2x2_sum(a2)                                     # (BB, 5, 5, 128)
    x3 = jnp.concatenate(
        [p2[:, h, w, :16] for h in range(_K) for w in range(_K)], axis=-1)
    a3 = jnp.dot(x3, w3_ref[...], preferred_element_type=jnp.float32)
    o_ref[...] = jnp.maximum(a3 + b3_ref[...], 0.0).reshape(o_ref.shape)


# ------------------------------ host-side prep -------------------------------

def _im2col_conv1(x):
    """(B, 1, 32, 32) NCHW -> (B, 784, 32) bf16 (25 taps, padded to 32)."""
    B = x.shape[0]
    xs = x[:, 0, :, :].astype(jnp.float32)                     # (B, 32, 32)
    taps = []
    for kh in range(_K):
        for kw in range(_K):
            taps.append(xs[:, kh:kh + 28, kw:kw + 28])
    p = jnp.stack(taps, axis=-1)                               # (B, 28, 28, 25)
    p = jnp.pad(p, ((0, 0), (0, 0), (0, 0), (0, 32 - 25)))     # K pad 25 -> 32
    return p.reshape(B, 28 * 28, 32).astype(jnp.bfloat16)


def _prep_w1(w, b):
    """conv1 (6,1,5,5)+(6,) -> (32, 128) bf16, (1, 128) f32. Row = kh*5+kw."""
    wm = jnp.transpose(w[:, 0], (1, 2, 0)).reshape(25, 6)
    wm = jnp.pad(wm, ((0, 32 - 25), (0, _COUT_PAD - 6)))
    bm = jnp.pad(b, (0, _COUT_PAD - 6)).reshape(1, _COUT_PAD).astype(jnp.float32)
    return wm.astype(jnp.bfloat16), bm


def _prep_w2(w, b):
    """conv2 (16,6,5,5)+(16,) -> (200, 128) bf16 (row=(kh*5+kw)*8+ci), pool 1/4 folded."""
    wm = jnp.transpose(w, (2, 3, 1, 0))                        # (5,5,6,16)
    wm = jnp.pad(wm, ((0, 0), (0, 0), (0, 2), (0, 0)))         # ci 6 -> 8
    wm = wm.reshape(200, 16) * 0.25                            # fold pool1 avg
    wm = jnp.pad(wm, ((0, 0), (0, _COUT_PAD - 16)))
    bm = jnp.pad(b, (0, _COUT_PAD - 16)).reshape(1, _COUT_PAD).astype(jnp.float32)
    return wm.astype(jnp.bfloat16), bm


def _prep_w3(w, b):
    """conv3 (120,16,5,5)+(120,) -> FC (400, 128) bf16 (row=(h*5+w)*16+ci), pool 1/4 folded."""
    wm = jnp.transpose(w, (2, 3, 1, 0)).reshape(400, 120) * 0.25   # fold pool2 avg
    wm = jnp.pad(wm, ((0, 0), (0, _COUT_PAD - 120)))
    bm = jnp.pad(b, (0, _COUT_PAD - 120)).reshape(1, _COUT_PAD).astype(jnp.float32)
    return wm.astype(jnp.bfloat16), bm


def lenet_v2_forward(x, params, *, block_b=1):
    """Forward of LeNetv2: feature_extractor + flatten -> (B, 120)."""
    w1, b1, w2, b2, w3, b3 = params
    B = x.shape[0]
    assert x.shape[1:] == (1, 32, 32), "classic LeNet input (final spatial 1x1)"

    x1 = _im2col_conv1(x)                                      # (B, 784, 32) bf16
    Bp = pl.cdiv(B, block_b) * block_b
    if Bp != B:
        x1 = jnp.pad(x1, ((0, Bp - B), (0, 0), (0, 0)))

    w1p, b1p = _prep_w1(w1, b1)
    w2p, b2p = _prep_w2(w2, b2)
    w3p, b3p = _prep_w3(w3, b3)

    out = pl.pallas_call(
        _lenet_kernel,
        out_shape=jax.ShapeDtypeStruct((Bp, 1, _COUT_PAD), jnp.float32),
        grid_spec=pltpu.PrefetchScalarGridSpec(
            num_scalar_prefetch=0,
            grid=(Bp // block_b,),
            in_specs=[
                pl.BlockSpec((block_b, 784, 32), lambda i: (i, 0, 0)),
                pl.BlockSpec((32, _COUT_PAD), lambda i: (0, 0)),
                pl.BlockSpec((1, _COUT_PAD), lambda i: (0, 0)),
                pl.BlockSpec((200, _COUT_PAD), lambda i: (0, 0)),
                pl.BlockSpec((1, _COUT_PAD), lambda i: (0, 0)),
                pl.BlockSpec((400, _COUT_PAD), lambda i: (0, 0)),
                pl.BlockSpec((1, _COUT_PAD), lambda i: (0, 0)),
            ],
            out_specs=pl.BlockSpec((block_b, 1, _COUT_PAD), lambda i: (i, 0, 0)),
        ),
        compiler_params=pltpu.CompilerParams(
            dimension_semantics=("parallel",),       # megacore on v7x
            vmem_limit_bytes=32 * 1024 * 1024,       # per-step footprint ~2 MiB; safe on v7x (64 MiB)
        ),
    )(x1, w1p, b1p, w2p, b2p, w3p, b3p)

    return out.reshape(Bp, _COUT_PAD)[:B, :120]      # drop batch/channel padding


# ---------------------------- pure-JAX reference -----------------------------

def lenet_v2_reference(x, params):
    w1, b1, w2, b2, w3, b3 = params

    def conv(x, w, b):
        y = jax.lax.conv_general_dilated(
            x, w, window_strides=(1, 1), padding='VALID',
            dimension_numbers=('NCHW', 'OIHW', 'NCHW'),
            precision=jax.lax.Precision.HIGHEST)
        return jnp.maximum(y + b.reshape(1, -1, 1, 1), 0.0)

    def pool(x):
        B, C, H, W = x.shape
        return x.reshape(B, C, H // 2, 2, W // 2, 2).mean(axis=(3, 5))

    x = pool(conv(x, w1, b1))
    x = pool(conv(x, w2, b2))
    x = conv(x, w3, b3)
    return x.reshape(x.shape[0], -1)


# ------------------------------- param init ----------------------------------

def init_params(key):
    shapes = [
        ((6, 1, 5, 5), (6,)),       # conv1
        ((16, 6, 5, 5), (16,)),     # conv2
        ((120, 16, 5, 5), (120,)),  # conv3
    ]
    params = []
    for (wshape, bshape) in shapes:
        key, kw, kb = jax.random.split(key, 3)
        fan_in = wshape[1] * wshape[2] * wshape[3]
        scale = 1.0 / jnp.sqrt(jnp.float32(fan_in))
        params.append(scale * jax.random.normal(kw, wshape, jnp.float32))
        params.append(scale * jax.random.normal(kb, bshape, jnp.float32))
    return tuple(params)


if __name__ == "__main__":
    key = jax.random.PRNGKey(0)
    pkey, xkey = jax.random.split(key)
    params = init_params(pkey)
    # Classic LeNet input: MNIST padded to 32x32, single channel, batch=2.
    x = jax.random.normal(xkey, (2, 1, 32, 32), jnp.float32)

    fwd = jax.jit(lenet_v2_forward)
    out = jax.block_until_ready(fwd(x, params))

    ref = jax.block_until_ready(lenet_v2_reference(x, params))
    assert out.shape == (2, 120), out.shape
    assert bool(jnp.all(jnp.isfinite(out)))
    # bf16 MXU operands / bf16 per-layer activations vs f32-HIGHEST reference.
    max_err = float(jnp.max(jnp.abs(out - ref)))
    assert jnp.allclose(out, ref, atol=3e-2, rtol=3e-2), max_err

    print("KERNEL_OK")
</pallas_src>

<mosaic_0001>
module attributes {stable_mosaic.version = 11 : i64} {
  func.func @_lenet_kernel(%arg0: i32, %arg1: memref<1x784x32xbf16, #tpu.memory_space<vmem>>, %arg2: memref<32x128xbf16, #tpu.memory_space<vmem>>, %arg3: memref<1x128xf32, #tpu.memory_space<vmem>>, %arg4: memref<200x128xbf16, #tpu.memory_space<vmem>>, %arg5: memref<1x128xf32, #tpu.memory_space<vmem>>, %arg6: memref<400x128xbf16, #tpu.memory_space<vmem>>, %arg7: memref<1x128xf32, #tpu.memory_space<vmem>>, %arg8: memref<1x1x128xf32, #tpu.memory_space<vmem>>) attributes {dimension_semantics = [#tpu.dimension_semantics<parallel>], iteration_bounds = array<i64: 2>, scalar_prefetch = 0 : i64, scratch_operands = 0 : i64, tpu.core_type = #tpu.core_type<tc>, window_params = [{transform_indices = @transform_0, window_bounds = array<i64: 1, 784, 32>}, {pipeline_mode = #tpu.pipeline_mode<synchronous>, transform_indices = @transform_1, window_bounds = array<i64: 32, 128>}, {pipeline_mode = #tpu.pipeline_mode<synchronous>, transform_indices = @transform_2, window_bounds = array<i64: 1, 128>}, {pipeline_mode = #tpu.pipeline_mode<synchronous>, transform_indices = @transform_3, window_bounds = array<i64: 200, 128>}, {pipeline_mode = #tpu.pipeline_mode<synchronous>, transform_indices = @transform_4, window_bounds = array<i64: 1, 128>}, {pipeline_mode = #tpu.pipeline_mode<synchronous>, transform_indices = @transform_5, window_bounds = array<i64: 400, 128>}, {pipeline_mode = #tpu.pipeline_mode<synchronous>, transform_indices = @transform_6, window_bounds = array<i64: 1, 128>}, {transform_indices = @transform_7, window_bounds = array<i64: 1, 1, 128>}]} {
    %c0 = arith.constant 0 : index
    %c0_0 = arith.constant 0 : index
    %c0_1 = arith.constant 0 : index
    %0 = vector.load %arg1[%c0, %c0_0, %c0_1] : memref<1x784x32xbf16, #tpu.memory_space<vmem>>, vector<1x784x32xbf16>
    %1 = vector.shape_cast %0 : vector<1x784x32xbf16> to vector<784x32xbf16>
    %c0_2 = arith.constant 0 : index
    %c0_3 = arith.constant 0 : index
    %2 = vector.load %arg2[%c0_2, %c0_3] : memref<32x128xbf16, #tpu.memory_space<vmem>>, vector<32x128xbf16>
    %cst = arith.constant dense<0.000000e+00> : vector<784x128xf32>
    %3 = tpu.matmul %1, %2, %cst {dimension_numbers = #tpu.dot_dimension_numbers<[1], [0], [0], [1], [0, 0, 1, 1], [], []>} : vector<784x32xbf16>, vector<32x128xbf16>, vector<784x128xf32> -> vector<784x128xf32>
    %c0_4 = arith.constant 0 : index
    %c0_5 = arith.constant 0 : index
    %4 = vector.load %arg3[%c0_4, %c0_5] : memref<1x128xf32, #tpu.memory_space<vmem>>, vector<1x128xf32>
    %5 = vector.broadcast %4 : vector<1x128xf32> to vector<784x128xf32>
    %6 = arith.addf %3, %5 : vector<784x128xf32>
    %cst_6 = arith.constant 0.000000e+00 : f32
    %7 = vector.broadcast %cst_6 : f32 to vector<784x128xf32>
    %8 = arith.maximumf %6, %7 : vector<784x128xf32>
    %9 = arith.truncf %8 : vector<784x128xf32> to vector<784x128xbf16>
    %10 = vector.shape_cast %9 : vector<784x128xbf16> to vector<1x28x28x128xbf16>
    %11 = vector.shape_cast %10 : vector<1x28x28x128xbf16> to vector<1x28x14x2x128xbf16>
    %12 = vector.extract_strided_slice %11 {offsets = [0, 0, 0, 0, 0], sizes = [1, 28, 14, 1, 128], strides = [1, 1, 1, 1, 1]} : vector<1x28x14x2x128xbf16> to vector<1x28x14x1x128xbf16>
    %13 = vector.shape_cast %12 : vector<1x28x14x1x128xbf16> to vector<1x28x14x128xbf16>
    %14 = vector.extract_strided_slice %11 {offsets = [0, 0, 0, 1, 0], sizes = [1, 28, 14, 1, 128], strides = [1, 1, 1, 1, 1]} : vector<1x28x14x2x128xbf16> to vector<1x28x14x1x128xbf16>
    %15 = vector.shape_cast %14 : vector<1x28x14x1x128xbf16> to vector<1x28x14x128xbf16>
    %16 = arith.addf %13, %15 : vector<1x28x14x128xbf16>
    %17 = vector.shape_cast %16 : vector<1x28x14x128xbf16> to vector<1x14x2x14x128xbf16>
    %18 = vector.extract_strided_slice %17 {offsets = [0, 0, 0, 0, 0], sizes = [1, 14, 1, 14, 128], strides = [1, 1, 1, 1, 1]} : vector<1x14x2x14x128xbf16> to vector<1x14x1x14x128xbf16>
    %19 = vector.shape_cast %18 : vector<1x14x1x14x128xbf16> to vector<1x14x14x128xbf16>
    %20 = vector.extract_strided_slice %17 {offsets = [0, 0, 1, 0, 0], sizes = [1, 14, 1, 14, 128], strides = [1, 1, 1, 1, 1]} : vector<1x14x2x14x128xbf16> to vector<1x14x1x14x128xbf16>
    %21 = vector.shape_cast %20 : vector<1x14x1x14x128xbf16> to vector<1x14x14x128xbf16>
    %22 = arith.addf %19, %21 : vector<1x14x14x128xbf16>
    %23 = vector.extract_strided_slice %22 {offsets = [0, 0, 0, 0], sizes = [1, 14, 14, 8], strides = [1, 1, 1, 1]} : vector<1x14x14x128xbf16> to vector<1x14x14x8xbf16>
    %24 = vector.extract_strided_slice %23 {offsets = [0, 0, 0, 0], sizes = [1, 10, 10, 8], strides = [1, 1, 1, 1]} : vector<1x14x14x8xbf16> to vector<1x10x10x8xbf16>
    %25 = vector.extract_strided_slice %23 {offsets = [0, 0, 1, 0], sizes = [1, 10, 10, 8], strides = [1, 1, 1, 1]} : vector<1x14x14x8xbf16> to vector<1x10x10x8xbf16>
    %26 = vector.extract_strided_slice %23 {offsets = [0, 0, 2, 0], sizes = [1, 10, 10, 8], strides = [1, 1, 1, 1]} : vector<1x14x14x8xbf16> to vector<1x10x10x8xbf16>
    %27 = vector.extract_strided_slice %23 {offsets = [0, 0, 3, 0], sizes = [1, 10, 10, 8], strides = [1, 1, 1, 1]} : vector<1x14x14x8xbf16> to vector<1x10x10x8xbf16>
    %28 = vector.extract_strided_slice %23 {offsets = [0, 0, 4, 0], sizes = [1, 10, 10, 8], strides = [1, 1, 1, 1]} : vector<1x14x14x8xbf16> to vector<1x10x10x8xbf16>
    %29 = vector.extract_strided_slice %23 {offsets = [0, 1, 0, 0], sizes = [1, 10, 10, 8], strides = [1, 1, 1, 1]} : vector<1x14x14x8xbf16> to vector<1x10x10x8xbf16>
    %30 = vector.extract_strided_slice %23 {offsets = [0, 1, 1, 0], sizes = [1, 10, 10, 8], strides = [1, 1, 1, 1]} : vector<1x14x14x8xbf16> to vector<1x10x10x8xbf16>
    %31 = vector.extract_strided_slice %23 {offsets = [0, 1, 2, 0], sizes = [1, 10, 10, 8], strides = [1, 1, 1, 1]} : vector<1x14x14x8xbf16> to vector<1x10x10x8xbf16>
    %32 = vector.extract_strided_slice %23 {offsets = [0, 1, 3, 0], sizes = [1, 10, 10, 8], strides = [1, 1, 1, 1]} : vector<1x14x14x8xbf16> to vector<1x10x10x8xbf16>
    %33 = vector.extract_strided_slice %23 {offsets = [0, 1, 4, 0], sizes = [1, 10, 10, 8], strides = [1, 1, 1, 1]} : vector<1x14x14x8xbf16> to vector<1x10x10x8xbf16>
    %34 = vector.extract_strided_slice %23 {offsets = [0, 2, 0, 0], sizes = [1, 10, 10, 8], strides = [1, 1, 1, 1]} : vector<1x14x14x8xbf16> to vector<1x10x10x8xbf16>
    %35 = vector.extract_strided_slice %23 {offsets = [0, 2, 1, 0], sizes = [1, 10, 10, 8], strides = [1, 1, 1, 1]} : vector<1x14x14x8xbf16> to vector<1x10x10x8xbf16>
    %36 = vector.extract_strided_slice %23 {offsets = [0, 2, 2, 0], sizes = [1, 10, 10, 8], strides = [1, 1, 1, 1]} : vector<1x14x14x8xbf16> to vector<1x10x10x8xbf16>
    %37 = vector.extract_strided_slice %23 {offsets = [0, 2, 3, 0], sizes = [1, 10, 10, 8], strides = [1, 1, 1, 1]} : vector<1x14x14x8xbf16> to vector<1x10x10x8xbf16>
    %38 = vector.extract_strided_slice %23 {offsets = [0, 2, 4, 0], sizes = [1, 10, 10, 8], strides = [1, 1, 1, 1]} : vector<1x14x14x8xbf16> to vector<1x10x10x8xbf16>
    %39 = vector.extract_strided_slice %23 {offsets = [0, 3, 0, 0], sizes = [1, 10, 10, 8], strides = [1, 1, 1, 1]} : vector<1x14x14x8xbf16> to vector<1x10x10x8xbf16>
    %40 = vector.extract_strided_slice %23 {offsets = [0, 3, 1, 0], sizes = [1, 10, 10, 8], strides = [1, 1, 1, 1]} : vector<1x14x14x8xbf16> to vector<1x10x10x8xbf16>
    %41 = vector.extract_strided_slice %23 {offsets = [0, 3, 2, 0], sizes = [1, 10, 10, 8], strides = [1, 1, 1, 1]} : vector<1x14x14x8xbf16> to vector<1x10x10x8xbf16>
    %42 = vector.extract_strided_slice %23 {offsets = [0, 3, 3, 0], sizes = [1, 10, 10, 8], strides = [1, 1, 1, 1]} : vector<1x14x14x8xbf16> to vector<1x10x10x8xbf16>
    %43 = vector.extract_strided_slice %23 {offsets = [0, 3, 4, 0], sizes = [1, 10, 10, 8], strides = [1, 1, 1, 1]} : vector<1x14x14x8xbf16> to vector<1x10x10x8xbf16>
    %44 = vector.extract_strided_slice %23 {offsets = [0, 4, 0, 0], sizes = [1, 10, 10, 8], strides = [1, 1, 1, 1]} : vector<1x14x14x8xbf16> to vector<1x10x10x8xbf16>
    %45 = vector.extract_strided_slice %23 {offsets = [0, 4, 1, 0], sizes = [1, 10, 10, 8], strides = [1, 1, 1, 1]} : vector<1x14x14x8xbf16> to vector<1x10x10x8xbf16>
    %46 = vector.extract_strided_slice %23 {offsets = [0, 4, 2, 0], sizes = [1, 10, 10, 8], strides = [1, 1, 1, 1]} : vector<1x14x14x8xbf16> to vector<1x10x10x8xbf16>
    %47 = vector.extract_strided_slice %23 {offsets = [0, 4, 3, 0], sizes = [1, 10, 10, 8], strides = [1, 1, 1, 1]} : vector<1x14x14x8xbf16> to vector<1x10x10x8xbf16>
    %48 = vector.extract_strided_slice %23 {offsets = [0, 4, 4, 0], sizes = [1, 10, 10, 8], strides = [1, 1, 1, 1]} : vector<1x14x14x8xbf16> to vector<1x10x10x8xbf16>
    %49 = tpu.concatenate %24, %25, %26, %27, %28, %29, %30, %31, %32, %33, %34, %35, %36, %37, %38, %39 in 3 : vector<1x10x10x8xbf16>, vector<1x10x10x8xbf16>, vector<1x10x10x8xbf16>, vector<1x10x10x8xbf16>, vector<1x10x10x8xbf16>, vector<1x10x10x8xbf16>, vector<1x10x10x8xbf16>, vector<1x10x10x8xbf16>, vector<1x10x10x8xbf16>, vector<1x10x10x8xbf16>, vector<1x10x10x8xbf16>, vector<1x10x10x8xbf16>, vector<1x10x10x8xbf16>, vector<1x10x10x8xbf16>, vector<1x10x10x8xbf16>, vector<1x10x10x8xbf16> -> vector<1x10x10x128xbf16>
    %50 = tpu.concatenate %40, %41, %42, %43, %44, %45, %46, %47, %48 in 3 : vector<1x10x10x8xbf16>, vector<1x10x10x8xbf16>, vector<1x10x10x8xbf16>, vector<1x10x10x8xbf16>, vector<1x10x10x8xbf16>, vector<1x10x10x8xbf16>, vector<1x10x10x8xbf16>, vector<1x10x10x8xbf16>, vector<1x10x10x8xbf16> -> vector<1x10x10x72xbf16>
    %51 = tpu.concatenate %49, %50 in 3 : vector<1x10x10x128xbf16>, vector<1x10x10x72xbf16> -> vector<1x10x10x200xbf16>
    %52 = vector.shape_cast %51 : vector<1x10x10x200xbf16> to vector<100x200xbf16>
    %c0_7 = arith.constant 0 : index
    %c0_8 = arith.constant 0 : index
    %53 = vector.load %arg4[%c0_7, %c0_8] : memref<200x128xbf16, #tpu.memory_space<vmem>>, vector<200x128xbf16>
    %cst_9 = arith.constant dense<0.000000e+00> : vector<100x128xf32>
    %54 = tpu.matmul %52, %53, %cst_9 {dimension_numbers = #tpu.dot_dimension_numbers<[1], [0], [0], [1], [0, 0, 1, 1], [], []>} : vector<100x200xbf16>, vector<200x128xbf16>, vector<100x128xf32> -> vector<100x128xf32>
    %c0_10 = arith.constant 0 : index
    %c0_11 = arith.constant 0 : index
    %55 = vector.load %arg5[%c0_10, %c0_11] : memref<1x128xf32, #tpu.memory_space<vmem>>, vector<1x128xf32>
    %56 = vector.broadcast %55 : vector<1x128xf32> to vector<100x128xf32>
    %57 = arith.addf %54, %56 : vector<100x128xf32>
    %cst_12 = arith.constant 0.000000e+00 : f32
    %58 = vector.broadcast %cst_12 : f32 to vector<100x128xf32>
    %59 = arith.maximumf %57, %58 : vector<100x128xf32>
    %60 = arith.truncf %59 : vector<100x128xf32> to vector<100x128xbf16>
    %61 = vector.shape_cast %60 : vector<100x128xbf16> to vector<1x10x10x128xbf16>
    %62 = vector.shape_cast %61 : vector<1x10x10x128xbf16> to vector<1x10x5x2x128xbf16>
    %63 = vector.extract_strided_slice %62 {offsets = [0, 0, 0, 0, 0], sizes = [1, 10, 5, 1, 128], strides = [1, 1, 1, 1, 1]} : vector<1x10x5x2x128xbf16> to vector<1x10x5x1x128xbf16>
    %64 = vector.shape_cast %63 : vector<1x10x5x1x128xbf16> to vector<1x10x5x128xbf16>
    %65 = vector.extract_strided_slice %62 {offsets = [0, 0, 0, 1, 0], sizes = [1, 10, 5, 1, 128], strides = [1, 1, 1, 1, 1]} : vector<1x10x5x2x128xbf16> to vector<1x10x5x1x128xbf16>
    %66 = vector.shape_cast %65 : vector<1x10x5x1x128xbf16> to vector<1x10x5x128xbf16>
    %67 = arith.addf %64, %66 : vector<1x10x5x128xbf16>
    %68 = vector.shape_cast %67 : vector<1x10x5x128xbf16> to vector<1x5x2x5x128xbf16>
    %69 = vector.extract_strided_slice %68 {offsets = [0, 0, 0, 0, 0], sizes = [1, 5, 1, 5, 128], strides = [1, 1, 1, 1, 1]} : vector<1x5x2x5x128xbf16> to vector<1x5x1x5x128xbf16>
    %70 = vector.shape_cast %69 : vector<1x5x1x5x128xbf16> to vector<1x5x5x128xbf16>
    %71 = vector.extract_strided_slice %68 {offsets = [0, 0, 1, 0, 0], sizes = [1, 5, 1, 5, 128], strides = [1, 1, 1, 1, 1]} : vector<1x5x2x5x128xbf16> to vector<1x5x1x5x128xbf16>
    %72 = vector.shape_cast %71 : vector<1x5x1x5x128xbf16> to vector<1x5x5x128xbf16>
    %73 = arith.addf %70, %72 : vector<1x5x5x128xbf16>
    %74 = vector.extract_strided_slice %73 {offsets = [0, 0, 0, 0], sizes = [1, 1, 1, 16], strides = [1, 1, 1, 1]} : vector<1x5x5x128xbf16> to vector<1x1x1x16xbf16>
    %75 = vector.shape_cast %74 : vector<1x1x1x16xbf16> to vector<1x16xbf16>
    %76 = vector.extract_strided_slice %73 {offsets = [0, 0, 1, 0], sizes = [1, 1, 1, 16], strides = [1, 1, 1, 1]} : vector<1x5x5x128xbf16> to vector<1x1x1x16xbf16>
    %77 = vector.shape_cast %76 : vector<1x1x1x16xbf16> to vector<1x16xbf16>
    %78 = vector.extract_strided_slice %73 {offsets = [0, 0, 2, 0], sizes = [1, 1, 1, 16], strides = [1, 1, 1, 1]} : vector<1x5x5x128xbf16> to vector<1x1x1x16xbf16>
    %79 = vector.shape_cast %78 : vector<1x1x1x16xbf16> to vector<1x16xbf16>
    %80 = vector.extract_strided_slice %73 {offsets = [0, 0, 3, 0], sizes = [1, 1, 1, 16], strides = [1, 1, 1, 1]} : vector<1x5x5x128xbf16> to vector<1x1x1x16xbf16>
    %81 = vector.shape_cast %80 : vector<1x1x1x16xbf16> to vector<1x16xbf16>
    %82 = vector.extract_strided_slice %73 {offsets = [0, 0, 4, 0], sizes = [1, 1, 1, 16], strides = [1, 1, 1, 1]} : vector<1x5x5x128xbf16> to vector<1x1x1x16xbf16>
    %83 = vector.shape_cast %82 : vector<1x1x1x16xbf16> to vector<1x16xbf16>
    %84 = vector.extract_strided_slice %73 {offsets = [0, 1, 0, 0], sizes = [1, 1, 1, 16], strides = [1, 1, 1, 1]} : vector<1x5x5x128xbf16> to vector<1x1x1x16xbf16>
    %85 = vector.shape_cast %84 : vector<1x1x1x16xbf16> to vector<1x16xbf16>
    %86 = vector.extract_strided_slice %73 {offsets = [0, 1, 1, 0], sizes = [1, 1, 1, 16], strides = [1, 1, 1, 1]} : vector<1x5x5x128xbf16> to vector<1x1x1x16xbf16>
    %87 = vector.shape_cast %86 : vector<1x1x1x16xbf16> to vector<1x16xbf16>
    %88 = vector.extract_strided_slice %73 {offsets = [0, 1, 2, 0], sizes = [1, 1, 1, 16], strides = [1, 1, 1, 1]} : vector<1x5x5x128xbf16> to vector<1x1x1x16xbf16>
    %89 = vector.shape_cast %88 : vector<1x1x1x16xbf16> to vector<1x16xbf16>
    %90 = vector.extract_strided_slice %73 {offsets = [0, 1, 3, 0], sizes = [1, 1, 1, 16], strides = [1, 1, 1, 1]} : vector<1x5x5x128xbf16> to vector<1x1x1x16xbf16>
    %91 = vector.shape_cast %90 : vector<1x1x1x16xbf16> to vector<1x16xbf16>
    %92 = vector.extract_strided_slice %73 {offsets = [0, 1, 4, 0], sizes = [1, 1, 1, 16], strides = [1, 1, 1, 1]} : vector<1x5x5x128xbf16> to vector<1x1x1x16xbf16>
    %93 = vector.shape_cast %92 : vector<1x1x1x16xbf16> to vector<1x16xbf16>
    %94 = vector.extract_strided_slice %73 {offsets = [0, 2, 0, 0], sizes = [1, 1, 1, 16], strides = [1, 1, 1, 1]} : vector<1x5x5x128xbf16> to vector<1x1x1x16xbf16>
    %95 = vector.shape_cast %94 : vector<1x1x1x16xbf16> to vector<1x16xbf16>
    %96 = vector.extract_strided_slice %73 {offsets = [0, 2, 1, 0], sizes = [1, 1, 1, 16], strides = [1, 1, 1, 1]} : vector<1x5x5x128xbf16> to vector<1x1x1x16xbf16>
    %97 = vector.shape_cast %96 : vector<1x1x1x16xbf16> to vector<1x16xbf16>
    %98 = vector.extract_strided_slice %73 {offsets = [0, 2, 2, 0], sizes = [1, 1, 1, 16], strides = [1, 1, 1, 1]} : vector<1x5x5x128xbf16> to vector<1x1x1x16xbf16>
    %99 = vector.shape_cast %98 : vector<1x1x1x16xbf16> to vector<1x16xbf16>
    %100 = vector.extract_strided_slice %73 {offsets = [0, 2, 3, 0], sizes = [1, 1, 1, 16], strides = [1, 1, 1, 1]} : vector<1x5x5x128xbf16> to vector<1x1x1x16xbf16>
    %101 = vector.shape_cast %100 : vector<1x1x1x16xbf16> to vector<1x16xbf16>
    %102 = vector.extract_strided_slice %73 {offsets = [0, 2, 4, 0], sizes = [1, 1, 1, 16], strides = [1, 1, 1, 1]} : vector<1x5x5x128xbf16> to vector<1x1x1x16xbf16>
    %103 = vector.shape_cast %102 : vector<1x1x1x16xbf16> to vector<1x16xbf16>
    %104 = vector.extract_strided_slice %73 {offsets = [0, 3, 0, 0], sizes = [1, 1, 1, 16], strides = [1, 1, 1, 1]} : vector<1x5x5x128xbf16> to vector<1x1x1x16xbf16>
    %105 = vector.shape_cast %104 : vector<1x1x1x16xbf16> to vector<1x16xbf16>
    %106 = vector.extract_strided_slice %73 {offsets = [0, 3, 1, 0], sizes = [1, 1, 1, 16], strides = [1, 1, 1, 1]} : vector<1x5x5x128xbf16> to vector<1x1x1x16xbf16>
    %107 = vector.shape_cast %106 : vector<1x1x1x16xbf16> to vector<1x16xbf16>
    %108 = vector.extract_strided_slice %73 {offsets = [0, 3, 2, 0], sizes = [1, 1, 1, 16], strides = [1, 1, 1, 1]} : vector<1x5x5x128xbf16> to vector<1x1x1x16xbf16>
    %109 = vector.shape_cast %108 : vector<1x1x1x16xbf16> to vector<1x16xbf16>
    %110 = vector.extract_strided_slice %73 {offsets = [0, 3, 3, 0], sizes = [1, 1, 1, 16], strides = [1, 1, 1, 1]} : vector<1x5x5x128xbf16> to vector<1x1x1x16xbf16>
    %111 = vector.shape_cast %110 : vector<1x1x1x16xbf16> to vector<1x16xbf16>
    %112 = vector.extract_strided_slice %73 {offsets = [0, 3, 4, 0], sizes = [1, 1, 1, 16], strides = [1, 1, 1, 1]} : vector<1x5x5x128xbf16> to vector<1x1x1x16xbf16>
    %113 = vector.shape_cast %112 : vector<1x1x1x16xbf16> to vector<1x16xbf16>
    %114 = vector.extract_strided_slice %73 {offsets = [0, 4, 0, 0], sizes = [1, 1, 1, 16], strides = [1, 1, 1, 1]} : vector<1x5x5x128xbf16> to vector<1x1x1x16xbf16>
    %115 = vector.shape_cast %114 : vector<1x1x1x16xbf16> to vector<1x16xbf16>
    %116 = vector.extract_strided_slice %73 {offsets = [0, 4, 1, 0], sizes = [1, 1, 1, 16], strides = [1, 1, 1, 1]} : vector<1x5x5x128xbf16> to vector<1x1x1x16xbf16>
    %117 = vector.shape_cast %116 : vector<1x1x1x16xbf16> to vector<1x16xbf16>
    %118 = vector.extract_strided_slice %73 {offsets = [0, 4, 2, 0], sizes = [1, 1, 1, 16], strides = [1, 1, 1, 1]} : vector<1x5x5x128xbf16> to vector<1x1x1x16xbf16>
    %119 = vector.shape_cast %118 : vector<1x1x1x16xbf16> to vector<1x16xbf16>
    %120 = vector.extract_strided_slice %73 {offsets = [0, 4, 3, 0], sizes = [1, 1, 1, 16], strides = [1, 1, 1, 1]} : vector<1x5x5x128xbf16> to vector<1x1x1x16xbf16>
    %121 = vector.shape_cast %120 : vector<1x1x1x16xbf16> to vector<1x16xbf16>
    %122 = vector.extract_strided_slice %73 {offsets = [0, 4, 4, 0], sizes = [1, 1, 1, 16], strides = [1, 1, 1, 1]} : vector<1x5x5x128xbf16> to vector<1x1x1x16xbf16>
    %123 = vector.shape_cast %122 : vector<1x1x1x16xbf16> to vector<1x16xbf16>
    %124 = tpu.concatenate %75, %77, %79, %81, %83, %85, %87, %89, %91, %93, %95, %97, %99, %101, %103, %105 in 1 : vector<1x16xbf16>, vector<1x16xbf16>, vector<1x16xbf16>, vector<1x16xbf16>, vector<1x16xbf16>, vector<1x16xbf16>, vector<1x16xbf16>, vector<1x16xbf16>, vector<1x16xbf16>, vector<1x16xbf16>, vector<1x16xbf16>, vector<1x16xbf16>, vector<1x16xbf16>, vector<1x16xbf16>, vector<1x16xbf16>, vector<1x16xbf16> -> vector<1x256xbf16>
    %125 = tpu.concatenate %107, %109, %111, %113, %115, %117, %119, %121, %123 in 1 : vector<1x16xbf16>, vector<1x16xbf16>, vector<1x16xbf16>, vector<1x16xbf16>, vector<1x16xbf16>, vector<1x16xbf16>, vector<1x16xbf16>, vector<1x16xbf16>, vector<1x16xbf16> -> vector<1x144xbf16>
    %126 = tpu.concatenate %124, %125 in 1 : vector<1x256xbf16>, vector<1x144xbf16> -> vector<1x400xbf16>
    %c0_13 = arith.constant 0 : index
    %c0_14 = arith.constant 0 : index
    %127 = vector.load %arg6[%c0_13, %c0_14] : memref<400x128xbf16, #tpu.memory_space<vmem>>, vector<400x128xbf16>
    %cst_15 = arith.constant dense<0.000000e+00> : vector<1x128xf32>
    %128 = tpu.matmul %126, %127, %cst_15 {dimension_numbers = #tpu.dot_dimension_numbers<[1], [0], [0], [1], [0, 0, 1, 1], [], []>} : vector<1x400xbf16>, vector<400x128xbf16>, vector<1x128xf32> -> vector<1x128xf32>
    %c0_16 = arith.constant 0 : index
    %c0_17 = arith.constant 0 : index
    %129 = vector.load %arg7[%c0_16, %c0_17] : memref<1x128xf32, #tpu.memory_space<vmem>>, vector<1x128xf32>
    %130 = arith.addf %128, %129 : vector<1x128xf32>
    %cst_18 = arith.constant 0.000000e+00 : f32
    %131 = vector.broadcast %cst_18 : f32 to vector<1x128xf32>
    %132 = arith.maximumf %130, %131 : vector<1x128xf32>
    %133 = vector.shape_cast %132 : vector<1x128xf32> to vector<1x1x128xf32>
    %c0_19 = arith.constant 0 : index
    %c0_20 = arith.constant 0 : index
    %c0_21 = arith.constant 0 : index
    %134 = vector.load %arg8[%c0_19, %c0_20, %c0_21] : memref<1x1x128xf32, #tpu.memory_space<vmem>>, vector<1x1x128xf32>
    tpu.vector_store %arg8[%c0_19, %c0_20, %c0_21], %133 {strides = array<i32>} : memref<1x1x128xf32, #tpu.memory_space<vmem>>, vector<1x1x128xf32>,
    return
  }
  func.func @transform_0(%arg0: i32) -> (i32, i32, i32) {
    %c0_i32 = arith.constant 0 : i32
    %c0_i32_0 = arith.constant 0 : i32
    %c0_i32_1 = arith.constant 0 : i32
    return %arg0, %c0_i32, %c0_i32_0 : i32, i32, i32
  }
  func.func @transform_1(%arg0: i32) -> (i32, i32) {
    %c0_i32 = arith.constant 0 : i32
    %c0_i32_0 = arith.constant 0 : i32
    %c0_i32_1 = arith.constant 0 : i32
    return %c0_i32, %c0_i32_0 : i32, i32
  }
  func.func @transform_2(%arg0: i32) -> (i32, i32) {
    %c0_i32 = arith.constant 0 : i32
    %c0_i32_0 = arith.constant 0 : i32
    %c0_i32_1 = arith.constant 0 : i32
    return %c0_i32, %c0_i32_0 : i32, i32
  }
  func.func @transform_3(%arg0: i32) -> (i32, i32) {
    %c0_i32 = arith.constant 0 : i32
    %c0_i32_0 = arith.constant 0 : i32
    %c0_i32_1 = arith.constant 0 : i32
    return %c0_i32, %c0_i32_0 : i32, i32
  }
  func.func @transform_4(%arg0: i32) -> (i32, i32) {
    %c0_i32 = arith.constant 0 : i32
    %c0_i32_0 = arith.constant 0 : i32
    %c0_i32_1 = arith.constant 0 : i32
    return %c0_i32, %c0_i32_0 : i32, i32
  }
  func.func @transform_5(%arg0: i32) -> (i32, i32) {
    %c0_i32 = arith.constant 0 : i32
    %c0_i32_0 = arith.constant 0 : i32
    %c0_i32_1 = arith.constant 0 : i32
    return %c0_i32, %c0_i32_0 : i32, i32
  }
  func.func @transform_6(%arg0: i32) -> (i32, i32) {
    %c0_i32 = arith.constant 0 : i32
    %c0_i32_0 = arith.constant 0 : i32
    %c0_i32_1 = arith.constant 0 : i32
    return %c0_i32, %c0_i32_0 : i32, i32
  }
  func.func @transform_7(%arg0: i32) -> (i32, i32, i32) {
    %c0_i32 = arith.constant 0 : i32
    %c0_i32_0 = arith.constant 0 : i32
    %c0_i32_1 = arith.constant 0 : i32
    return %arg0, %c0_i32, %c0_i32_0 : i32, i32, i32
  }
}

</mosaic_0001>

<bundles_post_ra>
// kernel: lenet_v2_forward.1
= control target key start
LH: loop header
LB: loop body
LE: loop exit
PB: predicated region body
PF: predicated region fallthrough
CT: control target
= control target key end

     0   :  { %s22979_s0 = inlined_call_operand.vmem [shape: bf16[2,784,32], index: 0, kind: input, shape index: {}]   ;;  %s22980_s1 = inlined_call_operand.vmem [shape: bf16[32,128], index: 1, kind: input, shape index: {}]   ;;  %s22981_s2 = inlined_call_operand.vmem [shape: f32[1,128], index: 2, kind: input, shape index: {}]   ;;  %s22982_s3 = inlined_call_operand.vmem [shape: bf16[200,128], index: 3, kind: input, shape index: {}]   ;;  %s22983_s4 = inlined_call_operand.vmem [shape: f32[1,128], index: 4, kind: input, shape index: {}]   ;;  %s22984_s5 = inlined_call_operand.vmem [shape: bf16[400,128], index: 5, kind: input, shape index: {}]   ;;  %s22985_s6 = inlined_call_operand.vmem [shape: f32[1,128], index: 6, kind: input, shape index: {}]   ;;  %s22986_s7 = inlined_call_operand.hbm [shape: f32[2,1,128], index: 7, kind: output, shape index: {}]  }
   0x1   :  { %23232 = sst [smem:[#allocation163_spill]] %s22979_s0 }
   0x2   :  { %23233 = sst [smem:[#allocation164_spill]] %s22980_s1 }
   0x3   :  { %12 = vsyncpa [#allocation3], 0 }
   0x4   :  { %14 = vsyncpa [#allocation3 + $0x1], 0  ;;  %s16235_s24 = smov 0   ;;  %s16237_s25 = smov 0  }
   0x5   :  { %s16239_s26 = smov 0   ;;  %s16241_s27 = smov 0  }
   0x6 LB: > { %s16256_s28 = sadd.s32 4294967295, %s16173_s27   ;;  %s15025_s29 = sadd.s32 4294967294, %s16173_s27   ;;  %s16173_s27 = sphi %s16241_s27, %s24333_s27   ;;  %s16169_s26 = sphi %s16239_s26, %s24332_s26   ;;  %s16165_s25 = sphi %s16237_s25, %s24331_s25   ;;  %s16161_s24 = sphi %s16235_s24, %s24330_s24  }
   0x7   : > { %s16260_s30 = sadd.s32 1, %s16173_s27   ;;  %s179_s8 = sadd.s32 1, %s16169_s26 }
   0x8   : > { %s176_s9 = ssub.s32 %s16173_s27, %s16260_s30  ;;  %p189_p0 = scmp.ne.s32.totalorder %s16169_s26, %s16165_s25 }
   0x9   : > { %p177_p1 = scmp.eq.s32.totalorder %s176_s9, 0  ;;  %p190_p2 = scmp.eq.s32.totalorder %s16256_s28, 1 }
   0xa   : > { %p195_p3 = scmp.ne.s32.totalorder %s16165_s25, %s16161_s24  ;;  %p196_p4 = scmp.eq.s32.totalorder %s15025_s29, 1 }
   0xb   : > { %s16271_s10 = scalar_select %p177_p1, %s16169_s26, %s179_s8  }
   0xc   : > { %p16273_p5 = por %p190_p2, %p189_p0  ;;  %p16277_p6 = por %p196_p4, %p195_p3 }
   0xd   : > { %p15028_p7 = scmp.ge.s32.totalorder %s16173_s27, 1  ;;  %p240_p8 = scmp.lt.s32.totalorder %s16173_s27, 3 }
   0xf   : > { %p241_p9 = pnand %p15028_p7, %p240_p8 }
  0x11   : > { %244 = sbr.rel (%p241_p9) target bundleno = 1913 (0x779), region = 48 }
  0x16   : > { %s23236_s1 = sld [smem:[#allocation164_spill]]  ;;  %v16175_v1 = vmov 0.0   ;;  %p271_p10 = scmp.lt.s32.totalorder %s16256_s28, 1  ;;  %vm16176_vm0 = vmmov 0   ;;  %vm643_vm1 = vcmask 261120   ;;  %vm8746_vm2 = vcmask 1041409  }
  0x17   : > { %15756 = vmatprep.subr.bf16.mxu0 %v16175_v1  ;;  %15956 = vmatprep.subr.bf16.mxu1 %v16175_v1  ;;  %s23237_s0 = sld [smem:[#allocation163_spill]]  ;;  %v16474_v46 = vld [vmem:[%s22981_s2] ss:$0 sm:$0xff]  ;;  %vm8749_vm3 = vcmask 1042434   ;;  %vm8752_vm4 = vcmask 1043459   ;;  %vm23226_vm5 = vcmask 1044484  }
  0x18   : > { %15760 = vmatprep.mubr.msk.bf16.mxu0 %vm16176_vm0, %v16175_v1  ;;  %15884 = vmatprep.mubr.msk.bf16.mxu1 %vm16176_vm0, %v16175_v1  ;;  %s272_s17 = scalar_select %p271_p10, %s16256_s28, 1  ;;  %vm23222_vm6 = vcmask 1045509   ;;  %vm8761_vm7 = vcmask 1046534   ;;  %vm8764_vm8 = vcmask 1047559   ;;  %vm23218_vm9 = vcmask 64512  }
  0x19   : > { %s23125_s29 = smov 8   ;;  %s23203_s8 = smov 16   ;;  %vm23220_vm10 = vcmask 130048   ;;  %vm23223_vm11 = vcmask 195584   ;;  %vm13406_vm12 = vcmask 1043456   ;;  %vm11430_vm13 = vcmask 326656  }
  0x1a   : > { %s15960_s18 = smul.u32 392, %s272_s17  ;;  %s23214_s9 = smov 24   ;;  %vm23228_vm14 = vcmask 457728   ;;  %vm11451_vm15 = vcmask 392192  }
  0x1b   : > { %s23170_s13 = smov 40   ;;  %s23127_s14 = smov 88  }
  0x1c   : > { %v16019_v0 = vld [vmem:[%s23236_s1 + $0x8] sm:$0xff]   ;;  %v16020_v2 = vld [vmem:[%s23236_s1] sm:$0xff]   ;;  %s23129_s15 = smov 48   ;;  %s23046_s16 = smov 32  }
  0x1d   : > { %15757 = vmatpush3.bf16.msra.mxu0 %v16019_v0  ;;  %15958 = vmatpush3.bf16.msra.mxu1 %v16019_v0  ;;  %s16302_s21 = scalar_lea.vmem %s23237_s0, %s15960_s18  ;;  %s23048_s17 = smov 120  }
  0x1e   : > { %15758 = vmatprep.subr.bf16.mxu0 %v16175_v1  ;;  %15957 = vmatprep.subr.bf16.mxu1 %v16175_v1  ;;  %v16021_v3 = vld [vmem:[%s16302_s21] sm:$0xff]   ;;  %v16022_v4 = vld [vmem:[%s16302_s21 + $0xf8] sm:$0xff]   ;;  %v16023_v5 = vld [vmem:[%s16302_s21 + $0x8] sm:$0xff]   ;;  %s23210_s18 = smov 80   ;;  %s23201_s19 = smov 96  }
  0x1f   : > { %v16024_v6 = vld [vmem:[%s16302_s21 + $0x100] sm:$0xff]   ;;  %v16025_v7 = vld [vmem:[%s16302_s21 + $0x10] sm:$0xff]   ;;  %v16026_v8 = vld [vmem:[%s16302_s21 + $0x108] sm:$0xff]   ;;  %s23194_s20 = smov 56   ;;  %s23199_s23 = smov 104  }
  0x20   : > { %v16027_v9 = vld [vmem:[%s16302_s21 + $0x18] sm:$0xff]   ;;  %v16028_v10 = vld [vmem:[%s16302_s21 + $0x110] sm:$0xff]   ;;  %v16029_v11 = vld [vmem:[%s16302_s21 + $0x20] sm:$0xff]   ;;  %s23038_s22 = smov 112   ;;  %s23973_s0 = smov 104  }
  0x21   : > { %15759 = vmatpush3.bf16.msra.mxu0 %v16020_v2  ;;  %15959 = vmatpush3.bf16.msra.mxu1 %v16020_v2  ;;  %v16030_v12 = vld [vmem:[%s16302_s21 + $0x118] sm:$0xff]   ;;  %v16031_v13 = vld [vmem:[%s16302_s21 + $0x28] sm:$0xff]   ;;  %v16032_v14 = vld [vmem:[%s16302_s21 + $0x120] sm:$0xff]   ;;  %s23990_s1 = smov 72  }
  0x22   : > { %v16033_v15 = vld [vmem:[%s16302_s21 + $0x30] sm:$0xff]   ;;  %v16034_v16 = vld [vmem:[%s16302_s21 + $0x128] sm:$0xff]   ;;  %v16035_v17 = vld [vmem:[%s16302_s21 + $0x38] sm:$0xff]  }
  0x23   : > { %v16036_v18 = vld [vmem:[%s16302_s21 + $0x130] sm:$0xff]   ;;  %v16037_v19 = vld [vmem:[%s16302_s21 + $0x40] sm:$0xff]   ;;  %v16038_v20 = vld [vmem:[%s16302_s21 + $0x138] sm:$0xff]  }
  0x24   : > { %15761 = vmatmul.mubr.msk.bf16.vlgmr.msra.gmra.mxu0 %vm643_vm1, %v16021_v3  ;;  %15885 = vmatmul.mubr.msk.bf16.vlgmr.msra.gmra.mxu1 %vm643_vm1, %v16022_v4  ;;  %v16039_v21 = vld [vmem:[%s16302_s21 + $0x48] sm:$0xff]   ;;  %v16040_v22 = vld [vmem:[%s16302_s21 + $0x140] sm:$0xff]   ;;  %v16041_v23 = vld [vmem:[%s16302_s21 + $0x50] sm:$0xff]  }
  0x25   : > { %15764 = vmatprep.mubr.msk.bf16.mxu0 %vm16176_vm0, %v16175_v1  ;;  %15888 = vmatprep.mubr.msk.bf16.mxu1 %vm16176_vm0, %v16175_v1  ;;  %v16042_v24 = vld [vmem:[%s16302_s21 + $0x148] sm:$0xff]   ;;  %v16043_v25 = vld [vmem:[%s16302_s21 + $0x58] sm:$0xff]   ;;  %v16052_v26 = vld [vmem:[%s16302_s21 + $0x150] sm:$0xff]  }
  0x26   : > { %v16044_v27 = vld [vmem:[%s16302_s21 + $0x60] sm:$0xff]   ;;  %v16054_v28 = vld [vmem:[%s16302_s21 + $0x158] sm:$0xff]   ;;  %v16045_v29 = vld [vmem:[%s16302_s21 + $0x68] sm:$0xff]  }
  0x27   : > { %v16056_v30 = vld [vmem:[%s16302_s21 + $0x160] sm:$0xff]   ;;  %v16046_v31 = vld [vmem:[%s16302_s21 + $0x70] sm:$0xff]   ;;  %v16058_v32 = vld [vmem:[%s16302_s21 + $0x168] sm:$0xff]  }
  0x28   : > { %v16047_v33 = vld [vmem:[%s16302_s21 + $0x78] sm:$0xff]   ;;  %v16060_v34 = vld [vmem:[%s16302_s21 + $0x170] sm:$0xff]   ;;  %v16048_v35 = vld [vmem:[%s16302_s21 + $0x80] sm:$0xff]  }
  0x29   : > { %v16062_v36 = vld [vmem:[%s16302_s21 + $0x178] sm:$0xff]   ;;  %v16049_v37 = vld [vmem:[%s16302_s21 + $0x88] sm:$0xff]   ;;  %v16064_v38 = vld [vmem:[%s16302_s21 + $0x180] sm:$0xff]  }
  0x2a   : > { %v16050_v39 = vld [vmem:[%s16302_s21 + $0x90] sm:$0xff]   ;;  %v16051_v40 = vld [vmem:[%s16302_s21 + $0x98] sm:$0xff]   ;;  %v16053_v41 = vld [vmem:[%s16302_s21 + $0xa0] sm:$0xff]  }
  0x2b   : > { %v16055_v42 = vld [vmem:[%s16302_s21 + $0xa8] sm:$0xff]   ;;  %v16057_v43 = vld [vmem:[%s16302_s21 + $0xb0] sm:$0xff]   ;;  %v16059_v44 = vld [vmem:[%s16302_s21 + $0xb8] sm:$0xff]  }
  0x2c   : > { %15765 = vmatmul.mubr.msk.bf16.gmra.mxu0 %vm643_vm1, %v16023_v5  ;;  %15889 = vmatmul.mubr.msk.bf16.gmra.mxu1 %vm643_vm1, %v16024_v6  ;;  %v16061_v45 = vld [vmem:[%s16302_s21 + $0xc0] sm:$0xff]   ;;  %v16063_v54 = vld [vmem:[%s16302_s21 + $0xc8] sm:$0xff]  }
  0x2d   : > { %15768 = vmatprep.mubr.msk.bf16.mxu0 %vm16176_vm0, %v16175_v1  ;;  %15892 = vmatprep.mubr.msk.bf16.mxu1 %vm16176_vm0, %v16175_v1 }
  0x34   : > { %15769 = vmatmul.mubr.msk.bf16.gmra.mxu0 %vm643_vm1, %v16025_v7  ;;  %15893 = vmatmul.mubr.msk.bf16.gmra.mxu1 %vm643_vm1, %v16026_v8  ;;  %v16065_v8 = vld [vmem:[%s16302_s21 + $0xd0] sm:$0xff]  }
  0x35   : > { %15772 = vmatprep.mubr.msk.bf16.mxu0 %vm16176_vm0, %v16175_v1  ;;  %15896 = vmatprep.mubr.msk.bf16.mxu1 %vm16176_vm0, %v16175_v1 }
  0x3c   : > { %15773 = vmatmul.mubr.msk.bf16.gmra.mxu0 %vm643_vm1, %v16027_v9  ;;  %15897 = vmatmul.mubr.msk.bf16.gmra.mxu1 %vm643_vm1, %v16028_v10  ;;  %v16177_v9 = vmov 1966171168  }
  0x3d   : > { %15776 = vmatprep.mubr.msk.bf16.mxu0 %vm16176_vm0, %v16175_v1  ;;  %15900 = vmatprep.mubr.msk.bf16.mxu1 %vm16176_vm0, %v16175_v1  ;;  %v1414_v10 = vunpack.c.l.s4 %v16177_v9 }
  0x44   : > { %15777 = vmatmul.mubr.msk.bf16.gmra.mxu0 %vm643_vm1, %v16029_v11  ;;  %15901 = vmatmul.mubr.msk.bf16.gmra.mxu1 %vm643_vm1, %v16030_v12  ;;  %v1416_v11 = vlaneseq }
  0x45   : > { %15780 = vmatprep.mubr.msk.bf16.mxu0 %vm16176_vm0, %v16175_v1  ;;  %15904 = vmatprep.mubr.msk.bf16.mxu1 %vm16176_vm0, %v16175_v1 }
  0x4c   : > { %15781 = vmatmul.mubr.msk.bf16.gmra.mxu0 %vm643_vm1, %v16031_v13  ;;  %15905 = vmatmul.mubr.msk.bf16.gmra.mxu1 %vm643_vm1, %v16032_v14 }
  0x4d   : > { %15784 = vmatprep.mubr.msk.bf16.mxu0 %vm16176_vm0, %v16175_v1  ;;  %15908 = vmatprep.mubr.msk.bf16.mxu1 %vm16176_vm0, %v16175_v1 }
  0x54   : > { %15785 = vmatmul.mubr.msk.bf16.gmra.mxu0 %vm643_vm1, %v16033_v15  ;;  %15909 = vmatmul.mubr.msk.bf16.gmra.mxu1 %vm643_vm1, %v16034_v16  ;;  %v1415_v16 = vunpack.c.0.s8 %v1414_v10 }
  0x55   : > { %15788 = vmatprep.mubr.msk.bf16.mxu0 %vm16176_vm0, %v16175_v1  ;;  %15912 = vmatprep.mubr.msk.bf16.mxu1 %vm16176_vm0, %v16175_v1 }
  0x5c   : > { %15789 = vmatmul.mubr.msk.bf16.gmra.mxu0 %vm643_vm1, %v16035_v17  ;;  %15913 = vmatmul.mubr.msk.bf16.gmra.mxu1 %vm643_vm1, %v16036_v18  ;;  %v1417_v17 = vshrl.u32 %v1416_v11, 7 }
  0x5d   : > { %15792 = vmatprep.mubr.msk.bf16.mxu0 %vm16176_vm0, %v16175_v1  ;;  %15916 = vmatprep.mubr.msk.bf16.mxu1 %vm16176_vm0, %v16175_v1 }
  0x64   : > { %15793 = vmatmul.mubr.msk.bf16.gmra.mxu0 %vm643_vm1, %v16037_v19  ;;  %15917 = vmatmul.mubr.msk.bf16.gmra.mxu1 %vm643_vm1, %v16038_v20 }
  0x65   : > { %15796 = vmatprep.mubr.msk.bf16.mxu0 %vm16176_vm0, %v16175_v1  ;;  %15920 = vmatprep.mubr.msk.bf16.mxu1 %vm16176_vm0, %v16175_v1 }
  0x6c   : > { %15797 = vmatmul.mubr.msk.bf16.gmra.mxu0 %vm643_vm1, %v16039_v21  ;;  %15921 = vmatmul.mubr.msk.bf16.gmra.mxu1 %vm643_vm1, %v16040_v22  ;;  %v16066_v22 = vld [vmem:[%s16302_s21 + $0xd8] sm:$0xff]  }
  0x6d   : > { %15800 = vmatprep.mubr.msk.bf16.mxu0 %vm16176_vm0, %v16175_v1  ;;  %15924 = vmatprep.mubr.msk.bf16.mxu1 %vm16176_vm0, %v16175_v1 }
  0x74   : > { %15801 = vmatmul.mubr.msk.bf16.gmra.mxu0 %vm643_vm1, %v16041_v23  ;;  %15925 = vmatmul.mubr.msk.bf16.gmra.mxu1 %vm643_vm1, %v16042_v24  ;;  %v16497_v23 = vsub.s32 %v1415_v16, %v1417_v17 }
  0x75   : > { %15804 = vmatprep.mubr.msk.bf16.mxu0 %vm16176_vm0, %v16175_v1  ;;  %15928 = vmatprep.mubr.msk.bf16.mxu1 %vm16176_vm0, %v16175_v1 }
  0x7c   : > { %15805 = vmatmul.mubr.msk.bf16.gmra.mxu0 %vm643_vm1, %v16043_v25  ;;  %15929 = vmatmul.mubr.msk.bf16.gmra.mxu1 %vm643_vm1, %v16052_v26 }
  0x7d   : > { %15808 = vmatprep.mubr.msk.bf16.mxu0 %vm16176_vm0, %v16175_v1  ;;  %15932 = vmatprep.mubr.msk.bf16.mxu1 %vm16176_vm0, %v16175_v1 }
  0x84   : > { %15809 = vmatmul.mubr.msk.bf16.gmra.mxu0 %vm643_vm1, %v16044_v27  ;;  %15933 = vmatmul.mubr.msk.bf16.gmra.mxu1 %vm643_vm1, %v16054_v28 }
  0x85   : > { %15812 = vmatprep.mubr.msk.bf16.mxu0 %vm16176_vm0, %v16175_v1  ;;  %15936 = vmatprep.mubr.msk.bf16.mxu1 %vm16176_vm0, %v16175_v1 }
  0x8c   : > { %15813 = vmatmul.mubr.msk.bf16.gmra.mxu0 %vm643_vm1, %v16045_v29  ;;  %15937 = vmatmul.mubr.msk.bf16.gmra.mxu1 %vm643_vm1, %v16056_v30 }
  0x8d   : > { %15816 = vmatprep.mubr.msk.bf16.mxu0 %vm16176_vm0, %v16175_v1  ;;  %15940 = vmatprep.mubr.msk.bf16.mxu1 %vm16176_vm0, %v16175_v1 }
  0x94   : > { %15817 = vmatmul.mubr.msk.bf16.gmra.mxu0 %vm643_vm1, %v16046_v31  ;;  %15941 = vmatmul.mubr.msk.bf16.gmra.mxu1 %vm643_vm1, %v16058_v32 }
  0x95   : > { %15820 = vmatprep.mubr.msk.bf16.mxu0 %vm16176_vm0, %v16175_v1  ;;  %15944 = vmatprep.mubr.msk.bf16.mxu1 %vm16176_vm0, %v16175_v1 }
  0x9c   : > { %15821 = vmatmul.mubr.msk.bf16.gmra.mxu0 %vm643_vm1, %v16047_v33  ;;  %15945 = vmatmul.mubr.msk.bf16.gmra.mxu1 %vm643_vm1, %v16060_v34 }
  0x9d   : > { %15824 = vmatprep.mubr.msk.bf16.mxu0 %vm16176_vm0, %v16175_v1  ;;  %15948 = vmatprep.mubr.msk.bf16.mxu1 %vm16176_vm0, %v16175_v1 }
  0xa4   : > { %15825 = vmatmul.mubr.msk.bf16.gmra.mxu0 %vm643_vm1, %v16048_v35  ;;  %15949 = vmatmul.mubr.msk.bf16.gmra.mxu1 %vm643_vm1, %v16062_v36 }
  0xa5   : > { %15828 = vmatprep.mubr.msk.bf16.mxu0 %vm16176_vm0, %v16175_v1  ;;  %15952 = vmatprep.mubr.msk.bf16.mxu1 %vm16176_vm0, %v16175_v1 }
  0xac   : > { %15829 = vmatmul.mubr.msk.bf16.gmra.mxu0 %vm643_vm1, %v16049_v37  ;;  %15953 = vmatmul.mubr.msk.bf16.gmra.mxu1 %vm643_vm1, %v16064_v38 }
  0xad   : > { %15832 = vmatprep.mubr.msk.bf16.mxu0 %vm16176_vm0, %v16175_v1 }
  0xb4   : > { %15833 = vmatmul.mubr.msk.bf16.gmra.mxu0 %vm643_vm1, %v16050_v39 }
  0xb5   : > { %15836 = vmatprep.mubr.msk.bf16.mxu0 %vm16176_vm0, %v16175_v1 }
  0xbc   : > { %15837 = vmatmul.mubr.msk.bf16.gmra.mxu0 %vm643_vm1, %v16051_v40 }
  0xbd   : > { %15840 = vmatprep.mubr.msk.bf16.mxu0 %vm16176_vm0, %v16175_v1 }
  0xc4   : > { %15841 = vmatmul.mubr.msk.bf16.gmra.mxu0 %vm643_vm1, %v16053_v41 }
  0xc5   : > { %15844 = vmatprep.mubr.msk.bf16.mxu0 %vm16176_vm0, %v16175_v1 }
  0xcc   : > { %15845 = vmatmul.mubr.msk.bf16.gmra.mxu0 %vm643_vm1, %v16055_v42 }
  0xcd   : > { %15848 = vmatprep.mubr.msk.bf16.mxu0 %vm16176_vm0, %v16175_v1 }
  0xd4   : > { %15849 = vmatmul.mubr.msk.bf16.gmra.mxu0 %vm643_vm1, %v16057_v43 }
  0xd5   : > { %15852 = vmatprep.mubr.msk.bf16.mxu0 %vm16176_vm0, %v16175_v1 }
  0xdc   : > { %15853 = vmatmul.mubr.msk.bf16.gmra.mxu0 %vm643_vm1, %v16059_v44 }
  0xdd   : > { %15856 = vmatprep.mubr.msk.bf16.mxu0 %vm16176_vm0, %v16175_v1 }
  0xe4   : > { %v825_v47 = vpop.f32.mrf.mxu0  ;;  %15857 = vmatmul.mubr.msk.bf16.gmra.mxu0 %vm643_vm1, %v16061_v45  ;;  %v1073_v48 = vpop.f32.mrf.mxu1 }
  0xe5   : > { %15860 = vmatprep.mubr.msk.bf16.mxu0 %vm16176_vm0, %v16175_v1  ;;  %v1074_v49 = vadd.f32 %v16474_v46, %v1073_v48  ;;  %v826_v51 = vadd.f32 %v16474_v46, %v825_v47 }
  0xe6   : > { %v15762_v50 = vpop.f32.mrf.mxu0  ;;  %v15886_v52 = vpop.f32.mrf.mxu1 }
  0xe7   : > { %v1278_v57 = vmax.f32 %v1074_v49, 0.0  ;;  %v1216_v60 = vmax.f32 %v826_v51, 0.0  ;;  %v16067_v49 = vld [vmem:[%s16302_s21 + $0xe0] sm:$0xff]  }
  0xe8   : > { %v828_v53 = vpop.f32.mrf.mxu0  ;;  %v1076_v56 = vpop.f32.mrf.mxu1 }
  0xe9   : > { %v829_v55 = vadd.f32 %v16474_v46, %v828_v53  ;;  %v1077_v58 = vadd.f32 %v16474_v46, %v1076_v56 }
  0xea   : > { %v15763_v59 = vpop.f32.mrf.mxu0  ;;  %v15887_v62 = vpop.f32.mrf.mxu1 }
  0xeb   : > { %v1217_v61 = vmax.f32 %v829_v55, 0.0  ;;  %v16484_v63 = vmax.f32 %v1077_v58, 0.0 }
  0xec   : > { %v833_v0 = vpop.f32.mrf.mxu0  ;;  %15861 = vmatmul.mubr.msk.bf16.gmra.mxu0 %vm643_vm1, %v16063_v54  ;;  %v1081_v3 = vpop.f32.mrf.mxu1 }
  0xed   : > { %v1314_v2 = vpack.c.bf16 %v1217_v61, %v1216_v60  ;;  %15864 = vmatprep.mubr.msk.bf16.mxu0 %vm16176_vm0, %v16175_v1  ;;  %v16490_v4 = vpack.c.bf16 %v16484_v63, %v1278_v57  ;;  %v1082_v24 = vadd.f32 %v16474_v46, %v1081_v3  ;;  %v15131_v27 = vpack.c.bf16 %v1217_v61, %v1217_v61 }
  0xee   : > { %v15766_v5 = vpop.f32.mrf.mxu0  ;;  %v15890_v6 = vpop.f32.mrf.mxu1  ;;  %v834_v29 = vadd.f32 %v16474_v46, %v833_v0  ;;  %v15162_v50 = vpack.c.bf16 %v16484_v63, %v16484_v63 }
  0xef   : > { %23238 = vst [vmem:[#allocation5_spill] sm:$0xff] %v16490_v4  ;;  %v1419_v31 = vrot.slane %v1314_v2, %v16497_v23  ;;  %v1280_v32 = vmax.f32 %v1082_v24, 0.0  ;;  %v1426_v39 = vrot.slane %v15131_v27, %v16497_v23 }
  0xf0   : > { %v836_v7 = vpop.f32.mrf.mxu0  ;;  %v1084_v12 = vpop.f32.mrf.mxu1  ;;  %v1218_v43 = vmax.f32 %v834_v29, 0.0  ;;  %v2945_v5 = vrot.slane %v15162_v50, %v16497_v23 }
  0xf1   : > { %v837_v34 = vadd.f32 %v16474_v46, %v836_v7  ;;  %v1085_v35 = vadd.f32 %v16474_v46, %v1084_v12  ;;  %v1427_v55 = vcombine.high %v1419_v31, %v1419_v31  ;;  %v1428_v60 = vcombine.high %v1426_v39, %v1426_v39 }
  0xf2   : > { %v15767_v13 = vpop.f32.mrf.mxu0  ;;  %v15891_v14 = vpop.f32.mrf.mxu1  ;;  %v1435_v3 = vrot.slane %v1419_v31, %v16497_v23  ;;  %v1442_v7 = vrot.slane %v1426_v39, %v16497_v23 }
  0xf3   : > { %v1219_v44 = vmax.f32 %v837_v34, 0.0  ;;  %v16516_v45 = vmax.f32 %v1085_v35, 0.0  ;;  %v1456_v12 = vrot.slane %v1428_v60, %v16497_v23 }
  0xf4   : > { %v841_v15 = vpop.f32.mrf.mxu0  ;;  %15865 = vmatmul.mubr.msk.bf16.gmra.mxu0 %vm643_vm1, %v16065_v8  ;;  %v1089_v18 = vpop.f32.mrf.mxu1  ;;  %v1449_v8 = vrot.slane %v1427_v55, %v16497_v23  ;;  %v4226_v35 = vshrl.u32 %v1442_v7, 16 }
  0xf5   : > { %15868 = vmatprep.mubr.msk.bf16.mxu0 %vm16176_vm0, %v16175_v1  ;;  %v842_v36 = vadd.f32 %v16474_v46, %v841_v15  ;;  %v1090_v37 = vadd.f32 %v16474_v46, %v1089_v18  ;;  %v1315_v56 = vpack.c.bf16 %v1219_v44, %v1218_v43  ;;  %v15132_v57 = vpack.c.bf16 %v1219_v44, %v1219_v44  ;;  %v16068_v18 = vld [vmem:[%s16302_s21 + $0xe8] sm:$0xff]  }
  0xf6   : > { %v15770_v19 = vpop.f32.mrf.mxu0  ;;  %v15894_v20 = vpop.f32.mrf.mxu1  ;;  %v16530_v58 = vpack.c.bf16 %v16516_v45, %v1280_v32  ;;  %v4211_v24 = vshrl.u32 %v1449_v8, 16  ;;  %v1460_v29 = vcombine.high %v1456_v12, %v1456_v12 }
  0xf7   : > { %v1282_v47 = vmax.f32 %v1090_v37, 0.0  ;;  %v1220_v51 = vmax.f32 %v842_v36, 0.0  ;;  %v1475_v0 = vrot.slane %v15132_v57, %v16497_v23  ;;  %v1468_v13 = vrot.slane %v1315_v56, %v16497_v23 }
  0xf8   : > { %v844_v21 = vpop.f32.mrf.mxu0  ;;  %v1092_v25 = vpop.f32.mrf.mxu1  ;;  %v1457_v19 = vcombine.high %v1435_v3, %v1435_v3  ;;  %v4206_v20 = vshrl.u32 %v1435_v3, 16  ;;  %v16566_v36 = vrot.slane %v2945_v5, %v16497_v23  ;;  %v16584_v50 = vadd.bf16 %v4211_v24, %v1449_v8 }
  0xf9   : > { %v845_v40 = vadd.f32 %v16474_v46, %v844_v21  ;;  %v1093_v41 = vadd.f32 %v16474_v46, %v1092_v25  ;;  %v1477_v9 = vcombine.high %v1475_v0, %v1475_v0  ;;  %v16549_v10 = vrot.slane %v1475_v0, %v16497_v23 }
  0xfa   : > { %v15771_v26 = vpop.f32.mrf.mxu0  ;;  %v15895_v28 = vpop.f32.mrf.mxu1  ;;  %v2947_v25 = vcombine.high %v2945_v5, %v2945_v5  ;;  %v1476_v31 = vcombine.high %v1468_v13, %v1468_v13  ;;  %v4241_v56 = vshrl.u32 %v1460_v29, 16 }
  0xfb   : > { %v16523_v52 = vmax.f32 %v845_v40, 0.0  ;;  %v16525_v53 = vmax.f32 %v1093_v41, 0.0  ;;  %v16554_v15 = vrot.slane %v1477_v9, %v16497_v23  ;;  %v1507_v16 = vcombine.high %v16549_v10, %v16549_v10 }
  0xfc   : > { %v16501_v30 = vpop.f32.mrf.mxu0  ;;  %15869 = vmatmul.mubr.msk.bf16.gmra.mxu0 %vm643_vm1, %v16066_v22  ;;  %v16505_v33 = vpop.f32.mrf.mxu1  ;;  %v1458_v22 = vcombine.high %v1442_v7, %v1442_v7  ;;  %v1459_v28 = vcombine.high %v1449_v8, %v1449_v8  ;;  %v4216_v40 = vshrl.u32 %v1457_v19, 16  ;;  %v16573_v41 = vadd.bf16 %v4206_v20, %v1435_v3  ;;  %v16069_v8 = vld [vmem:[%s16302_s21 + $0xf0] sm:$0xff]   ;;  %s23192_s21 = smov 64  }
  0xfd   : > { %15872 = vmatprep.mubr.msk.bf16.mxu0 %vm16176_vm0, %v16175_v1  ;;  %v1316_v61 = vpack.c.bf16 %v16523_v52, %v1220_v51  ;;  %v16534_v62 = vpack.c.bf16 %v16525_v53, %v1282_v47  ;;  %23239 = vst [vmem:[#allocation6_spill] sm:$0xff] %v16554_v15  ;;  %v1509_v26 = vcombine.high %v16554_v15, %v16554_v15  ;;  %v4276_v32 = vshrl.u32 %v1507_v16, 16 }
  0xfe   : > { %v15774_v38 = vpop.f32.mrf.mxu0  ;;  %v15898_v42 = vpop.f32.mrf.mxu1  ;;  %23240 = vst [vmem:[#allocation7_spill] sm:$0xff] %v16573_v41  ;;  %v4231_v47 = vshrl.u32 %v1456_v12, 16  ;;  %v4221_v55 = vshrl.u32 %v1459_v28, 16  ;;  %v16589_v57 = vrot.slane %v1476_v31, %v16497_v23  ;;  %v16603_v9 = vadd.bf16 %v4226_v35, %v1442_v7 }
  0xff   : > { %v4281_v37 = vshrl.u32 %v1509_v26, 16  ;;  %v15133_v38 = vpack.c.bf16 %v16523_v52, %v16523_v52  ;;  %v16576_v42 = vrot.slane %v1468_v13, %v16497_v23  ;;  %v16578_v43 = vadd.bf16 %v4276_v32, %v1507_v16 }
 0x100   : > { %v16518_v48 = vpop.f32.mrf.mxu0  ;;  %v16527_v54 = vpop.f32.mrf.mxu1  ;;  %v1517_v0 = vrot.slane %v1316_v61, %v16497_v23  ;;  %v16608_v13 = vrot.slane %v16530_v58, %v16497_v23  ;;  %v16616_v61 = vadd.bf16 %v4231_v47, %v1456_v12  ;;  %v16622_v7 = vcombine.high %v16566_v36, %v16566_v36 }
 0x101   : > { %23241 = vst [vmem:[#allocation8_spill] sm:$0xff] %v16578_v43  ;;  %v16586_v51 = vadd.bf16 %v4281_v37, %v1509_v26  ;;  %v1524_v3 = vrot.slane %v15133_v38, %v16497_v23  ;;  %v16626_v58 = vadd.bf16 %v4241_v56, %v1460_v29  ;;  %v4251_v26 = vshrl.u32 %v16589_v57, 16 }
 0x102   : > { %v15775_v59 = vpop.f32.mrf.mxu0  ;;  %v15899_v63 = vpop.f32.mrf.mxu1  ;;  %v1533_v31 = vrot.slane %v1517_v0, %v16497_v23 }
 0x103   : > { %v16594_v63 = vrot.slane %v2947_v25, %v16497_v23  ;;  %v16624_v25 = vadd.bf16 %v4221_v55, %v1459_v28  ;;  %v1540_v29 = vrot.slane %v1524_v3, %v16497_v23 }
 0x104   : > { %v16537_v2 = vpop.f32.mrf.mxu0  ;;  %15873 = vmatmul.mubr.msk.bf16.gmra.mxu0 %vm643_vm1, %v16067_v49  ;;  %v16542_v6 = vpop.f32.mrf.mxu1  ;;  %v4236_v49 = vshrl.u32 %v1458_v22, 16  ;;  %v4286_v47 = vshrl.u32 %v1533_v31, 16 }
 0x105   : > { %15876 = vmatprep.mubr.msk.bf16.mxu0 %vm16176_vm0, %v16175_v1  ;;  %v16635_v12 = vcombine.high %v16594_v63, %v16594_v63  ;;  %v1556_v55 = vcombine.high %v1540_v29, %v1540_v29  ;;  %v4306_v56 = vshrl.u32 %v1540_v29, 16 }
 0x106   : > { %v15778_v11 = vpop.f32.mrf.mxu0  ;;  %v15902_v14 = vpop.f32.mrf.mxu1  ;;  %v16618_v20 = vadd.bf16 %v4236_v49, %v1458_v22  ;;  %v1525_v22 = vcombine.high %v1517_v0, %v1517_v0 }
 0x107   : > { %v4246_v11 = vshrl.u32 %v16576_v42, 16  ;;  %v15164_v14 = vpack.c.bf16 %v16525_v53, %v16525_v53  ;;  %v16631_v53 = vrot.slane %v16534_v62, %v16497_v23  ;;  %v2995_v62 = vcombine.high %v16608_v13, %v16608_v13 }
 0x108   : > { %v16558_v17 = vpop.f32.mrf.mxu0  ;;  %v16561_v21 = vpop.f32.mrf.mxu1  ;;  %v1547_v37 = vrot.slane %v1525_v22, %v16497_v23  ;;  %v4316_v22 = vshrl.u32 %v1556_v55, 16 }
 0x109   : > { %v16642_v28 = vadd.bf16 %v4246_v11, %v16576_v42 }
 0x10a   : > { %v15779_v27 = vpop.f32.mrf.mxu0  ;;  %v15903_v34 = vpop.f32.mrf.mxu1  ;;  %v4291_v11 = vshrl.u32 %v1547_v37, 16  ;;  %v16671_v43 = vadd.bf16 %v4316_v22, %v1556_v55  ;;  %v5471_v55 = vshrl.u32 %v16594_v63, 16  ;;  %v16701_v22 = vrot.slane %v2995_v62, %v16497_v23 }
 0x10b   : > { %v1526_v27 = vcombine.high %v1524_v3, %v1524_v3  ;;  %23243 = vst [vmem:[#allocation10_spill] sm:$0xff] %v16642_v28  ;;  %v3043_v34 = vrot.slane %v15164_v14, %v16497_v23  ;;  %v1557_v3 = vcombine.high %v1547_v37, %v1547_v37 }
 0x10c   : > { %v16570_v39 = vpop.f32.mrf.mxu0  ;;  %15877 = vmatmul.mubr.msk.bf16.gmra.mxu0 %vm643_vm1, %v16068_v18  ;;  %v16580_v44 = vpop.f32.mrf.mxu1  ;;  %v16614_v18 = vadd.bf16 %v4216_v40, %v1457_v19  ;;  %v1555_v40 = vcombine.high %v1533_v31, %v1533_v31  ;;  %23248 = vst [vmem:[#allocation15_spill] sm:$0xff] %v16671_v43 }
 0x10d   : > { %15880 = vmatprep.mubr.msk.bf16.mxu0 %vm16176_vm0, %v16175_v1  ;;  %v1554_v38 = vrot.slane %v1526_v27, %v16497_v23  ;;  %v16659_v27 = vadd.bf16 %v4286_v47, %v1533_v31  ;;  %v4301_v59 = vshrl.u32 %v1557_v3, 16  ;;  %v15163_v31 = vpack.c.bf16 %v16516_v45, %v16516_v45 }
 0x10e   : > { %v15782_v52 = vpop.f32.mrf.mxu0  ;;  %v15906_v60 = vpop.f32.mrf.mxu1  ;;  %v4296_v14 = vshrl.u32 %v1555_v40, 16  ;;  %vm23227_vm0 = vcmask 523264  }
 0x10f   : > { %v16653_v52 = vadd.bf16 %v4251_v26, %v16589_v57  ;;  %v3044_v60 = vcombine.high %v16631_v53, %v16631_v53  ;;  %v16677_v47 = vadd.bf16 %v4301_v59, %v1557_v3  ;;  %v16693_v59 = vrot.slane %v16608_v13, %v16497_v23 }
 0x110   : > { %v16600_v5 = vpop.f32.mrf.mxu0  ;;  %v16612_v16 = vpop.f32.mrf.mxu1 }
 0x111   : > { %23245 = vst [vmem:[#allocation12_spill] sm:$0xff] %v16653_v52  ;;  %v16714_v3 = vrot.slane %v3044_v60, %v16497_v23 }
 0x112   : > { %v15783_v24 = vpop.f32.mrf.mxu0  ;;  %v15907_v19 = vpop.f32.mrf.mxu1 }
 0x113   : > { %v4311_v19 = vshrl.u32 %v1554_v38, 16 }
 0x114   : > { %v16638_v32 = vpop.f32.mrf.mxu0  ;;  %15881 = vmatmul.mubr.msk.bf16.gmra.mxu0 %vm643_vm1, %v16069_v8  ;;  %v16648_v35 = vpop.f32.mrf.mxu1  ;;  %v1558_v8 = vcombine.high %v1554_v38, %v1554_v38 }
 0x115   : > { %23242 = vst [vmem:[#allocation9_spill] sm:$0xff] %v16638_v32  ;;  %23244 = vst [vmem:[#allocation11_spill] sm:$0xff] %v16648_v35  ;;  %v16665_v35 = vadd.bf16 %v4291_v11, %v1547_v37  ;;  %v16667_v32 = vadd.bf16 %v4296_v14, %v1555_v40  ;;  %v16669_v41 = vadd.bf16 %v4311_v19, %v1554_v38  ;;  %v5466_v40 = vshrl.u32 %v16566_v36, 16 }
 0x116   : > { %v15786_v49 = vpop.f32.mrf.mxu0  ;;  %v15910_v0 = vpop.f32.mrf.mxu1  ;;  %v4321_v1 = vshrl.u32 %v1558_v8, 16  ;;  %v5476_v19 = vshrl.u32 %v16622_v7, 16  ;;  %v5481_v11 = vshrl.u32 %v16635_v12, 16 }
 0x117   : > { %v16661_v49 = vadd.bf16 %v4306_v56, %v1540_v29  ;;  %v6809_v38 = vadd.bf16 %v5466_v40, %v16566_v36  ;;  %v3076_v36 = vcombine.high %v16714_v3, %v16714_v3  ;;  %v850_v40 = vadd.f32 %v16474_v46, %v16501_v30 }
 0x118   : > { %v16657_v24 = vpop.f32.mrf.mxu0  ;;  %v16663_v26 = vpop.f32.mrf.mxu1  ;;  %v16679_v56 = vadd.bf16 %v4321_v1, %v1558_v8  ;;  %v3045_v8 = vcombine.high %v3043_v34, %v3043_v34  ;;  %v16729_v45 = vadd.bf16 %v5481_v11, %v16635_v12 }
 0x119   : > { %23246 = vst [vmem:[#allocation13_spill] sm:$0xff] %v16657_v24  ;;  %23247 = vst [vmem:[#allocation14_spill] sm:$0xff] %v16663_v26  ;;  %v16723_v24 = vadd.bf16 %v5476_v19, %v16622_v7 }
 0x11a   : > { %v15787_v0 = vpop.f32.mrf.mxu0  ;;  %v15911_v29 = vpop.f32.mrf.mxu1  ;;  %23249 = vst [vmem:[#allocation16_spill] sm:$0xff] %v16679_v56  ;;  %v3073_v37 = vrot.slane %v3045_v8, %v16497_v23  ;;  %23252 = vst [vmem:[#allocation19_spill] sm:$0xff] %v16729_v45 }
 0x11b   : > { %v16705_v0 = vrot.slane %v16631_v53, %v16497_v23  ;;  %v3059_v29 = vrot.slane %v3043_v34, %v16497_v23  ;;  %v6810_v53 = vadd.bf16 %v5471_v55, %v16594_v63  ;;  %v5486_v34 = vshrl.u32 %v16693_v59, 16 }
 0x11c   : > { %v16708_v13 = vpop.f32.mrf.mxu0  ;;  %v16710_v14 = vpop.f32.mrf.mxu1  ;;  %v3077_v63 = vcombine.high %v3073_v37, %v3073_v37  ;;  %v2994_v55 = vrot.slane %v15163_v31, %v16497_v23  ;;  %v5551_v8 = vshrl.u32 %v3073_v37, 16 }
 0x11d   : > { %23250 = vst [vmem:[#allocation17_spill] sm:$0xff] %v16708_v13  ;;  %23251 = vst [vmem:[#allocation18_spill] sm:$0xff] %v16710_v14  ;;  %v5491_v14 = vshrl.u32 %v16701_v22, 16  ;;  %v3074_v60 = vcombine.high %v16705_v0, %v16705_v0  ;;  %v3075_v13 = vcombine.high %v3059_v29, %v3059_v29  ;;  %v16737_v19 = vadd.bf16 %v5486_v34, %v16693_v59 }
 0x11e   : > { %v15790_v62 = vpop.f32.mrf.mxu0  ;;  %v15914_v1 = vpop.f32.mrf.mxu1  ;;  %v5561_v4 = vshrl.u32 %v3077_v63, 16  ;;  %v16744_v52 = vadd.bf16 %v5551_v8, %v3073_v37  ;;  %v853_v34 = vadd.f32 %v16474_v46, %v16518_v48  ;;  %v2996_v48 = vcombine.high %v2994_v55, %v2994_v55 }
 0x11f   : > { %v5536_v7 = vshrl.u32 %v3074_v60, 16  ;;  %v5546_v1 = vshrl.u32 %v3059_v29, 16  ;;  %23253 = vst [vmem:[#allocation20_spill] sm:$0xff] %v16737_v19  ;;  %v5541_v62 = vshrl.u32 %v3076_v36, 16  ;;  %v5556_v26 = vshrl.u32 %v3075_v13, 16 }
 0x120   : > { %v16740_v12 = vadd.bf16 %v5491_v14, %v16701_v22  ;;  %v16748_v31 = vadd.bf16 %v5561_v4, %v3077_v63  ;;  %v1101_v63 = vadd.f32 %v16474_v46, %v16527_v54  ;;  %v1508_v8 = vcombine.high %v16589_v57, %v16589_v57 }
 0x121   : > { %v6823_v11 = vadd.bf16 %v5536_v7, %v3074_v60  ;;  %v16742_v15 = vadd.bf16 %v5546_v1, %v3059_v29  ;;  %v6824_v30 = vadd.bf16 %v5541_v62, %v3076_v36  ;;  %v16746_v56 = vadd.bf16 %v5556_v26, %v3075_v13  ;;  %v16756_v29 = vpop.f32.mrf.mxu0 }
 0x122   : > { %23254 = vst [vmem:[#allocation21_spill] sm:$0xff] %v16740_v12  ;;  %23256 = vst [vmem:[#allocation23_spill] sm:$0xff] %v16748_v31  ;;  %v1222_v60 = vmax.f32 %v850_v40, 0.0  ;;  %v16762_v13 = vmax.f32 %v853_v34, 0.0  ;;  %v1098_v36 = vadd.f32 %v16474_v46, %v16505_v33  ;;  %v16780_v54 = vrot.slane %v2996_v48, %v16497_v23 }
 0x123   : > { %23255 = vst [vmem:[#allocation22_spill] sm:$0xff] %v16746_v56  ;;  %v7075_v28 = vadd.bf16 %v6823_v11, %v6809_v38  ;;  %23257 = vst [vmem:[#allocation24_spill] sm:$0xff] %v16756_v29  ;;  %v7076_v37 = vadd.bf16 %v6824_v30, %v6810_v53  ;;  %v15791_v40 = vpop.f32.mrf.mxu0  ;;  %v1506_v53 = vcombine.high %v16576_v42, %v16576_v42  ;;  %v1285_v42 = vmax.f32 %v1101_v63, 0.0 }
 0x124   : > { %v1317_v1 = vpack.c.bf16 %v16762_v13, %v1222_v60  ;;  %v3010_v11 = vrot.slane %v2994_v55, %v16497_v23  ;;  %v1284_v30 = vmax.f32 %v1098_v36, 0.0  ;;  %v4261_v40 = vshrl.u32 %v1508_v8, 16 }
 0x125   : > { %v8511_v38 = vrot.slane %v7075_v28, %v16497_v23  ;;  %v8525_v7 = vrot.slane %v7076_v37, %v16497_v23  ;;  %v4256_v34 = vshrl.u32 %v1506_v53, 16  ;;  %v3025_v57 = vcombine.high %v16693_v59, %v16693_v59 }
 0x126   : > { %v1566_v33 = vrot.slane %v1317_v1, %v16497_v23  ;;  %v16790_v1 = vpop.f32.mrf.mxu1  ;;  %v3026_v36 = vcombine.high %v3010_v11, %v3010_v11  ;;  %v3028_v63 = vcombine.high %v16780_v54, %v16780_v54  ;;  %v1348_v4 = vpack.c.bf16 %v1285_v42, %v1284_v30 }
 0x127   : > { %v8518_v62 = vrot.slane %v8511_v38, %v16497_v23  ;;  %v8532_v28 = vrot.slane %v8525_v7, %v16497_v23  ;;  %v3027_v38 = vcombine.high %v16701_v22, %v16701_v22  ;;  %23259 = vst [vmem:[#allocation26_spill] sm:$0xff] %v16790_v1  ;;  %v4266_v59 = vshrl.u32 %v16549_v10, 16 }
 0x128   : > { %v1574_v60 = vcombine.high %v1566_v33, %v1566_v33  ;;  %v1582_v48 = vrot.slane %v1566_v33, %v16497_v23  ;;  %v16798_v26 = vadd.bf16 %v4256_v34, %v1506_v53  ;;  %v15915_v14 = vpop.f32.mrf.mxu1  ;;  %v16803_v33 = vadd.bf16 %v4261_v40, %v1508_v8 }
 0x129   : > { %v16782_v37 = vunpack.c.l.b16 %v8532_v28  ;;  %v8735_v7 = vunpack.c.l.b16 %v8518_v62  ;;  %v5496_v43 = vshrl.u32 %v3025_v57, 16  ;;  %v5506_v12 = vshrl.u32 %v3010_v11, 16 }
 0x12a   : > { %v16795_v28 = vrot.slane %v1574_v60, %v16497_v23  ;;  %v1604_v62 = vcombine.high %v1582_v48, %v1582_v48  ;;  %23262 = vst [vmem:[#allocation29_spill] sm:$0xff] %v16803_v33  ;;  %v4326_v1 = vshrl.u32 %v1582_v48, 16  ;;  %v15165_v31 = vpack.c.bf16 %v1285_v42, %v1285_v42 }
 0x12b   : > { %23258 = vst [vmem:[#allocation25_spill] sm:$0xff] %v16782_v37  ;;  %v8896_v55 = vrot.slane %v16782_v37, 7  ;;  %v5501_v37 = vshrl.u32 %v3027_v38, 16  ;;  %v5516_v30 = vshrl.u32 %v3026_v36, 16  ;;  %v5521_v19 = vshrl.u32 %v3028_v63, 16 }
 0x12c   : > { %23260 = vst [vmem:[#allocation27_spill] sm:$0xff] %v16795_v28  ;;  %v4331_v29 = vshrl.u32 %v16795_v28, 16  ;;  %v4336_v60 = vshrl.u32 %v1604_v62, 16  ;;  %v16806_v56 = vadd.bf16 %v4326_v1, %v1582_v48  ;;  %v16812_v34 = vadd.bf16 %v4266_v59, %v16549_v10 }
 0x12d   : > { %v16801_v22 = vsel %vm8746_vm2, %v8896_v55, %v8735_v7  ;;  %v5511_v14 = vshrl.u32 %v16780_v54, 16  ;;  %v5526_v8 = vshrl.u32 %v16705_v0, 16  ;;  %v16818_v7 = vadd.bf16 %v5496_v43, %v3025_v57 }
 0x12e   : > { %23261 = vst [vmem:[#allocation28_spill] sm:$0xff] %v16801_v22  ;;  %v16809_v53 = vadd.bf16 %v4331_v29, %v16795_v28  ;;  %23264 = vst [vmem:[#allocation31_spill] sm:$0xff] %v16812_v34  ;;  %v16816_v40 = vadd.bf16 %v4336_v60, %v1604_v62  ;;  %v3085_v29 = vrot.slane %v1348_v4, %v16497_v23  ;;  %v5531_v55 = vshrl.u32 %v16714_v3, 16 }
 0x12f   : > { %v16825_v48 = vadd.bf16 %v5501_v37, %v3027_v38  ;;  %v16827_v10 = vadd.bf16 %v5506_v12, %v3010_v11  ;;  %v3092_v59 = vrot.slane %v15165_v31, %v16497_v23  ;;  %v16832_v62 = vadd.bf16 %v5516_v30, %v3026_v36 }
 0x130   : > { %23263 = vst [vmem:[#allocation30_spill] sm:$0xff] %v16809_v53  ;;  %23265 = vst [vmem:[#allocation32_spill] sm:$0xff] %v16816_v40  ;;  %v16834_v43 = vadd.bf16 %v5521_v19, %v3028_v63  ;;  %v3093_v57 = vcombine.high %v3085_v29, %v3085_v29  ;;  %v3101_v60 = vrot.slane %v3085_v29, %v16497_v23  ;;  %v16845_v19 = vpop.f32.mrf.mxu0 }
 0x131   : > { %v16839_v4 = vadd.bf16 %v5526_v8, %v16705_v0  ;;  %v3094_v37 = vcombine.high %v3092_v59, %v3092_v59  ;;  %v3108_v12 = vrot.slane %v3092_v59, %v16497_v23  ;;  %v858_v31 = vadd.f32 %v16474_v46, %v16537_v2  ;;  %23267 = vst [vmem:[#allocation34_spill] sm:$0xff] %v16845_v19 }
 0x132   : > { %v3115_v11 = vrot.slane %v3093_v57, %v16497_v23  ;;  %v3123_v38 = vcombine.high %v3101_v60, %v3101_v60  ;;  %v5566_v1 = vshrl.u32 %v3101_v60, 16  ;;  %v861_v0 = vadd.f32 %v16474_v46, %v16558_v17  ;;  %v15794_v57 = vpop.f32.mrf.mxu0 }
 0x133   : > { %23266 = vst [vmem:[#allocation33_spill] sm:$0xff] %v16839_v4  ;;  %v3122_v36 = vrot.slane %v3094_v37, %v16497_v23  ;;  %v3124_v63 = vcombine.high %v3108_v12, %v3108_v12  ;;  %v5586_v30 = vshrl.u32 %v3108_v12, 16 }
 0x134   : > { %v3125_v8 = vcombine.high %v3115_v11, %v3115_v11  ;;  %v5571_v29 = vshrl.u32 %v3115_v11, 16  ;;  %v5576_v42 = vshrl.u32 %v3123_v38, 16  ;;  %v16850_v59 = vadd.bf16 %v5566_v1, %v3101_v60 }
 0x135   : > { %v3126_v28 = vcombine.high %v3122_v36, %v3122_v36  ;;  %v5591_v22 = vshrl.u32 %v3122_v36, 16  ;;  %v5596_v34 = vshrl.u32 %v3124_v63, 16  ;;  %v16852_v40 = vadd.bf16 %v5586_v30, %v3108_v12 }
 0x136   : > { %v5581_v2 = vshrl.u32 %v3125_v8, 16  ;;  %v16854_v19 = vadd.bf16 %v5571_v29, %v3115_v11  ;;  %v16856_v37 = vadd.bf16 %v5576_v42, %v3123_v38  ;;  %v16867_v60 = vadd.bf16 %v5511_v14, %v16780_v54  ;;  %v16875_v38 = vpop.f32.mrf.mxu1 }
 0x137   : > { %v5601_v17 = vshrl.u32 %v3126_v28, 16  ;;  %v16860_v53 = vadd.bf16 %v5591_v22, %v3122_v36  ;;  %v16862_v45 = vadd.bf16 %v5596_v34, %v3124_v63  ;;  %23269 = vst [vmem:[#allocation36_spill] sm:$0xff] %v16875_v38  ;;  %v16877_v22 = vpop.f32.mrf.mxu0  ;;  %v16880_v34 = vadd.bf16 %v5531_v55, %v16714_v3 }
 0x138   : > { %v16869_v12 = vadd.bf16 %v5581_v2, %v3125_v8  ;;  %23270 = vst [vmem:[#allocation37_spill] sm:$0xff] %v16877_v22  ;;  %v15134_v63 = vpack.c.bf16 %v16762_v13, %v16762_v13  ;;  %v1224_v8 = vmax.f32 %v858_v31, 0.0  ;;  %v16892_v29 = vmax.f32 %v861_v0, 0.0  ;;  %v15918_v57 = vpop.f32.mrf.mxu1 }
 0x139   : > { %23268 = vst [vmem:[#allocation35_spill] sm:$0xff] %v16862_v45  ;;  %23271 = vst [vmem:[#allocation38_spill] sm:$0xff] %v16880_v34  ;;  %v16882_v36 = vadd.bf16 %v5601_v17, %v3126_v28  ;;  %v15795_v3 = vpop.f32.mrf.mxu0  ;;  %v1106_v55 = vadd.f32 %v16474_v46, %v16542_v6  ;;  %v1109_v13 = vadd.f32 %v16474_v46, %v16561_v21 }
 0x13a   : > { %v1573_v2 = vrot.slane %v15134_v63, %v16497_v23  ;;  %v1318_v17 = vpack.c.bf16 %v16892_v29, %v1224_v8  ;;  %v866_v31 = vadd.f32 %v16474_v46, %v16570_v39  ;;  %v869_v0 = vadd.f32 %v16474_v46, %v16600_v5  ;;  %v16912_v1 = vpop.f32.mrf.mxu1 }
 0x13b   : > { %23272 = vst [vmem:[#allocation39_spill] sm:$0xff] %v16882_v36  ;;  %v1286_v14 = vmax.f32 %v1106_v55, 0.0  ;;  %v16906_v57 = vmax.f32 %v1109_v13, 0.0  ;;  %23274 = vst [vmem:[#allocation41_spill] sm:$0xff] %v16912_v1  ;;  %v16914_v11 = vpop.f32.mrf.mxu0 }
 0x13c   : > { %v1226_v3 = vmax.f32 %v866_v31, 0.0  ;;  %v1575_v28 = vcombine.high %v1573_v2, %v1573_v2  ;;  %v1227_v54 = vmax.f32 %v869_v0, 0.0  ;;  %v1589_v8 = vrot.slane %v1573_v2, %v16497_v23  ;;  %23275 = vst [vmem:[#allocation42_spill] sm:$0xff] %v16914_v11  ;;  %v15919_v31 = vpop.f32.mrf.mxu1 }
 0x13d   : > { %23273 = vst [vmem:[#allocation40_spill] sm:$0xff] %v16906_v57  ;;  %v1349_v6 = vpack.c.bf16 %v16906_v57, %v1286_v14  ;;  %v1615_v21 = vrot.slane %v1318_v17, %v16497_v23  ;;  %v1114_v14 = vadd.f32 %v16474_v46, %v16580_v44 }
 0x13e   : > { %v1319_v63 = vpack.c.bf16 %v1227_v54, %v1226_v3  ;;  %v1603_v55 = vrot.slane %v1575_v28, %v16497_v23  ;;  %v1605_v30 = vcombine.high %v1589_v8, %v1589_v8  ;;  %v15136_v13 = vpack.c.bf16 %v1227_v54, %v1227_v54  ;;  %v15798_v3 = vpop.f32.mrf.mxu0  ;;  %v16920_v33 = vpop.f32.mrf.mxu1 }
 0x13f   : > { %v1623_v5 = vcombine.high %v1615_v21, %v1615_v21  ;;  %v4346_v42 = vshrl.u32 %v1589_v8, 16  ;;  %23276 = vst [vmem:[#allocation43_spill] sm:$0xff] %v16920_v33  ;;  %v16923_v38 = vrot.slane %v1615_v21, %v16497_v23  ;;  %v1117_v54 = vadd.f32 %v16474_v46, %v16612_v16 }
 0x140   : > { %v1607_v39 = vcombine.high %v1603_v55, %v1603_v55  ;;  %v4351_v0 = vshrl.u32 %v1603_v55, 16  ;;  %v4356_v2 = vshrl.u32 %v1605_v30, 16  ;;  %v1664_v28 = vrot.slane %v1319_v63, %v16497_v23  ;;  %v15922_v11 = vpop.f32.mrf.mxu1 }
 0x141   : > { %v1671_v17 = vrot.slane %v15136_v13, %v16497_v23  ;;  %v16928_v31 = vrot.slane %v1623_v5, %v16497_v23  ;;  %v16930_v44 = vadd.bf16 %v4346_v42, %v1589_v8  ;;  %v1288_v63 = vmax.f32 %v1114_v14, 0.0 }
 0x142   : > { %v4361_v1 = vshrl.u32 %v1607_v39, 16  ;;  %v16932_v3 = vadd.bf16 %v4351_v0, %v1603_v55  ;;  %v16934_v22 = vadd.bf16 %v4356_v2, %v1605_v30  ;;  %v1672_v13 = vcombine.high %v1664_v28, %v1664_v28 }
 0x143   : > { %v1673_v33 = vcombine.high %v1671_v17, %v1671_v17  ;;  %v16937_v34 = vrot.slane %v1664_v28, %v16497_v23  ;;  %v4366_v46 = vshrl.u32 %v16923_v38, 16  ;;  %v1687_v16 = vrot.slane %v1671_v17, %v16497_v23 }
 0x144   : > { %v16939_v21 = vadd.bf16 %v4361_v1, %v1607_v39  ;;  %v1289_v5 = vmax.f32 %v1117_v54, 0.0  ;;  %v4371_v42 = vshrl.u32 %v16928_v31, 16  ;;  %v16945_v11 = vrot.slane %v1672_v13, %v16497_v23  ;;  %v16955_v54 = vpop.f32.mrf.mxu0 }
 0x145   : > { %23277 = vst [vmem:[#allocation44_spill] sm:$0xff] %v16937_v34  ;;  %v1701_v30 = vrot.slane %v1673_v33, %v16497_v23  ;;  %v1702_v8 = vcombine.high %v16937_v34, %v16937_v34  ;;  %v3134_v55 = vrot.slane %v1349_v6, %v16497_v23  ;;  %v1703_v0 = vcombine.high %v1687_v16, %v1687_v16 }
 0x146   : > { %23278 = vst [vmem:[#allocation45_spill] sm:$0xff] %v16945_v11  ;;  %v4426_v1 = vshrl.u32 %v1687_v16, 16  ;;  %v16951_v39 = vpack.c.bf16 %v1289_v5, %v1288_v63  ;;  %v1704_v14 = vcombine.high %v16945_v11, %v16945_v11  ;;  %v15167_v17 = vpack.c.bf16 %v1289_v5, %v1289_v5  ;;  %23280 = vst [vmem:[#allocation47_spill] sm:$0xff] %v16955_v54  ;;  %v15799_v11 = vpop.f32.mrf.mxu0 }
 0x147   : > { %v1705_v2 = vcombine.high %v1701_v30, %v1701_v30  ;;  %v4416_v28 = vshrl.u32 %v1702_v8, 16  ;;  %v16958_v13 = vadd.bf16 %v4366_v46, %v16923_v38  ;;  %v4431_v33 = vshrl.u32 %v1701_v30, 16 }
 0x148   : > { %23279 = vst [vmem:[#allocation46_spill] sm:$0xff] %v16951_v39  ;;  %v4436_v36 = vshrl.u32 %v1703_v0, 16  ;;  %v16960_v34 = vadd.bf16 %v4426_v1, %v1687_v16  ;;  %v16963_v6 = vadd.bf16 %v4371_v42, %v16928_v31  ;;  %v4421_v63 = vshrl.u32 %v1704_v14, 16 }
 0x149   : > { %v4441_v39 = vshrl.u32 %v1705_v2, 16  ;;  %v16965_v4 = vadd.bf16 %v4416_v28, %v1702_v8  ;;  %v3142_v45 = vcombine.high %v3134_v55, %v3134_v55  ;;  %v16967_v57 = vadd.bf16 %v4431_v33, %v1701_v30  ;;  %v17012_v30 = vpop.f32.mrf.mxu1 }
 0x14a   : > { %23281 = vst [vmem:[#allocation48_spill] sm:$0xff] %v16963_v6  ;;  %v16969_v5 = vadd.bf16 %v4436_v36, %v1703_v0  ;;  %v16973_v54 = vadd.bf16 %v4421_v63, %v1704_v14  ;;  %v3190_v1 = vrot.slane %v15167_v17, %v16497_v23  ;;  %v16992_v14 = vrot.slane %v3134_v55, %v16497_v23 }
 0x14b   : > { %v16975_v16 = vadd.bf16 %v4441_v39, %v1705_v2  ;;  %v16989_v39 = vrot.slane %v3142_v45, %v16497_v23  ;;  %23285 = vst [vmem:[#allocation52_spill] sm:$0xff] %v17012_v30  ;;  %v15923_v42 = vpop.f32.mrf.mxu1 }
 0x14c   : > { %v3192_v0 = vcombine.high %v3190_v1, %v3190_v1  ;;  %v16995_v2 = vrot.slane %v3190_v1, %v16497_v23  ;;  %v5606_v28 = vshrl.u32 %v16992_v14, 16 }
 0x14d   : > { %23282 = vst [vmem:[#allocation49_spill] sm:$0xff] %v16975_v16  ;;  %v5611_v33 = vshrl.u32 %v16989_v39, 16 }
 0x14e   : > { %23283 = vst [vmem:[#allocation50_spill] sm:$0xff] %v16995_v2  ;;  %v16999_v17 = vrot.slane %v3192_v0, %v16497_v23  ;;  %v3222_v63 = vcombine.high %v16995_v2, %v16995_v2  ;;  %v17007_v8 = vadd.bf16 %v5606_v28, %v16992_v14  ;;  %v17022_v28 = vpop.f32.mrf.mxu0  ;;  %v17024_v2 = vpop.f32.mrf.mxu1 }
 0x14f   : > { %v17010_v1 = vadd.bf16 %v5611_v33, %v16989_v39  ;;  %23286 = vst [vmem:[#allocation53_spill] sm:$0xff] %v17022_v28  ;;  %23287 = vst [vmem:[#allocation54_spill] sm:$0xff] %v17024_v2 }
 0x150   : > { %23284 = vst [vmem:[#allocation51_spill] sm:$0xff] %v16999_v17  ;;  %v3224_v45 = vcombine.high %v16999_v17, %v16999_v17  ;;  %v5676_v55 = vshrl.u32 %v3222_v63, 16  ;;  %v15802_v33 = vpop.f32.mrf.mxu0  ;;  %v15926_v6 = vpop.f32.mrf.mxu1 }
 0x151   : > { %v23292_v6 = vadd.bf16 %v16677_v47, %v16616_v61  ;;  %v23296_v33 = vld [vmem:[#allocation15_spill] sm:$0xff] }
 0x152   : > { %v5681_v36 = vshrl.u32 %v3224_v45, 16  ;;  %v17014_v0 = vadd.bf16 %v5676_v55, %v3222_v63  ;;  %v17026_v16 = vpop.f32.mrf.mxu0  ;;  %v23290_v63 = vadd.bf16 %v16665_v35, %v16624_v25  ;;  %v23291_v55 = vadd.bf16 %v16667_v32, %v16603_v9 }
 0x153   : > { %23288 = vst [vmem:[#allocation55_spill] sm:$0xff] %v17026_v16  ;;  %v23294_v25 = vadd.bf16 %v16669_v41, %v16626_v58  ;;  %v23295_v9 = vadd.bf16 %v16586_v51, %v16584_v50  ;;  %v23300_v41 = vld [vmem:[#allocation16_spill] sm:$0xff] }
 0x154   : > { %v17016_v11 = vadd.bf16 %v5681_v36, %v3224_v45  ;;  %v15803_v30 = vpop.f32.mrf.mxu0  ;;  %v23289_v36 = vadd.bf16 %v16659_v27, %v16614_v18  ;;  %v7293_v45 = vrot.slane %v23290_v63, %v16497_v23  ;;  %v7307_v17 = vrot.slane %v23291_v55, %v16497_v23  ;;  %v23301_v58 = vld [vmem:[#allocation12_spill] sm:$0xff] }
 0x155   : > { %v7321_v30 = vrot.slane %v23292_v6, %v16497_v23  ;;  %v23293_v18 = vadd.bf16 %v16661_v49, %v16618_v20  ;;  %v7349_v35 = vrot.slane %v23294_v25, %v16497_v23  ;;  %v7265_v32 = vrot.slane %v23295_v9, %v16497_v23 }
 0x156   : > { %v7279_v42 = vrot.slane %v23289_v36, %v16497_v23  ;;  %v23297_v36 = vld [vmem:[#allocation10_spill] sm:$0xff]  ;;  %v23299_v20 = vadd.bf16 %v16742_v15, %v16723_v24  ;;  %v23302_v55 = vadd.bf16 %v23300_v41, %v23301_v58  ;;  %v7300_v50 = vrot.slane %v7293_v45, %v16497_v23  ;;  %v17144_v16 = vpop.f32.mrf.mxu0 }
 0x157   : > { %v7335_v27 = vrot.slane %v23293_v18, %v16497_v23  ;;  %v23298_v61 = vadd.bf16 %v23296_v33, %v23297_v36  ;;  %v17069_v18 = vpop.f32.mrf.mxu1  ;;  %v7314_v51 = vrot.slane %v7307_v17, %v16497_v23  ;;  %v7328_v25 = vrot.slane %v7321_v30, %v16497_v23 }
 0x158   : > { %v8539_v49 = vrot.slane %v23299_v20, %v16497_v23  ;;  %v7286_v63 = vrot.slane %v7279_v42, %v16497_v23  ;;  %v7377_v6 = vrot.slane %v23302_v55, %v16497_v23  ;;  %23303 = vst [vmem:[#allocation15_spill] sm:$0xff] %v17069_v18  ;;  %v7356_v15 = vrot.slane %v7349_v35, %v16497_v23 }
 0x159   : > { %v7363_v47 = vrot.slane %v23298_v61, %v16497_v23  ;;  %v7342_v9 = vrot.slane %v7335_v27, %v16497_v23  ;;  %v15927_v24 = vpop.f32.mrf.mxu1  ;;  %v7272_v36 = vrot.slane %v7265_v32, %v16497_v23  ;;  %v23305_v45 = vadd.bf16 %v16806_v56, %v16798_v26  ;;  %v23311_v32 = vld [vmem:[#allocation19_spill] sm:$0xff] }
 0x15a   : > { %v8546_v33 = vrot.slane %v8539_v49, %v16497_v23  ;;  %v17079_v61 = vunpack.c.l.b16 %v7286_v63  ;;  %v7384_v30 = vrot.slane %v7377_v6, %v16497_v23  ;;  %v17086_v20 = vunpack.c.l.b16 %v7300_v50 }
 0x15b   : > { %v7370_v42 = vrot.slane %v7363_v47, %v16497_v23  ;;  %v8938_v17 = vrot.slane %v23305_v45, %v16497_v23  ;;  %v17088_v27 = vunpack.c.l.b16 %v7314_v51  ;;  %v17090_v35 = vunpack.c.l.b16 %v7328_v25 }
 0x15c   : > { %23304 = vst [vmem:[#allocation10_spill] sm:$0xff] %v17079_v61  ;;  %23306 = vst [vmem:[#allocation16_spill] sm:$0xff] %v17086_v20  ;;  %v17092_v47 = vunpack.c.l.b16 %v7342_v9  ;;  %v17094_v49 = vunpack.c.l.b16 %v7356_v15  ;;  %v23312_v63 = vadd.bf16 %v16744_v52, %v23311_v32  ;;  %v17102_v56 = vunpack.c.l.b16 %v8546_v33  ;;  %v23316_v33 = vld [vmem:[#allocation30_spill] sm:$0xff] }
 0x15d   : > { %23307 = vst [vmem:[#allocation12_spill] sm:$0xff] %v17088_v27  ;;  %23308 = vst [vmem:[#allocation56_spill] sm:$0xff] %v17090_v35  ;;  %v17104_v26 = vunpack.c.l.b16 %v7272_v36  ;;  %v17106_v58 = vunpack.c.l.b16 %v7370_v42  ;;  %v17108_v55 = vunpack.c.l.b16 %v7384_v30  ;;  %v8945_v6 = vrot.slane %v8938_v17, %v16497_v23  ;;  %v23317_v36 = vld [vmem:[#allocation29_spill] sm:$0xff] }
 0x15e   : > { %23309 = vst [vmem:[#allocation57_spill] sm:$0xff] %v17092_v47  ;;  %23310 = vst [vmem:[#allocation58_spill] sm:$0xff] %v17094_v49  ;;  %v17100_v41 = vrot.slane %v23312_v63, %v16497_v23  ;;  %v9082_v50 = vrot.slane %v17079_v61, 7  ;;  %v9084_v51 = vrot.slane %v17086_v20, 6  ;;  %v9086_v52 = vrot.slane %v17088_v27, 5 }
 0x15f   : > { %23313 = vst [vmem:[#allocation19_spill] sm:$0xff] %v17104_v26  ;;  %23314 = vst [vmem:[#allocation59_spill] sm:$0xff] %v17106_v58  ;;  %v9088_v25 = vrot.slane %v17090_v35, 4  ;;  %v17115_v9 = vunpack.c.l.b16 %v8945_v6  ;;  %v9090_v42 = vrot.slane %v17092_v47, 3  ;;  %v23318_v45 = vadd.bf16 %v23316_v33, %v23317_v36 }
 0x160   : > { %23315 = vst [vmem:[#allocation60_spill] sm:$0xff] %v17108_v55  ;;  %v9083_v15 = vsel %vm8746_vm2, %v9082_v50, %v17104_v26  ;;  %v9432_v63 = vrot.slane %v17086_v20, 7  ;;  %v9434_v6 = vrot.slane %v17088_v27, 6  ;;  %v9092_v46 = vrot.slane %v17094_v49, 2  ;;  %23319 = vst [vmem:[#allocation30_spill] sm:$0xff] %v17144_v16  ;;  %v23321_v16 = vld [vmem:[#allocation31_spill] sm:$0xff] }
 0x161   : > { %v9085_v24 = vsel %vm8749_vm3, %v9084_v51, %v9083_v15  ;;  %v9288_v17 = vrot.slane %v23318_v45, %v16497_v23  ;;  %v9096_v32 = vrot.slane %v17115_v9, 7  ;;  %v9094_v51 = vrot.slane %v17106_v58, 1 }
 0x162   : > { %v9087_v30 = vsel %vm8752_vm4, %v9086_v52, %v9085_v24  ;;  %v9433_v52 = vsel %vm8746_vm2, %v9432_v63, %v17079_v61  ;;  %v9436_v24 = vrot.slane %v17090_v35, 5  ;;  %v9442_v63 = vrot.slane %v17106_v58, 2 }
 0x163   : > { %v9089_v50 = vsel %vm23226_vm5, %v9088_v25, %v9087_v30  ;;  %v9295_v15 = vrot.slane %v9288_v17, %v16497_v23  ;;  %v9097_v33 = vsel %vm8746_vm2, %v9096_v32, %v17108_v55  ;;  %v9435_v25 = vsel %vm8749_vm3, %v9434_v6, %v9433_v52  ;;  %v15806_v6 = vpop.f32.mrf.mxu0  ;;  %v23320_v52 = vld [vmem:[#allocation32_spill] sm:$0xff] }
 0x164   : > { %v9091_v18 = vsel %vm23222_vm6, %v9090_v42, %v9089_v50  ;;  %v9438_v30 = vrot.slane %v17092_v47, 4  ;;  %v9437_v17 = vsel %vm8752_vm4, %v9436_v24, %v9435_v25  ;;  %v9440_v32 = vrot.slane %v17094_v49, 3 }
 0x165   : > { %v9093_v36 = vsel %vm8761_vm7, %v9092_v46, %v9091_v18  ;;  %v17140_v45 = vunpack.c.l.b16 %v9295_v15  ;;  %v9444_v46 = vrot.slane %v17108_v55, 1  ;;  %v9782_v24 = vrot.slane %v17088_v27, 7 }
 0x166   : > { %v9095_v42 = vsel %vm8764_vm8, %v9094_v51, %v9093_v36  ;;  %v9439_v2 = vsel %vm23226_vm5, %v9438_v30, %v9437_v17  ;;  %v23322_v51 = vadd.bf16 %v23320_v52, %v23321_v16  ;;  %v9784_v25 = vrot.slane %v17090_v35, 6  ;;  %v23323_v30 = vld [vmem:[#allocation22_spill] sm:$0xff] }
 0x167   : > { %v9242_v50 = vpack.c.b16 %v9097_v33, %v9095_v42  ;;  %v9446_v18 = vrot.slane %v17140_v45, 7  ;;  %v9441_v15 = vsel %vm23222_vm6, %v9440_v32, %v9439_v2  ;;  %v8560_v33 = vrot.slane %v17100_v41, %v16497_v23  ;;  %v23324_v42 = vld [vmem:[#allocation20_spill] sm:$0xff]  ;;  %v17170_v32 = vpop.f32.mrf.mxu0 }
 0x168   : > { %v9638_v36 = vrot.slane %v23322_v51, %v16497_v23  ;;  %v23325_v17 = vadd.bf16 %v23323_v30, %v23324_v42  ;;  %v9443_v2 = vsel %vm8761_vm7, %v9442_v63, %v9441_v15  ;;  %23326 = vst [vmem:[#allocation29_spill] sm:$0xff] %v17170_v32  ;;  %v9783_v41 = vsel %vm8746_vm2, %v9782_v24, %v17086_v20  ;;  %v23327_v24 = vld [vmem:[#allocation23_spill] sm:$0xff] }
 0x169   : > { %9252 = vrot.lane.b32.xlu0 %v9242_v50, %s23125_s29  ;;  %v9447_v16 = vsel %vm8746_vm2, %v9446_v18, %v17115_v9  ;;  %v9445_v6 = vsel %vm8764_vm8, %v9444_v46, %v9443_v2  ;;  %v9786_v51 = vrot.slane %v17092_v47, 5  ;;  %v9226_v30 = vrot.slane %v17102_v56, 7  ;;  %v15807_v15 = vpop.f32.mrf.mxu0  ;;  %v23328_v2 = vld [vmem:[#allocation21_spill] sm:$0xff] }
 0x16a   : > { %v8567_v28 = vrot.slane %v23325_v17, %v16497_v23  ;;  %v9645_v52 = vrot.slane %v9638_v36, %v16497_v23  ;;  %v9592_v42 = vpack.c.b16 %v9447_v16, %v9445_v6  ;;  %v9785_v50 = vsel %vm8749_vm3, %v9784_v25, %v9783_v41  ;;  %v23330_v6 = vld [vmem:[#allocation25_spill] sm:$0xff] }
 0x16b   : > { %v9788_v63 = vrot.slane %v17094_v49, 4  ;;  %v9787_v17 = vsel %vm8752_vm4, %v9786_v51, %v9785_v50  ;;  %v9790_v46 = vrot.slane %v17106_v58, 3  ;;  %v9794_v36 = vrot.slane %v17115_v9, 1 }
 0x16c   : > { %v17180_v18 = vunpack.c.l.b16 %v9645_v52  ;;  %v23329_v20 = vadd.bf16 %v23327_v24, %v23328_v2  ;;  %9602 = vrot.lane.b32.xlu1 %v9592_v42, %s23203_s8  ;;  %v9792_v16 = vrot.slane %v17108_v55, 2  ;;  %v9227_v52 = vsel %vm8746_vm2, %v9226_v30, %v23330_v6 }
 0x16d   : > { %v9789_v25 = vsel %vm23226_vm5, %v9788_v63, %v9787_v17  ;;  %v23331_v41 = vadd.bf16 %v16850_v59, %v16818_v7  ;;  %v17202_v24 = vunpack.c.l.b16 %v8560_v33  ;;  %v8574_v63 = vrot.slane %v8567_v28, %v16497_v23 }
 0x16e   : > { %v8581_v32 = vrot.slane %v23329_v20, %v16497_v23  ;;  %v9791_v50 = vsel %vm23222_vm6, %v9790_v46, %v9789_v25  ;;  %v9796_v15 = vrot.slane %v17180_v18, 7  ;;  %v17200_v20 = vpop.f32.mrf.mxu0  ;;  %v23333_v59 = vadd.bf16 %v16854_v19, %v16825_v48 }
 0x16f   : > { %v8595_v51 = vrot.slane %v23331_v41, %v16497_v23  ;;  %23332 = vst [vmem:[#allocation32_spill] sm:$0xff] %v17200_v20  ;;  %v9793_v42 = vsel %vm8761_vm7, %v9792_v16, %v9791_v50  ;;  %v23334_v28 = vadd.bf16 %v16856_v37, %v16827_v10  ;;  %v9228_v6 = vrot.slane %v17202_v24, 6 }
 0x170   : > { %v9795_v17 = vsel %vm8764_vm8, %v9794_v36, %v9793_v42  ;;  %v9797_v30 = vsel %vm8746_vm2, %v9796_v15, %v17140_v45  ;;  %v15810_v2 = vpop.f32.mrf.mxu0  ;;  %v8588_v7 = vrot.slane %v8581_v32, %v16497_v23  ;;  %v8609_v46 = vrot.slane %v23333_v59, %v16497_v23 }
 0x171   : > { %v9942_v25 = vpack.c.b16 %v9797_v30, %v9795_v17  ;;  %v8602_v33 = vrot.slane %v8595_v51, %v16497_v23  ;;  %v8623_v16 = vrot.slane %v23334_v28, %v16497_v23  ;;  %v17223_v32 = vunpack.c.l.b16 %v8574_v63 }
 0x172   : > { %v17219_v36 = vpop.f32.mrf.mxu0  ;;  %v23336_v48 = vadd.bf16 %v16852_v40, %v16832_v62  ;;  %v17229_v51 = vunpack.c.l.b16 %v8588_v7  ;;  %v8616_v10 = vrot.slane %v8609_v46, %v16497_v23  ;;  %v23337_v50 = vadd.bf16 %v16869_v12, %v16867_v60 }
 0x173   : > { %23335 = vst [vmem:[#allocation31_spill] sm:$0xff] %v17219_v36  ;;  %9952 = vrot.lane.b32.xlu0 %v9942_v25, %s23214_s9  ;;  %v8630_v37 = vrot.slane %v8623_v16, %v16497_v23  ;;  %v17237_v42 = vunpack.c.l.b16 %v8602_v33  ;;  %v9229_v63 = vsel %vm8749_vm3, %v9228_v6, %v9227_v52  ;;  %v9230_v40 = vrot.slane %v17223_v32, 5 }
 0x174   : > { %v9064_v19 = vrot.slane %v23336_v48, %v16497_v23  ;;  %v15811_v41 = vpop.f32.mrf.mxu0  ;;  %v8637_v15 = vrot.slane %v23337_v50, %v16497_v23  ;;  %v17242_v62 = vunpack.c.l.b16 %v8616_v10  ;;  %v23338_v30 = vadd.bf16 %v16860_v53, %v16834_v43 }
 0x175   : > { %v9232_v7 = vrot.slane %v17229_v51, 4  ;;  %v17250_v12 = vunpack.c.l.b16 %v8630_v37  ;;  %v9231_v59 = vsel %vm8752_vm4, %v9230_v40, %v9229_v63  ;;  %v9234_v52 = vrot.slane %v17237_v42, 3 }
 0x176   : > { %v9071_v17 = vrot.slane %v9064_v19, %v16497_v23  ;;  %v9414_v2 = vrot.slane %v23338_v30, %v16497_v23  ;;  %v8644_v60 = vrot.slane %v8637_v15, %v16497_v23  ;;  %v9576_v25 = vrot.slane %v17202_v24, 7  ;;  %v17277_v40 = vpop.f32.mrf.mxu0 }
 0x177   : > { %v9233_v33 = vsel %vm23226_vm5, %v9232_v7, %v9231_v59  ;;  %v9236_v28 = vrot.slane %v17242_v62, 2  ;;  %v9238_v6 = vrot.slane %v17250_v12, 1  ;;  %v9578_v63 = vrot.slane %v17223_v32, 6  ;;  %23340 = vst [vmem:[#allocation20_spill] sm:$0xff] %v17277_v40 }
 0x178   : > { %v17254_v46 = vunpack.c.l.b16 %v9071_v17  ;;  %v17259_v53 = vunpack.c.l.b16 %v8644_v60  ;;  %v9421_v43 = vrot.slane %v9414_v2, %v16497_v23  ;;  %v9235_v16 = vsel %vm23222_vm6, %v9234_v52, %v9233_v33  ;;  %v15814_v52 = vpop.f32.mrf.mxu0 }
 0x179   : > { %v9237_v19 = vsel %vm8761_vm7, %v9236_v28, %v9235_v16  ;;  %v9577_v41 = vsel %vm8746_vm2, %v9576_v25, %v17102_v56  ;;  %v9580_v17 = vrot.slane %v17229_v51, 5  ;;  %v8898_v30 = vrot.slane %v17102_v56, 6  ;;  %v23341_v28 = vld [vmem:[#allocation28_spill] sm:$0xff] }
 0x17a   : > { %v9240_v48 = vrot.slane %v17254_v46, 7  ;;  %v17268_v10 = vunpack.c.l.b16 %v9421_v43  ;;  %v9239_v37 = vsel %vm8764_vm8, %v9238_v6, %v9237_v19  ;;  %v9582_v2 = vrot.slane %v17237_v42, 4 }
 0x17b   : > { %v9584_v7 = vrot.slane %v17242_v62, 3  ;;  %v9579_v60 = vsel %vm8749_vm3, %v9578_v63, %v9577_v41  ;;  %v9586_v59 = vrot.slane %v17250_v12, 2  ;;  %v9588_v56 = vrot.slane %v17259_v53, 1 }
 0x17c   : > { %v9241_v50 = vsel %vm8746_vm2, %v9240_v48, %v17259_v53  ;;  %v9581_v25 = vsel %vm8752_vm4, %v9580_v17, %v9579_v60  ;;  %v9590_v33 = vrot.slane %v17268_v10, 7  ;;  %v8899_v43 = vsel %vm8749_vm3, %v8898_v30, %v23341_v28  ;;  %v23342_v17 = vld [vmem:[#allocation27_spill] sm:$0xff] }
 0x17d   : > { %v17273_v15 = vpack.c.b16 %v9241_v50, %v9239_v37  ;;  %v9583_v16 = vsel %vm23226_vm5, %v9582_v2, %v9581_v25  ;;  %v8900_v6 = vrot.slane %v17202_v24, 5  ;;  %v8902_v19 = vrot.slane %v17223_v32, 4 }
 0x17e   : > { %v9585_v48 = vsel %vm23222_vm6, %v9584_v7, %v9583_v16  ;;  %v8904_v50 = vrot.slane %v17229_v51, 3  ;;  %v8906_v63 = vrot.slane %v17237_v42, 2  ;;  %v1606_v30 = vcombine.high %v23342_v17, %v23342_v17 }
 0x17f   : > { %23339 = vst [vmem:[#allocation22_spill] sm:$0xff] %v17273_v15  ;;  %9270 = vrot.lane.b32.xlu1 %v17273_v15, %s23125_s29  ;;  %12093 = vrot.lane.b32.xlu0 %v17273_v15, %s23170_s13  ;;  %v9587_v41 = vsel %vm8761_vm7, %v9586_v59, %v9585_v48  ;;  %v8901_v37 = vsel %vm8752_vm4, %v8900_v6, %v8899_v43  ;;  %v17309_v59 = vpop.f32.mrf.mxu0  ;;  %v8908_v28 = vrot.slane %v17242_v62, 1  ;;  %v8910_v43 = vrot.slane %v17259_v53, 7 }
 0x180   : > { %v9589_v2 = vsel %vm8764_vm8, %v9588_v56, %v9587_v41  ;;  %v9591_v7 = vsel %vm8746_vm2, %v9590_v33, %v17254_v46  ;;  %v8903_v60 = vsel %vm23226_vm5, %v8902_v19, %v8901_v37  ;;  %23343 = vst [vmem:[#allocation23_spill] sm:$0xff] %v17309_v59  ;;  %v4341_v33 = vshrl.u32 %v1606_v30, 16  ;;  %v23345_v41 = vld [vmem:[#allocation6_spill] sm:$0xff] }
 0x181   : > { %v17311_v52 = vpack.c.b16 %v9591_v7, %v9589_v2  ;;  %v8905_v25 = vsel %vm23222_vm6, %v8904_v50, %v8903_v60  ;;  %v15815_v6 = vpop.f32.mrf.mxu0  ;;  %v8911_v56 = vsel %vm8746_vm2, %v8910_v43, %v17250_v12  ;;  %v4271_v37 = vshrl.u32 %v23345_v41, 16 }
 0x182   : > { %v8907_v16 = vsel %vm8761_vm7, %v8906_v63, %v8905_v25  ;;  %v6584_v50 = vadd.bf16 %v4341_v33, %v1606_v30  ;;  %v10132_v7 = vrot.slane %v17090_v35, 7  ;;  %v10134_v33 = vrot.slane %v17092_v47, 6 }
 0x183   : > { %10975 = vrot.lane.b32.xlu0 %v17273_v15, %s23127_s14  ;;  %11739 = vrot.lane.b32.xlu1 %v17311_v52, %s23125_s29  ;;  %v8909_v48 = vsel %vm8764_vm8, %v8908_v28, %v8907_v16  ;;  %v6570_v63 = vadd.bf16 %v4271_v37, %v23345_v41  ;;  %v17334_v2 = vpop.f32.mrf.mxu0  ;;  %v23348_v28 = vld [vmem:[#allocation5_spill] sm:$0xff]  ;;  %v10136_v41 = vrot.slane %v17094_v49, 5 }
 0x184   : > { %v17324_v19 = vpack.c.b16 %v8911_v56, %v8909_v48  ;;  %23346 = vst [vmem:[#allocation25_spill] sm:$0xff] %v17334_v2  ;;  %v2938_v43 = vrot.slane %v23348_v28, %v16497_v23  ;;  %v10133_v16 = vsel %vm8746_vm2, %v10132_v7, %v17088_v27  ;;  %v15135_v48 = vpack.c.bf16 %v16892_v29, %v16892_v29 }
 0x185   : > { %v6962_v17 = vadd.bf16 %v6584_v50, %v6570_v63  ;;  %v15818_v60 = vpop.f32.mrf.mxu0  ;;  %v10135_v50 = vsel %vm8749_vm3, %v10134_v33, %v10133_v16  ;;  %v10138_v63 = vrot.slane %v17106_v58, 4  ;;  %v10140_v28 = vrot.slane %v17108_v55, 3  ;;  %v23349_v33 = vld [vmem:[#allocation40_spill] sm:$0xff] }
 0x186   : > { %23344 = vst [vmem:[#allocation21_spill] sm:$0xff] %v17324_v19  ;;  %v2946_v60 = vcombine.high %v2938_v43, %v2938_v43  ;;  %v10137_v7 = vsel %vm8752_vm4, %v10136_v41, %v10135_v50  ;;  %v1622_v29 = vrot.slane %v15135_v48, %v16497_v23  ;;  %v2954_v16 = vrot.slane %v2938_v43, %v16497_v23 }
 0x187   : > { %10568 = vrot.lane.b32.xlu0 %v17273_v15, %s23129_s15  ;;  %12040 = vrot.lane.b32.xlu1 %v17324_v19, %s23046_s16  ;;  %v9988_v25 = vrot.slane %v6962_v17, %v16497_v23  ;;  %v17340_v30 = vpop.f32.mrf.mxu0  ;;  %v10142_v17 = vrot.slane %v17115_v9, 2  ;;  %v15166_v58 = vpack.c.bf16 %v23349_v33, %v23349_v33 }
 0x188   : > { %23347 = vst [vmem:[#allocation28_spill] sm:$0xff] %v17340_v30  ;;  %v2968_v50 = vrot.slane %v2946_v60, %v16497_v23  ;;  %v5446_v60 = vshrl.u32 %v2954_v16, 16 }
 0x189   : > { %v15819_v6 = vpop.f32.mrf.mxu0  ;;  %v9995_v56 = vrot.slane %v9988_v25, %v16497_v23  ;;  %v10144_v25 = vrot.slane %v17140_v45, 1  ;;  %v3141_v48 = vrot.slane %v15166_v58, %v16497_v23 }
 0x18a   : > { %v10139_v6 = vsel %vm23226_vm5, %v10138_v63, %v10137_v7  ;;  %v2976_v7 = vcombine.high %v2954_v16, %v2954_v16  ;;  %v2978_v43 = vcombine.high %v2968_v50, %v2968_v50  ;;  %v17386_v55 = vadd.bf16 %v5446_v60, %v2954_v16 }
 0x18b   : > { %12146 = vrot.lane.b32.xlu1 %v17311_v52, %s23129_s15  ;;  %v10122_v37 = vunpack.c.l.b16 %v9995_v56  ;;  %v10141_v56 = vsel %vm23222_vm6, %v10140_v28, %v10139_v6  ;;  %v23350_v28 = vld [vmem:[#allocation8_spill] sm:$0xff]  ;;  %v23351_v6 = vld [vmem:[#allocation7_spill] sm:$0xff] }
 0x18c   : > { %v10143_v9 = vsel %vm8761_vm7, %v10142_v17, %v10141_v56  ;;  %v23352_v33 = vadd.bf16 %v23350_v28, %v23351_v6  ;;  %v17374_v56 = vpop.f32.mrf.mxu0  ;;  %v1653_v6 = vcombine.high %v16923_v38, %v16923_v38  ;;  %23354 = vst [vmem:[#allocation6_spill] sm:$0xff] %v17386_v55 }
 0x18d   : > { %v10146_v15 = vrot.slane %v10122_v37, 7  ;;  %v10145_v45 = vsel %vm8764_vm8, %v10144_v25, %v10143_v9  ;;  %v1624_v37 = vcombine.high %v1622_v29, %v1622_v29  ;;  %23353 = vst [vmem:[#allocation27_spill] sm:$0xff] %v17374_v56  ;;  %v5451_v25 = vshrl.u32 %v2968_v50, 16 }
 0x18e   : > { %v7251_v17 = vrot.slane %v23352_v33, %v16497_v23  ;;  %v5456_v9 = vshrl.u32 %v2976_v7, 16  ;;  %v15822_v58 = vpop.f32.mrf.mxu0 }
 0x18f   : > { %11329 = vrot.lane.b32.xlu1 %v17324_v19, %s23048_s17  ;;  %v10147_v41 = vsel %vm8746_vm2, %v10146_v15, %v17180_v18  ;;  %v1638_v18 = vrot.slane %v1622_v29, %v16497_v23  ;;  %v1652_v15 = vrot.slane %v1624_v37, %v16497_v23  ;;  %v1655_v37 = vcombine.high %v16928_v31, %v16928_v31  ;;  %v23360_v31 = vld [vmem:[#allocation33_spill] sm:$0xff] }
 0x190   : > { %v10292_v63 = vpack.c.b16 %v10147_v41, %v10145_v45  ;;  %v3143_v41 = vcombine.high %v3141_v48, %v3141_v48  ;;  %v5461_v45 = vshrl.u32 %v2978_v43, 16  ;;  %v7258_v28 = vrot.slane %v7251_v17, %v16497_v23  ;;  %v23359_v17 = vld [vmem:[#allocation35_spill] sm:$0xff] }
 0x191   : > { %v1654_v29 = vcombine.high %v1638_v18, %v1638_v18  ;;  %v1656_v33 = vcombine.high %v1652_v15, %v1652_v15  ;;  %v17388_v49 = vadd.bf16 %v5451_v25, %v2968_v50  ;;  %v17390_v47 = vadd.bf16 %v5456_v9, %v2976_v7 }
 0x192   : > { %10302 = vrot.lane.b32.xlu0 %v10292_v63, %s23046_s16  ;;  %v3157_v63 = vrot.slane %v3141_v48, %v16497_v23  ;;  %v3171_v58 = vrot.slane %v3143_v41, %v16497_v23  ;;  %v17395_v48 = vpop.f32.mrf.mxu0  ;;  %v17397_v38 = vadd.bf16 %v5461_v45, %v2978_v43  ;;  %v23361_v35 = vadd.bf16 %v23359_v17, %v23360_v31  ;;  %v23363_v45 = vld [vmem:[#allocation46_spill] sm:$0xff] }
 0x193   : > { %9620 = vrot.lane.b32.xlu1 %v17311_v52, %s23203_s8  ;;  %23355 = vst [vmem:[#allocation5_spill] sm:$0xff] %v17388_v49  ;;  %23356 = vst [vmem:[#allocation40_spill] sm:$0xff] %v17390_v47  ;;  %v3172_v50 = vcombine.high %v16992_v14, %v16992_v14  ;;  %v17407_v60 = vunpack.c.l.b16 %v7258_v28  ;;  %v4376_v25 = vshrl.u32 %v1653_v6, 16  ;;  %v4386_v9 = vshrl.u32 %v1638_v18, 16 }
 0x194   : > { %23357 = vst [vmem:[#allocation8_spill] sm:$0xff] %v17395_v48  ;;  %23358 = vst [vmem:[#allocation7_spill] sm:$0xff] %v17397_v38  ;;  %v17403_v16 = vrot.slane %v23361_v35, %v16497_v23  ;;  %v3173_v7 = vcombine.high %v3157_v63, %v3157_v63  ;;  %v4391_v41 = vshrl.u32 %v1652_v15, 16  ;;  %v15823_v47 = vpop.f32.mrf.mxu0  ;;  %v4381_v49 = vshrl.u32 %v1655_v37, 16  ;;  %v23365_v48 = vld [vmem:[#allocation38_spill] sm:$0xff] }
 0x195   : > { %23362 = vst [vmem:[#allocation35_spill] sm:$0xff] %v17407_v60  ;;  %v4396_v55 = vshrl.u32 %v1654_v29, 16  ;;  %v4401_v43 = vshrl.u32 %v1656_v33, 16  ;;  %v3183_v38 = vrot.slane %v23363_v45, %v16497_v23  ;;  %v3174_v35 = vcombine.high %v16989_v39, %v16989_v39  ;;  %v23364_v60 = vld [vmem:[#allocation39_spill] sm:$0xff] }
 0x196   : > { %10922 = vrot.lane.b32.xlu0 %v17324_v19, %s23210_s18  ;;  %v3175_v31 = vcombine.high %v3171_v58, %v3171_v58  ;;  %v5626_v14 = vshrl.u32 %v3157_v63, 16  ;;  %v5616_v47 = vshrl.u32 %v3172_v50, 16  ;;  %v5631_v27 = vshrl.u32 %v3171_v58, 16 }
 0x197   : > { %v5636_v56 = vshrl.u32 %v3173_v7, 16  ;;  %v23366_v45 = vadd.bf16 %v23364_v60, %v23365_v48  ;;  %v17424_v17 = vadd.bf16 %v4376_v25, %v1653_v6  ;;  %v17426_v39 = vadd.bf16 %v4386_v9, %v1638_v18  ;;  %v23375_v9 = vld [vmem:[#allocation11_spill] sm:$0xff] }
 0x198   : > { %v17428_v61 = vadd.bf16 %v4391_v41, %v1652_v15  ;;  %v17430_v2 = vadd.bf16 %v4381_v49, %v1655_v37  ;;  %v17434_v28 = vadd.bf16 %v4401_v43, %v1656_v33  ;;  %v3191_v59 = vcombine.high %v3183_v38, %v3183_v38  ;;  %v23372_v33 = vld [vmem:[#allocation13_spill] sm:$0xff]  ;;  %v23376_v43 = vld [vmem:[#allocation14_spill] sm:$0xff] }
 0x199   : > { %v17422_v30 = vrot.slane %v23366_v45, %v16497_v23  ;;  %v5621_v40 = vshrl.u32 %v3174_v35, 16  ;;  %v5641_v36 = vshrl.u32 %v3175_v31, 16  ;;  %v17436_v20 = vadd.bf16 %v5626_v14, %v3157_v63 }
 0x19a   : > { %11028 = vrot.lane.b32.xlu0 %v17311_v52, %s23201_s19  ;;  %v23367_v6 = vadd.bf16 %v16960_v34, %v16934_v22  ;;  %v17444_v49 = vadd.bf16 %v5616_v47, %v3172_v50  ;;  %v17448_v18 = vadd.bf16 %v5636_v56, %v3173_v7  ;;  %v23368_v15 = vadd.bf16 %v16965_v4, %v16930_v44  ;;  %v23373_v4 = vld [vmem:[#allocation45_spill] sm:$0xff] }
 0x19b   : > { %v23370_v22 = vadd.bf16 %v16967_v57, %v16939_v21  ;;  %v4411_v44 = vshrl.u32 %v23373_v4, 16  ;;  %v23374_v50 = vadd.bf16 %v16969_v5, %v16958_v13  ;;  %v3199_v57 = vrot.slane %v3183_v38, %v16497_v23 }
 0x19c   : > { %v7419_v48 = vrot.slane %v23367_v6, %v16497_v23  ;;  %v7391_v63 = vrot.slane %v23368_v15, %v16497_v23  ;;  %v3213_v21 = vrot.slane %v3191_v59, %v16497_v23  ;;  %v17475_v60 = vadd.bf16 %v5621_v40, %v3174_v35  ;;  %v23378_v40 = vld [vmem:[#allocation49_spill] sm:$0xff]  ;;  %v23379_v59 = vld [vmem:[#allocation48_spill] sm:$0xff] }
 0x19d   : > { %v7433_v34 = vrot.slane %v23370_v22, %v16497_v23  ;;  %v7447_v7 = vrot.slane %v23374_v50, %v16497_v23  ;;  %v17482_v47 = vadd.bf16 %v5641_v36, %v3175_v31  ;;  %v23377_v13 = vadd.bf16 %v16973_v54, %v16932_v3 }
 0x19e   : > { %10515 = vrot.lane.b32.xlu0 %v17324_v19, %s23170_s13  ;;  %v17432_v19 = vadd.bf16 %v4396_v55, %v1654_v29  ;;  %v17446_v55 = vadd.bf16 %v5631_v27, %v3171_v58  ;;  %v23369_v29 = vld [vmem:[#allocation44_spill] sm:$0xff]  ;;  %v23371_v27 = vld [vmem:[#allocation9_spill] sm:$0xff]  ;;  %v7426_v25 = vrot.slane %v7419_v48, %v16497_v23  ;;  %v7398_v45 = vrot.slane %v7391_v63, %v16497_v23 }
 0x19f   : > { %v4406_v37 = vshrl.u32 %v23369_v29, 16  ;;  %v7405_v5 = vrot.slane %v23377_v13, %v16497_v23  ;;  %v23380_v38 = vadd.bf16 %v23378_v40, %v23379_v59  ;;  %v7440_v48 = vrot.slane %v7433_v34, %v16497_v23 }
 0x1a0   : > { %v17498_v31 = vadd.bf16 %v4411_v44, %v23373_v4  ;;  %v7454_v63 = vrot.slane %v7447_v7, %v16497_v23  ;;  %v3221_v22 = vcombine.high %v3199_v57, %v3199_v57  ;;  %v3223_v3 = vcombine.high %v3213_v21, %v3213_v21 }
 0x1a1   : > { %v7461_v35 = vrot.slane %v23380_v38, %v16497_v23  ;;  %v17494_v6 = vadd.bf16 %v4406_v37, %v23369_v29  ;;  %v17501_v54 = vunpack.c.l.b16 %v7426_v25  ;;  %v7412_v34 = vrot.slane %v7405_v5, %v16497_v23  ;;  %v23385_v5 = vld [vmem:[#allocation51_spill] sm:$0xff] }
 0x1a2   : > { %10621 = vrot.lane.b32.xlu0 %v17311_v52, %s23194_s20  ;;  %v17462_v52 = vld [vmem:[%s22981_s2] ss:$0 sm:$0xff]  ;;  %v23383_v4 = vadd.bf16 %v17016_v11, %v17010_v1  ;;  %v17515_v50 = vunpack.c.l.b16 %v7440_v48  ;;  %v5646_v7 = vshrl.u32 %v3199_v57, 16  ;;  %v17518_v13 = vunpack.c.l.b16 %v7454_v63  ;;  %v17526_v48 = vpop.f32.mrf.mxu0 }
 0x1a3   : > { %v874_v56 = vadd.f32 %v17462_v52, %v23371_v27  ;;  %v877_v58 = vadd.f32 %v17462_v52, %v23372_v33  ;;  %v1122_v41 = vadd.f32 %v17462_v52, %v23375_v9  ;;  %v1125_v14 = vadd.f32 %v17462_v52, %v23376_v43  ;;  %v23384_v43 = vld [vmem:[#allocation50_spill] sm:$0xff]  ;;  %23387 = vst [vmem:[#allocation39_spill] sm:$0xff] %v17526_v48 }
 0x1a4   : > { %v23381_v27 = vadd.bf16 %v17014_v0, %v17007_v8  ;;  %v10352_v44 = vrot.slane %v23383_v4, %v16497_v23  ;;  %v5651_v8 = vshrl.u32 %v3213_v21, 16  ;;  %v5656_v0 = vshrl.u32 %v3221_v22, 16 }
 0x1a5   : > { %v1228_v15 = vmax.f32 %v874_v56, 0.0  ;;  %v1229_v36 = vmax.f32 %v877_v58, 0.0  ;;  %v1290_v29 = vmax.f32 %v1122_v41, 0.0  ;;  %v1291_v37 = vmax.f32 %v1125_v14, 0.0 }
 0x1a6   : > { %v10338_v33 = vrot.slane %v23381_v27, %v16497_v23  ;;  %v7468_v56 = vrot.slane %v7461_v35, %v16497_v23  ;;  %v17509_v58 = vunpack.c.l.b16 %v7398_v45  ;;  %v5661_v41 = vshrl.u32 %v3223_v3, 16 }
 0x1a7   : > { %v1320_v25 = vpack.c.bf16 %v1229_v36, %v1228_v15  ;;  %v15137_v9 = vpack.c.bf16 %v1229_v36, %v1229_v36  ;;  %v5666_v14 = vshrl.u32 %v23384_v43, 16  ;;  %v5671_v45 = vshrl.u32 %v23385_v5, 16 }
 0x1a8   : > { %23382 = vst [vmem:[#allocation33_spill] sm:$0xff] %v17509_v58  ;;  %v10345_v40 = vrot.slane %v10338_v33, %v16497_v23  ;;  %v1351_v59 = vpack.c.bf16 %v1291_v37, %v1290_v29  ;;  %v17522_v38 = vunpack.c.l.b16 %v7412_v34  ;;  %v10359_v1 = vrot.slane %v10352_v44, %v16497_v23 }
 0x1a9   : > { %v15168_v35 = vpack.c.bf16 %v1291_v37, %v1291_v37  ;;  %v17528_v15 = vunpack.c.l.b16 %v7468_v56  ;;  %v17530_v36 = vadd.bf16 %v5646_v7, %v3199_v57  ;;  %v1713_v63 = vrot.slane %v1320_v25, %v16497_v23  ;;  %v15826_v37 = vpop.f32.mrf.mxu0 }
 0x1aa   : > { %23386 = vst [vmem:[#allocation46_spill] sm:$0xff] %v17522_v38  ;;  %v1720_v27 = vrot.slane %v15137_v9, %v16497_v23  ;;  %v17534_v4 = vadd.bf16 %v5651_v8, %v3213_v21  ;;  %v17536_v33 = vadd.bf16 %v5656_v0, %v3221_v22  ;;  %v17538_v29 = vadd.bf16 %v5661_v41, %v3223_v3 }
 0x1ab   : > { %v17541_v34 = vadd.bf16 %v5666_v14, %v23384_v43  ;;  %v17544_v44 = vadd.bf16 %v5671_v45, %v23385_v5  ;;  %v17546_v56 = vunpack.c.l.b16 %v10345_v40  ;;  %v3232_v57 = vrot.slane %v1351_v59, %v16497_v23  ;;  %v17557_v8 = vpop.f32.mrf.mxu0 }
 0x1ac   : > { %23388 = vst [vmem:[#allocation38_spill] sm:$0xff] %v17536_v33  ;;  %23389 = vst [vmem:[#allocation44_spill] sm:$0xff] %v17538_v29  ;;  %v17550_v25 = vunpack.c.l.b16 %v10359_v1  ;;  %v3239_v21 = vrot.slane %v15168_v35, %v16497_v23  ;;  %v23394_v22 = vrot.slane %v17403_v16, %v16497_v23  ;;  %v9926_v9 = vrot.slane %v17223_v32, 7 }
 0x1ad   : > { %23390 = vst [vmem:[#allocation9_spill] sm:$0xff] %v17541_v34  ;;  %23391 = vst [vmem:[#allocation13_spill] sm:$0xff] %v17544_v44  ;;  %v1721_v0 = vcombine.high %v1713_v63, %v1713_v63  ;;  %v1722_v41 = vcombine.high %v1720_v27, %v1720_v27  ;;  %v9928_v43 = vrot.slane %v17229_v51, 6  ;;  %v9930_v14 = vrot.slane %v17237_v42, 5  ;;  %v15827_v59 = vpop.f32.mrf.mxu0 }
 0x1ae   : > { %23392 = vst [vmem:[#allocation45_spill] sm:$0xff] %v17546_v56  ;;  %23393 = vst [vmem:[#allocation11_spill] sm:$0xff] %v17550_v25  ;;  %v9781_v3 = vunpack.c.l.b16 %v23394_v22  ;;  %v1729_v5 = vrot.slane %v1713_v63, %v16497_v23  ;;  %v9927_v45 = vsel %vm8746_vm2, %v9926_v9, %v17202_v24  ;;  %v9932_v40 = vrot.slane %v17242_v62, 4 }
 0x1af   : > { %23395 = vst [vmem:[#allocation14_spill] sm:$0xff] %v17557_v8  ;;  %v9934_v16 = vrot.slane %v17250_v12, 3  ;;  %v1736_v1 = vrot.slane %v1720_v27, %v16497_v23  ;;  %v3240_v35 = vcombine.high %v3232_v57, %v3232_v57  ;;  %v9929_v37 = vsel %vm8749_vm3, %v9928_v43, %v9927_v45 }
 0x1b0   : > { %v9936_v22 = vrot.slane %v17259_v53, 2  ;;  %v3241_v7 = vcombine.high %v3239_v21, %v3239_v21  ;;  %v9931_v11 = vsel %vm8752_vm4, %v9930_v14, %v9929_v37  ;;  %v9940_v8 = vrot.slane %v9781_v3, 7 }
 0x1b1   : > { %v10121_v63 = vrot.slane %v17422_v30, %v16497_v23  ;;  %v1743_v24 = vrot.slane %v1721_v0, %v16497_v23  ;;  %v9933_v9 = vsel %vm23226_vm5, %v9932_v40, %v9931_v11  ;;  %v10276_v59 = vrot.slane %v17229_v51, 7 }
 0x1b2   : > { %v10278_v27 = vrot.slane %v17237_v42, 6  ;;  %v1750_v48 = vrot.slane %v1722_v41, %v16497_v23  ;;  %v9935_v43 = vsel %vm23222_vm6, %v9934_v16, %v9933_v9  ;;  %v9938_v45 = vrot.slane %v17254_v46, 1 }
 0x1b3   : > { %v10131_v26 = vunpack.c.l.b16 %v10121_v63  ;;  %v9937_v14 = vsel %vm8761_vm7, %v9936_v22, %v9935_v43  ;;  %v10277_v30 = vsel %vm8746_vm2, %v10276_v59, %v17223_v32  ;;  %v10280_v0 = vrot.slane %v17242_v62, 5 }
 0x1b4   : > { %v10282_v11 = vrot.slane %v17250_v12, 4  ;;  %v3248_v51 = vrot.slane %v3232_v57, %v16497_v23  ;;  %v9939_v42 = vsel %vm8764_vm8, %v9938_v45, %v9937_v14  ;;  %v9941_v41 = vsel %vm8746_vm2, %v9940_v8, %v17268_v10 }
 0x1b5   : > { %v10279_v40 = vsel %vm8749_vm3, %v10278_v27, %v10277_v30  ;;  %v1751_v16 = vcombine.high %v1729_v5, %v1729_v5  ;;  %v17589_v37 = vpack.c.b16 %v9941_v41, %v9939_v42  ;;  %v10284_v32 = vrot.slane %v17259_v53, 3 }
 0x1b6   : > { %v10281_v22 = vsel %vm8752_vm4, %v10280_v0, %v10279_v40  ;;  %v1752_v63 = vcombine.high %v1736_v1, %v1736_v1  ;;  %v4446_v62 = vshrl.u32 %v1729_v5, 16  ;;  %v4466_v9 = vshrl.u32 %v1736_v1, 16 }
 0x1b7   : > { %v10283_v12 = vsel %vm23226_vm5, %v10282_v11, %v10281_v22  ;;  %v1753_v57 = vcombine.high %v1743_v24, %v1743_v24  ;;  %v1754_v59 = vcombine.high %v1750_v48, %v1750_v48  ;;  %v3262_v43 = vrot.slane %v3240_v35, %v16497_v23  ;;  %9970 = vrot.lane.b32.xlu1 %v17589_v37, %s23214_s9 }
 0x1b8   : > { %v10290_v8 = vrot.slane %v10131_v26, 7  ;;  %11792 = vrot.lane.b32.xlu0 %v17589_v37, %s23203_s8  ;;  %v4451_v45 = vshrl.u32 %v1743_v24, 16  ;;  %v3255_v53 = vrot.slane %v3239_v21, %v16497_v23  ;;  %v3269_v14 = vrot.slane %v3241_v7, %v16497_v23  ;;  %v17609_v7 = vpop.f32.mrf.mxu0 }
 0x1b9   : > { %v4456_v30 = vshrl.u32 %v1751_v16, 16  ;;  %v4471_v0 = vshrl.u32 %v1750_v48, 16  ;;  %v10285_v11 = vsel %vm23222_vm6, %v10284_v32, %v10283_v12  ;;  %v4476_v42 = vshrl.u32 %v1752_v63, 16  ;;  %23396 = vst [vmem:[#allocation49_spill] sm:$0xff] %v17609_v7 }
 0x1ba   : > { %v10291_v35 = vsel %vm8746_vm2, %v10290_v8, %v9781_v3  ;;  %v6605_v41 = vadd.bf16 %v4446_v62, %v1729_v5  ;;  %v3270_v40 = vcombine.high %v3248_v51, %v3248_v51  ;;  %v10286_v26 = vrot.slane %v17254_v46, 2  ;;  %v15830_v8 = vpop.f32.mrf.mxu0 }
 0x1bb   : > { %v4461_v22 = vshrl.u32 %v1753_v57, 16  ;;  %v4481_v58 = vshrl.u32 %v1754_v59, 16  ;;  %v17605_v38 = vadd.bf16 %v4466_v9, %v1736_v1  ;;  %v3272_v27 = vcombine.high %v3262_v43, %v3262_v43  ;;  %v23399_v8 = vld [vmem:[#allocation24_spill] sm:$0xff] }
 0x1bc   : > { %12199 = vrot.lane.b32.xlu0 %v17589_v37, %s23194_s20  ;;  %v6606_v21 = vadd.bf16 %v4451_v45, %v1743_v24  ;;  %v3271_v25 = vcombine.high %v3255_v53, %v3255_v53  ;;  %v3273_v32 = vcombine.high %v3269_v14, %v3269_v14  ;;  %v10287_v3 = vsel %vm8761_vm7, %v10286_v26, %v10285_v11 }
 0x1bd   : > { %v6607_v12 = vadd.bf16 %v4456_v30, %v1751_v16  ;;  %v5686_v5 = vshrl.u32 %v3248_v51, 16  ;;  %v5691_v62 = vshrl.u32 %v3262_v43, 16  ;;  %v10288_v46 = vrot.slane %v17268_v10, 1  ;;  %v17621_v16 = vpop.f32.mrf.mxu0 }
 0x1be   : > { %v17613_v56 = vadd.bf16 %v4471_v0, %v1750_v48  ;;  %v17615_v1 = vadd.bf16 %v4476_v42, %v1752_v63  ;;  %v6969_v9 = vadd.bf16 %v6605_v41, %v17424_v17  ;;  %v5696_v44 = vshrl.u32 %v3270_v40, 16  ;;  %23397 = vst [vmem:[#allocation48_spill] sm:$0xff] %v17621_v16 }
 0x1bf   : > { %v5701_v34 = vshrl.u32 %v3272_v27, 16  ;;  %v5706_v7 = vshrl.u32 %v3255_v53, 16  ;;  %v5711_v24 = vshrl.u32 %v3269_v14, 16  ;;  %v10289_v45 = vsel %vm8764_vm8, %v10288_v46, %v10287_v3  ;;  %v15831_v41 = vpop.f32.mrf.mxu0  ;;  %v23398_v3 = vld [vmem:[#allocation17_spill] sm:$0xff] }
 0x1c0   : > { %11081 = vrot.lane.b32.xlu0 %v17589_v37, %s23199_s23  ;;  %v6608_v10 = vadd.bf16 %v4461_v22, %v1753_v57  ;;  %v5716_v63 = vshrl.u32 %v3271_v25, 16  ;;  %v5721_v30 = vshrl.u32 %v3273_v32, 16  ;;  %v17625_v0 = vadd.bf16 %v4481_v58, %v1754_v59 }
 0x1c1   : > { %v6970_v17 = vadd.bf16 %v6606_v21, %v17430_v2  ;;  %v6853_v11 = vadd.bf16 %v5686_v5, %v3248_v51  ;;  %v6854_v42 = vadd.bf16 %v5691_v62, %v3262_v43  ;;  %v6855_v26 = vadd.bf16 %v5696_v44, %v3270_v40 }
 0x1c2   : > { %v882_v46 = vadd.f32 %v17462_v52, %v23398_v3  ;;  %v885_v16 = vadd.f32 %v17462_v52, %v23399_v8  ;;  %v10301_v57 = vpack.c.b16 %v10291_v35, %v10289_v45  ;;  %v6971_v22 = vadd.bf16 %v6607_v12, %v17426_v39 }
 0x1c3   : > { %v6856_v48 = vadd.bf16 %v5701_v34, %v3272_v27  ;;  %v6857_v29 = vadd.bf16 %v5706_v7, %v3255_v53  ;;  %v6858_v33 = vadd.bf16 %v5711_v24, %v3269_v14  ;;  %v6974_v2 = vadd.bf16 %v17613_v56, %v17434_v28  ;;  %v23400_v34 = vld [vmem:[#allocation18_spill] sm:$0xff] }
 0x1c4   : > { %10674 = vrot.lane.b32.xlu0 %v17589_v37, %s23192_s21  ;;  %v6975_v58 = vadd.bf16 %v17615_v1, %v17494_v6  ;;  %v6859_v44 = vadd.bf16 %v5716_v63, %v3271_v25  ;;  %v6860_v51 = vadd.bf16 %v5721_v30, %v3273_v32  ;;  %11845 = vrot.lane.b32.xlu1 %v10301_v57, %s23214_s9  ;;  %v23401_v27 = vld [vmem:[#allocation26_spill] sm:$0xff]  ;;  %v1230_v35 = vmax.f32 %v882_v46, 0.0 }
 0x1c5   : > { %v7091_v59 = vadd.bf16 %v6853_v11, %v17444_v49  ;;  %v7092_v39 = vadd.bf16 %v6854_v42, %v17475_v60  ;;  %v1130_v43 = vadd.f32 %v17462_v52, %v23400_v34  ;;  %v1133_v37 = vadd.f32 %v17462_v52, %v23401_v27  ;;  %v17676_v42 = vpop.f32.mrf.mxu0 }
 0x1c6   : > { %v7475_v53 = vrot.slane %v6969_v9, %v16497_v23  ;;  %v7093_v14 = vadd.bf16 %v6855_v26, %v17436_v20  ;;  %v1231_v40 = vmax.f32 %v885_v16, 0.0  ;;  %v6972_v25 = vadd.bf16 %v6608_v10, %v17428_v61  ;;  %23402 = vst [vmem:[#allocation50_spill] sm:$0xff] %v17676_v42 }
 0x1c7   : > { %v7094_v7 = vadd.bf16 %v6856_v48, %v17446_v55  ;;  %v7095_v49 = vadd.bf16 %v6857_v29, %v17448_v18  ;;  %v7096_v60 = vadd.bf16 %v6858_v33, %v17482_v47  ;;  %v7489_v21 = vrot.slane %v6970_v17, %v16497_v23 }
 0x1c8   : > { %11134 = vrot.lane.b32.xlu0 %v10301_v57, %s23038_s22  ;;  %v7503_v32 = vrot.slane %v6971_v22, %v16497_v23  ;;  %v7097_v12 = vadd.bf16 %v6859_v44, %v17530_v36  ;;  %v7098_v20 = vadd.bf16 %v6860_v51, %v17534_v4  ;;  %12252 = vrot.lane.b32.xlu1 %v10301_v57, %s23192_s21  ;;  %v1292_v18 = vmax.f32 %v1130_v43, 0.0  ;;  %s23212_s22 = smov 72   ;;  %v15834_v51 = vpop.f32.mrf.mxu0 }
 0x1c9   : > { %v10366_v61 = vrot.slane %v7091_v59, %v16497_v23  ;;  %v10380_v55 = vrot.slane %v7092_v39, %v16497_v23  ;;  %v1293_v29 = vmax.f32 %v1133_v37, 0.0  ;;  %v7482_v47 = vrot.slane %v7475_v53, %v16497_v23 }
 0x1ca   : > { %v10394_v33 = vrot.slane %v7093_v14, %v16497_v23  ;;  %v1321_v5 = vpack.c.bf16 %v1231_v40, %v1230_v35  ;;  %v15138_v62 = vpack.c.bf16 %v1231_v40, %v1231_v40  ;;  %v17663_v9 = vrot.slane %v6972_v25, %v16497_v23  ;;  %v17700_v35 = vpop.f32.mrf.mxu0 }
 0x1cb   : > { %v10408_v36 = vrot.slane %v7094_v7, %v16497_v23  ;;  %v10422_v4 = vrot.slane %v7095_v49, %v16497_v23  ;;  %v10436_v24 = vrot.slane %v7096_v60, %v16497_v23  ;;  %v7496_v45 = vrot.slane %v7489_v21, %v16497_v23  ;;  %23403 = vst [vmem:[#allocation51_spill] sm:$0xff] %v17700_v35 }
 0x1cc   : > { %10727 = vrot.lane.b32.xlu0 %v10301_v57, %s23212_s22  ;;  %v7510_v16 = vrot.slane %v7503_v32, %v16497_v23  ;;  %v10450_v10 = vrot.slane %v7097_v12, %v16497_v23  ;;  %v10464_v48 = vrot.slane %v7098_v20, %v16497_v23  ;;  %10320 = vrot.lane.b32.xlu1 %v10301_v57, %s23046_s16  ;;  %v17678_v41 = vunpack.c.l.b16 %v7482_v47  ;;  %v15835_v20 = vpop.f32.mrf.mxu0 }
 0x1cd   : > { %v10373_v63 = vrot.slane %v10366_v61, %v16497_v23  ;;  %v10387_v30 = vrot.slane %v10380_v55, %v16497_v23  ;;  %v1352_v17 = vpack.c.bf16 %v1293_v29, %v1292_v18  ;;  %v15169_v11 = vpack.c.bf16 %v1293_v29, %v1293_v29 }
 0x1ce   : > { %v10401_v26 = vrot.slane %v10394_v33, %v16497_v23  ;;  %v1762_v3 = vrot.slane %v1321_v5, %v16497_v23  ;;  %v1769_v46 = vrot.slane %v15138_v62, %v16497_v23  ;;  %v7524_v8 = vrot.slane %v17663_v9, %v16497_v23  ;;  %v17723_v9 = vpop.f32.mrf.mxu0 }
 0x1cf   : > { %v10415_v57 = vrot.slane %v10408_v36, %v16497_v23  ;;  %v10429_v22 = vrot.slane %v10422_v4, %v16497_v23  ;;  %v10443_v44 = vrot.slane %v10436_v24, %v16497_v23  ;;  %v17688_v59 = vunpack.c.l.b16 %v7496_v45  ;;  %23404 = vst [vmem:[#allocation17_spill] sm:$0xff] %v17723_v9 }
 0x1d0   : > { %v17690_v39 = vunpack.c.l.b16 %v7510_v16  ;;  %v10457_v34 = vrot.slane %v10450_v10, %v16497_v23  ;;  %v10471_v43 = vrot.slane %v10464_v48, %v16497_v23  ;;  %v17694_v27 = vunpack.c.l.b16 %v10373_v63  ;;  %v15838_v48 = vpop.f32.mrf.mxu0 }
 0x1d1   : > { %v17696_v37 = vunpack.c.l.b16 %v10387_v30  ;;  %v3281_v53 = vrot.slane %v1352_v17, %v16497_v23  ;;  %v3288_v14 = vrot.slane %v15169_v11, %v16497_v23  ;;  %v17702_v40 = vunpack.c.l.b16 %v10401_v26 }
 0x1d2   : > { %v1770_v25 = vcombine.high %v1762_v3, %v1762_v3  ;;  %v1771_v7 = vcombine.high %v1769_v46, %v1769_v46  ;;  %v9448_v49 = vrot.slane %v17515_v50, 7  ;;  %v17705_v60 = vunpack.c.l.b16 %v10415_v57 }
 0x1d3   : > { %v17707_v21 = vunpack.c.l.b16 %v10429_v22  ;;  %v17709_v32 = vunpack.c.l.b16 %v10443_v44  ;;  %v9302_v12 = vrot.slane %v6974_v2, %v16497_v23  ;;  %v17715_v61 = vunpack.c.l.b16 %v10457_v34 }
 0x1d4   : > { %v17717_v55 = vunpack.c.l.b16 %v10471_v43  ;;  %v1778_v18 = vrot.slane %v1762_v3, %v16497_v23  ;;  %v1785_v29 = vrot.slane %v1769_v46, %v16497_v23  ;;  %v3289_v5 = vcombine.high %v3281_v53, %v3281_v53 }
 0x1d5   : > { %v3290_v62 = vcombine.high %v3288_v14, %v3288_v14  ;;  %v17726_v28 = vrot.slane %v1770_v25, %v16497_v23  ;;  %v17729_v56 = vrot.slane %v1771_v7, %v16497_v23  ;;  %v17732_v2 = vrot.slane %v3281_v53, %v16497_v23  ;;  %v23406_v7 = vld [vmem:[#allocation37_spill] sm:$0xff] }
 0x1d6   : > { %v9449_v36 = vsel %vm8746_vm2, %v9448_v49, %v17501_v54  ;;  %v17737_v4 = vrot.slane %v3288_v14, %v16497_v23  ;;  %v23405_v24 = vadd.bf16 %v17605_v38, %v17432_v19  ;;  %v9309_v16 = vrot.slane %v9302_v12, %v16497_v23 }
 0x1d7   : > { %v9450_v10 = vrot.slane %v17518_v13, 6  ;;  %v17745_v63 = vcombine.high %v1778_v18, %v1778_v18  ;;  %v17747_v30 = vcombine.high %v1785_v29, %v1785_v29  ;;  %v4486_v17 = vshrl.u32 %v1778_v18, 16 }
 0x1d8   : > { %v8952_v45 = vrot.slane %v23405_v24, %v16497_v23  ;;  %v9452_v11 = vrot.slane %v17528_v15, 5  ;;  %v4506_v26 = vshrl.u32 %v1785_v29, 16  ;;  %v17751_v3 = vrot.slane %v3289_v5, %v16497_v23 }
 0x1d9   : > { %v17754_v46 = vrot.slane %v3290_v62, %v16497_v23  ;;  %v9451_v19 = vsel %vm8749_vm3, %v9450_v10, %v9449_v36  ;;  %v17759_v38 = vcombine.high %v17726_v28, %v17726_v28  ;;  %v17763_v57 = vcombine.high %v17729_v56, %v17729_v56  ;;  %v17784_v36 = vpop.f32.mrf.mxu0 }
 0x1da   : > { %v4491_v22 = vshrl.u32 %v17726_v28, 16  ;;  %v9453_v44 = vsel %vm8752_vm4, %v9452_v11, %v9451_v19  ;;  %v17767_v51 = vunpack.c.l.b16 %v7524_v8  ;;  %v8959_v34 = vrot.slane %v8952_v45, %v16497_v23  ;;  %23408 = vst [vmem:[#allocation18_spill] sm:$0xff] %v17784_v36  ;;  %v23409_v45 = vld [vmem:[#allocation34_spill] sm:$0xff]  ;;  %v17891_v36 = vpop.f32.mrf.mxu1 }
 0x1db   : > { %v17770_v43 = vunpack.c.l.b16 %v9309_v16  ;;  %v9454_v53 = vrot.slane %v17678_v41, 4  ;;  %v4496_v14 = vshrl.u32 %v17745_v63, 16  ;;  %v4511_v25 = vshrl.u32 %v17729_v56, 16  ;;  %23418 = vst [vmem:[#allocation63_spill] sm:$0xff] %v17891_v36 }
 0x1dc   : > { %v893_v49 = vadd.f32 %v17462_v52, %v23406_v7  ;;  %v9456_v12 = vrot.slane %v17688_v59, 3  ;;  %v4516_v20 = vshrl.u32 %v17747_v30, 16  ;;  %v17779_v5 = vadd.bf16 %v4486_v17, %v1778_v18 }
 0x1dd   : > { %v17781_v8 = vadd.bf16 %v4506_v26, %v1785_v29  ;;  %v5726_v62 = vshrl.u32 %v17732_v2, 16  ;;  %v890_v16 = vadd.f32 %v17462_v52, %v23409_v45  ;;  %v9455_v10 = vsel %vm23226_vm5, %v9454_v53, %v9453_v44  ;;  %v15839_v26 = vpop.f32.mrf.mxu0 }
 0x1de   : > { %v9458_v48 = vrot.slane %v17690_v39, 2  ;;  %v17791_v11 = vunpack.c.l.b16 %v8959_v34  ;;  %v9457_v18 = vsel %vm23222_vm6, %v9456_v12, %v9455_v10  ;;  %v9460_v29 = vrot.slane %v17767_v51, 1 }
 0x1df   : > { %23407 = vst [vmem:[#allocation24_spill] sm:$0xff] %v17781_v8  ;;  %v9462_v17 = vrot.slane %v17770_v43, 7  ;;  %v1233_v19 = vmax.f32 %v893_v49, 0.0  ;;  %v9652_v45 = vrot.slane %v6975_v58, %v16497_v23  ;;  %v9798_v44 = vrot.slane %v17518_v13, 7  ;;  %v17893_v9 = vpop.f32.mrf.mxu0 }
 0x1e0   : > { %v9459_v7 = vsel %vm8761_vm7, %v9458_v48, %v9457_v18  ;;  %v6861_v34 = vadd.bf16 %v5726_v62, %v17732_v2  ;;  %v9800_v10 = vrot.slane %v17528_v15, 6  ;;  %v9802_v6 = vrot.slane %v17678_v41, 5  ;;  %23419 = vst [vmem:[#allocation64_spill] sm:$0xff] %v17893_v9 }
 0x1e1   : > { %v9461_v53 = vsel %vm8764_vm8, %v9460_v29, %v9459_v7  ;;  %v9463_v12 = vsel %vm8746_vm2, %v9462_v17, %v17791_v11  ;;  %v9659_v49 = vrot.slane %v9652_v45, %v16497_v23  ;;  %v9799_v48 = vsel %vm8746_vm2, %v9798_v44, %v17515_v50 }
 0x1e2   : > { %v17807_v26 = vpack.c.b16 %v9463_v12, %v9461_v53  ;;  %v9801_v1 = vsel %vm8749_vm3, %v9800_v10, %v9799_v48  ;;  %v9804_v58 = vrot.slane %v17688_v59, 4  ;;  %v9806_v62 = vrot.slane %v17690_v39, 3 }
 0x1e3   : > { %v9808_v18 = vrot.slane %v17767_v51, 2  ;;  %v1232_v29 = vmax.f32 %v890_v16, 0.0  ;;  %v15139_v17 = vpack.c.bf16 %v1233_v19, %v1233_v19  ;;  %v17819_v7 = vunpack.c.l.b16 %v9659_v49 }
 0x1e4   : > { %23410 = vst [vmem:[#allocation26_spill] sm:$0xff] %v17807_v26  ;;  %9604 = vrot.lane.b32.xlu1 %v17807_v26, %s23203_s8  ;;  %v9803_v45 = vsel %vm8752_vm4, %v9802_v6, %v9801_v1  ;;  %v6976_v53 = vadd.bf16 %v17625_v0, %v17498_v31  ;;  %v10148_v12 = vrot.slane %v17528_v15, 7  ;;  %v10150_v10 = vrot.slane %v17678_v41, 6 }
 0x1e5   : > { %v9805_v44 = vsel %vm23226_vm5, %v9804_v58, %v9803_v45  ;;  %v9810_v16 = vrot.slane %v17791_v11, 1  ;;  %v9812_v33 = vrot.slane %v17819_v7, 7  ;;  %v10152_v49 = vrot.slane %v17688_v59, 5 }
 0x1e6   : > { %v9807_v48 = vsel %vm23222_vm6, %v9806_v62, %v9805_v44  ;;  %v10002_v6 = vrot.slane %v6976_v53, %v16497_v23  ;;  %v10149_v1 = vsel %vm8746_vm2, %v10148_v12, %v17518_v13  ;;  %v10154_v31 = vrot.slane %v17690_v39, 4 }
 0x1e7   : > { %v9809_v47 = vsel %vm8761_vm7, %v9808_v18, %v9807_v48  ;;  %v4521_v0 = vshrl.u32 %v17763_v57, 16  ;;  %v17838_v58 = vadd.bf16 %v4491_v22, %v17726_v28  ;;  %v9813_v45 = vsel %vm8746_vm2, %v9812_v33, %v17770_v43  ;;  %v23413_v22 = vld [vmem:[#allocation38_spill] sm:$0xff] }
 0x1e8   : > { %v9811_v62 = vsel %vm8764_vm8, %v9810_v16, %v9809_v47  ;;  %v3319_v18 = vcombine.high %v17732_v2, %v17732_v2  ;;  %v10151_v53 = vsel %vm8749_vm3, %v10150_v10, %v10149_v1  ;;  %v10156_v12 = vrot.slane %v17767_v51, 3 }
 0x1e9   : > { %v17845_v44 = vpack.c.b16 %v9813_v45, %v9811_v62  ;;  %v17850_v48 = vadd.bf16 %v4496_v14, %v17745_v63  ;;  %v3321_v28 = vcombine.high %v17751_v3, %v17751_v3  ;;  %v7099_v47 = vadd.bf16 %v6861_v34, %v23413_v22 }
 0x1ea   : > { %v10153_v16 = vsel %vm8752_vm4, %v10152_v49, %v10151_v53  ;;  %v1322_v33 = vpack.c.bf16 %v1233_v19, %v1232_v29  ;;  %v1818_v24 = vrot.slane %v15139_v17, %v16497_v23  ;;  %v10009_v2 = vrot.slane %v10002_v6, %v16497_v23 }
 0x1eb   : > { %23411 = vst [vmem:[#allocation37_spill] sm:$0xff] %v17845_v44  ;;  %23412 = vst [vmem:[#allocation34_spill] sm:$0xff] %v17850_v48  ;;  %9954 = vrot.lane.b32.xlu1 %v17845_v44, %s23214_s9  ;;  %v10155_v10 = vsel %vm23226_vm5, %v10154_v31, %v10153_v16  ;;  %v17864_v63 = vadd.bf16 %v4511_v25, %v17729_v56  ;;  %v17869_v14 = vadd.bf16 %v4516_v20, %v17747_v30 }
 0x1ec   : > { %v3320_v19 = vcombine.high %v17737_v4, %v17737_v4  ;;  %v3322_v34 = vcombine.high %v17754_v46, %v17754_v46  ;;  %v5731_v29 = vshrl.u32 %v17751_v3, 16  ;;  %v5736_v17 = vshrl.u32 %v3319_v18, 16 }
 0x1ed   : > { %23414 = vst [vmem:[#allocation38_spill] sm:$0xff] %v17864_v63  ;;  %23415 = vst [vmem:[#allocation61_spill] sm:$0xff] %v17869_v14  ;;  %v10157_v49 = vsel %vm23222_vm6, %v10156_v12, %v10155_v10  ;;  %v10158_v6 = vrot.slane %v17791_v11, 2  ;;  %v5741_v56 = vshrl.u32 %v3321_v28, 16  ;;  %v5746_v25 = vshrl.u32 %v17737_v4, 16 }
 0x1ee   : > { %v5751_v1 = vshrl.u32 %v17754_v46, 16  ;;  %v10526_v30 = vrot.slane %v7099_v47, %v16497_v23  ;;  %v1811_v20 = vrot.slane %v1322_v33, %v16497_v23  ;;  %v1820_v31 = vcombine.high %v1818_v24, %v1818_v24 }
 0x1ef   : > { %v10123_v62 = vunpack.c.l.b16 %v10009_v2  ;;  %v10159_v45 = vsel %vm8761_vm7, %v10158_v6, %v10157_v49  ;;  %v23416_v53 = vshrl.u32 %v17759_v38, 16  ;;  %v5756_v12 = vshrl.u32 %v3320_v19, 16  ;;  %v23421_v2 = vld [vmem:[#allocation36_spill] sm:$0xff] }
 0x1f0   : > { %v5761_v16 = vshrl.u32 %v3322_v34, 16  ;;  %v17889_v10 = vrot.slane %v1818_v24, %v16497_v23  ;;  %v17896_v47 = vadd.bf16 %v4521_v0, %v17763_v57  ;;  %v17899_v33 = vadd.bf16 %v5731_v29, %v17751_v3  ;;  %v15930_v57 = vpop.f32.mrf.mxu1  ;;  %v15842_v0 = vpop.f32.mrf.mxu0 }
 0x1f1   : > { %v17886_v22 = vadd.bf16 %v23416_v53, %v17759_v38  ;;  %v1138_v49 = vadd.f32 %v17462_v52, %v23421_v2  ;;  %v23422_v38 = vld [vmem:[#allocation41_spill] sm:$0xff]  ;;  %v17905_v53 = vadd.bf16 %v5736_v17, %v3319_v18  ;;  %v17907_v24 = vadd.bf16 %v5741_v56, %v3321_v28  ;;  %v23428_v28 = vld [vmem:[#allocation42_spill] sm:$0xff] }
 0x1f2   : > { %23420 = vst [vmem:[#allocation65_spill] sm:$0xff] %v17896_v47  ;;  %v1141_v6 = vadd.f32 %v17462_v52, %v23422_v38  ;;  %v17910_v35 = vadd.bf16 %v5746_v25, %v17737_v4  ;;  %v10533_v9 = vrot.slane %v10526_v30, %v16497_v23  ;;  %v17914_v3 = vadd.bf16 %v5751_v1, %v17754_v46  ;;  %v17929_v56 = vpop.f32.mrf.mxu1 }
 0x1f3   : > { %23417 = vst [vmem:[#allocation62_spill] sm:$0xff] %v17886_v22  ;;  %23423 = vst [vmem:[#allocation36_spill] sm:$0xff] %v17907_v24  ;;  %v1819_v29 = vcombine.high %v1811_v20, %v1811_v20  ;;  %v17917_v2 = vrot.slane %v1820_v31, %v16497_v23  ;;  %v10162_v42 = vrot.slane %v10123_v62, 7  ;;  %v17919_v38 = vadd.bf16 %v5756_v12, %v3320_v19  ;;  %v23430_v31 = vld [vmem:[#allocation44_spill] sm:$0xff]  ;;  %v23433_v62 = vld [vmem:[#allocation43_spill] sm:$0xff] }
 0x1f4   : > { %23424 = vst [vmem:[#allocation41_spill] sm:$0xff] %v17910_v35  ;;  %23425 = vst [vmem:[#allocation66_spill] sm:$0xff] %v17914_v3  ;;  %v17921_v18 = vadd.bf16 %v5761_v16, %v3322_v34  ;;  %v1850_v4 = vcombine.high %v17889_v10, %v17889_v10  ;;  %v17927_v17 = vadd.f32 %v17462_v52, %v23428_v28  ;;  %v1294_v46 = vmax.f32 %v1138_v49, 0.0  ;;  %v23431_v34 = vld [vmem:[#allocation9_spill] sm:$0xff]  ;;  %v15931_v0 = vpop.f32.mrf.mxu1 }
 0x1f5   : > { %23426 = vst [vmem:[#allocation67_spill] sm:$0xff] %v17919_v38  ;;  %23429 = vst [vmem:[#allocation42_spill] sm:$0xff] %v17929_v56  ;;  %v1827_v25 = vrot.slane %v1811_v20, %v16497_v23  ;;  %v1295_v1 = vmax.f32 %v1141_v6, 0.0  ;;  %v10160_v30 = vrot.slane %v17770_v43, 1  ;;  %v17939_v57 = vunpack.c.l.b16 %v10533_v9 }
 0x1f6   : > { %23427 = vst [vmem:[#allocation68_spill] sm:$0xff] %v17921_v18  ;;  %v1841_v28 = vrot.slane %v1819_v29, %v16497_v23  ;;  %v1852_v20 = vcombine.high %v17917_v2, %v17917_v2  ;;  %v10163_v43 = vsel %vm8746_vm2, %v10162_v42, %v17819_v7  ;;  %v4556_v6 = vshrl.u32 %v1850_v4, 16  ;;  %v23434_v29 = vld [vmem:[#allocation45_spill] sm:$0xff]  ;;  %v23435_v18 = vld [vmem:[#allocation11_spill] sm:$0xff] }
 0x1f7   : > { %v10161_v49 = vsel %vm8764_vm8, %v10160_v30, %v10159_v45  ;;  %v17950_v56 = vadd.f32 %v17462_v52, %v23433_v62  ;;  %v1849_v16 = vcombine.high %v1827_v25, %v1827_v25  ;;  %v1353_v0 = vpack.c.bf16 %v1295_v1, %v1294_v46 }
 0x1f8   : > { %v10293_v9 = vpack.c.b16 %v10163_v43, %v10161_v49  ;;  %v15170_v36 = vpack.c.bf16 %v1295_v1, %v1295_v1  ;;  %v23436_v38 = vrot.slane %v23435_v18, 7  ;;  %v4526_v45 = vshrl.u32 %v1827_v25, 16 }
 0x1f9   : > { %v4546_v30 = vshrl.u32 %v17889_v10, 16  ;;  %v23437_v42 = vrot.slane %v17694_v27, 6  ;;  %v10486_v62 = vrot.slane %v17696_v37, 5  ;;  %v1851_v49 = vcombine.high %v1841_v28, %v1841_v28 }
 0x1fa   : > { %v10483_v3 = vsel %vm8746_vm2, %v23436_v38, %v23434_v29  ;;  %10304 = vrot.lane.b32.xlu1 %v10293_v9, %s23046_s16  ;;  %v4561_v43 = vshrl.u32 %v1852_v20, 16  ;;  %v10488_v46 = vrot.slane %v17702_v40, 4  ;;  %v10490_v1 = vrot.slane %v17705_v60, 3 }
 0x1fb   : > { %v10485_v7 = vsel %vm8749_vm3, %v23437_v42, %v10483_v3  ;;  %v4531_v19 = vshrl.u32 %v1841_v28, 16  ;;  %v6627_v35 = vadd.bf16 %v4556_v6, %v1850_v4  ;;  %v10492_v29 = vrot.slane %v17707_v21, 2  ;;  %v23438_v42 = vld [vmem:[#allocation46_spill] sm:$0xff] }
 0x1fc   : > { %v10487_v38 = vsel %vm8752_vm4, %v10486_v62, %v10485_v7  ;;  %v3330_v12 = vrot.slane %v1353_v0, %v16497_v23  ;;  %v3337_v24 = vrot.slane %v15170_v36, %v16497_v23  ;;  %v23439_v63 = vrot.slane %v17501_v54, 7 }
 0x1fd   : > { %v10489_v3 = vsel %vm23226_vm5, %v10488_v46, %v10487_v38  ;;  %v10494_v4 = vrot.slane %v17709_v32, 1  ;;  %v9100_v6 = vrot.slane %v17515_v50, 6  ;;  %v9102_v7 = vrot.slane %v17518_v13, 5  ;;  %v17980_v38 = vpop.f32.mrf.mxu0 }
 0x1fe   : > { %v9099_v47 = vsel %vm8746_vm2, %v23439_v63, %v23438_v42  ;;  %10711 = vrot.lane.b32.xlu1 %v10293_v9, %s23212_s22  ;;  %v10491_v8 = vsel %vm23222_vm6, %v10490_v1, %v10489_v3  ;;  %v4536_v0 = vshrl.u32 %v1849_v16, 16  ;;  %v4551_v36 = vshrl.u32 %v17917_v2, 16  ;;  %23440 = vst [vmem:[#allocation44_spill] sm:$0xff] %v17980_v38 }
 0x1ff   : > { %v6628_v62 = vadd.bf16 %v4561_v43, %v1852_v20  ;;  %v10496_v46 = vrot.slane %v17717_v55, 7  ;;  %v17982_v22 = vadd.bf16 %v4526_v45, %v1827_v25  ;;  %v17985_v63 = vadd.bf16 %v4546_v30, %v17889_v10  ;;  %v15843_v26 = vpop.f32.mrf.mxu0  ;;  %v23443_v30 = vld [vmem:[#allocation47_spill] sm:$0xff] }
 0x200   : > { %v10493_v9 = vsel %vm8761_vm7, %v10492_v29, %v10491_v8  ;;  %v9101_v1 = vsel %vm8749_vm3, %v9100_v6, %v9099_v47  ;;  %v4541_v3 = vshrl.u32 %v1851_v49, 16  ;;  %v6977_v14 = vadd.bf16 %v6627_v35, %v17779_v5 }
 0x201   : > { %23441 = vst [vmem:[#allocation9_spill] sm:$0xff] %v17985_v63  ;;  %v3338_v48 = vcombine.high %v3330_v12, %v3330_v12  ;;  %v3339_v44 = vcombine.high %v3337_v24, %v3337_v24  ;;  %v17991_v20 = vrot.slane %v3330_v12, %v16497_v23  ;;  %v10495_v43 = vsel %vm8764_vm8, %v10494_v4, %v10493_v9 }
 0x202   : > { %v9103_v25 = vsel %vm8752_vm4, %v9102_v7, %v9101_v1  ;;  %v9104_v10 = vrot.slane %v17528_v15, 4  ;;  %v6978_v45 = vadd.bf16 %v6628_v62, %v17838_v58  ;;  %v17998_v8 = vrot.slane %v3337_v24, %v16497_v23 }
 0x203   : > { %v10497_v35 = vsel %vm8746_vm2, %v10496_v46, %v17715_v61  ;;  %v9106_v5 = vrot.slane %v17678_v41, 3  ;;  %v18003_v26 = vadd.bf16 %v4531_v19, %v1841_v28  ;;  %v18005_v47 = vadd.bf16 %v4536_v0, %v1849_v16 }
 0x204   : > { %v18008_v12 = vadd.bf16 %v4551_v36, %v17917_v2  ;;  %v901_v29 = vadd.f32 %v17462_v52, %v23443_v30  ;;  %v18012_v4 = vadd.bf16 %v4541_v3, %v1851_v49  ;;  %v18015_v58 = vrot.slane %v6977_v14, %v16497_v23 }
 0x205   : > { %v18018_v24 = vrot.slane %v3338_v48, %v16497_v23  ;;  %v1296_v6 = vmax.f32 %v17950_v56, 0.0  ;;  %v18022_v19 = vrot.slane %v3339_v44, %v16497_v23  ;;  %v18026_v2 = vcombine.high %v17991_v20, %v17991_v20 }
 0x206   : > { %23442 = vst [vmem:[#allocation43_spill] sm:$0xff] %v18008_v12  ;;  %v18028_v16 = vpack.c.b16 %v10497_v35, %v10495_v43  ;;  %v9105_v28 = vsel %vm23226_vm5, %v9104_v10, %v9103_v25  ;;  %v18032_v49 = vrot.slane %v6978_v45, %v16497_v23  ;;  %v18036_v48 = vcombine.high %v17998_v8, %v17998_v8  ;;  %v23445_v35 = vld [vmem:[#allocation52_spill] sm:$0xff] }
 0x207   : > { %v9107_v14 = vsel %vm23222_vm6, %v9106_v5, %v9105_v28  ;;  %v9108_v44 = vrot.slane %v17688_v59, 2  ;;  %v1235_v7 = vmax.f32 %v901_v29, 0.0  ;;  %v9110_v0 = vrot.slane %v17690_v39, 1 }
 0x208   : > { %10517 = vrot.lane.b32.xlu1 %v18028_v16, %s23170_s13  ;;  %v9112_v36 = vrot.slane %v17791_v11, 7  ;;  %v23444_v62 = vrot.slane %v17694_v27, 7  ;;  %v10537_v1 = vrot.slane %v17696_v37, 6  ;;  %v10539_v3 = vrot.slane %v17702_v40, 5 }
 0x209   : > { %v9109_v9 = vsel %vm8761_vm7, %v9108_v44, %v9107_v14  ;;  %v10541_v43 = vrot.slane %v17705_v60, 4  ;;  %v5766_v25 = vshrl.u32 %v17991_v20, 16  ;;  %v10543_v45 = vrot.slane %v17707_v21, 3 }
 0x20a   : > { %v10536_v46 = vsel %vm8746_vm2, %v23444_v62, %v23435_v18  ;;  %v9111_v10 = vsel %vm8764_vm8, %v9110_v0, %v9109_v9  ;;  %v9113_v11 = vsel %vm8746_vm2, %v9112_v36, %v17767_v51  ;;  %v1149_v18 = vadd.f32 %v17462_v52, %v23445_v35  ;;  %v18076_v35 = vpop.f32.mrf.mxu1 }
 0x20b   : > { %v9243_v5 = vpack.c.b16 %v9113_v11, %v9111_v10  ;;  %v10538_v30 = vsel %vm8749_vm3, %v10537_v1, %v10536_v46  ;;  %v10545_v29 = vrot.slane %v17709_v32, 2  ;;  %v10547_v14 = vrot.slane %v17715_v61, 1  ;;  %v23447_v10 = vld [vmem:[#allocation33_spill] sm:$0xff]  ;;  %23448 = vst [vmem:[#allocation45_spill] sm:$0xff] %v18076_v35 }
 0x20c   : > { %v10540_v28 = vsel %vm8752_vm4, %v10539_v3, %v10538_v30  ;;  %v10549_v44 = vrot.slane %v17939_v57, 7  ;;  %v8768_v0 = vrot.slane %v23438_v42, 7  ;;  %v23446_v36 = vmax.f32 %v17927_v17, 0.0 }
 0x20d   : > { %v15140_v9 = vpack.c.bf16 %v1235_v7, %v1235_v7  ;;  %9254 = vrot.lane.b32.xlu0 %v9243_v5, %s23125_s29  ;;  %v10542_v52 = vsel %vm23226_vm5, %v10541_v43, %v10540_v28  ;;  %v8770_v46 = vrot.slane %v17501_v54, 6  ;;  %v8772_v42 = vrot.slane %v17515_v50, 5  ;;  %v18086_v50 = vpop.f32.mrf.mxu0 }
 0x20e   : > { %v1323_v62 = vpack.c.bf16 %v1235_v7, %v23446_v36  ;;  %v10544_v1 = vsel %vm23222_vm6, %v10543_v45, %v10542_v52  ;;  %v10550_v3 = vsel %vm8746_vm2, %v10549_v44, %v17717_v55  ;;  %v8769_v11 = vsel %vm8746_vm2, %v8768_v0, %v23447_v10  ;;  %v15934_v0 = vpop.f32.mrf.mxu1  ;;  %23449 = vst [vmem:[#allocation11_spill] sm:$0xff] %v18086_v50 }
 0x20f   : > { %v10546_v17 = vsel %vm8761_vm7, %v10545_v29, %v10544_v1  ;;  %v8771_v7 = vsel %vm8749_vm3, %v8770_v46, %v8769_v11  ;;  %v8774_v43 = vrot.slane %v17518_v13, 4  ;;  %v8778_v54 = vrot.slane %v17678_v41, 2 }
 0x210   : > { %v5786_v45 = vshrl.u32 %v17998_v8, 16  ;;  %v10548_v30 = vsel %vm8764_vm8, %v10547_v14, %v10546_v17  ;;  %v8773_v28 = vsel %vm8752_vm4, %v8772_v42, %v8771_v7  ;;  %v8776_v44 = vrot.slane %v17528_v15, 3  ;;  %v18098_v1 = vpop.f32.mrf.mxu1 }
 0x211   : > { %v18088_v36 = vpack.c.b16 %v10550_v3, %v10548_v30  ;;  %10552 = vrot.lane.b32.xlu0 %v9243_v5, %s23129_s15  ;;  %v8775_v29 = vsel %vm23226_vm5, %v8774_v43, %v8773_v28  ;;  %v8780_v13 = vrot.slane %v17688_v59, 1  ;;  %v8782_v41 = vrot.slane %v17767_v51, 7  ;;  %23451 = vst [vmem:[#allocation47_spill] sm:$0xff] %v18098_v1  ;;  %v15846_v3 = vpop.f32.mrf.mxu0 }
 0x212   : > { %v7538_v14 = vrot.slane %v18015_v58, %v16497_v23  ;;  %v1860_v52 = vrot.slane %v1323_v62, %v16497_v23  ;;  %v1297_v46 = vmax.f32 %v1149_v18, 0.0  ;;  %v8777_v15 = vsel %vm23222_vm6, %v8776_v44, %v8775_v29  ;;  %v15935_v42 = vpop.f32.mrf.mxu1 }
 0x213   : > { %23450 = vst [vmem:[#allocation46_spill] sm:$0xff] %v18088_v36  ;;  %v18102_v5 = vcombine.high %v18018_v24, %v18018_v24  ;;  %v1867_v10 = vrot.slane %v15140_v9, %v16497_v23  ;;  %12095 = vrot.lane.b32.xlu1 %v18088_v36, %s23170_s13  ;;  %v8779_v59 = vsel %vm8761_vm7, %v8778_v54, %v8777_v15  ;;  %v5771_v11 = vshrl.u32 %v18018_v24, 16  ;;  %v23456_v42 = vld [vmem:[#allocation26_spill] sm:$0xff] }
 0x214   : > { %v23452_v51 = vadd.bf16 %v17905_v53, %v23431_v34  ;;  %v7552_v18 = vrot.slane %v18032_v49, %v16497_v23  ;;  %v18116_v62 = vcombine.high %v18022_v19, %v18022_v19  ;;  %v8783_v9 = vsel %vm8746_vm2, %v8782_v41, %v17690_v39 }
 0x215   : > { %v5776_v17 = vshrl.u32 %v18026_v2, 16  ;;  %v8781_v34 = vsel %vm8764_vm8, %v8780_v13, %v8779_v59  ;;  %v18125_v43 = vunpack.c.l.b16 %v7538_v14  ;;  %v1868_v49 = vcombine.high %v1860_v52, %v1860_v52 }
 0x216   : > { %v10632_v58 = vrot.slane %v23452_v51, %v16497_v23  ;;  %v1354_v54 = vpack.c.bf16 %v1297_v46, %v1296_v6  ;;  %v15171_v30 = vpack.c.bf16 %v1297_v46, %v1297_v46  ;;  %v1869_v28 = vcombine.high %v1867_v10, %v1867_v10 }
 0x217   : > { %10570 = vrot.lane.b32.xlu1 %v18088_v36, %s23129_s15  ;;  %v18131_v39 = vpack.c.b16 %v8783_v9, %v8781_v34  ;;  %v23454_v44 = vadd.bf16 %v17899_v33, %v23430_v31  ;;  %v1876_v56 = vrot.slane %v1860_v52, %v16497_v23  ;;  %v1883_v6 = vrot.slane %v1867_v10, %v16497_v23 }
 0x218   : > { %v10639_v29 = vrot.slane %v10632_v58, %v16497_v23  ;;  %v18142_v14 = vunpack.c.l.b16 %v7552_v18  ;;  %v18147_v46 = vadd.bf16 %v5766_v25, %v17991_v20  ;;  %v18150_v33 = vadd.bf16 %v5771_v11, %v18018_v24 }
 0x219   : > { %23453 = vst [vmem:[#allocation52_spill] sm:$0xff] %v18131_v39  ;;  %v10579_v0 = vrot.slane %v23454_v44, %v16497_v23  ;;  %v18153_v31 = vadd.bf16 %v5776_v17, %v18026_v2  ;;  %10499 = vrot.lane.b32.xlu0 %v18131_v39, %s23170_s13  ;;  %v18158_v52 = vadd.bf16 %v5786_v45, %v17998_v8  ;;  %v10641_v10 = vrot.slane %v17702_v40, 7 }
 0x21a   : > { %v1890_v15 = vrot.slane %v1868_v49, %v16497_v23  ;;  %v18162_v3 = vrot.slane %v1354_v54, %v16497_v23  ;;  %v18165_v20 = vrot.slane %v15171_v30, %v16497_v23  ;;  %v1897_v24 = vrot.slane %v1869_v28, %v16497_v23 }
 0x21b   : > { %23455 = vst [vmem:[#allocation33_spill] sm:$0xff] %v18158_v52  ;;  %v10586_v25 = vrot.slane %v10579_v0, %v16497_v23  ;;  %v18169_v2 = vunpack.c.l.b16 %v10639_v29  ;;  %v1898_v59 = vcombine.high %v1876_v56, %v1876_v56  ;;  %v18172_v51 = vcombine.high %v1883_v6, %v1883_v6 }
 0x21c   : > { %v10643_v8 = vrot.slane %v17705_v60, 6  ;;  %v10645_v45 = vrot.slane %v17707_v21, 5  ;;  %v4566_v58 = vshrl.u32 %v1876_v56, 16  ;;  %v10642_v18 = vsel %vm8746_vm2, %v10641_v10, %v17696_v37 }
 0x21d   : > { %v10647_v11 = vrot.slane %v17709_v32, 4  ;;  %v10649_v9 = vrot.slane %v17715_v61, 3  ;;  %10605 = vrot.lane.b32.xlu0 %v23456_v42, %s23194_s20  ;;  %v1900_v17 = vcombine.high %v1890_v15, %v1890_v15  ;;  %v4586_v34 = vshrl.u32 %v1883_v6, 16 }
 0x21e   : > { %v10644_v49 = vsel %vm8749_vm3, %v10643_v8, %v10642_v18  ;;  %v10651_v54 = vrot.slane %v17717_v55, 2  ;;  %v18184_v30 = vunpack.c.l.b16 %v10586_v25  ;;  %v10653_v44 = vrot.slane %v17939_v57, 1 }
 0x21f   : > { %v10646_v28 = vsel %vm8752_vm4, %v10645_v45, %v10644_v49  ;;  %v10655_v0 = vrot.slane %v18169_v2, 7  ;;  %v1901_v29 = vcombine.high %v1897_v24, %v1897_v24  ;;  %v10588_v41 = vrot.slane %v17696_v37, 7  ;;  %v23457_v45 = vld [vmem:[#allocation37_spill] sm:$0xff] }
 0x220   : > { %v10648_v10 = vsel %vm23226_vm5, %v10647_v11, %v10646_v28  ;;  %v10590_v42 = vrot.slane %v17702_v40, 6  ;;  %v4571_v53 = vshrl.u32 %v1890_v15, 16  ;;  %v4576_v7 = vshrl.u32 %v1898_v59, 16 }
 0x221   : > { %v10650_v8 = vsel %vm23222_vm6, %v10649_v9, %v10648_v10  ;;  %v10656_v25 = vsel %vm8746_vm2, %v10655_v0, %v18184_v30  ;;  %10658 = vrot.lane.b32.xlu0 %v23457_v45, %s23192_s21  ;;  %v4591_v18 = vshrl.u32 %v1897_v24, 16  ;;  %v10589_v11 = vsel %vm8746_vm2, %v10588_v41, %v17694_v27 }
 0x222   : > { %v10652_v49 = vsel %vm8761_vm7, %v10651_v54, %v10650_v8  ;;  %v10592_v37 = vrot.slane %v17705_v60, 5  ;;  %v4596_v28 = vshrl.u32 %v18172_v51, 16  ;;  %v6629_v13 = vadd.bf16 %v4566_v58, %v1876_v56 }
 0x223   : > { %v6633_v36 = vadd.bf16 %v4586_v34, %v1883_v6  ;;  %v10654_v9 = vsel %vm8764_vm8, %v10653_v44, %v10652_v49  ;;  %v4581_v10 = vshrl.u32 %v1900_v17, 16  ;;  %v10591_v0 = vsel %vm8749_vm3, %v10590_v42, %v10589_v11  ;;  %v18215_v34 = vpop.f32.mrf.mxu0  ;;  %v18217_v44 = vpop.f32.mrf.mxu1  ;;  %v23466_v11 = vld [vmem:[#allocation61_spill] sm:$0xff] }
 0x224   : > { %v18203_v39 = vpack.c.b16 %v10656_v25, %v10654_v9  ;;  %v10594_v45 = vrot.slane %v17707_v21, 4  ;;  %v4601_v50 = vshrl.u32 %v1901_v29, 16  ;;  %v6630_v54 = vadd.bf16 %v4571_v53, %v1890_v15  ;;  %23459 = vst [vmem:[#allocation37_spill] sm:$0xff] %v18215_v34  ;;  %23460 = vst [vmem:[#allocation69_spill] sm:$0xff] %v18217_v44 }
 0x225   : > { %v10593_v8 = vsel %vm8752_vm4, %v10592_v37, %v10591_v0  ;;  %v10596_v27 = vrot.slane %v17709_v32, 3  ;;  %12042 = vrot.lane.b32.xlu0 %v18028_v16, %s23046_s16  ;;  %v6631_v41 = vadd.bf16 %v4576_v7, %v1898_v59  ;;  %v6634_v56 = vadd.bf16 %v4591_v18, %v1897_v24  ;;  %v23465_v18 = vld [vmem:[#allocation34_spill] sm:$0xff]  ;;  %v15847_v0 = vpop.f32.mrf.mxu0  ;;  %s23594_s16 = smov 32  }
 0x226   : > { %23458 = vst [vmem:[#allocation26_spill] sm:$0xff] %v18203_v39  ;;  %12201 = vrot.lane.b32.xlu1 %v18203_v39, %s23194_s20  ;;  %v10595_v6 = vsel %vm23226_vm5, %v10594_v45, %v10593_v8  ;;  %v10598_v58 = vrot.slane %v17715_v61, 2  ;;  %v23461_v53 = vshrl.u32 %v18102_v5, 16  ;;  %v23462_v7 = vshrl.u32 %v18022_v19, 16 }
 0x227   : > { %v23464_v59 = vshrl.u32 %v18036_v48, 16  ;;  %v3387_v25 = vcombine.high %v18162_v3, %v18162_v3  ;;  %v6979_v49 = vadd.bf16 %v6629_v13, %v23465_v18  ;;  %v6983_v37 = vadd.bf16 %v6633_v36, %v23466_v11  ;;  %v23468_v13 = vld [vmem:[#allocation24_spill] sm:$0xff]  ;;  %v23469_v18 = vld [vmem:[#allocation65_spill] sm:$0xff] }
 0x228   : > { %v18222_v15 = vadd.bf16 %v23461_v53, %v18102_v5  ;;  %v18227_v24 = vadd.bf16 %v23462_v7, %v18022_v19  ;;  %v3388_v5 = vcombine.high %v18165_v20, %v18165_v20  ;;  %v10597_v9 = vsel %vm23222_vm6, %v10596_v27, %v10595_v6  ;;  %v15938_v19 = vpop.f32.mrf.mxu1  ;;  %v23467_v53 = vld [vmem:[#allocation62_spill] sm:$0xff]  ;;  %v18252_v6 = vpop.f32.mrf.mxu0 }
 0x229   : > { %v18232_v42 = vadd.bf16 %v23464_v59, %v18036_v48  ;;  %v6632_v45 = vadd.bf16 %v4581_v10, %v1900_v17  ;;  %v6636_v8 = vadd.bf16 %v4601_v50, %v1901_v29  ;;  %v6980_v7 = vadd.bf16 %v6630_v54, %v23467_v53  ;;  %11331 = vrot.lane.b32.xlu0 %v18028_v16, %s23048_s17  ;;  %v23472_v29 = vld [vmem:[#allocation53_spill] sm:$0xff]  ;;  %v23473_v10 = vld [vmem:[#allocation54_spill] sm:$0xff]  ;;  %s23597_s17 = smov 112  }
 0x22a   : > { %23463 = vst [vmem:[#allocation70_spill] sm:$0xff] %v18227_v24  ;;  %v18244_v48 = vrot.slane %v18162_v3, %v16497_v23  ;;  %v6635_v36 = vadd.bf16 %v4596_v28, %v18172_v51  ;;  %v6981_v59 = vadd.bf16 %v6631_v41, %v23468_v13  ;;  %v6984_v11 = vadd.bf16 %v6634_v56, %v23469_v18  ;;  %v18254_v50 = vpop.f32.mrf.mxu1  ;;  %v18264_v51 = vld [vmem:[%s22981_s2] ss:$0 sm:$0xff]  ;;  %v23475_v19 = vld [vmem:[#allocation38_spill] sm:$0xff] }
 0x22b   : > { %v10599_v27 = vsel %vm8761_vm7, %v10598_v58, %v10597_v9  ;;  %23470 = vst [vmem:[#allocation34_spill] sm:$0xff] %v18252_v6  ;;  %23471 = vst [vmem:[#allocation61_spill] sm:$0xff] %v18254_v50  ;;  %v3402_v17 = vrot.slane %v18165_v20, %v16497_v23  ;;  %v18259_v3 = vrot.slane %v3387_v25, %v16497_v23  ;;  %v23474_v58 = vld [vmem:[#allocation55_spill] sm:$0xff]  ;;  %v15850_v9 = vpop.f32.mrf.mxu0  ;;  %v10600_v50 = vrot.slane %v17717_v55, 1 }
 0x22c   : > { %v906_v28 = vadd.f32 %v18264_v51, %v23472_v29  ;;  %v18270_v54 = vadd.f32 %v18264_v51, %v23473_v10  ;;  %v7559_v41 = vrot.slane %v6979_v49, %v16497_v23  ;;  %v7615_v56 = vrot.slane %v6983_v37, %v16497_v23  ;;  %v15939_v0 = vpop.f32.mrf.mxu1 }
 0x22d   : > { %v3416_v20 = vrot.slane %v3388_v5, %v16497_v23  ;;  %v909_v25 = vadd.f32 %v18264_v51, %v23474_v58  ;;  %v6982_v53 = vadd.bf16 %v6632_v45, %v23475_v19  ;;  %v6986_v13 = vadd.bf16 %v6636_v8, %v18003_v26  ;;  %10924 = vrot.lane.b32.xlu0 %v18028_v16, %s23210_s18 }
 0x22e   : > { %v7573_v18 = vrot.slane %v6980_v7, %v16497_v23  ;;  %v3417_v29 = vcombine.high %v18244_v48, %v18244_v48  ;;  %v23476_v49 = vshrl.u32 %v18116_v62, 16  ;;  %v6985_v5 = vadd.bf16 %v6635_v36, %v17982_v22 }
 0x22f   : > { %v7587_v10 = vrot.slane %v6981_v59, %v16497_v23  ;;  %v7629_v45 = vrot.slane %v6984_v11, %v16497_v23  ;;  %v3418_v26 = vcombine.high %v3402_v17, %v3402_v17  ;;  %v3419_v8 = vcombine.high %v18259_v3, %v18259_v3 }
 0x230   : > { %v18287_v37 = vadd.bf16 %v23476_v49, %v18116_v62  ;;  %v1236_v7 = vmax.f32 %v906_v28, 0.0  ;;  %v7566_v16 = vrot.slane %v7559_v41, %v16497_v23  ;;  %v7622_v9 = vrot.slane %v7615_v56, %v16497_v23 }
 0x231   : > { %v3420_v0 = vcombine.high %v3416_v20, %v3416_v20  ;;  %v1237_v62 = vmax.f32 %v909_v25, 0.0  ;;  %v7580_v19 = vrot.slane %v7573_v18, %v16497_v23  ;;  %v18299_v22 = vrot.slane %v6982_v53, %v16497_v23 }
 0x232   : > { %23477 = vst [vmem:[#allocation62_spill] sm:$0xff] %v18287_v37  ;;  %v18302_v36 = vrot.slane %v6986_v13, %v16497_v23  ;;  %v5816_v59 = vshrl.u32 %v3417_v29, 16  ;;  %v7594_v11 = vrot.slane %v7587_v10, %v16497_v23  ;;  %v7636_v28 = vrot.slane %v7629_v45, %v16497_v23 }
 0x233   : > { %v18307_v49 = vrot.slane %v6985_v5, %v16497_v23  ;;  %v10602_v41 = vrot.slane %v18184_v30, 7  ;;  %v5821_v56 = vshrl.u32 %v3419_v8, 16  ;;  %v5826_v25 = vshrl.u32 %v3402_v17, 16  ;;  %v23479_v5 = vld [vmem:[#allocation13_spill] sm:$0xff] }
 0x234   : > { %v5831_v58 = vshrl.u32 %v3416_v20, 16  ;;  %v5836_v18 = vshrl.u32 %v3418_v26, 16  ;;  %v18310_v6 = vunpack.c.l.b16 %v7566_v16  ;;  %v18312_v53 = vunpack.c.l.b16 %v7622_v9 }
 0x235   : > { %v5841_v13 = vshrl.u32 %v3420_v0, 16  ;;  %v7608_v10 = vrot.slane %v18299_v22, %v16497_v23  ;;  %v18319_v45 = vunpack.c.l.b16 %v7580_v19  ;;  %v6879_v44 = vadd.bf16 %v5816_v59, %v3417_v29  ;;  %v23478_v19 = vld [vmem:[#allocation36_spill] sm:$0xff] }
 0x236   : > { %v18321_v34 = vunpack.c.l.b16 %v7594_v11  ;;  %v18323_v35 = vunpack.c.l.b16 %v7636_v28  ;;  %v1324_v16 = vpack.c.bf16 %v1237_v62, %v1236_v7  ;;  %v10603_v9 = vsel %vm8746_vm2, %v10602_v41, %v17939_v57  ;;  %v23481_v11 = vld [vmem:[#allocation41_spill] sm:$0xff]  ;;  %v23486_v41 = vld [vmem:[#allocation15_spill] sm:$0xff] }
 0x237   : > { %v6880_v38 = vadd.bf16 %v5821_v56, %v3419_v8  ;;  %v6881_v12 = vadd.bf16 %v5826_v25, %v3402_v17  ;;  %v6882_v1 = vadd.bf16 %v5831_v58, %v3416_v20  ;;  %v6883_v37 = vadd.bf16 %v5836_v18, %v3418_v26 }
 0x238   : > { %v6884_v24 = vadd.bf16 %v5841_v13, %v3420_v0  ;;  %v15141_v22 = vpack.c.bf16 %v1237_v62, %v1237_v62  ;;  %v10601_v63 = vsel %vm8764_vm8, %v10600_v50, %v10599_v27  ;;  %v23480_v29 = vadd.bf16 %v23478_v19, %v23479_v5  ;;  %v23483_v50 = vld [vmem:[#allocation66_spill] sm:$0xff]  ;;  %v23484_v0 = vld [vmem:[#allocation67_spill] sm:$0xff] }
 0x239   : > { %v7103_v28 = vadd.bf16 %v6879_v44, %v23481_v11  ;;  %v18333_v52 = vpack.c.b16 %v10603_v9, %v10601_v63  ;;  %v10694_v7 = vrot.slane %v17705_v60, 7  ;;  %v10696_v8 = vrot.slane %v17707_v21, 6  ;;  %v23485_v63 = vld [vmem:[#allocation68_spill] sm:$0xff] }
 0x23a   : > { %v10685_v59 = vrot.slane %v23480_v29, %v16497_v23  ;;  %v1909_v17 = vrot.slane %v1324_v16, %v16497_v23  ;;  %v10698_v26 = vrot.slane %v17709_v32, 5  ;;  %v10700_v27 = vrot.slane %v17715_v61, 4 }
 0x23b   : > { %23482 = vst [vmem:[#allocation24_spill] sm:$0xff] %v18333_v52  ;;  %v7104_v58 = vadd.bf16 %v6880_v38, %v23483_v50  ;;  %v7105_v62 = vadd.bf16 %v6881_v12, %v23484_v0  ;;  %10623 = vrot.lane.b32.xlu1 %v18333_v52, %s23194_s20  ;;  %v10695_v60 = vsel %vm8746_vm2, %v10694_v7, %v17702_v40  ;;  %v10702_v21 = vrot.slane %v17717_v55, 3 }
 0x23c   : > { %v10692_v20 = vrot.slane %v10685_v59, %v16497_v23  ;;  %12148 = vrot.lane.b32.xlu0 %v18333_v52, %s23129_s15  ;;  %v7106_v44 = vadd.bf16 %v6882_v1, %v23485_v63  ;;  %v1925_v32 = vrot.slane %v1909_v17, %v16497_v23  ;;  %v10697_v38 = vsel %vm8749_vm3, %v10696_v8, %v10695_v60 }
 0x23d   : > { %v7107_v12 = vadd.bf16 %v6883_v37, %v18147_v46  ;;  %v1157_v56 = vadd.f32 %v18264_v51, %v23486_v41  ;;  %v10699_v25 = vsel %vm8752_vm4, %v10698_v26, %v10697_v38  ;;  %v10704_v40 = vrot.slane %v17939_v57, 2  ;;  %v18369_v57 = vpop.f32.mrf.mxu0 }
 0x23e   : > { %v10693_v61 = vunpack.c.l.b16 %v10692_v20  ;;  %v9114_v55 = vrot.slane %v18310_v6, 7  ;;  %v1916_v18 = vrot.slane %v15141_v22, %v16497_v23  ;;  %v10701_v1 = vsel %vm23226_vm5, %v10700_v27, %v10699_v25  ;;  %23487 = vst [vmem:[#allocation65_spill] sm:$0xff] %v18369_v57 }
 0x23f   : > { %v7108_v5 = vadd.bf16 %v6884_v24, %v18150_v33  ;;  %v10747_v16 = vrot.slane %v7103_v28, %v16497_v23  ;;  %10676 = vrot.lane.b32.xlu1 %v18203_v39, %s23192_s21  ;;  %v10703_v46 = vsel %vm23222_vm6, %v10702_v21, %v10701_v1  ;;  %v10706_v37 = vrot.slane %v18184_v30, 1  ;;  %v15851_v11 = vpop.f32.mrf.mxu0 }
 0x240   : > { %v10708_v13 = vrot.slane %v10693_v61, 7  ;;  %11741 = vrot.lane.b32.xlu0 %v18333_v52, %s23125_s29  ;;  %v10761_v9 = vrot.slane %v7104_v58, %v16497_v23  ;;  %v10775_v22 = vrot.slane %v7105_v62, %v16497_v23  ;;  %v10789_v33 = vrot.slane %v7106_v44, %v16497_v23  ;;  %v23494_v11 = vld [vmem:[#allocation29_spill] sm:$0xff] }
 0x241   : > { %v4606_v24 = vshrl.u32 %v1925_v32, 16  ;;  %v10803_v19 = vrot.slane %v7107_v12, %v16497_v23  ;;  %v1299_v29 = vmax.f32 %v1157_v56, 0.0  ;;  %v10705_v59 = vsel %vm8761_vm7, %v10704_v40, %v10703_v46 }
 0x242   : > { %v10709_v30 = vsel %vm8746_vm2, %v10708_v13, %v18169_v2  ;;  %v5806_v28 = vshrl.u32 %v18244_v48, 16  ;;  %v5811_v7 = vshrl.u32 %v18259_v3, 16  ;;  %v1917_v8 = vcombine.high %v1909_v17, %v1909_v17 }
 0x243   : > { %v1918_v20 = vcombine.high %v1916_v18, %v1916_v18  ;;  %v18380_v26 = vunpack.c.l.b16 %v7608_v10  ;;  %v10817_v27 = vrot.slane %v7108_v5, %v16497_v23  ;;  %v1932_v50 = vrot.slane %v1916_v18, %v16497_v23 }
 0x244   : > { %v10707_v58 = vsel %vm8764_vm8, %v10706_v37, %v10705_v59  ;;  %11794 = vrot.lane.b32.xlu0 %v18203_v39, %s23203_s8  ;;  %v10754_v2 = vrot.slane %v10747_v16, %v16497_v23  ;;  %v10768_v0 = vrot.slane %v10761_v9, %v16497_v23  ;;  %v10782_v62 = vrot.slane %v10775_v22, %v16497_v23  ;;  %v23493_v59 = vld [vmem:[#allocation30_spill] sm:$0xff] }
 0x245   : > { %v6637_v60 = vadd.bf16 %v4606_v24, %v1925_v32  ;;  %v10796_v17 = vrot.slane %v10789_v33, %v16497_v23  ;;  %v10810_v10 = vrot.slane %v10803_v19, %v16497_v23  ;;  %v23488_v21 = vmax.f32 %v18270_v54, 0.0 }
 0x246   : > { %v15172_v44 = vpack.c.bf16 %v1299_v29, %v1299_v29  ;;  %v18395_v61 = vadd.bf16 %v5806_v28, %v18244_v48  ;;  %v18398_v38 = vadd.bf16 %v5811_v7, %v18259_v3  ;;  %v1939_v12 = vrot.slane %v1917_v8, %v16497_v23  ;;  %v23495_v7 = vld [vmem:[#allocation32_spill] sm:$0xff] }
 0x247   : > { %v1355_v63 = vpack.c.bf16 %v1299_v29, %v23488_v21  ;;  %v1946_v41 = vrot.slane %v1918_v20, %v16497_v23  ;;  %v10824_v56 = vrot.slane %v10817_v27, %v16497_v23  ;;  %v1947_v25 = vcombine.high %v1925_v32, %v1925_v32 }
 0x248   : > { %23489 = vst [vmem:[#allocation53_spill] sm:$0xff] %v18395_v61  ;;  %23490 = vst [vmem:[#allocation54_spill] sm:$0xff] %v18398_v38  ;;  %v1948_v40 = vcombine.high %v1932_v50, %v1932_v50  ;;  %v18403_v18 = vpack.c.b16 %v10709_v30, %v10707_v58  ;;  %v18405_v1 = vunpack.c.l.b16 %v10754_v2  ;;  %v18407_v54 = vunpack.c.l.b16 %v10768_v0 }
 0x249   : > { %v18409_v13 = vunpack.c.l.b16 %v10782_v62  ;;  %v6987_v48 = vadd.bf16 %v6637_v60, %v18005_v47  ;;  %v18412_v3 = vunpack.c.l.b16 %v10796_v17  ;;  %v18414_v5 = vunpack.c.l.b16 %v10810_v10 }
 0x24a   : > { %23491 = vst [vmem:[#allocation55_spill] sm:$0xff] %v18403_v18  ;;  %23492 = vst [vmem:[#allocation38_spill] sm:$0xff] %v18405_v1  ;;  %v3428_v16 = vrot.slane %v1355_v63, %v16497_v23  ;;  %v3435_v46 = vrot.slane %v15172_v44, %v16497_v23  ;;  %12254 = vrot.lane.b32.xlu1 %v18403_v18, %s23192_s21  ;;  %v18420_v32 = vcombine.high %v1939_v12, %v1939_v12 }
 0x24b   : > { %v18422_v37 = vcombine.high %v1946_v41, %v1946_v41  ;;  %v4611_v9 = vshrl.u32 %v1939_v12, 16  ;;  %v4626_v22 = vshrl.u32 %v1932_v50, 16  ;;  %v18424_v33 = vunpack.c.l.b16 %v10824_v56 }
 0x24c   : > { %v4616_v47 = vshrl.u32 %v1947_v25, 16  ;;  %v4631_v24 = vshrl.u32 %v1946_v41, 16  ;;  %v4636_v19 = vshrl.u32 %v1948_v40, 16  ;;  %v8966_v29 = vrot.slane %v6987_v48, %v16497_v23 }
 0x24d   : > { %v914_v30 = vadd.f32 %v18264_v51, %v23493_v59  ;;  %v917_v28 = vadd.f32 %v18264_v51, %v23494_v11  ;;  %v18433_v8 = vadd.f32 %v18264_v51, %v23495_v7  ;;  %v3436_v27 = vcombine.high %v3428_v16, %v3428_v16 }
 0x24e   : > { %v3437_v58 = vcombine.high %v3435_v46, %v3435_v46  ;;  %v3444_v2 = vrot.slane %v3428_v16, %v16497_v23  ;;  %11847 = vrot.lane.b32.xlu1 %v18403_v18, %s23214_s9  ;;  %v18441_v60 = vadd.bf16 %v4611_v9, %v1939_v12  ;;  %v18443_v17 = vadd.bf16 %v4626_v22, %v1932_v50 }
 0x24f   : > { %v18445_v10 = vadd.bf16 %v4616_v47, %v1947_v25  ;;  %v18447_v21 = vadd.bf16 %v4631_v24, %v1946_v41  ;;  %v18449_v63 = vadd.bf16 %v4636_v19, %v1948_v40  ;;  %v3451_v44 = vrot.slane %v3435_v46, %v16497_v23 }
 0x250   : > { %v8973_v56 = vrot.slane %v8966_v29, %v16497_v23  ;;  %v1238_v48 = vmax.f32 %v914_v30, 0.0  ;;  %v18453_v16 = vmax.f32 %v917_v28, 0.0  ;;  %v1240_v59 = vmax.f32 %v18433_v8, 0.0  ;;  %v23497_v29 = vld [vmem:[#allocation31_spill] sm:$0xff]  ;;  %v18480_v8 = vpop.f32.mrf.mxu1 }
 0x251   : > { %v3458_v12 = vrot.slane %v3436_v27, %v16497_v23  ;;  %v18458_v50 = vrot.slane %v3437_v58, %v16497_v23  ;;  %v3466_v25 = vcombine.high %v3444_v2, %v3444_v2  ;;  %v7650_v41 = vrot.slane %v18307_v49, %v16497_v23  ;;  %23498 = vst [vmem:[#allocation36_spill] sm:$0xff] %v18480_v8 }
 0x252   : > { %10729 = vrot.lane.b32.xlu1 %v18403_v18, %s23212_s22  ;;  %v23496_v40 = vrot.slane %v18302_v36, %v16497_v23  ;;  %v8784_v9 = vrot.slane %v18142_v14, 7  ;;  %v8786_v22 = vrot.slane %v18310_v6, 6  ;;  %v8788_v47 = vrot.slane %v18319_v45, 5  ;;  %v15942_v0 = vpop.f32.mrf.mxu1 }
 0x253   : > { %v5846_v24 = vshrl.u32 %v3444_v2, 16  ;;  %v5866_v19 = vshrl.u32 %v3451_v44, 16  ;;  %v925_v30 = vadd.f32 %v18264_v51, %v23497_v29  ;;  %v8790_v11 = vrot.slane %v18321_v34, 4 }
 0x254   : > { %v18467_v46 = vunpack.c.l.b16 %v23496_v40  ;;  %v1325_v49 = vpack.c.bf16 %v18453_v16, %v1238_v48  ;;  %v8785_v36 = vsel %vm8746_vm2, %v8784_v9, %v18125_v43  ;;  %v8792_v28 = vrot.slane %v18380_v26, 3  ;;  %v18488_v48 = vpop.f32.mrf.mxu0 }
 0x255   : > { %v5851_v27 = vshrl.u32 %v3458_v12, 16  ;;  %v8787_v58 = vsel %vm8749_vm3, %v8786_v22, %v8785_v36  ;;  %v8794_v40 = vrot.slane %v18312_v53, 2  ;;  %v9115_v29 = vsel %vm8746_vm2, %v9114_v55, %v18142_v14  ;;  %23499 = vst [vmem:[#allocation13_spill] sm:$0xff] %v18488_v48 }
 0x256   : > { %v8798_v7 = vrot.slane %v18467_v46, 7  ;;  %v18490_v20 = vunpack.c.l.b16 %v7650_v41  ;;  %v8789_v43 = vsel %vm8752_vm4, %v8788_v47, %v8787_v58  ;;  %v8796_v9 = vrot.slane %v18323_v35, 1  ;;  %v15854_v52 = vpop.f32.mrf.mxu0  ;;  %v18504_v58 = vpop.f32.mrf.mxu1 }
 0x257   : > { %v9116_v62 = vrot.slane %v18319_v45, 6  ;;  %v1241_v18 = vmax.f32 %v925_v30, 0.0  ;;  %v8791_v22 = vsel %vm23226_vm5, %v8790_v11, %v8789_v43  ;;  %v9118_v36 = vrot.slane %v18321_v34, 5  ;;  %23500 = vst [vmem:[#allocation41_spill] sm:$0xff] %v18504_v58 }
 0x258   : > { %v9120_v39 = vrot.slane %v18380_v26, 4  ;;  %v8793_v14 = vsel %vm23222_vm6, %v8792_v28, %v8791_v22  ;;  %v8799_v55 = vsel %vm8746_vm2, %v8798_v7, %v18490_v20  ;;  %v18501_v41 = vunpack.c.l.b16 %v8973_v56  ;;  %v15943_v56 = vpop.f32.mrf.mxu1  ;;  %v18517_v38 = vpop.f32.mrf.mxu0 }
 0x259   : > { %v9117_v47 = vsel %vm8749_vm3, %v9116_v62, %v9115_v29  ;;  %v8795_v0 = vsel %vm8761_vm7, %v8794_v40, %v8793_v14  ;;  %v9122_v11 = vrot.slane %v18312_v53, 3  ;;  %v9124_v43 = vrot.slane %v18323_v35, 2  ;;  %23502 = vst [vmem:[#allocation67_spill] sm:$0xff] %v18517_v38 }
 0x25a   : > { %v9119_v30 = vsel %vm8752_vm4, %v9118_v36, %v9117_v47  ;;  %v3468_v52 = vcombine.high %v3458_v12, %v3458_v12  ;;  %v5856_v48 = vshrl.u32 %v3466_v25, 16  ;;  %v8797_v28 = vsel %vm8764_vm8, %v8796_v9, %v8795_v0  ;;  %v18614_v58 = vpop.f32.mrf.mxu1 }
 0x25b   : > { %v9121_v7 = vsel %vm23226_vm5, %v9120_v39, %v9119_v30  ;;  %v6885_v22 = vadd.bf16 %v5846_v24, %v3444_v2  ;;  %v6886_v57 = vadd.bf16 %v5851_v27, %v3458_v12  ;;  %v18512_v62 = vpack.c.b16 %v8799_v55, %v8797_v28 }
 0x25c   : > { %v9123_v29 = vsel %vm23222_vm6, %v9122_v11, %v9121_v7  ;;  %v3467_v40 = vcombine.high %v3451_v44, %v3451_v44  ;;  %v6889_v14 = vadd.bf16 %v5866_v19, %v3451_v44  ;;  %v9126_v36 = vrot.slane %v18490_v20, 1 }
 0x25d   : > { %23501 = vst [vmem:[#allocation66_spill] sm:$0xff] %v18512_v62  ;;  %v9128_v47 = vrot.slane %v18501_v41, 7  ;;  %v15142_v9 = vpack.c.bf16 %v18453_v16, %v18453_v16  ;;  %v1326_v0 = vpack.c.bf16 %v1241_v18, %v1240_v59  ;;  %v15143_v39 = vpack.c.bf16 %v1241_v18, %v1241_v18  ;;  %10501 = vrot.lane.b32.xlu1 %v18512_v62, %s23170_s13  ;;  %v15855_v16 = vpop.f32.mrf.mxu0 }
 0x25e   : > { %v9125_v2 = vsel %vm8761_vm7, %v9124_v43, %v9123_v29  ;;  %v23503_v12 = vshrl.u32 %v18420_v32, 16  ;;  %v5861_v24 = vshrl.u32 %v3468_v52, 16  ;;  %v6887_v19 = vadd.bf16 %v5856_v48, %v3466_v25  ;;  %10908 = vrot.lane.b32.xlu0 %v18512_v62, %s23210_s18 }
 0x25f   : > { %v1958_v27 = vrot.slane %v1325_v49, %v16497_v23  ;;  %v23505_v18 = vshrl.u32 %v18422_v37, 16  ;;  %v3469_v55 = vcombine.high %v18458_v50, %v18458_v50  ;;  %v7109_v30 = vadd.bf16 %v6885_v22, %v18153_v31 }
 0x260   : > { %v18527_v44 = vadd.bf16 %v23503_v12, %v18420_v32  ;;  %v7110_v32 = vadd.bf16 %v6886_v57, %v18222_v15  ;;  %v5871_v25 = vshrl.u32 %v18458_v50, 16  ;;  %v5876_v48 = vshrl.u32 %v3467_v40, 16  ;;  %v23506_v57 = vld [vmem:[#allocation33_spill] sm:$0xff] }
 0x261   : > { %v18535_v59 = vadd.bf16 %v23505_v18, %v18422_v37  ;;  %v9127_v49 = vsel %vm8764_vm8, %v9126_v36, %v9125_v2  ;;  %v9129_v11 = vsel %vm8746_vm2, %v9128_v47, %v18467_v46  ;;  %v7113_v43 = vadd.bf16 %v6889_v14, %v18232_v42  ;;  %v23507_v42 = vld [vmem:[#allocation9_spill] sm:$0xff]  ;;  %23515 = vst [vmem:[#allocation33_spill] sm:$0xff] %v18614_v58 }
 0x262   : > { %23504 = vst [vmem:[#allocation68_spill] sm:$0xff] %v18527_v44  ;;  %v1965_v37 = vrot.slane %v15142_v9, %v16497_v23  ;;  %v2007_v28 = vrot.slane %v1326_v0, %v16497_v23  ;;  %v2014_v7 = vrot.slane %v15143_v39, %v16497_v23  ;;  %v6988_v31 = vadd.bf16 %v18441_v60, %v18012_v4 }
 0x263   : > { %v6888_v15 = vadd.bf16 %v5861_v24, %v3468_v52  ;;  %v7111_v56 = vadd.bf16 %v6887_v19, %v23506_v57  ;;  %v1966_v22 = vcombine.high %v1958_v27, %v1958_v27  ;;  %v5881_v29 = vshrl.u32 %v3469_v55, 16  ;;  %v23510_v24 = vld [vmem:[#allocation70_spill] sm:$0xff] }
 0x264   : > { %v10831_v36 = vrot.slane %v7109_v30, %v16497_v23  ;;  %v10845_v47 = vrot.slane %v7110_v32, %v16497_v23  ;;  %v9244_v2 = vpack.c.b16 %v9129_v11, %v9127_v49  ;;  %v18557_v9 = vadd.bf16 %v5871_v25, %v18458_v50 }
 0x265   : > { %v18559_v0 = vadd.bf16 %v5876_v48, %v3467_v40  ;;  %v1974_v4 = vrot.slane %v1958_v27, %v16497_v23  ;;  %v18563_v60 = vrot.slane %v7113_v43, %v16497_v23  ;;  %v1967_v52 = vcombine.high %v1965_v37, %v1965_v37 }
 0x266   : > { %23508 = vst [vmem:[#allocation15_spill] sm:$0xff] %v18557_v9  ;;  %v2015_v39 = vcombine.high %v2007_v28, %v2007_v28  ;;  %v2016_v12 = vcombine.high %v2014_v7, %v2014_v7  ;;  %10554 = vrot.lane.b32.xlu1 %v9244_v2, %s23129_s15  ;;  %v7112_v19 = vadd.bf16 %v6888_v15, %v23510_v24 }
 0x267   : > { %23509 = vst [vmem:[#allocation30_spill] sm:$0xff] %v18559_v0  ;;  %v10859_v16 = vrot.slane %v7111_v56, %v16497_v23  ;;  %v1988_v18 = vrot.slane %v1966_v22, %v16497_v23  ;;  %v18570_v50 = vrot.slane %v2007_v28, %v16497_v23  ;;  %9256 = vrot.lane.b32.xlu0 %v9244_v2, %s23125_s29 }
 0x268   : > { %v18573_v40 = vadd.bf16 %v5881_v29, %v3469_v55  ;;  %v10838_v27 = vrot.slane %v10831_v36, %v16497_v23  ;;  %v10852_v30 = vrot.slane %v10845_v47, %v16497_v23  ;;  %v2030_v32 = vrot.slane %v2014_v7, %v16497_v23 }
 0x269   : > { %v1981_v11 = vrot.slane %v1965_v37, %v16497_v23  ;;  %v1996_v43 = vcombine.high %v1974_v4, %v1974_v4  ;;  %v1995_v55 = vrot.slane %v1967_v52, %v16497_v23  ;;  %v18587_v15 = vrot.slane %v2015_v39, %v16497_v23 }
 0x26a   : > { %23511 = vst [vmem:[#allocation29_spill] sm:$0xff] %v18573_v40  ;;  %v2044_v57 = vrot.slane %v2016_v12, %v16497_v23  ;;  %v10866_v7 = vrot.slane %v10859_v16, %v16497_v23  ;;  %v18592_v56 = vrot.slane %v7112_v19, %v16497_v23  ;;  %v1998_v22 = vcombine.high %v1988_v18, %v1988_v18 }
 0x26b   : > { %v2045_v37 = vcombine.high %v18570_v50, %v18570_v50  ;;  %10961 = vrot.lane.b32.xlu0 %v9244_v2, %s23127_s14  ;;  %v18597_v29 = vunpack.c.l.b16 %v10838_v27  ;;  %v18599_v36 = vunpack.c.l.b16 %v10852_v30  ;;  %v4646_v47 = vshrl.u32 %v1974_v4, 16 }
 0x26c   : > { %v2046_v52 = vcombine.high %v2030_v32, %v2030_v32  ;;  %v1997_v39 = vcombine.high %v1981_v11, %v1981_v11  ;;  %v4651_v24 = vshrl.u32 %v1988_v18, 16  ;;  %v4656_v12 = vshrl.u32 %v1996_v43, 16 }
 0x26d   : > { %23513 = vst [vmem:[#allocation32_spill] sm:$0xff] %v18599_v36  ;;  %v4706_v49 = vshrl.u32 %v2030_v32, 16  ;;  %v18601_v16 = vcombine.high %v1995_v55, %v1995_v55  ;;  %v4666_v19 = vshrl.u32 %v1981_v11, 16  ;;  %v2047_v48 = vcombine.high %v18587_v15, %v18587_v15 }
 0x26e   : > { %v2048_v28 = vcombine.high %v2044_v57, %v2044_v57  ;;  %v18605_v14 = vunpack.c.l.b16 %v10866_v7  ;;  %v4661_v2 = vshrl.u32 %v1998_v22, 16  ;;  %v4671_v27 = vshrl.u32 %v1995_v55, 16 }
 0x26f   : > { %v4696_v62 = vshrl.u32 %v2045_v37, 16  ;;  %v18607_v30 = vadd.bf16 %v4646_v47, %v1974_v4  ;;  %v4711_v38 = vshrl.u32 %v2044_v57, 16  ;;  %v4716_v40 = vshrl.u32 %v2046_v52, 16 }
 0x270   : > { %23514 = vst [vmem:[#allocation31_spill] sm:$0xff] %v18605_v14  ;;  %v9316_v61 = vrot.slane %v6988_v31, %v16497_v23  ;;  %v4676_v0 = vshrl.u32 %v1997_v39, 16  ;;  %v18610_v25 = vadd.bf16 %v4651_v24, %v1988_v18  ;;  %v18612_v9 = vadd.bf16 %v4656_v12, %v1996_v43  ;;  %v23516_v31 = vld [vmem:[#allocation20_spill] sm:$0xff]  ;;  %v15946_v24 = vpop.f32.mrf.mxu1 }
 0x271   : > { %v6657_v1 = vadd.bf16 %v4706_v49, %v2030_v32  ;;  %v4681_v7 = vshrl.u32 %v18601_v16, 16  ;;  %v18617_v8 = vadd.bf16 %v4666_v19, %v1981_v11  ;;  %v4701_v44 = vshrl.u32 %v2047_v48, 16  ;;  %v23517_v32 = vld [vmem:[#allocation23_spill] sm:$0xff] }
 0x272   : > { %v4721_v14 = vshrl.u32 %v2048_v28, 16  ;;  %v18619_v4 = vadd.bf16 %v4661_v2, %v1998_v22  ;;  %v18621_v47 = vadd.bf16 %v4671_v27, %v1995_v55  ;;  %v6655_v36 = vadd.bf16 %v4696_v62, %v2045_v37 }
 0x273   : > { %v930_v18 = vadd.f32 %v18264_v51, %v23516_v31  ;;  %v6658_v43 = vadd.bf16 %v4711_v38, %v2044_v57  ;;  %v6659_v12 = vadd.bf16 %v4716_v40, %v2046_v52  ;;  %v933_v49 = vadd.f32 %v18264_v51, %v23517_v32  ;;  %v18635_v40 = vpop.f32.mrf.mxu0 }
 0x274   : > { %v9323_v58 = vrot.slane %v9316_v61, %v16497_v23  ;;  %v6993_v11 = vadd.bf16 %v6657_v1, %v18449_v63  ;;  %v9464_v19 = vrot.slane %v18319_v45, 7  ;;  %v9466_v22 = vrot.slane %v18321_v34, 6  ;;  %23518 = vst [vmem:[#allocation9_spill] sm:$0xff] %v18635_v40  ;;  %v18641_v63 = vpop.f32.mrf.mxu1 }
 0x275   : > { %v9468_v55 = vrot.slane %v18380_v26, 5  ;;  %v6656_v62 = vadd.bf16 %v4701_v44, %v2047_v48  ;;  %v6660_v37 = vadd.bf16 %v4721_v14, %v2048_v28  ;;  %v9470_v38 = vrot.slane %v18312_v53, 4  ;;  %23519 = vst [vmem:[#allocation70_spill] sm:$0xff] %v18641_v63  ;;  %v15858_v48 = vpop.f32.mrf.mxu0 }
 0x276   : > { %v18632_v2 = vunpack.c.l.b16 %v9323_v58  ;;  %v6991_v57 = vadd.bf16 %v6655_v36, %v18443_v17  ;;  %v1242_v52 = vmax.f32 %v930_v18, 0.0  ;;  %v9465_v61 = vsel %vm8746_vm2, %v9464_v19, %v18310_v6  ;;  %v15947_v31 = vpop.f32.mrf.mxu1 }
 0x277   : > { %v9472_v1 = vrot.slane %v18323_v35, 3  ;;  %v1243_v27 = vmax.f32 %v933_v49, 0.0  ;;  %v9467_v44 = vsel %vm8749_vm3, %v9466_v22, %v9465_v61  ;;  %v9474_v58 = vrot.slane %v18490_v20, 2  ;;  %v23522_v61 = vld [vmem:[#allocation42_spill] sm:$0xff] }
 0x278   : > { %v9478_v14 = vrot.slane %v18632_v2, 7  ;;  %v18646_v28 = vadd.bf16 %v4676_v0, %v1997_v39  ;;  %v6994_v17 = vadd.bf16 %v6658_v43, %v18535_v59  ;;  %v9469_v36 = vsel %vm8752_vm4, %v9468_v55, %v9467_v44 }
 0x279   : > { %v9476_v6 = vrot.slane %v18467_v46, 1  ;;  %v6995_v18 = vadd.bf16 %v6659_v12, %v18607_v30  ;;  %v7699_v24 = vrot.slane %v6993_v11, %v16497_v23  ;;  %v9471_v32 = vsel %vm23226_vm5, %v9470_v38, %v9469_v36 }
 0x27a   : > { %v9814_v49 = vrot.slane %v18321_v34, 7  ;;  %v6992_v19 = vadd.bf16 %v6656_v62, %v18447_v21  ;;  %v6996_v0 = vadd.bf16 %v6660_v37, %v18610_v25  ;;  %v9473_v39 = vsel %vm23222_vm6, %v9472_v1, %v9471_v32  ;;  %v23521_v37 = vld [vmem:[#allocation63_spill] sm:$0xff]  ;;  %v18699_v32 = vpop.f32.mrf.mxu0 }
 0x27b   : > { %v9479_v59 = vsel %vm8746_vm2, %v9478_v14, %v18501_v41  ;;  %v7671_v43 = vrot.slane %v6991_v57, %v16497_v23  ;;  %v1327_v22 = vpack.c.bf16 %v1243_v27, %v1242_v52  ;;  %v9475_v30 = vsel %vm8761_vm7, %v9474_v58, %v9473_v39  ;;  %23524 = vst [vmem:[#allocation23_spill] sm:$0xff] %v18699_v32 }
 0x27c   : > { %v23520_v12 = vadd.bf16 %v18445_v10, %v23507_v42  ;;  %v7713_v55 = vrot.slane %v6994_v17, %v16497_v23  ;;  %v15144_v21 = vpack.c.bf16 %v1243_v27, %v1243_v27  ;;  %v9477_v25 = vsel %vm8764_vm8, %v9476_v6, %v9475_v30 }
 0x27d   : > { %v9816_v62 = vrot.slane %v18380_v26, 6  ;;  %v1162_v38 = vadd.f32 %v18264_v51, %v23521_v37  ;;  %v1165_v57 = vadd.f32 %v18264_v51, %v23522_v61  ;;  %v18673_v52 = vpack.c.b16 %v9479_v59, %v9477_v25 }
 0x27e   : > { %v9666_v11 = vrot.slane %v23520_v12, %v16497_v23  ;;  %v9815_v1 = vsel %vm8746_vm2, %v9814_v49, %v18319_v45  ;;  %v18678_v10 = vadd.bf16 %v4681_v7, %v18601_v16  ;;  %v4686_v42 = vshrl.u32 %v18570_v50, 16  ;;  %v15859_v12 = vpop.f32.mrf.mxu0 }
 0x27f   : > { %v4691_v27 = vshrl.u32 %v18587_v15, 16  ;;  %v7727_v44 = vrot.slane %v6995_v18, %v16497_v23  ;;  %v7706_v58 = vrot.slane %v7699_v24, %v16497_v23  ;;  %v2056_v14 = vrot.slane %v1327_v22, %v16497_v23  ;;  %10607 = vrot.lane.b32.xlu1 %v18673_v52, %s23194_s20  ;;  %11014 = vrot.lane.b32.xlu0 %v18673_v52, %s23201_s19  ;;  %v23535_v12 = vld [vmem:[#allocation8_spill] sm:$0xff] }
 0x280   : > { %v9673_v48 = vrot.slane %v9666_v11, %v16497_v23  ;;  %v9818_v45 = vrot.slane %v18312_v53, 5  ;;  %v7685_v16 = vrot.slane %v6992_v19, %v16497_v23  ;;  %v7741_v7 = vrot.slane %v6996_v0, %v16497_v23 }
 0x281   : > { %v2063_v17 = vrot.slane %v15144_v21, %v16497_v23  ;;  %v9817_v36 = vsel %vm8749_vm3, %v9816_v62, %v9815_v1  ;;  %v7678_v6 = vrot.slane %v7671_v43, %v16497_v23  ;;  %v7720_v31 = vrot.slane %v7713_v55, %v16497_v23 }
 0x282   : > { %v1300_v18 = vmax.f32 %v1162_v38, 0.0  ;;  %v18697_v24 = vmax.f32 %v1165_v57, 0.0  ;;  %v18702_v49 = vadd.bf16 %v4686_v42, %v18570_v50  ;;  %v18705_v19 = vadd.bf16 %v4691_v27, %v18587_v15  ;;  %v23531_v57 = vld [vmem:[#allocation25_spill] sm:$0xff] }
 0x283   : > { %v7734_v0 = vrot.slane %v7727_v44, %v16497_v23  ;;  %v9820_v39 = vrot.slane %v18323_v35, 4  ;;  %v18709_v59 = vunpack.c.l.b16 %v7706_v58  ;;  %v2064_v43 = vcombine.high %v2056_v14, %v2056_v14 }
 0x284   : > { %23523 = vst [vmem:[#allocation20_spill] sm:$0xff] %v18697_v24  ;;  %23525 = vst [vmem:[#allocation63_spill] sm:$0xff] %v18702_v49  ;;  %v18711_v22 = vunpack.c.l.b16 %v9673_v48  ;;  %v9819_v30 = vsel %vm8752_vm4, %v9818_v45, %v9817_v36  ;;  %v7692_v11 = vrot.slane %v7685_v16, %v16497_v23  ;;  %v7748_v50 = vrot.slane %v7741_v7, %v16497_v23 }
 0x285   : > { %23526 = vst [vmem:[#allocation42_spill] sm:$0xff] %v18705_v19  ;;  %23527 = vst [vmem:[#allocation71_spill] sm:$0xff] %v18709_v59  ;;  %v2065_v55 = vcombine.high %v2063_v17, %v2063_v17  ;;  %v2072_v15 = vrot.slane %v2056_v14, %v16497_v23  ;;  %v18717_v21 = vunpack.c.l.b16 %v7678_v6  ;;  %v18719_v25 = vunpack.c.l.b16 %v7720_v31  ;;  %v23533_v31 = vld [vmem:[#allocation47_spill] sm:$0xff] }
 0x286   : > { %v1356_v62 = vpack.c.bf16 %v18697_v24, %v1300_v18  ;;  %v9822_v37 = vrot.slane %v18490_v20, 3  ;;  %v18723_v38 = vunpack.c.l.b16 %v7734_v0  ;;  %v2079_v61 = vrot.slane %v2063_v17, %v16497_v23 }
 0x287   : > { %23528 = vst [vmem:[#allocation72_spill] sm:$0xff] %v18717_v21  ;;  %23529 = vst [vmem:[#allocation73_spill] sm:$0xff] %v18719_v25  ;;  %v938_v1 = vadd.f32 %v18264_v51, %v23531_v57  ;;  %v9821_v42 = vsel %vm23226_vm5, %v9820_v39, %v9819_v30  ;;  %v2086_v58 = vrot.slane %v2064_v43, %v16497_v23  ;;  %v9828_v14 = vrot.slane %v18711_v22, 7  ;;  %v23534_v43 = vld [vmem:[#allocation28_spill] sm:$0xff]  ;;  %v23538_v25 = vld [vmem:[#allocation19_spill] sm:$0xff] }
 0x288   : > { %23530 = vst [vmem:[#allocation74_spill] sm:$0xff] %v18723_v38  ;;  %v18733_v48 = vunpack.c.l.b16 %v7692_v11  ;;  %v2093_v45 = vrot.slane %v2065_v55, %v16497_v23  ;;  %v2094_v16 = vcombine.high %v2072_v15, %v2072_v15  ;;  %v9824_v7 = vrot.slane %v18467_v46, 2  ;;  %v23537_v38 = vld [vmem:[#allocation35_spill] sm:$0xff] }
 0x289   : > { %v3477_v17 = vrot.slane %v1356_v62, %v16497_v23  ;;  %v9823_v36 = vsel %vm23222_vm6, %v9822_v37, %v9821_v42  ;;  %v9826_v6 = vrot.slane %v18501_v41, 1  ;;  %v1173_v18 = vadd.f32 %v18264_v51, %v23533_v31 }
 0x28a   : > { %23532 = vst [vmem:[#allocation25_spill] sm:$0xff] %v18733_v48  ;;  %v2095_v0 = vcombine.high %v2079_v61, %v2079_v61  ;;  %v1244_v39 = vmax.f32 %v938_v1, 0.0  ;;  %v941_v30 = vadd.f32 %v18264_v51, %v23534_v43  ;;  %v949_v11 = vadd.f32 %v18264_v51, %v23535_v12 }
 0x28b   : > { %v2096_v55 = vcombine.high %v2086_v58, %v2086_v58  ;;  %v4726_v57 = vshrl.u32 %v2072_v15, 16  ;;  %v4746_v27 = vshrl.u32 %v2079_v61, 16  ;;  %v9829_v62 = vsel %vm8746_vm2, %v9828_v14, %v18632_v2 }
 0x28c   : > { %v2097_v37 = vcombine.high %v2093_v45, %v2093_v45  ;;  %v4731_v42 = vshrl.u32 %v2086_v58, 16  ;;  %v4736_v44 = vshrl.u32 %v2094_v16, 16  ;;  %v9825_v63 = vsel %vm8761_vm7, %v9824_v7, %v9823_v36 }
 0x28d   : > { %v4751_v31 = vshrl.u32 %v2093_v45, 16  ;;  %v3485_v32 = vcombine.high %v3477_v17, %v3477_v17  ;;  %v9827_v1 = vsel %vm8764_vm8, %v9826_v6, %v9825_v63  ;;  %v18750_v40 = vmax.f32 %v1173_v18, 0.0 }
 0x28e   : > { %v1245_v43 = vmax.f32 %v941_v30, 0.0  ;;  %v18752_v21 = vmax.f32 %v949_v11, 0.0  ;;  %v9944_v12 = vpack.c.b16 %v9829_v62, %v9827_v1  ;;  %v23539_v59 = vrot.slane %v23538_v25, 7  ;;  %v18767_v25 = vpop.f32.mrf.mxu1 }
 0x28f   : > { %23536 = vst [vmem:[#allocation47_spill] sm:$0xff] %v18750_v40  ;;  %v18760_v24 = vunpack.c.l.b16 %v7748_v50  ;;  %v4756_v36 = vshrl.u32 %v2095_v0, 16  ;;  %v15174_v63 = vpack.c.bf16 %v18750_v40, %v18750_v40  ;;  %v4741_v6 = vshrl.u32 %v2096_v55, 16  ;;  %23542 = vst [vmem:[#allocation35_spill] sm:$0xff] %v18767_v25 }
 0x290   : > { %v18758_v14 = vsel %vm8746_vm2, %v23539_v59, %v23537_v38  ;;  %v4761_v18 = vshrl.u32 %v2097_v37, 16  ;;  %v6661_v30 = vadd.bf16 %v4726_v57, %v2072_v15  ;;  %v6665_v11 = vadd.bf16 %v4746_v27, %v2079_v61  ;;  %10660 = vrot.lane.b32.xlu1 %v9944_v12, %s23192_s21  ;;  %11067 = vrot.lane.b32.xlu0 %v9944_v12, %s23199_s23  ;;  %v15950_v61 = vpop.f32.mrf.mxu1 }
 0x291   : > { %23540 = vst [vmem:[#allocation28_spill] sm:$0xff] %v18758_v14  ;;  %23541 = vst [vmem:[#allocation8_spill] sm:$0xff] %v18760_v24  ;;  %v6662_v59 = vadd.bf16 %v4731_v42, %v2086_v58  ;;  %v6663_v38 = vadd.bf16 %v4736_v44, %v2094_v16  ;;  %v18770_v50 = vrot.slane %v3485_v32, %v16497_v23 }
 0x292   : > { %v3533_v62 = vrot.slane %v15174_v63, %v16497_v23  ;;  %v6666_v1 = vadd.bf16 %v4751_v31, %v2093_v45  ;;  %v1328_v7 = vpack.c.bf16 %v1245_v43, %v1244_v39  ;;  %v15146_v14 = vpack.c.bf16 %v18752_v21, %v18752_v21  ;;  %v18824_v61 = vpop.f32.mrf.mxu1 }
 0x293   : > { %23543 = vst [vmem:[#allocation19_spill] sm:$0xff] %v18770_v50  ;;  %v18776_v15 = vrot.slane %v3477_v17, %v16497_v23  ;;  %v18778_v27 = vadd.bf16 %v4756_v36, %v2095_v0  ;;  %v15145_v57 = vpack.c.bf16 %v1245_v43, %v1245_v43  ;;  %v6664_v32 = vadd.bf16 %v4741_v6, %v2096_v55  ;;  %v23550_v6 = vld [vmem:[#allocation14_spill] sm:$0xff] }
 0x294   : > { %v3535_v25 = vcombine.high %v3533_v62, %v3533_v62  ;;  %v18781_v44 = vrot.slane %v3533_v62, %v16497_v23  ;;  %v6997_v58 = vadd.bf16 %v6661_v30, %v18612_v9  ;;  %v7001_v45 = vadd.bf16 %v6665_v11, %v18646_v28  ;;  %9606 = vrot.lane.b32.xlu1 %v18673_v52, %s23203_s8 }
 0x295   : > { %23544 = vst [vmem:[#allocation75_spill] sm:$0xff] %v18776_v15  ;;  %23545 = vst [vmem:[#allocation76_spill] sm:$0xff] %v18778_v27  ;;  %v5886_v16 = vshrl.u32 %v18776_v15, 16  ;;  %v18788_v17 = vadd.bf16 %v4761_v18, %v2097_v37  ;;  %v5891_v0 = vshrl.u32 %v18770_v50, 16  ;;  %v6998_v55 = vadd.bf16 %v6662_v59, %v18619_v4 }
 0x296   : > { %23546 = vst [vmem:[#allocation77_spill] sm:$0xff] %v18781_v44  ;;  %v18792_v39 = vrot.slane %v3535_v25, %v16497_v23  ;;  %v3565_v42 = vcombine.high %v18781_v44, %v18781_v44  ;;  %v6999_v9 = vadd.bf16 %v6663_v38, %v18617_v8  ;;  %v2105_v28 = vrot.slane %v1328_v7, %v16497_v23 }
 0x297   : > { %23547 = vst [vmem:[#allocation78_spill] sm:$0xff] %v18788_v17  ;;  %v2161_v31 = vrot.slane %v15146_v14, %v16497_v23  ;;  %v7002_v52 = vadd.bf16 %v6666_v1, %v18678_v10  ;;  %v2112_v43 = vrot.slane %v15145_v57, %v16497_v23  ;;  %v7755_v63 = vrot.slane %v6997_v58, %v16497_v23  ;;  %v23549_v14 = vld [vmem:[#allocation39_spill] sm:$0xff]  ;;  %v18822_v1 = vpop.f32.mrf.mxu0 }
 0x298   : > { %v3567_v36 = vcombine.high %v18792_v39, %v18792_v39  ;;  %v8980_v4 = vrot.slane %v7001_v45, %v16497_v23  ;;  %v18809_v8 = vadd.bf16 %v5886_v16, %v18776_v15  ;;  %v5956_v7 = vshrl.u32 %v3565_v42, 16  ;;  %9956 = vrot.lane.b32.xlu1 %v9944_v12, %s23214_s9  ;;  %23553 = vst [vmem:[#allocation80_spill] sm:$0xff] %v18822_v1 }
 0x299   : > { %v954_v10 = vadd.f32 %v18264_v51, %v23549_v14  ;;  %v957_v18 = vadd.f32 %v18264_v51, %v23550_v6  ;;  %v18817_v30 = vadd.bf16 %v5891_v0, %v18770_v50  ;;  %v7000_v25 = vadd.bf16 %v6664_v32, %v18621_v47  ;;  %23554 = vst [vmem:[#allocation81_spill] sm:$0xff] %v18824_v61  ;;  %v23556_v47 = vld [vmem:[#allocation27_spill] sm:$0xff]  ;;  %v15951_v14 = vpop.f32.mrf.mxu1  ;;  %v23569_v50 = vld [vmem:[#allocation68_spill] sm:$0xff] }
 0x29a   : > { %23548 = vst [vmem:[#allocation79_spill] sm:$0xff] %v18809_v8  ;;  %v5961_v11 = vshrl.u32 %v3567_v36, 16  ;;  %v2113_v59 = vcombine.high %v2105_v28, %v2105_v28  ;;  %v2163_v38 = vcombine.high %v2161_v31, %v2161_v31  ;;  %v18820_v62 = vadd.bf16 %v5956_v7, %v3565_v42  ;;  %v15862_v7 = vpop.f32.mrf.mxu0 }
 0x29b   : > { %23551 = vst [vmem:[#allocation39_spill] sm:$0xff] %v18817_v30  ;;  %v7769_v12 = vrot.slane %v6998_v55, %v16497_v23  ;;  %v7783_v57 = vrot.slane %v6999_v9, %v16497_v23  ;;  %v2114_v58 = vcombine.high %v2112_v43, %v2112_v43  ;;  %v7762_v16 = vrot.slane %v7755_v63, %v16497_v23 }
 0x29c   : > { %23552 = vst [vmem:[#allocation14_spill] sm:$0xff] %v18820_v62  ;;  %v18828_v45 = vadd.bf16 %v5961_v11, %v3567_v36  ;;  %v2121_v0 = vrot.slane %v2105_v28, %v16497_v23  ;;  %v946_v32 = vadd.f32 %v18264_v51, %v23556_v47  ;;  %v2128_v6 = vrot.slane %v2112_v43, %v16497_v23  ;;  %v23566_v62 = vld [vmem:[#allocation32_spill] sm:$0xff] }
 0x29d   : > { %v1248_v55 = vmax.f32 %v954_v10, 0.0  ;;  %v1249_v37 = vmax.f32 %v957_v18, 0.0  ;;  %v8987_v28 = vrot.slane %v8980_v4, %v16497_v23  ;;  %v2135_v63 = vrot.slane %v2113_v59, %v16497_v23 }
 0x29e   : > { %23555 = vst [vmem:[#allocation82_spill] sm:$0xff] %v18828_v45  ;;  %v18844_v51 = vrot.slane %v2163_v38, %v16497_v23  ;;  %v7776_v11 = vrot.slane %v7769_v12, %v16497_v23  ;;  %v7790_v47 = vrot.slane %v7783_v57, %v16497_v23  ;;  %v18849_v43 = vrot.slane %v7002_v52, %v16497_v23 }
 0x29f   : > { %v18852_v10 = vrot.slane %v2114_v58, %v16497_v23  ;;  %v18855_v18 = vrot.slane %v7000_v25, %v16497_v23  ;;  %v18857_v7 = vcombine.high %v2121_v0, %v2121_v0  ;;  %v1246_v4 = vmax.f32 %v946_v32, 0.0 }
 0x2a0   : > { %23557 = vst [vmem:[#allocation27_spill] sm:$0xff] %v18849_v43  ;;  %v18860_v59 = vrot.slane %v2161_v31, %v16497_v23  ;;  %v18862_v38 = vunpack.c.l.b16 %v7762_v16  ;;  %v2144_v12 = vcombine.high %v2128_v6, %v2128_v6  ;;  %v4766_v14 = vshrl.u32 %v2121_v0, 16 }
 0x2a1   : > { %23558 = vst [vmem:[#allocation83_spill] sm:$0xff] %v18855_v18  ;;  %v1330_v57 = vpack.c.bf16 %v1249_v37, %v1248_v55  ;;  %v18864_v36 = vcombine.high %v2135_v63, %v2135_v63  ;;  %v4786_v52 = vshrl.u32 %v2128_v6, 16  ;;  %v2195_v58 = vcombine.high %v18844_v51, %v18844_v51 }
 0x2a2   : > { %23559 = vst [vmem:[#allocation84_spill] sm:$0xff] %v18862_v38  ;;  %v15147_v9 = vpack.c.bf16 %v1249_v37, %v1249_v37  ;;  %v18868_v25 = vunpack.c.l.b16 %v7776_v11  ;;  %v18870_v42 = vunpack.c.l.b16 %v7790_v47  ;;  %v18872_v32 = vunpack.c.l.b16 %v8987_v28 }
 0x2a3   : > { %v18876_v31 = vcombine.high %v18852_v10, %v18852_v10  ;;  %v4771_v16 = vshrl.u32 %v2135_v63, 16  ;;  %v4776_v55 = vshrl.u32 %v18857_v7, 16  ;;  %v1329_v1 = vpack.c.bf16 %v18752_v21, %v1246_v4 }
 0x2a4   : > { %23560 = vst [vmem:[#allocation85_spill] sm:$0xff] %v18868_v25  ;;  %23561 = vst [vmem:[#allocation86_spill] sm:$0xff] %v18870_v42  ;;  %v2193_v61 = vcombine.high %v18860_v59, %v18860_v59  ;;  %v4791_v37 = vshrl.u32 %v18852_v10, 16  ;;  %v4796_v11 = vshrl.u32 %v2144_v12, 16  ;;  %v18883_v19 = vadd.bf16 %v4766_v14, %v2121_v0  ;;  %v23567_v25 = vld [vmem:[#allocation31_spill] sm:$0xff] }
 0x2a5   : > { %23562 = vst [vmem:[#allocation87_spill] sm:$0xff] %v18872_v32  ;;  %v2203_v28 = vrot.slane %v1330_v57, %v16497_v23  ;;  %v4781_v47 = vshrl.u32 %v18864_v36, 16  ;;  %v18887_v17 = vadd.bf16 %v4786_v52, %v2128_v6  ;;  %v4841_v49 = vshrl.u32 %v2195_v58, 16 }
 0x2a6   : > { %v2210_v27 = vrot.slane %v15147_v9, %v16497_v23  ;;  %v23563_v21 = vrot.slane %v18563_v60, %v16497_v23  ;;  %v23565_v30 = vrot.slane %v18409_v13, 7  ;;  %v10946_v14 = vrot.slane %v18412_v3, 6 }
 0x2a7   : > { %v10948_v57 = vrot.slane %v18414_v5, 5  ;;  %v2154_v6 = vrot.slane %v1329_v1, %v16497_v23  ;;  %v4836_v52 = vshrl.u32 %v2193_v61, 16  ;;  %v10880_v9 = vrot.slane %v18592_v56, %v16497_v23 }
 0x2a8   : > { %v18893_v4 = vunpack.c.l.b16 %v23563_v21  ;;  %v10945_v0 = vsel %vm8746_vm2, %v23565_v30, %v18407_v54  ;;  %v10950_v45 = vrot.slane %v18424_v33, 4  ;;  %v2211_v60 = vcombine.high %v2203_v28, %v2203_v28 }
 0x2a9   : > { %v10947_v21 = vsel %vm8749_vm3, %v10946_v14, %v10945_v0  ;;  %v10952_v8 = vrot.slane %v18597_v29, 3  ;;  %v10954_v44 = vrot.slane %v23566_v62, 2  ;;  %v2212_v30 = vcombine.high %v2210_v27, %v2210_v27 }
 0x2aa   : > { %23564 = vst [vmem:[#allocation88_spill] sm:$0xff] %v18893_v4  ;;  %v2219_v40 = vrot.slane %v2203_v28, %v16497_v23  ;;  %v10949_v43 = vsel %vm8752_vm4, %v10948_v57, %v10947_v21  ;;  %v10958_v1 = vrot.slane %v18893_v4, 7  ;;  %v6670_v42 = vadd.bf16 %v4771_v16, %v2135_v63  ;;  %v23568_v21 = vld [vmem:[#allocation43_spill] sm:$0xff]  ;;  %v18925_v16 = vpop.f32.mrf.mxu0 }
 0x2ab   : > { %v6684_v32 = vadd.bf16 %v4841_v49, %v2195_v58  ;;  %v10951_v56 = vsel %vm23226_vm5, %v10950_v45, %v10949_v43  ;;  %v10956_v38 = vrot.slane %v23567_v25, 1  ;;  %v4801_v24 = vshrl.u32 %v18876_v31, 16  ;;  %23570 = vst [vmem:[#allocation43_spill] sm:$0xff] %v18925_v16 }
 0x2ac   : > { %v2162_v0 = vcombine.high %v2154_v6, %v2154_v6  ;;  %v18914_v14 = vunpack.c.l.b16 %v10880_v9  ;;  %v10953_v48 = vsel %vm23222_vm6, %v10952_v8, %v10951_v56  ;;  %v6683_v18 = vadd.bf16 %v4836_v52, %v2193_v61 }
 0x2ad   : > { %v2226_v28 = vrot.slane %v2210_v27, %v16497_v23  ;;  %v10955_v57 = vsel %vm8761_vm7, %v10954_v44, %v10953_v48  ;;  %v2233_v49 = vrot.slane %v2211_v60, %v16497_v23  ;;  %v2240_v45 = vrot.slane %v2212_v30, %v16497_v23  ;;  %v15863_v30 = vpop.f32.mrf.mxu0 }
 0x2ae   : > { %v2241_v43 = vcombine.high %v2219_v40, %v2219_v40  ;;  %v10959_v58 = vsel %vm8746_vm2, %v10958_v1, %v18914_v14  ;;  %v2170_v8 = vrot.slane %v2154_v6, %v16497_v23  ;;  %v7006_v61 = vadd.bf16 %v6684_v32, %v6670_v42  ;;  %v18939_v42 = vpop.f32.mrf.mxu1 }
 0x2af   : > { %v4846_v52 = vshrl.u32 %v2219_v40, 16  ;;  %v10957_v27 = vsel %vm8764_vm8, %v10956_v38, %v10955_v57  ;;  %v6671_v48 = vadd.bf16 %v4776_v55, %v18857_v7  ;;  %v18931_v44 = vadd.bf16 %v4791_v37, %v18852_v10  ;;  %23572 = vst [vmem:[#allocation89_spill] sm:$0xff] %v18939_v42  ;;  %v18941_v55 = vpop.f32.mrf.mxu0 }
 0x2b0   : > { %v18933_v9 = vadd.bf16 %v4796_v11, %v2144_v12  ;;  %v2184_v60 = vrot.slane %v2162_v0, %v16497_v23  ;;  %v7005_v1 = vadd.bf16 %v6683_v18, %v18883_v19  ;;  %v2242_v56 = vcombine.high %v2226_v28, %v2226_v28  ;;  %23573 = vst [vmem:[#allocation90_spill] sm:$0xff] %v18941_v55  ;;  %v15954_v19 = vpop.f32.mrf.mxu1 }
 0x2b1   : > { %v4866_v63 = vshrl.u32 %v2226_v28, 16  ;;  %v18937_v16 = vpack.c.b16 %v10959_v58, %v10957_v27  ;;  %v2243_v32 = vcombine.high %v2233_v49, %v2233_v49  ;;  %v2244_v38 = vcombine.high %v2240_v45, %v2240_v45  ;;  %v15866_v27 = vpop.f32.mrf.mxu0 }
 0x2b2   : > { %v4851_v6 = vshrl.u32 %v2233_v49, 16  ;;  %v4856_v7 = vshrl.u32 %v2241_v43, 16  ;;  %v6672_v10 = vadd.bf16 %v4781_v47, %v18864_v36  ;;  %v2192_v12 = vcombine.high %v2170_v8, %v2170_v8  ;;  %v18950_v47 = vpop.f32.mrf.mxu1 }
 0x2b3   : > { %23571 = vst [vmem:[#allocation68_spill] sm:$0xff] %v18937_v16  ;;  %v7825_v37 = vrot.slane %v7006_v61, %v16497_v23  ;;  %v6685_v11 = vadd.bf16 %v4846_v52, %v2219_v40  ;;  %12097 = vrot.lane.b32.xlu1 %v18937_v16, %s23170_s13  ;;  %v6676_v18 = vadd.bf16 %v4801_v24, %v18876_v31  ;;  %v4806_v0 = vshrl.u32 %v2170_v8, 16 }
 0x2b4   : > { %v4826_v57 = vshrl.u32 %v18860_v59, 16  ;;  %v4871_v58 = vshrl.u32 %v2240_v45, 16  ;;  %v4811_v30 = vshrl.u32 %v2184_v60, 16  ;;  %v7811_v55 = vrot.slane %v7005_v1, %v16497_v23  ;;  %23574 = vst [vmem:[#allocation91_spill] sm:$0xff] %v18950_v47  ;;  %v15955_v4 = vpop.f32.mrf.mxu1 }
 0x2b5   : > { %v4876_v42 = vshrl.u32 %v2242_v56, 16  ;;  %v6689_v36 = vadd.bf16 %v4866_v63, %v2226_v28  ;;  %v4861_v61 = vshrl.u32 %v2243_v32, 16  ;;  %v4881_v40 = vshrl.u32 %v2244_v38, 16 }
 0x2b6   : > { %v6686_v52 = vadd.bf16 %v4851_v6, %v2233_v49  ;;  %v6687_v15 = vadd.bf16 %v4856_v7, %v2241_v43  ;;  %v2194_v16 = vcombine.high %v2184_v60, %v2184_v60  ;;  %v4816_v19 = vshrl.u32 %v2192_v12, 16 }
 0x2b7   : > { %v7832_v24 = vrot.slane %v7825_v37, %v16497_v23  ;;  %v7007_v31 = vadd.bf16 %v6685_v11, %v6671_v48  ;;  %v4831_v25 = vshrl.u32 %v18844_v51, 16  ;;  %v6677_v27 = vadd.bf16 %v4806_v0, %v2170_v8 }
 0x2b8   : > { %v18955_v62 = vadd.bf16 %v4826_v57, %v18860_v59  ;;  %v6690_v1 = vadd.bf16 %v4871_v58, %v2240_v45  ;;  %v6678_v28 = vadd.bf16 %v4811_v30, %v2184_v60  ;;  %v7818_v63 = vrot.slane %v7811_v55, %v16497_v23  ;;  %v18968_v45 = vld [vmem:[%s22981_s2] ss:$0 sm:$0xff]  ;;  %v23576_v60 = vld [vmem:[#allocation49_spill] sm:$0xff] }
 0x2b9   : > { %v6691_v47 = vadd.bf16 %v4876_v42, %v2242_v56  ;;  %v7011_v49 = vadd.bf16 %v6689_v36, %v18933_v9  ;;  %v6688_v43 = vadd.bf16 %v4861_v61, %v2243_v32  ;;  %v6692_v6 = vadd.bf16 %v4881_v40, %v2244_v38  ;;  %v23577_v56 = vld [vmem:[#allocation48_spill] sm:$0xff] }
 0x2ba   : > { %v7008_v7 = vadd.bf16 %v6686_v52, %v6672_v10  ;;  %v7009_v37 = vadd.bf16 %v6687_v15, %v18887_v17  ;;  %v4821_v48 = vshrl.u32 %v2194_v16, 16  ;;  %v18960_v4 = vadd.bf16 %v4816_v19, %v2192_v12 }
 0x2bb   : > { %v18962_v11 = vunpack.c.l.b16 %v7832_v24  ;;  %v7839_v59 = vrot.slane %v7007_v31, %v16497_v23  ;;  %v7012_v8 = vadd.bf16 %v6690_v1, %v6676_v18  ;;  %v962_v9 = vadd.f32 %v18968_v45, %v23576_v60 }
 0x2bc   : > { %v965_v42 = vadd.f32 %v18968_v45, %v23577_v56  ;;  %v23578_v15 = vadd.bf16 %v23569_v50, %v23568_v21  ;;  %v18979_v32 = vadd.bf16 %v4831_v25, %v18844_v51  ;;  %v8685_v38 = vunpack.c.l.b16 %v7818_v63  ;;  %v23580_v63 = vld [vmem:[#allocation36_spill] sm:$0xff] }
 0x2bd   : > { %23575 = vst [vmem:[#allocation92_spill] sm:$0xff] %v18962_v11  ;;  %v7013_v55 = vadd.bf16 %v6691_v47, %v6677_v27  ;;  %v7895_v10 = vrot.slane %v7011_v49, %v16497_v23  ;;  %v7010_v12 = vadd.bf16 %v6688_v43, %v18931_v44  ;;  %v7014_v18 = vadd.bf16 %v6692_v6, %v6678_v28 }
 0x2be   : > { %v10016_v17 = vrot.slane %v23578_v15, %v16497_v23  ;;  %v7853_v0 = vrot.slane %v7008_v7, %v16497_v23  ;;  %v7867_v57 = vrot.slane %v7009_v37, %v16497_v23  ;;  %v8816_v58 = vrot.slane %v18962_v11, 7 }
 0x2bf   : > { %v7846_v30 = vrot.slane %v7839_v59, %v16497_v23  ;;  %v10164_v50 = vrot.slane %v18380_v26, 7  ;;  %v10166_v51 = vrot.slane %v18312_v53, 6  ;;  %v7909_v25 = vrot.slane %v7012_v8, %v16497_v23 }
 0x2c0   : > { %v1250_v21 = vmax.f32 %v962_v9, 0.0  ;;  %v1251_v36 = vmax.f32 %v965_v42, 0.0  ;;  %v10023_v47 = vrot.slane %v10016_v17, %v16497_v23  ;;  %v7902_v44 = vrot.slane %v7895_v10, %v16497_v23 }
 0x2c1   : > { %v7923_v61 = vrot.slane %v7013_v55, %v16497_v23  ;;  %v10165_v40 = vsel %vm8746_vm2, %v10164_v50, %v18321_v34  ;;  %v10168_v52 = vrot.slane %v18323_v35, 5  ;;  %v7860_v19 = vrot.slane %v7853_v0, %v16497_v23  ;;  %v23588_v50 = vld [vmem:[#allocation50_spill] sm:$0xff] }
 0x2c2   : > { %v7874_v26 = vrot.slane %v7867_v57, %v16497_v23  ;;  %v18999_v53 = vrot.slane %v7010_v12, %v16497_v23  ;;  %v19002_v24 = vrot.slane %v7014_v18, %v16497_v23  ;;  %v19004_v31 = vadd.bf16 %v4821_v48, %v2194_v16  ;;  %v23585_v12 = vld [vmem:[#allocation41_spill] sm:$0xff] }
 0x2c3   : > { %v19007_v27 = vsel %vm8746_vm2, %v8816_v58, %v8685_v38  ;;  %v10167_v1 = vsel %vm8749_vm3, %v10166_v51, %v10165_v40  ;;  %v10170_v34 = vrot.slane %v18490_v20, 4  ;;  %v7916_v35 = vrot.slane %v7909_v25, %v16497_v23 }
 0x2c4   : > { %23579 = vst [vmem:[#allocation49_spill] sm:$0xff] %v19007_v27  ;;  %v1331_v28 = vpack.c.bf16 %v1251_v36, %v1250_v21  ;;  %v1186_v49 = vadd.f32 %v18968_v45, %v23580_v63  ;;  %v10124_v43 = vunpack.c.l.b16 %v10023_v47  ;;  %v7930_v6 = vrot.slane %v7923_v61, %v16497_v23 }
 0x2c5   : > { %v19015_v7 = vunpack.c.l.b16 %v7846_v30  ;;  %v19017_v16 = vunpack.c.l.b16 %v7902_v44  ;;  %v10169_v37 = vsel %vm8752_vm4, %v10168_v52, %v10167_v1  ;;  %v7888_v48 = vrot.slane %v18999_v53, %v16497_v23  ;;  %v19044_v30 = vpop.f32.mrf.mxu0  ;;  %v23591_v44 = vld [vmem:[#allocation51_spill] sm:$0xff] }
 0x2c6   : > { %v7944_v20 = vrot.slane %v19002_v24, %v16497_v23  ;;  %v19024_v59 = vunpack.c.l.b16 %v7860_v19  ;;  %v19026_v8 = vunpack.c.l.b16 %v7874_v26  ;;  %v10171_v60 = vsel %vm23226_vm5, %v10170_v34, %v10169_v37  ;;  %23587 = vst [vmem:[#allocation95_spill] sm:$0xff] %v19044_v30 }
 0x2c7   : > { %23581 = vst [vmem:[#allocation48_spill] sm:$0xff] %v19015_v7  ;;  %23582 = vst [vmem:[#allocation36_spill] sm:$0xff] %v19017_v16  ;;  %v10172_v9 = vrot.slane %v18467_v46, 3  ;;  %v10174_v56 = vrot.slane %v18501_v41, 2  ;;  %v10176_v42 = vrot.slane %v18632_v2, 1  ;;  %v15148_v15 = vpack.c.bf16 %v1251_v36, %v1251_v36 }
 0x2c8   : > { %23583 = vst [vmem:[#allocation93_spill] sm:$0xff] %v19024_v59  ;;  %23584 = vst [vmem:[#allocation94_spill] sm:$0xff] %v19026_v8  ;;  %v2252_v17 = vrot.slane %v1331_v28, %v16497_v23  ;;  %v1306_v38 = vmax.f32 %v1186_v49, 0.0  ;;  %v10178_v55 = vrot.slane %v10124_v43, 7  ;;  %v1189_v18 = vadd.f32 %v18968_v45, %v23585_v12  ;;  %v23592_v28 = vld [vmem:[#allocation17_spill] sm:$0xff]  ;;  %v23593_v49 = vld [vmem:[#allocation18_spill] sm:$0xff] }
 0x2c9   : > { %v10173_v10 = vsel %vm23222_vm6, %v10172_v9, %v10171_v60  ;;  %v10891_v0 = vrot.slane %v18407_v54, 7  ;;  %v10893_v57 = vrot.slane %v18409_v13, 6  ;;  %v19038_v58 = vunpack.c.l.b16 %v7916_v35  ;;  %v23590_v54 = vld [vmem:[#allocation38_spill] sm:$0xff] }
 0x2ca   : > { %v2268_v46 = vrot.slane %v2252_v17, %v16497_v23  ;;  %v10175_v41 = vsel %vm8761_vm7, %v10174_v56, %v10173_v10  ;;  %v10179_v2 = vsel %vm8746_vm2, %v10178_v55, %v18711_v22  ;;  %v970_v51 = vadd.f32 %v18968_v45, %v23588_v50  ;;  %v15867_v22 = vpop.f32.mrf.mxu0 }
 0x2cb   : > { %23586 = vst [vmem:[#allocation41_spill] sm:$0xff] %v19038_v58  ;;  %v10177_v25 = vsel %vm8764_vm8, %v10176_v42, %v10175_v41  ;;  %v19049_v21 = vmax.f32 %v1189_v18, 0.0  ;;  %v10892_v36 = vsel %vm8746_vm2, %v10891_v0, %v23590_v54  ;;  %v2260_v47 = vcombine.high %v2252_v17, %v2252_v17  ;;  %v23655_v58 = vld [vmem:[#allocation87_spill] sm:$0xff] }
 0x2cc   : > { %v973_v61 = vadd.f32 %v18968_v45, %v23591_v44  ;;  %v10294_v40 = vpack.c.b16 %v10179_v2, %v10177_v25  ;;  %v10894_v52 = vsel %vm8749_vm3, %v10893_v57, %v10892_v36  ;;  %v2259_v19 = vrot.slane %v15148_v15, %v16497_v23 }
 0x2cd   : > { %23589 = vst [vmem:[#allocation50_spill] sm:$0xff] %v19049_v21  ;;  %v1359_v26 = vpack.c.bf16 %v19049_v21, %v1306_v38  ;;  %v10895_v1 = vrot.slane %v18412_v3, 5  ;;  %v10897_v34 = vrot.slane %v18414_v5, 4  ;;  %v2290_v35 = vcombine.high %v2268_v46, %v2268_v46 }
 0x2ce   : > { %v978_v63 = vadd.f32 %v18968_v45, %v23592_v28  ;;  %v981_v43 = vadd.f32 %v18968_v45, %v23593_v49  ;;  %10306 = vrot.lane.b32.xlu1 %v10294_v40, %s23594_s16  ;;  %10713 = vrot.lane.b32.xlu0 %v10294_v40, %s23212_s22  ;;  %v10899_v37 = vrot.slane %v18424_v33, 3  ;;  %v19067_v60 = vunpack.c.l.b16 %v7930_v6 }
 0x2cf   : > { %v19071_v56 = vrot.slane %v1359_v26, %v16497_v23  ;;  %v10896_v42 = vsel %vm8752_vm4, %v10895_v1, %v10894_v52  ;;  %v2282_v15 = vrot.slane %v2260_v47, %v16497_v23  ;;  %v4886_v17 = vshrl.u32 %v2268_v46, 16 }
 0x2d0   : > { %23595 = vst [vmem:[#allocation38_spill] sm:$0xff] %v19067_v60  ;;  %v1252_v38 = vmax.f32 %v970_v51, 0.0  ;;  %v10898_v55 = vsel %vm23226_vm5, %v10897_v34, %v10896_v42  ;;  %v2261_v10 = vcombine.high %v2259_v19, %v2259_v19  ;;  %v1253_v12 = vmax.f32 %v973_v61, 0.0  ;;  %v23599_v61 = vld [vmem:[#allocation32_spill] sm:$0xff] }
 0x2d1   : > { %23596 = vst [vmem:[#allocation51_spill] sm:$0xff] %v19071_v56  ;;  %v3632_v18 = vcombine.high %v19071_v56, %v19071_v56  ;;  %v10901_v6 = vrot.slane %v18597_v29, 2  ;;  %v4896_v0 = vshrl.u32 %v2290_v35, 16  ;;  %v1254_v57 = vmax.f32 %v978_v63, 0.0 }
 0x2d2   : > { %v1255_v41 = vmax.f32 %v981_v43, 0.0  ;;  %v10900_v2 = vsel %vm23222_vm6, %v10899_v37, %v10898_v55  ;;  %11120 = vrot.lane.b32.xlu0 %v10294_v40, %s23597_s17  ;;  %v5951_v51 = vshrl.u32 %v18792_v39, 16  ;;  %v10905_v54 = vrot.slane %v18914_v14, 7  ;;  %v23601_v37 = vld [vmem:[#allocation31_spill] sm:$0xff] }
 0x2d3   : > { %v19084_v25 = vrot.slane %v3632_v18, %v16497_v23  ;;  %v2275_v36 = vrot.slane %v2259_v19, %v16497_v23  ;;  %v2292_v47 = vcombine.high %v2282_v15, %v2282_v15  ;;  %v6693_v44 = vadd.bf16 %v4886_v17, %v2268_v46 }
 0x2d4   : > { %v10903_v52 = vrot.slane %v23599_v61, 1  ;;  %v9496_v22 = vrot.slane %v19024_v59, 7  ;;  %v2289_v26 = vrot.slane %v2261_v10, %v16497_v23  ;;  %v10902_v1 = vsel %vm8761_vm7, %v10901_v6, %v10900_v2 }
 0x2d5   : > { %23598 = vst [vmem:[#allocation17_spill] sm:$0xff] %v19084_v25  ;;  %v3664_v40 = vcombine.high %v19084_v25, %v19084_v25  ;;  %v4891_v34 = vshrl.u32 %v2282_v15, 16  ;;  %v6695_v28 = vadd.bf16 %v4896_v0, %v2290_v35  ;;  %v1332_v63 = vpack.c.bf16 %v1253_v12, %v1252_v38 }
 0x2d6   : > { %v1333_v49 = vpack.c.bf16 %v1255_v41, %v1254_v57  ;;  %v15150_v43 = vpack.c.bf16 %v1255_v41, %v1255_v41  ;;  %v19095_v19 = vadd.bf16 %v5951_v51, %v18792_v39  ;;  %v10906_v42 = vsel %vm8746_vm2, %v10905_v54, %v23601_v37 }
 0x2d7   : > { %v6021_v46 = vshrl.u32 %v3664_v40, 16  ;;  %v2291_v17 = vcombine.high %v2275_v36, %v2275_v36  ;;  %v4901_v55 = vshrl.u32 %v2292_v47, 16  ;;  %v7015_v10 = vadd.bf16 %v6693_v44, %v18960_v4 }
 0x2d8   : > { %23600 = vst [vmem:[#allocation18_spill] sm:$0xff] %v19095_v19  ;;  %v10904_v18 = vsel %vm8764_vm8, %v10903_v52, %v10902_v1  ;;  %v2293_v50 = vcombine.high %v2289_v26, %v2289_v26  ;;  %v4906_v6 = vshrl.u32 %v2275_v36, 16  ;;  %v15149_v2 = vpack.c.bf16 %v1253_v12, %v1253_v12 }
 0x2d9   : > { %v19101_v35 = vadd.bf16 %v6021_v46, %v3664_v40  ;;  %v4911_v38 = vshrl.u32 %v2289_v26, 16  ;;  %v6694_v0 = vadd.bf16 %v4891_v34, %v2282_v15  ;;  %v2301_v39 = vrot.slane %v1332_v63, %v16497_v23 }
 0x2da   : > { %v19104_v57 = vpack.c.b16 %v10906_v42, %v10904_v18  ;;  %v7017_v41 = vadd.bf16 %v6695_v28, %v18955_v62  ;;  %v2350_v51 = vrot.slane %v1333_v49, %v16497_v23  ;;  %v2357_v54 = vrot.slane %v15150_v43, %v16497_v23  ;;  %v19119_v62 = vpop.f32.mrf.mxu0 }
 0x2db   : > { %23602 = vst [vmem:[#allocation32_spill] sm:$0xff] %v19101_v35  ;;  %v19114_v12 = vunpack.c.l.b16 %v7888_v48  ;;  %v4916_v44 = vshrl.u32 %v2291_v17, 16  ;;  %v6696_v15 = vadd.bf16 %v4901_v55, %v2292_v47  ;;  %v8994_v52 = vrot.slane %v7015_v10, %v16497_v23  ;;  %23605 = vst [vmem:[#allocation97_spill] sm:$0xff] %v19119_v62 }
 0x2dc   : > { %23603 = vst [vmem:[#allocation31_spill] sm:$0xff] %v19104_v57  ;;  %12044 = vrot.lane.b32.xlu1 %v19104_v57, %s23594_s16  ;;  %v19124_v40 = vunpack.c.l.b16 %v7944_v20  ;;  %v4921_v34 = vshrl.u32 %v2293_v50, 16  ;;  %v2308_v53 = vrot.slane %v15149_v2, %v16497_v23  ;;  %v19130_v48 = vsel %vm8746_vm2, %v9496_v22, %v19015_v7  ;;  %v15870_v49 = vpop.f32.mrf.mxu0 }
 0x2dd   : > { %23604 = vst [vmem:[#allocation96_spill] sm:$0xff] %v19114_v12  ;;  %23607 = vst [vmem:[#allocation99_spill] sm:$0xff] %v19130_v48  ;;  %v19132_v47 = vadd.bf16 %v4906_v6, %v2275_v36  ;;  %v7016_v28 = vadd.bf16 %v6694_v0, %v19004_v31  ;;  %v2309_v63 = vcombine.high %v2301_v39, %v2301_v39 }
 0x2de   : > { %23606 = vst [vmem:[#allocation98_spill] sm:$0xff] %v19124_v40  ;;  %v19135_v43 = vadd.bf16 %v4911_v38, %v2289_v26  ;;  %v19138_v24 = vrot.slane %v7017_v41, %v16497_v23  ;;  %v2358_v20 = vcombine.high %v2350_v51, %v2350_v51  ;;  %v2359_v46 = vcombine.high %v2357_v54, %v2357_v54  ;;  %v23611_v41 = vld [vmem:[#allocation62_spill] sm:$0xff]  ;;  %v23654_v40 = vld [vmem:[#allocation85_spill] sm:$0xff] }
 0x2df   : > { %v19140_v42 = vadd.bf16 %v4916_v44, %v2291_v17  ;;  %v7018_v55 = vadd.bf16 %v6696_v15, %v18979_v32  ;;  %v9001_v22 = vrot.slane %v8994_v52, %v16497_v23  ;;  %v2317_v36 = vrot.slane %v2301_v39, %v16497_v23  ;;  %v23610_v39 = vld [vmem:[#allocation15_spill] sm:$0xff]  ;;  %v19167_v44 = vpop.f32.mrf.mxu0 }
 0x2e0   : > { %23608 = vst [vmem:[#allocation100_spill] sm:$0xff] %v19138_v24  ;;  %v19145_v10 = vadd.bf16 %v4921_v34, %v2293_v50  ;;  %v2310_v31 = vcombine.high %v2308_v53, %v2308_v53  ;;  %v19148_v18 = vrot.slane %v2350_v51, %v16497_v23  ;;  %v2373_v26 = vrot.slane %v2357_v54, %v16497_v23 }
 0x2e1   : > { %v19152_v6 = vrot.slane %v7016_v28, %v16497_v23  ;;  %v2324_v17 = vrot.slane %v2308_v53, %v16497_v23  ;;  %v2331_v2 = vrot.slane %v2309_v63, %v16497_v23  ;;  %v10997_v32 = vrot.slane %v18412_v3, 7  ;;  %23613 = vst [vmem:[#allocation15_spill] sm:$0xff] %v19167_v44 }
 0x2e2   : > { %v19160_v50 = vrot.slane %v2358_v20, %v16497_v23  ;;  %v2387_v0 = vrot.slane %v2359_v46, %v16497_v23  ;;  %v23612_v51 = vadd.bf16 %v23610_v39, %v23611_v41  ;;  %v19169_v15 = vunpack.c.l.b16 %v9001_v22  ;;  %v15871_v46 = vpop.f32.mrf.mxu0 }
 0x2e3   : > { %23609 = vst [vmem:[#allocation101_spill] sm:$0xff] %v19152_v6  ;;  %v19172_v52 = vrot.slane %v7018_v55, %v16497_v23  ;;  %v2339_v34 = vcombine.high %v2317_v36, %v2317_v36  ;;  %v4926_v53 = vshrl.u32 %v2317_v36, 16  ;;  %v19175_v28 = vrot.slane %v2310_v31, %v16497_v23 }
 0x2e4   : > { %v10988_v54 = vrot.slane %v23612_v51, %v16497_v23  ;;  %23614 = vst [vmem:[#allocation62_spill] sm:$0xff] %v19169_v15  ;;  %v2388_v63 = vcombine.high %v19148_v18, %v19148_v18  ;;  %v2389_v49 = vcombine.high %v2373_v26, %v2373_v26  ;;  %v10999_v20 = vrot.slane %v18414_v5, 6 }
 0x2e5   : > { %23615 = vst [vmem:[#allocation102_spill] sm:$0xff] %v19172_v52  ;;  %v19180_v39 = vcombine.high %v2324_v17, %v2324_v17  ;;  %v19182_v41 = vcombine.high %v2331_v2, %v2331_v2  ;;  %v4986_v22 = vshrl.u32 %v2373_v26, 16  ;;  %v10998_v55 = vsel %vm8746_vm2, %v10997_v32, %v18409_v13 }
 0x2e6   : > { %v4931_v51 = vshrl.u32 %v2331_v2, 16  ;;  %v2390_v31 = vcombine.high %v19160_v50, %v19160_v50  ;;  %v4991_v4 = vshrl.u32 %v2387_v0, 16  ;;  %v10995_v38 = vrot.slane %v10988_v54, %v16497_v23 }
 0x2e7   : > { %v4936_v1 = vshrl.u32 %v2339_v34, 16  ;;  %v4946_v9 = vshrl.u32 %v2324_v17, 16  ;;  %v2391_v57 = vcombine.high %v2387_v0, %v2387_v0  ;;  %v11001_v46 = vrot.slane %v18424_v33, 5 }
 0x2e8   : > { %v19190_v19 = vadd.bf16 %v4926_v53, %v2317_v36  ;;  %v4976_v35 = vshrl.u32 %v2388_v63, 16  ;;  %v4996_v44 = vshrl.u32 %v2389_v49, 16  ;;  %v11000_v62 = vsel %vm8749_vm3, %v10999_v20, %v10998_v55 }
 0x2e9   : > { %v19195_v13 = vcombine.high %v19175_v28, %v19175_v28  ;;  %v6713_v54 = vadd.bf16 %v4986_v22, %v2373_v26  ;;  %v4981_v48 = vshrl.u32 %v2390_v31, 16  ;;  %v6714_v30 = vadd.bf16 %v4991_v4, %v2387_v0 }
 0x2ea   : > { %v19199_v24 = vunpack.c.l.b16 %v10995_v38  ;;  %v11003_v36 = vrot.slane %v18597_v29, 4  ;;  %v19202_v53 = vadd.bf16 %v4931_v51, %v2331_v2  ;;  %v5001_v6 = vshrl.u32 %v2391_v57, 16  ;;  %v23616_v38 = vld [vmem:[#allocation64_spill] sm:$0xff] }
 0x2eb   : > { %v11002_v20 = vsel %vm8752_vm4, %v11001_v46, %v11000_v62  ;;  %v11005_v55 = vrot.slane %v23599_v61, 3  ;;  %v19206_v15 = vadd.bf16 %v4936_v1, %v2339_v34  ;;  %v6711_v11 = vadd.bf16 %v4976_v35, %v2388_v63 }
 0x2ec   : > { %v6715_v32 = vadd.bf16 %v4996_v44, %v2389_v49  ;;  %v11007_v52 = vrot.slane %v23601_v37, 2  ;;  %v19209_v26 = vadd.bf16 %v4946_v9, %v2324_v17  ;;  %v7021_v4 = vadd.bf16 %v6713_v54, %v19140_v42  ;;  %v23617_v9 = vld [vmem:[#allocation30_spill] sm:$0xff]  ;;  %v23618_v17 = vld [vmem:[#allocation53_spill] sm:$0xff] }
 0x2ed   : > { %v19214_v0 = vadd.f32 %v18968_v45, %v23616_v38  ;;  %v11009_v2 = vrot.slane %v18914_v14, 1  ;;  %v6712_v22 = vadd.bf16 %v4981_v48, %v2390_v31  ;;  %v7022_v62 = vadd.bf16 %v6714_v30, %v19145_v10  ;;  %v23620_v10 = vld [vmem:[#allocation88_spill] sm:$0xff] }
 0x2ee   : > { %v11004_v1 = vsel %vm23226_vm5, %v11003_v36, %v11002_v20  ;;  %v11011_v35 = vrot.slane %v19199_v24, 7  ;;  %v6716_v44 = vadd.bf16 %v5001_v6, %v2391_v57  ;;  %v23619_v42 = vadd.bf16 %v23617_v9, %v23618_v17 }
 0x2ef   : > { %v11006_v34 = vsel %vm23222_vm6, %v11005_v55, %v11004_v1  ;;  %v11050_v49 = vrot.slane %v18414_v5, 7  ;;  %v7019_v51 = vadd.bf16 %v6711_v11, %v19132_v47  ;;  %v7023_v48 = vadd.bf16 %v6715_v32, %v19190_v19 }
 0x2f0   : > { %v11041_v63 = vrot.slane %v23619_v42, %v16497_v23  ;;  %v11008_v30 = vsel %vm8761_vm7, %v11007_v52, %v11006_v34  ;;  %v11012_v31 = vsel %vm8746_vm2, %v11011_v35, %v23620_v10  ;;  %v11052_v54 = vrot.slane %v18424_v33, 6  ;;  %v23624_v42 = vld [vmem:[#allocation20_spill] sm:$0xff] }
 0x2f1   : > { %v11010_v57 = vsel %vm8764_vm8, %v11009_v2, %v11008_v30  ;;  %v11051_v46 = vsel %vm8746_vm2, %v11050_v49, %v18412_v3  ;;  %v7020_v36 = vadd.bf16 %v6712_v22, %v19135_v43  ;;  %v7993_v11 = vrot.slane %v7022_v62, %v16497_v23  ;;  %v23622_v2 = vld [vmem:[#allocation44_spill] sm:$0xff]  ;;  %v19255_v62 = vpop.f32.mrf.mxu0 }
 0x2f2   : > { %v11048_v6 = vrot.slane %v11041_v63, %v16497_v23  ;;  %v19238_v47 = vpack.c.b16 %v11012_v31, %v11010_v57  ;;  %v11054_v19 = vrot.slane %v18597_v29, 5  ;;  %v11053_v32 = vsel %vm8749_vm3, %v11052_v54, %v11051_v46  ;;  %23623 = vst [vmem:[#allocation30_spill] sm:$0xff] %v19255_v62 }
 0x2f3   : > { %v11056_v20 = vrot.slane %v23599_v61, 4  ;;  %v11058_v55 = vrot.slane %v23601_v37, 3  ;;  %v4956_v3 = vshrl.u32 %v19180_v39, 16  ;;  %v7979_v38 = vrot.slane %v7021_v4, %v16497_v23  ;;  %v15874_v30 = vpop.f32.mrf.mxu0 }
 0x2f4   : > { %23621 = vst [vmem:[#allocation64_spill] sm:$0xff] %v19238_v47  ;;  %v19241_v52 = vunpack.c.l.b16 %v11048_v6  ;;  %v989_v43 = vadd.f32 %v18968_v45, %v23622_v2  ;;  %12150 = vrot.lane.b32.xlu1 %v19238_v47, %s23129_s15  ;;  %11743 = vrot.lane.b32.xlu0 %v19238_v47, %s23125_s29  ;;  %v11055_v22 = vsel %vm8752_vm4, %v11054_v19, %v11053_v32  ;;  %v4961_v9 = vshrl.u32 %v19195_v13, 16  ;;  %v19363_v47 = vpop.permute.xlu1 %9602 }
 0x2f5   : > { %v7024_v1 = vadd.bf16 %v6716_v44, %v19202_v53  ;;  %v7951_v35 = vrot.slane %v7019_v51, %v16497_v23  ;;  %v11057_v34 = vsel %vm23226_vm5, %v11056_v20, %v11055_v22  ;;  %v7965_v17 = vrot.slane %v7020_v36, %v16497_v23  ;;  %v19274_v36 = vpop.f32.mrf.mxu0 }
 0x2f6   : > { %v11064_v4 = vrot.slane %v19241_v52, 7  ;;  %v15173_v63 = vpack.c.bf16 %v23624_v42, %v23624_v42  ;;  %v11060_v49 = vrot.slane %v18914_v14, 2  ;;  %v8000_v31 = vrot.slane %v7993_v11, %v16497_v23  ;;  %23625 = vst [vmem:[#allocation53_spill] sm:$0xff] %v19274_v36 }
 0x2f7   : > { %v8007_v53 = vrot.slane %v7023_v48, %v16497_v23  ;;  %v11059_v44 = vsel %vm23222_vm6, %v11058_v55, %v11057_v34  ;;  %v4966_v57 = vshrl.u32 %v19148_v18, 16  ;;  %v7986_v6 = vrot.slane %v7979_v38, %v16497_v23 }
 0x2f8   : > { %v11065_v51 = vsel %vm8746_vm2, %v11064_v4, %v19199_v24  ;;  %v1256_v46 = vmax.f32 %v19214_v0, 0.0  ;;  %v1257_v54 = vmax.f32 %v989_v43, 0.0  ;;  %v4971_v19 = vshrl.u32 %v19160_v50, 16  ;;  %v15875_v43 = vpop.f32.mrf.mxu0 }
 0x2f9   : > { %v7958_v11 = vrot.slane %v7951_v35, %v16497_v23  ;;  %v8021_v48 = vrot.slane %v7024_v1, %v16497_v23  ;;  %v11062_v32 = vrot.slane %v23620_v10, 1  ;;  %v23626_v20 = vshrl.u32 %v19182_v41, 16 }
 0x2fa   : > { %v7972_v38 = vrot.slane %v7965_v17, %v16497_v23  ;;  %v3484_v0 = vrot.slane %v15173_v63, %v16497_v23  ;;  %v11061_v2 = vsel %vm8761_vm7, %v11060_v49, %v11059_v44  ;;  %v23627_v22 = vshrl.u32 %v19175_v28, 16  ;;  %v19312_v30 = vpop.f32.mrf.mxu0 }
 0x2fb   : > { %v19283_v55 = vadd.bf16 %v23626_v20, %v19182_v41  ;;  %v19294_v1 = vadd.bf16 %v4956_v3, %v19180_v39  ;;  %v8014_v34 = vrot.slane %v8007_v53, %v16497_v23  ;;  %v19297_v4 = vunpack.c.l.b16 %v8000_v31  ;;  %23630 = vst [vmem:[#allocation20_spill] sm:$0xff] %v19312_v30 }
 0x2fc   : > { %v19291_v35 = vadd.bf16 %v23627_v22, %v19175_v28  ;;  %v19300_v41 = vadd.bf16 %v4961_v9, %v19195_v13  ;;  %v19303_v17 = vadd.bf16 %v4966_v57, %v19148_v18  ;;  %v19305_v42 = vunpack.c.l.b16 %v7986_v6  ;;  %v23634_v57 = vld [vmem:[#allocation54_spill] sm:$0xff] }
 0x2fd   : > { %23628 = vst [vmem:[#allocation88_spill] sm:$0xff] %v19297_v4  ;;  %v1334_v63 = vpack.c.bf16 %v1257_v54, %v1256_v46  ;;  %v19308_v49 = vadd.bf16 %v4971_v19, %v19160_v50  ;;  %v8028_v28 = vrot.slane %v8021_v48, %v16497_v23  ;;  %v8695_v39 = vunpack.c.l.b16 %v7958_v11  ;;  %v23635_v50 = vld [vmem:[#allocation29_spill] sm:$0xff]  ;;  %v15878_v19 = vpop.f32.mrf.mxu0 }
 0x2fe   : > { %23629 = vst [vmem:[#allocation44_spill] sm:$0xff] %v19305_v42  ;;  %v11063_v3 = vsel %vm8764_vm8, %v11062_v32, %v11061_v2  ;;  %v19314_v31 = vunpack.c.l.b16 %v7972_v38  ;;  %v3486_v13 = vcombine.high %v3484_v0, %v3484_v0  ;;  %v15151_v9 = vpack.c.bf16 %v1257_v54, %v1257_v54  ;;  %v23636_v54 = vld [vmem:[#allocation75_spill] sm:$0xff] }
 0x2ff   : > { %v19316_v53 = vpack.c.b16 %v11065_v51, %v11063_v3  ;;  %v19318_v18 = vunpack.c.l.b16 %v8014_v34  ;;  %v9512_v44 = vrot.slane %v19297_v4, 7  ;;  %v7116_v6 = vadd.bf16 %v23635_v50, %v23634_v57  ;;  %v23637_v38 = vld [vmem:[#allocation19_spill] sm:$0xff]  ;;  %v19339_v43 = vpop.f32.mrf.mxu0 }
 0x300   : > { %23631 = vst [vmem:[#allocation103_spill] sm:$0xff] %v19314_v31  ;;  %v11103_v46 = vrot.slane %v18424_v33, 7  ;;  %v3500_v48 = vrot.slane %v3484_v0, %v16497_v23  ;;  %v2399_v32 = vrot.slane %v1334_v63, %v16497_v23  ;;  %v11105_v51 = vrot.slane %v18597_v29, 6  ;;  %23638 = vst [vmem:[#allocation54_spill] sm:$0xff] %v19339_v43  ;;  %v23642_v43 = vld [vmem:[#allocation45_spill] sm:$0xff] }
 0x301   : > { %23632 = vst [vmem:[#allocation104_spill] sm:$0xff] %v19316_v53  ;;  %23633 = vst [vmem:[#allocation105_spill] sm:$0xff] %v19318_v18  ;;  %12203 = vrot.lane.b32.xlu1 %v19316_v53, %s23194_s20  ;;  %11796 = vrot.lane.b32.xlu0 %v19316_v53, %s23203_s8  ;;  %v3515_v20 = vcombine.high %v23636_v54, %v23636_v54  ;;  %v3517_v33 = vcombine.high %v23637_v38, %v23637_v38  ;;  %v8832_v22 = vrot.slane %v19314_v31, 7  ;;  %v23649_v18 = vld [vmem:[#allocation73_spill] sm:$0xff] }
 0x302   : > { %v11094_v2 = vrot.slane %v7116_v6, %v16497_v23  ;;  %v11104_v0 = vsel %vm8746_vm2, %v11103_v46, %v18414_v5  ;;  %v3514_v63 = vrot.slane %v3486_v13, %v16497_v23  ;;  %v2406_v29 = vrot.slane %v15151_v9, %v16497_v23  ;;  %v19352_v6 = vpop.permute.xlu0 %9252  ;;  %v15879_v46 = vpop.f32.mrf.mxu0 }
 0x303   : > { %v19345_v3 = vunpack.c.l.b16 %v8028_v28  ;;  %v19350_v50 = vsel %vm8746_vm2, %v9512_v44, %v19305_v42  ;;  %v11107_v5 = vrot.slane %v23599_v61, 5  ;;  %v19355_v19 = vcombine.high %v3500_v48, %v3500_v48 }
 0x304   : > { %23640 = vst [vmem:[#allocation75_spill] sm:$0xff] %v19350_v50  ;;  %v2407_v54 = vcombine.high %v2399_v32, %v2399_v32  ;;  %v11101_v13 = vrot.slane %v11094_v2, %v16497_v23  ;;  %v11106_v9 = vsel %vm8749_vm3, %v11105_v51, %v11104_v0  ;;  %v5896_v28 = vshrl.u32 %v3515_v20, 16  ;;  %v23645_v50 = vld [vmem:[#allocation25_spill] sm:$0xff] }
 0x305   : > { %23639 = vst [vmem:[#allocation29_spill] sm:$0xff] %v19345_v3  ;;  %v5901_v38 = vshrl.u32 %v3517_v33, 16  ;;  %v5906_v11 = vshrl.u32 %v3500_v48, 16  ;;  %v2415_v57 = vrot.slane %v2399_v32, %v16497_v23  ;;  %v19361_v44 = vsel %vm8746_vm2, %v8832_v22, %v8695_v39  ;;  %v23646_v3 = vld [vmem:[#allocation71_spill] sm:$0xff] }
 0x306   : > { %23641 = vst [vmem:[#allocation19_spill] sm:$0xff] %v19361_v44  ;;  %v5911_v34 = vshrl.u32 %v3514_v63, 16  ;;  %v2408_v53 = vcombine.high %v2406_v29, %v2406_v29  ;;  %v11109_v61 = vrot.slane %v23601_v37, 4  ;;  %v19366_v46 = vcombine.high %v3514_v63, %v3514_v63  ;;  %v19385_v44 = vpop.permute.xlu0 %9952 }
 0x307   : > { %v2422_v2 = vrot.slane %v2406_v29, %v16497_v23  ;;  %v19371_v51 = vadd.f32 %v18968_v45, %v23642_v43  ;;  %v11108_v0 = vsel %vm8752_vm4, %v11107_v5, %v11106_v9  ;;  %v2429_v39 = vrot.slane %v2407_v54, %v16497_v23 }
 0x308   : > { %v11102_v22 = vunpack.c.l.b16 %v11101_v13  ;;  %v11111_v30 = vrot.slane %v18914_v14, 3  ;;  %v19377_v36 = vadd.bf16 %v5896_v28, %v3515_v20  ;;  %v19379_v37 = vadd.bf16 %v5901_v38, %v3517_v33  ;;  %v19398_v28 = vpop.permute.xlu1 %9270 }
 0x309   : > { %v19381_v62 = vadd.bf16 %v5906_v11, %v3500_v48  ;;  %v19383_v29 = vcombine.high %v2415_v57, %v2415_v57  ;;  %v19387_v43 = vadd.bf16 %v5911_v34, %v3514_v63  ;;  %v2436_v5 = vrot.slane %v2408_v53, %v16497_v23  ;;  %23643 = vst [vmem:[#allocation45_spill] sm:$0xff] %v19398_v28 }
 0x30a   : > { %v11110_v9 = vsel %vm23226_vm5, %v11109_v61, %v11108_v0  ;;  %v11113_v54 = vrot.slane %v23620_v10, 2  ;;  %v19392_v13 = vcombine.high %v2422_v2, %v2422_v2  ;;  %v5006_v14 = vshrl.u32 %v2415_v57, 16  ;;  %v23644_v61 = vld [vmem:[#allocation83_spill] sm:$0xff] }
 0x30b   : > { %v1302_v20 = vmax.f32 %v19371_v51, 0.0  ;;  %v11115_v11 = vrot.slane %v19199_v24, 1  ;;  %v19396_v48 = vcombine.high %v2429_v39, %v2429_v39  ;;  %v5026_v33 = vshrl.u32 %v2422_v2, 16 }
 0x30c   : > { %v11112_v34 = vsel %vm23222_vm6, %v11111_v30, %v11110_v9  ;;  %v11117_v63 = vrot.slane %v11102_v22, 7  ;;  %v19401_v53 = vcombine.high %v2436_v5, %v2436_v5  ;;  %v5011_v38 = vshrl.u32 %v2429_v39, 16  ;;  %v19414_v9 = vpop.permute.xlu0 %12093 }
 0x30d   : > { %v5016_v10 = vshrl.u32 %v19383_v29, 16  ;;  %v7804_v0 = vrot.slane %v23644_v61, %v16497_v23  ;;  %v5031_v32 = vshrl.u32 %v2436_v5, 16  ;;  %v11114_v51 = vsel %vm8761_vm7, %v11113_v54, %v11112_v34  ;;  %23648 = vst [vmem:[#allocation83_spill] sm:$0xff] %v19414_v9  ;;  %v23650_v61 = vld [vmem:[#allocation74_spill] sm:$0xff] }
 0x30e   : > { %v11118_v24 = vsel %vm8746_vm2, %v11117_v63, %v19241_v52  ;;  %v23647_v28 = vrot.slane %v23646_v3, 7  ;;  %v5036_v22 = vshrl.u32 %v19392_v13, 16  ;;  %v11116_v4 = vsel %vm8764_vm8, %v11115_v11, %v11114_v51  ;;  %v23652_v52 = vld [vmem:[#allocation8_spill] sm:$0xff]  ;;  %v19430_v51 = vpop.permute.xlu1 %11739 }
 0x30f   : > { %v9132_v42 = vrot.slane %v23649_v18, 6  ;;  %v9134_v31 = vrot.slane %v23650_v61, 5  ;;  %v19419_v25 = vadd.bf16 %v5006_v14, %v2415_v57  ;;  %v19421_v54 = vpack.c.b16 %v11118_v24, %v11116_v4  ;;  %v23653_v63 = vld [vmem:[#allocation84_spill] sm:$0xff]  ;;  %23656 = vst [vmem:[#allocation71_spill] sm:$0xff] %v19430_v51  ;;  %v23657_v57 = vld [vmem:[#allocation86_spill] sm:$0xff]  ;;  %v23658_v24 = vld [vmem:[#allocation27_spill] sm:$0xff] }
 0x310   : > { %v9131_v30 = vsel %vm8746_vm2, %v23647_v28, %v23645_v50  ;;  %v9136_v34 = vrot.slane %v23652_v52, 4  ;;  %v9138_v60 = vrot.slane %v23653_v63, 3  ;;  %v19425_v56 = vunpack.c.l.b16 %v7804_v0 }
 0x311   : > { %23651 = vst [vmem:[#allocation25_spill] sm:$0xff] %v19421_v54  ;;  %v9133_v28 = vsel %vm8749_vm3, %v9132_v42, %v9131_v30  ;;  %v9140_v9 = vrot.slane %v23654_v40, 2  ;;  %v9144_v11 = vrot.slane %v23655_v58, 7  ;;  %12256 = vrot.lane.b32.xlu1 %v19421_v54, %s23192_s21  ;;  %v9142_v14 = vrot.slane %v23657_v57, 1 }
 0x312   : > { %v9135_v4 = vsel %vm8752_vm4, %v9134_v31, %v9133_v28  ;;  %v9337_v16 = vrot.slane %v23658_v24, %v16497_v23  ;;  %v9480_v0 = vrot.slane %v23649_v18, 7  ;;  %v5021_v42 = vshrl.u32 %v19396_v48, 16  ;;  %v19448_v24 = vpop.permute.xlu0 %10975 }
 0x313   : > { %v6721_v30 = vadd.bf16 %v5026_v33, %v2422_v2  ;;  %v9137_v12 = vsel %vm23226_vm5, %v9136_v34, %v9135_v4  ;;  %v9482_v8 = vrot.slane %v23650_v61, 6  ;;  %v5041_v51 = vshrl.u32 %v19401_v53, 16  ;;  %23659 = vst [vmem:[#allocation73_spill] sm:$0xff] %v19448_v24 }
 0x314   : > { %v9139_v54 = vsel %vm23222_vm6, %v9138_v60, %v9137_v12  ;;  %v9145_v31 = vsel %vm8746_vm2, %v9144_v11, %v19425_v56  ;;  %v9481_v28 = vsel %vm8746_vm2, %v9480_v0, %v23646_v3  ;;  %v9484_v33 = vrot.slane %v23652_v52, 5  ;;  %v23661_v11 = vld [vmem:[#allocation47_spill] sm:$0xff] }
 0x315   : > { %v9141_v7 = vsel %vm8761_vm7, %v9140_v9, %v9139_v54  ;;  %v9483_v2 = vsel %vm8749_vm3, %v9482_v8, %v9481_v28  ;;  %v9486_v34 = vrot.slane %v23653_v63, 4  ;;  %v6718_v4 = vadd.bf16 %v5011_v38, %v2429_v39  ;;  %v23663_v28 = vld [vmem:[#allocation16_spill] sm:$0xff]  ;;  %v19465_v39 = vpop.permute.xlu1 %12040  ;;  %v23666_v38 = vld [vmem:[#allocation10_spill] sm:$0xff] }
 0x316   : > { %v9143_v27 = vsel %vm8764_vm8, %v9142_v14, %v9141_v7  ;;  %v19455_v60 = vunpack.c.l.b16 %v9337_v16  ;;  %v9488_v12 = vrot.slane %v23654_v40, 3  ;;  %v1357_v59 = vpack.c.bf16 %v23661_v11, %v1302_v20  ;;  %23664 = vst [vmem:[#allocation84_spill] sm:$0xff] %v19465_v39 }
 0x317   : > { %v19459_v0 = vpack.c.b16 %v9145_v31, %v9143_v27  ;;  %v9485_v24 = vsel %vm8752_vm4, %v9484_v33, %v9483_v2  ;;  %v9490_v9 = vrot.slane %v23657_v57, 2  ;;  %v6719_v8 = vadd.bf16 %v5016_v10, %v19383_v29  ;;  %v23665_v27 = vld [vmem:[#allocation28_spill] sm:$0xff]  ;;  %v19480_v29 = vpop.f32.mrf.mxu0 }
 0x318   : > { %23660 = vst [vmem:[#allocation74_spill] sm:$0xff] %v19455_v60  ;;  %v6722_v54 = vadd.bf16 %v5031_v32, %v2436_v5  ;;  %v8751_v21 = vrot.slane %v23663_v28, 5  ;;  %v9487_v7 = vsel %vm23226_vm5, %v9486_v34, %v9485_v24  ;;  %v5921_v16 = vshrl.u32 %v19366_v46, 16  ;;  %23668 = vst [vmem:[#allocation85_spill] sm:$0xff] %v19480_v29  ;;  %v23670_v34 = vld [vmem:[#allocation12_spill] sm:$0xff] }
 0x319   : > { %23662 = vst [vmem:[#allocation8_spill] sm:$0xff] %v19459_v0  ;;  %v7025_v20 = vadd.bf16 %v19419_v25, %v19206_v15  ;;  %v23667_v14 = vrot.slane %v23666_v38, 6  ;;  %9258 = vrot.lane.b32.xlu0 %v19459_v0, %s23125_s29  ;;  %10963 = vrot.lane.b32.xlu1 %v19459_v0, %s23127_s14  ;;  %v9489_v32 = vsel %vm23222_vm6, %v9488_v12, %v9487_v7  ;;  %v23669_v5 = vshrl.u32 %v19355_v19, 16  ;;  %v19493_v12 = vpop.permute.xlu0 %10568  ;;  %v15882_v7 = vpop.f32.mrf.mxu0  ;;  %s23803_s14 = smov 48  }
 0x31a   : > { %v7029_v25 = vadd.bf16 %v6721_v30, %v19294_v1  ;;  %v9492_v15 = vrot.slane %v19425_v56, 1  ;;  %v9494_v24 = vrot.slane %v19455_v60, 7  ;;  %v6723_v2 = vadd.bf16 %v5036_v22, %v19392_v13  ;;  %23671 = vst [vmem:[#allocation87_spill] sm:$0xff] %v19493_v12 }
 0x31b   : > { %v8750_v31 = vsel %vm8749_vm3, %v23667_v14, %v23665_v27  ;;  %v19485_v10 = vadd.bf16 %v23669_v5, %v19355_v19  ;;  %v3526_v33 = vrot.slane %v1357_v59, %v16497_v23  ;;  %v8754_v11 = vrot.slane %v23670_v34, 4 }
 0x31c   : > { %v9491_v28 = vsel %vm8761_vm7, %v9490_v9, %v9489_v32  ;;  %v6720_v19 = vadd.bf16 %v5021_v42, %v19396_v48  ;;  %v6724_v27 = vadd.bf16 %v5041_v51, %v19401_v53  ;;  %v7026_v1 = vadd.bf16 %v6718_v4, %v19283_v55  ;;  %v19508_v9 = vpop.f32.mrf.mxu0  ;;  %v23673_v53 = vld [vmem:[#allocation56_spill] sm:$0xff]  ;;  %v19512_v51 = vpop.permute.xlu1 %12146 }
 0x31d   : > { %v8753_v30 = vsel %vm8752_vm4, %v8751_v21, %v8750_v31  ;;  %v19501_v38 = vadd.bf16 %v5921_v16, %v19366_v46  ;;  %v7027_v59 = vadd.bf16 %v6719_v8, %v19209_v26  ;;  %v7030_v13 = vadd.bf16 %v6722_v54, %v19300_v41  ;;  %10556 = vrot.lane.b32.xlu1 %v19459_v0, %s23129_s15  ;;  %v23675_v46 = vld [vmem:[#allocation11_spill] sm:$0xff]  ;;  %v23676_v31 = vld [vmem:[#allocation37_spill] sm:$0xff]  ;;  %s23807_s15 = smov 88  }
 0x31e   : > { %v8035_v22 = vrot.slane %v7025_v20, %v16497_v23  ;;  %23672 = vst [vmem:[#allocation86_spill] sm:$0xff] %v19508_v9  ;;  %v9008_v48 = vrot.slane %v7029_v25, %v16497_v23  ;;  %v8757_v55 = vrot.slane %v23673_v53, 3  ;;  %23674 = vst [vmem:[#allocation27_spill] sm:$0xff] %v19512_v51  ;;  %v9493_v21 = vsel %vm8764_vm8, %v9492_v15, %v9491_v28  ;;  %v15883_v54 = vpop.f32.mrf.mxu0  ;;  %v23677_v25 = vld [vmem:[#allocation69_spill] sm:$0xff] }
 0x31f   : > { %v9495_v26 = vsel %vm8746_vm2, %v9494_v24, %v23655_v58  ;;  %v7031_v41 = vadd.bf16 %v6723_v2, %v19303_v17  ;;  %v994_v42 = vadd.f32 %v18968_v45, %v23675_v46  ;;  %v3534_v4 = vcombine.high %v3526_v33, %v3526_v33  ;;  %v23678_v15 = vld [vmem:[#allocation61_spill] sm:$0xff]  ;;  %v19531_v2 = vpop.permute.xlu0 %10302  ;;  %v23686_v54 = vld [vmem:[#allocation60_spill] sm:$0xff] }
 0x320   : > { %v8756_v8 = vsel %vm23226_vm5, %v8754_v11, %v8753_v30  ;;  %v7028_v16 = vadd.bf16 %v6720_v19, %v19291_v35  ;;  %v7032_v20 = vadd.bf16 %v6724_v27, %v19308_v49  ;;  %v8049_v14 = vrot.slane %v7026_v1, %v16497_v23  ;;  %23679 = vst [vmem:[#allocation47_spill] sm:$0xff] %v19531_v2  ;;  %v23681_v1 = vld [vmem:[#allocation57_spill] sm:$0xff]  ;;  %v19549_v53 = vpop.permute.xlu1 %11329 }
 0x321   : > { %v997_v32 = vadd.f32 %v18968_v45, %v23676_v31  ;;  %v8063_v5 = vrot.slane %v7027_v59, %v16497_v23  ;;  %v1178_v17 = vadd.f32 %v18968_v45, %v23677_v25  ;;  %v1181_v24 = vadd.f32 %v18968_v45, %v23678_v15  ;;  %23682 = vst [vmem:[#allocation28_spill] sm:$0xff] %v19549_v53 }
 0x322   : > { %v19533_v34 = vpack.c.b16 %v9495_v26, %v9493_v21  ;;  %v8042_v35 = vrot.slane %v8035_v22, %v16497_v23  ;;  %v9015_v49 = vrot.slane %v9008_v48, %v16497_v23  ;;  %v9358_v11 = vrot.slane %v7030_v13, %v16497_v23 }
 0x323   : > { %v8759_v28 = vsel %vm23222_vm6, %v8757_v55, %v8756_v8  ;;  %v19540_v7 = vrot.slane %v7031_v41, %v16497_v23  ;;  %v3542_v19 = vrot.slane %v3526_v33, %v16497_v23  ;;  %v3556_v27 = vrot.slane %v3534_v4, %v16497_v23  ;;  %v23685_v4 = vld [vmem:[#allocation58_spill] sm:$0xff] }
 0x324   : > { %v8760_v30 = vrot.slane %v23681_v1, 2  ;;  %11727 = vrot.lane.b32.xlu0 %v19533_v34, %s23125_s29  ;;  %v8056_v59 = vrot.slane %v8049_v14, %v16497_v23  ;;  %v8077_v22 = vrot.slane %v7028_v16, %v16497_v23  ;;  %v1258_v48 = vmax.f32 %v994_v42, 0.0  ;;  %v19576_v12 = vpop.permute.xlu1 %9620  ;;  %s23716_s29 = smov 120  }
 0x325   : > { %23680 = vst [vmem:[#allocation16_spill] sm:$0xff] %v19540_v7  ;;  %v1259_v13 = vmax.f32 %v997_v32, 0.0  ;;  %v8070_v55 = vrot.slane %v8063_v5, %v16497_v23  ;;  %v1304_v33 = vmax.f32 %v1178_v17, 0.0  ;;  %v1305_v26 = vmax.f32 %v1181_v24, 0.0  ;;  %v19563_v5 = vpop.permute.xlu0 %10922  ;;  %23692 = vst [vmem:[#allocation69_spill] sm:$0xff] %v19576_v12 }
 0x326   : > { %v8762_v21 = vsel %vm8761_vm7, %v8760_v30, %v8759_v28  ;;  %v19553_v41 = vunpack.c.l.b16 %v8042_v35  ;;  %v19556_v46 = vrot.slane %v7032_v20, %v16497_v23  ;;  %v8763_v8 = vrot.slane %v23685_v4, 1  ;;  %23688 = vst [vmem:[#allocation11_spill] sm:$0xff] %v19563_v5  ;;  %v23690_v28 = vld [vmem:[#allocation77_spill] sm:$0xff]  ;;  %v23691_v30 = vld [vmem:[#allocation59_spill] sm:$0xff] }
 0x327   : > { %v8766_v14 = vrot.slane %v23686_v54, 7  ;;  %v19560_v16 = vunpack.c.l.b16 %v9015_v49  ;;  %v9365_v42 = vrot.slane %v9358_v11, %v16497_v23  ;;  %v3564_v31 = vcombine.high %v3542_v19, %v3542_v19 }
 0x328   : > { %23683 = vst [vmem:[#allocation10_spill] sm:$0xff] %v19553_v41  ;;  %23684 = vst [vmem:[#allocation12_spill] sm:$0xff] %v19556_v46  ;;  %v3566_v32 = vcombine.high %v3556_v27, %v3556_v27  ;;  %9608 = vrot.lane.b32.xlu0 %v19533_v34, %s23203_s8  ;;  %v8084_v25 = vrot.slane %v8077_v22, %v16497_v23  ;;  %v8765_v17 = vsel %vm8764_vm8, %v8763_v8, %v8762_v21  ;;  %v23718_v46 = vld [vmem:[#allocation34_spill] sm:$0xff] }
 0x329   : > { %23687 = vst [vmem:[#allocation56_spill] sm:$0xff] %v19560_v16  ;;  %v1335_v15 = vpack.c.bf16 %v1259_v13, %v1258_v48  ;;  %v19571_v24 = vunpack.c.l.b16 %v8056_v59  ;;  %v5926_v35 = vshrl.u32 %v3542_v19, 16  ;;  %v1358_v49 = vpack.c.bf16 %v1305_v26, %v1304_v33 }
 0x32a   : > { %v5931_v11 = vshrl.u32 %v3556_v27, 16  ;;  %v5946_v1 = vshrl.u32 %v23690_v28, 16  ;;  %v8767_v4 = vsel %vm8746_vm2, %v8766_v14, %v23691_v30  ;;  %v15175_v54 = vpack.c.bf16 %v1305_v26, %v1305_v26  ;;  %v19590_v30 = vpop.permute.xlu0 %11028 }
 0x32b   : > { %23689 = vst [vmem:[#allocation37_spill] sm:$0xff] %v19571_v24  ;;  %v5936_v22 = vshrl.u32 %v3564_v31, 16  ;;  %v5941_v53 = vshrl.u32 %v3566_v32, 16  ;;  %v8912_v20 = vpack.c.b16 %v8767_v4, %v8765_v17  ;;  %v15152_v5 = vpack.c.bf16 %v1259_v13, %v1259_v13  ;;  %23696 = vst [vmem:[#allocation60_spill] sm:$0xff] %v19590_v30  ;;  %v23710_v30 = vld [vmem:[#allocation82_spill] sm:$0xff] }
 0x32c   : > { %v19578_v21 = vunpack.c.l.b16 %v8070_v55  ;;  %v19580_v59 = vunpack.c.l.b16 %v8084_v25  ;;  %v19582_v48 = vunpack.c.l.b16 %v9365_v42  ;;  %v2448_v33 = vrot.slane %v1335_v15, %v16497_v23  ;;  %v23698_v42 = vld [vmem:[#allocation65_spill] sm:$0xff] }
 0x32d   : > { %v19585_v8 = vadd.bf16 %v5926_v35, %v3542_v19  ;;  %v11340_v14 = vsel %vm23218_vm9, %v8912_v20, %v19352_v6  ;;  %v3575_v26 = vrot.slane %v1358_v49, %v16497_v23  ;;  %v19592_v17 = vadd.bf16 %v5931_v11, %v3556_v27  ;;  %v19611_v11 = vpop.permute.xlu1 %9970 }
 0x32e   : > { %23693 = vst [vmem:[#allocation61_spill] sm:$0xff] %v19578_v21  ;;  %23694 = vst [vmem:[#allocation57_spill] sm:$0xff] %v19580_v59  ;;  %v19595_v13 = vadd.bf16 %v5946_v1, %v23690_v28  ;;  %v3582_v55 = vrot.slane %v15175_v54, %v16497_v23  ;;  %v1005_v25 = vadd.f32 %v18968_v45, %v23698_v42  ;;  %v8804_v20 = vrot.slane %v23649_v18, 5  ;;  %v23702_v45 = vld [vmem:[#allocation72_spill] sm:$0xff] }
 0x32f   : > { %23695 = vst [vmem:[#allocation58_spill] sm:$0xff] %v19582_v48  ;;  %v19600_v19 = vadd.bf16 %v5936_v22, %v3564_v31  ;;  %v19602_v15 = vadd.bf16 %v5941_v53, %v3566_v32  ;;  %v2455_v6 = vrot.slane %v15152_v5, %v16497_v23  ;;  %v11370_v27 = vsel %vm23220_vm10, %v11340_v14, %v19363_v47  ;;  %v19626_v14 = vpop.permute.xlu0 %10515 }
 0x330   : > { %23697 = vst [vmem:[#allocation77_spill] sm:$0xff] %v19595_v13  ;;  %v2456_v35 = vcombine.high %v2448_v33, %v2448_v33  ;;  %v19609_v49 = vrot.slane %v2448_v33, %v16497_v23  ;;  %23701 = vst [vmem:[#allocation106_spill] sm:$0xff] %v19611_v11  ;;  %v3583_v28 = vcombine.high %v3575_v26, %v3575_v26  ;;  %v23703_v31 = vrot.slane %v23645_v50, 7 }
 0x331   : > { %23699 = vst [vmem:[#allocation59_spill] sm:$0xff] %v19600_v19  ;;  %23700 = vst [vmem:[#allocation65_spill] sm:$0xff] %v19602_v15  ;;  %v8806_v32 = vrot.slane %v23650_v61, 4  ;;  %v8808_v5 = vrot.slane %v23652_v52, 3  ;;  %v3584_v1 = vcombine.high %v3582_v55, %v3582_v55  ;;  %v19619_v4 = vmax.f32 %v1005_v25, 0.0  ;;  %v23707_v25 = vld [vmem:[#allocation79_spill] sm:$0xff]  ;;  %v19651_v51 = vpop.permute.xlu1 %11845 }
 0x332   : > { %v8801_v53 = vsel %vm8746_vm2, %v23703_v31, %v23702_v45  ;;  %v23704_v47 = vrot.slane %v23646_v3, 6  ;;  %v8810_v22 = vrot.slane %v23653_v63, 2  ;;  %v3591_v33 = vrot.slane %v3575_v26, %v16497_v23  ;;  %23705 = vst [vmem:[#allocation72_spill] sm:$0xff] %v19626_v14  ;;  %v23706_v31 = vld [vmem:[#allocation14_spill] sm:$0xff]  ;;  %23713 = vst [vmem:[#allocation79_spill] sm:$0xff] %v19651_v51 }
 0x333   : > { %v8812_v42 = vrot.slane %v23654_v40, 1  ;;  %v8814_v45 = vrot.slane %v19425_v56, 7  ;;  %v23708_v11 = vadd.bf16 %v23706_v31, %v23707_v25  ;;  %v2457_v3 = vcombine.high %v2455_v6, %v2455_v6  ;;  %v23711_v31 = vld [vmem:[#allocation39_spill] sm:$0xff] }
 0x334   : > { %v8803_v54 = vsel %vm8749_vm3, %v23704_v47, %v8801_v53  ;;  %v3598_v53 = vrot.slane %v3582_v55, %v16497_v23  ;;  %v19638_v26 = vrot.slane %v2455_v6, %v16497_v23  ;;  %v3612_v55 = vrot.slane %v3584_v1, %v16497_v23 }
 0x335   : > { %v8805_v50 = vsel %vm8752_vm4, %v8804_v20, %v8803_v54  ;;  %v11156_v12 = vrot.slane %v23708_v11, %v16497_v23  ;;  %v19642_v20 = vsel %vm23223_vm11, %v11370_v27, %v19385_v44  ;;  %v3605_v54 = vrot.slane %v3583_v28, %v16497_v23  ;;  %v19680_v29 = vpop.permute.xlu1 %12252 }
 0x336   : > { %v8807_v47 = vsel %vm23226_vm5, %v8806_v32, %v8805_v50  ;;  %23709 = vst [vmem:[#allocation14_spill] sm:$0xff] %v19642_v20  ;;  %v23712_v11 = vadd.bf16 %v23710_v30, %v23711_v31  ;;  %v8815_v32 = vsel %vm8746_vm2, %v8814_v45, %v23657_v57  ;;  %v2478_v44 = vrot.slane %v2456_v35, %v16497_v23  ;;  %v19664_v45 = vpop.permute.xlu0 %10621 }
 0x337   : > { %v8809_v14 = vsel %vm23222_vm6, %v8808_v5, %v8807_v47  ;;  %v3613_v27 = vcombine.high %v3591_v33, %v3591_v33  ;;  %v15153_v28 = vpack.c.bf16 %v19619_v4, %v19619_v4  ;;  %v11163_v30 = vrot.slane %v11156_v12, %v16497_v23  ;;  %23714 = vst [vmem:[#allocation82_spill] sm:$0xff] %v19664_v45 }
 0x338   : > { %v11170_v25 = vrot.slane %v23712_v11, %v16497_v23  ;;  %v8811_v6 = vsel %vm8761_vm7, %v8810_v22, %v8809_v14  ;;  %v2486_v1 = vcombine.high %v19609_v49, %v19609_v49  ;;  %v5046_v50 = vshrl.u32 %v19609_v49, 16  ;;  %23717 = vst [vmem:[#allocation107_spill] sm:$0xff] %v19680_v29 }
 0x339   : > { %v8813_v5 = vsel %vm8764_vm8, %v8812_v42, %v8811_v6  ;;  %v3614_v47 = vcombine.high %v3598_v53, %v3598_v53  ;;  %v3615_v22 = vcombine.high %v3605_v54, %v3605_v54  ;;  %v5966_v14 = vshrl.u32 %v3591_v33, 16 }
 0x33a   : > { %v5986_v31 = vshrl.u32 %v3598_v53, 16  ;;  %v19666_v35 = vpack.c.b16 %v8815_v32, %v8813_v5  ;;  %v2485_v11 = vrot.slane %v2457_v3, %v16497_v23  ;;  %v19671_v42 = vcombine.high %v19638_v26, %v19638_v26  ;;  %v19691_v15 = vpop.permute.xlu0 %11792 }
 0x33b   : > { %v3616_v12 = vcombine.high %v3612_v55, %v3612_v55  ;;  %v5971_v6 = vshrl.u32 %v3605_v54, 16  ;;  %v11177_v39 = vrot.slane %v11170_v25, %v16497_v23  ;;  %v5066_v51 = vshrl.u32 %v19638_v26, 16  ;;  %v19685_v25 = vld [vmem:[%s22981_s2] ss:$0 sm:$0xff]  ;;  %23720 = vst [vmem:[#allocation108_spill] sm:$0xff] %v19691_v15 }
 0x33c   : > { %23715 = vst [vmem:[#allocation39_spill] sm:$0xff] %v19666_v35  ;;  %v5976_v0 = vshrl.u32 %v3613_v27, 16  ;;  %v2504_v9 = vrot.slane %v15153_v28, %v16497_v23  ;;  %10910 = vrot.lane.b32.xlu1 %v19666_v35, %s23210_s18  ;;  %11317 = vrot.lane.b32.xlu0 %v19666_v35, %s23716_s29  ;;  %v2488_v3 = vcombine.high %v2478_v44, %v2478_v44  ;;  %v5051_v32 = vshrl.u32 %v2478_v44, 16 }
 0x33d   : > { %v5991_v5 = vshrl.u32 %v3612_v55, 16  ;;  %v5996_v45 = vshrl.u32 %v3614_v47, 16  ;;  %v1002_v28 = vadd.f32 %v19685_v25, %v23718_v46  ;;  %v5981_v7 = vshrl.u32 %v3615_v22, 16 }
 0x33e   : > { %v6909_v48 = vadd.bf16 %v5966_v14, %v3591_v33  ;;  %v6913_v59 = vadd.bf16 %v5986_v31, %v3598_v53  ;;  %v19689_v16 = vunpack.c.l.b16 %v11163_v30  ;;  %v5056_v21 = vshrl.u32 %v2486_v1, 16 }
 0x33f   : > { %v6001_v24 = vshrl.u32 %v3616_v12, 16  ;;  %v6910_v41 = vadd.bf16 %v5971_v6, %v3605_v54  ;;  %v2489_v20 = vcombine.high %v2485_v11, %v2485_v11  ;;  %v5071_v2 = vshrl.u32 %v2485_v11, 16 }
 0x340   : > { %23719 = vst [vmem:[#allocation34_spill] sm:$0xff] %v19689_v16  ;;  %v6911_v13 = vadd.bf16 %v5976_v0, %v3613_v27  ;;  %v2506_v29 = vcombine.high %v2504_v9, %v2504_v9  ;;  %11016 = vrot.lane.b32.xlu1 %v19533_v34, %s23201_s19  ;;  %v19695_v19 = vunpack.c.l.b16 %v11177_v39  ;;  %v5076_v46 = vshrl.u32 %v19671_v42, 16  ;;  %v19704_v16 = vpop.permute.xlu1 %10320 }
 0x341   : > { %v6914_v33 = vadd.bf16 %v5991_v5, %v3612_v55  ;;  %v6915_v53 = vadd.bf16 %v5996_v45, %v3614_v47  ;;  %v1260_v30 = vmax.f32 %v1002_v28, 0.0  ;;  %v6912_v14 = vadd.bf16 %v5981_v7, %v3615_v22  ;;  %23722 = vst [vmem:[#allocation110_spill] sm:$0xff] %v19704_v16 }
 0x342   : > { %23721 = vst [vmem:[#allocation109_spill] sm:$0xff] %v19695_v19  ;;  %v7119_v31 = vadd.bf16 %v6909_v48, %v19377_v36  ;;  %v7123_v54 = vadd.bf16 %v6913_v59, %v19485_v10  ;;  %v5061_v6 = vshrl.u32 %v2488_v3, 16  ;;  %v19701_v0 = vadd.bf16 %v5046_v50, %v19609_v49  ;;  %v19725_v48 = vpop.permute.xlu0 %12199 }
 0x343   : > { %v6916_v27 = vadd.bf16 %v6001_v24, %v3616_v12  ;;  %v7120_v15 = vadd.bf16 %v6910_v41, %v19379_v37  ;;  %v5081_v39 = vshrl.u32 %v2489_v20, 16  ;;  %v19706_v60 = vadd.bf16 %v5051_v32, %v2478_v44  ;;  %23723 = vst [vmem:[#allocation111_spill] sm:$0xff] %v19725_v48 }
 0x344   : > { %v7121_v55 = vadd.bf16 %v6911_v13, %v19381_v62  ;;  %v19710_v7 = vrot.slane %v2506_v29, %v16497_v23  ;;  %10503 = vrot.lane.b32.xlu1 %v19666_v35, %s23170_s13  ;;  %v19714_v36 = vadd.bf16 %v5056_v21, %v2486_v1  ;;  %v19717_v10 = vadd.bf16 %v5066_v51, %v19638_v26  ;;  %v19748_v44 = vpop.permute.xlu1 %9604 }
 0x345   : > { %v7124_v37 = vadd.bf16 %v6914_v33, %v19501_v38  ;;  %v7125_v41 = vadd.bf16 %v6915_v53, %v19585_v8  ;;  %v7122_v24 = vadd.bf16 %v6912_v14, %v19387_v43  ;;  %v11184_v59 = vrot.slane %v7119_v31, %v16497_v23  ;;  %23724 = vst [vmem:[#allocation112_spill] sm:$0xff] %v19748_v44 }
 0x346   : > { %v11240_v62 = vrot.slane %v7123_v54, %v16497_v23  ;;  %v1336_v29 = vpack.c.bf16 %v19619_v4, %v1260_v30  ;;  %v19728_v13 = vadd.bf16 %v5071_v2, %v2485_v11  ;;  %v7126_v51 = vadd.bf16 %v6916_v27, %v19592_v17  ;;  %v23725_v11 = vld [vmem:[#allocation76_spill] sm:$0xff] }
 0x347   : > { %v11198_v38 = vrot.slane %v7120_v15, %v16497_v23  ;;  %v11212_v8 = vrot.slane %v7121_v55, %v16497_v23  ;;  %v19734_v43 = vrot.slane %v2504_v9, %v16497_v23  ;;  %v2538_v49 = vcombine.high %v19710_v7, %v19710_v7 }
 0x348   : > { %v9830_v4 = vrot.slane %v23650_v61, 7  ;;  %10609 = vrot.lane.b32.xlu1 %v19533_v34, %s23194_s20  ;;  %v19741_v26 = vadd.bf16 %v5061_v6, %v2488_v3  ;;  %v19744_v2 = vadd.bf16 %v5076_v46, %v19671_v42  ;;  %v11254_v17 = vrot.slane %v7124_v37, %v16497_v23  ;;  %v23726_v42 = vld [vmem:[#allocation63_spill] sm:$0xff]  ;;  %v19769_v46 = vpop.permute.xlu0 %11081 }
 0x349   : > { %v11268_v15 = vrot.slane %v7125_v41, %v16497_v23  ;;  %v11191_v9 = vrot.slane %v11184_v59, %v16497_v23  ;;  %v11226_v1 = vrot.slane %v7122_v24, %v16497_v23  ;;  %v11247_v50 = vrot.slane %v11240_v62, %v16497_v23  ;;  %23728 = vst [vmem:[#allocation76_spill] sm:$0xff] %v19769_v46  ;;  %v19785_v41 = vpop.permute.xlu1 %9954 }
 0x34a   : > { %v2497_v47 = vrot.slane %v1336_v29, %v16497_v23  ;;  %v19754_v34 = vadd.bf16 %v5081_v39, %v2489_v20  ;;  %v11205_v22 = vrot.slane %v11198_v38, %v16497_v23  ;;  %v19758_v45 = vrot.slane %v7126_v51, %v16497_v23  ;;  %23731 = vst [vmem:[#allocation114_spill] sm:$0xff] %v19785_v41 }
 0x34b   : > { %v23727_v12 = vadd.bf16 %v23725_v11, %v23726_v42  ;;  %v11219_v32 = vrot.slane %v11212_v8, %v16497_v23  ;;  %v2536_v5 = vcombine.high %v19734_v43, %v19734_v43  ;;  %v5121_v28 = vshrl.u32 %v2538_v49, 16 }
 0x34c   : > { %v9831_v20 = vsel %vm8746_vm2, %v9830_v4, %v23649_v18  ;;  %v11261_v33 = vrot.slane %v11254_v17, %v16497_v23  ;;  %v11275_v53 = vrot.slane %v11268_v15, %v16497_v23  ;;  %v9832_v30 = vrot.slane %v23652_v52, 6  ;;  %v23754_v18 = vld [vmem:[#allocation96_spill] sm:$0xff] }
 0x34d   : > { %v9680_v3 = vrot.slane %v23727_v12, %v16497_v23  ;;  %v9834_v14 = vrot.slane %v23653_v63, 5  ;;  %v11233_v31 = vrot.slane %v11226_v1, %v16497_v23  ;;  %v19776_v54 = vunpack.c.l.b16 %v11191_v9  ;;  %v23736_v1 = vld [vmem:[#allocation13_spill] sm:$0xff] }
 0x34e   : > { %v19778_v6 = vunpack.c.l.b16 %v11247_v50  ;;  %v2505_v27 = vcombine.high %v2497_v47, %v2497_v47  ;;  %v9833_v55 = vsel %vm8749_vm3, %v9832_v30, %v9831_v20  ;;  %v9836_v37 = vrot.slane %v23654_v40, 4 }
 0x34f   : > { %23729 = vst [vmem:[#allocation63_spill] sm:$0xff] %v19776_v54  ;;  %v9687_v39 = vrot.slane %v9680_v3, %v16497_v23  ;;  %v19787_v24 = vunpack.c.l.b16 %v11205_v22  ;;  %v19789_v59 = vunpack.c.l.b16 %v11219_v32  ;;  %v5116_v62 = vshrl.u32 %v2536_v5, 16  ;;  %v23738_v22 = vld [vmem:[#allocation67_spill] sm:$0xff] }
 0x350   : > { %23730 = vst [vmem:[#allocation113_spill] sm:$0xff] %v19778_v6  ;;  %v6740_v29 = vadd.bf16 %v5121_v28, %v2538_v49  ;;  %v19791_v51 = vunpack.c.l.b16 %v11261_v33  ;;  %v19794_v38 = vrot.slane %v2497_v47, %v16497_v23  ;;  %v9835_v8 = vsel %vm8752_vm4, %v9834_v14, %v9833_v55  ;;  %v19806_v49 = vpop.permute.xlu0 %10674 }
 0x351   : > { %23732 = vst [vmem:[#allocation115_spill] sm:$0xff] %v19787_v24  ;;  %23733 = vst [vmem:[#allocation116_spill] sm:$0xff] %v19789_v59  ;;  %v9838_v4 = vrot.slane %v23657_v57, 3  ;;  %v19798_v17 = vunpack.c.l.b16 %v11275_v53  ;;  %v19802_v9 = vrot.slane %v2505_v27, %v16497_v23  ;;  %v1010_v50 = vadd.f32 %v19685_v25, %v23736_v1  ;;  %v19823_v27 = vpop.permute.xlu1 %10304 }
 0x352   : > { %23734 = vst [vmem:[#allocation117_spill] sm:$0xff] %v19791_v51  ;;  %23737 = vst [vmem:[#allocation13_spill] sm:$0xff] %v19806_v49  ;;  %v1013_v47 = vadd.f32 %v19685_v25, %v23738_v22  ;;  %v9775_v11 = vunpack.c.l.b16 %v9687_v39  ;;  %v9837_v42 = vsel %vm23226_vm5, %v9836_v37, %v9835_v8  ;;  %v9840_v12 = vrot.slane %v19425_v56, 2  ;;  %v23742_v8 = vld [vmem:[#allocation42_spill] sm:$0xff] }
 0x353   : > { %23735 = vst [vmem:[#allocation118_spill] sm:$0xff] %v19798_v17  ;;  %v19812_v3 = vunpack.c.l.b16 %v11233_v31  ;;  %v6739_v28 = vadd.bf16 %v5116_v62, %v2536_v5  ;;  %v7034_v20 = vadd.bf16 %v6740_v29, %v19706_v60  ;;  %v19818_v33 = vcombine.high %v19794_v38, %v19794_v38  ;;  %23740 = vst [vmem:[#allocation119_spill] sm:$0xff] %v19823_v27  ;;  %v23741_v29 = vld [vmem:[#allocation78_spill] sm:$0xff]  ;;  %v23755_v5 = vld [vmem:[#allocation36_spill] sm:$0xff] }
 0x354   : > { %v5086_v53 = vshrl.u32 %v19794_v38, 16  ;;  %v9839_v30 = vsel %vm23222_vm6, %v9838_v4, %v9837_v42  ;;  %v9842_v14 = vrot.slane %v23655_v58, 1  ;;  %v19827_v31 = vcombine.high %v19802_v9, %v19802_v9  ;;  %v19842_v32 = vpop.permute.xlu0 %11134 }
 0x355   : > { %23739 = vst [vmem:[#allocation67_spill] sm:$0xff] %v19812_v3  ;;  %v1262_v39 = vmax.f32 %v1010_v50, 0.0  ;;  %v9841_v60 = vsel %vm8761_vm7, %v9840_v12, %v9839_v30  ;;  %v1263_v55 = vmax.f32 %v1013_v47, 0.0  ;;  %v9844_v62 = vrot.slane %v9775_v11, 7  ;;  %23744 = vst [vmem:[#allocation78_spill] sm:$0xff] %v19842_v32  ;;  %v23745_v47 = vld [vmem:[#allocation50_spill] sm:$0xff]  ;;  %v19856_v21 = vpop.permute.xlu1 %10711 }
 0x356   : > { %v9843_v37 = vsel %vm8764_vm8, %v9842_v14, %v9841_v60  ;;  %v23743_v4 = vadd.bf16 %v23741_v29, %v23742_v8  ;;  %v7033_v22 = vadd.bf16 %v6739_v28, %v19701_v0  ;;  %v19838_v42 = vrot.slane %v7034_v20, %v16497_v23  ;;  %v23746_v30 = vld [vmem:[#allocation74_spill] sm:$0xff]  ;;  %23747 = vst [vmem:[#allocation42_spill] sm:$0xff] %v19856_v21 }
 0x357   : > { %v10180_v15 = vrot.slane %v23652_v52, 7  ;;  %v10182_v50 = vrot.slane %v23653_v63, 6  ;;  %v15176_v12 = vpack.c.bf16 %v23745_v47, %v23745_v47  ;;  %v9845_v14 = vsel %vm8746_vm2, %v9844_v62, %v23746_v30  ;;  %v23763_v32 = vld [vmem:[#allocation38_spill] sm:$0xff] }
 0x358   : > { %v10030_v1 = vrot.slane %v23743_v4, %v16497_v23  ;;  %v10184_v29 = vrot.slane %v23654_v40, 5  ;;  %v9945_v0 = vpack.c.b16 %v9845_v14, %v9843_v37  ;;  %v10186_v52 = vrot.slane %v23657_v57, 4  ;;  %v23752_v14 = vld [vmem:[#allocation94_spill] sm:$0xff] }
 0x359   : > { %v10181_v28 = vsel %vm8746_vm2, %v10180_v15, %v23650_v61  ;;  %v10188_v63 = vrot.slane %v19425_v56, 3  ;;  %v1337_v20 = vpack.c.bf16 %v1263_v55, %v1262_v39  ;;  %v10190_v47 = vrot.slane %v23655_v58, 2  ;;  %v23748_v61 = vld [vmem:[#allocation93_spill] sm:$0xff] }
 0x35a   : > { %v10037_v60 = vrot.slane %v10030_v1, %v16497_v23  ;;  %v10183_v4 = vsel %vm8749_vm3, %v10182_v50, %v10181_v28  ;;  %v15154_v62 = vpack.c.bf16 %v1263_v55, %v1263_v55  ;;  %9958 = vrot.lane.b32.xlu0 %v9945_v0, %s23214_s9  ;;  %v10192_v37 = vrot.slane %v23746_v30, 1  ;;  %11780 = vrot.lane.b32.xlu1 %v9945_v0, %s23203_s8  ;;  %v23749_v39 = vld [vmem:[#allocation49_spill] sm:$0xff]  ;;  %v23750_v1 = vld [vmem:[#allocation48_spill] sm:$0xff] }
 0x35b   : > { %v10185_v40 = vsel %vm8752_vm4, %v10184_v29, %v10183_v4  ;;  %v8820_v57 = vrot.slane %v23748_v61, 5  ;;  %v23751_v50 = vrot.slane %v23750_v1, 6  ;;  %v8822_v55 = vrot.slane %v23752_v14, 4  ;;  %v19873_v4 = vpop.permute.xlu0 %10727 }
 0x35c   : > { %v10125_v8 = vunpack.c.l.b16 %v10037_v60  ;;  %v10187_v56 = vsel %vm23226_vm5, %v10186_v52, %v10185_v40  ;;  %v8091_v60 = vrot.slane %v7033_v22, %v16497_v23  ;;  %v3631_v29 = vrot.slane %v15176_v12, %v16497_v23  ;;  %23753 = vst [vmem:[#allocation50_spill] sm:$0xff] %v19873_v4 }
 0x35d   : > { %v8819_v58 = vsel %vm8749_vm3, %v23751_v50, %v23749_v39  ;;  %v10189_v30 = vsel %vm23222_vm6, %v10188_v63, %v10187_v56  ;;  %v8824_v39 = vrot.slane %v23754_v18, 3  ;;  %v2546_v50 = vrot.slane %v1337_v20, %v16497_v23 }
 0x35e   : > { %v10194_v15 = vrot.slane %v10125_v8, 7  ;;  %v8821_v28 = vsel %vm8752_vm4, %v8820_v57, %v8819_v58  ;;  %v10191_v52 = vsel %vm8761_vm7, %v10190_v47, %v10189_v30  ;;  %v2553_v22 = vrot.slane %v15154_v62, %v16497_v23  ;;  %11069 = vrot.lane.b32.xlu1 %v9945_v0, %s23199_s23  ;;  %v23757_v62 = vld [vmem:[#allocation41_spill] sm:$0xff] }
 0x35f   : > { %v8823_v40 = vsel %vm23226_vm5, %v8822_v55, %v8821_v28  ;;  %v10193_v12 = vsel %vm8764_vm8, %v10192_v37, %v10191_v52  ;;  %v8826_v63 = vrot.slane %v23755_v5, 2  ;;  %v5096_v57 = vshrl.u32 %v19818_v33, 16  ;;  %v23758_v37 = vld [vmem:[#allocation98_spill] sm:$0xff] }
 0x360   : > { %v10195_v8 = vsel %vm8746_vm2, %v10194_v15, %v9775_v11  ;;  %v8112_v47 = vrot.slane %v19838_v42, %v16497_v23  ;;  %v8825_v56 = vsel %vm23222_vm6, %v8824_v39, %v8823_v40  ;;  %v19888_v15 = vpop.permute.xlu1 %10517  ;;  %v5106_v20 = vshrl.u32 %v19734_v43, 16  ;;  %v23759_v42 = vld [vmem:[#allocation51_spill] sm:$0xff] }
 0x361   : > { %v10295_v11 = vpack.c.b16 %v10195_v8, %v10193_v12  ;;  %23756 = vst [vmem:[#allocation74_spill] sm:$0xff] %v19888_v15  ;;  %v3633_v58 = vcombine.high %v3631_v29, %v3631_v29  ;;  %v8828_v55 = vrot.slane %v23757_v62, 1  ;;  %v8830_v30 = vrot.slane %v23758_v37, 7  ;;  %v19905_v15 = vpop.permute.xlu0 %9254 }
 0x362   : > { %v5101_v28 = vshrl.u32 %v19827_v31, 16  ;;  %v19897_v52 = vadd.bf16 %v5086_v53, %v19794_v38  ;;  %v3640_v8 = vrot.slane %v23759_v42, %v16497_v23  ;;  %v8827_v40 = vsel %vm8761_vm7, %v8826_v63, %v8825_v56  ;;  %23760 = vst [vmem:[#allocation93_spill] sm:$0xff] %v19905_v15  ;;  %10662 = vrot.lane.b32.xlu1 %v9945_v0, %s23192_s21 }
 0x363   : > { %11833 = vrot.lane.b32.xlu0 %v10295_v11, %s23214_s9  ;;  %v8098_v39 = vrot.slane %v8091_v60, %v16497_v23  ;;  %v3647_v12 = vrot.slane %v3631_v29, %v16497_v23  ;;  %v2554_v4 = vcombine.high %v2546_v50, %v2546_v50  ;;  %v2555_v49 = vcombine.high %v2553_v22, %v2553_v22 }
 0x364   : > { %v5111_v38 = vshrl.u32 %v19710_v7, 16  ;;  %v23761_v53 = vshrl.u32 %v19802_v9, 16  ;;  %v19914_v16 = vunpack.c.l.b16 %v8112_v47  ;;  %v2562_v63 = vrot.slane %v2546_v50, %v16497_v23  ;;  %v19932_v50 = vpop.permute.xlu1 %12095 }
 0x365   : > { %v3661_v60 = vrot.slane %v3633_v58, %v16497_v23  ;;  %v2569_v29 = vrot.slane %v2553_v22, %v16497_v23  ;;  %v8829_v56 = vsel %vm8764_vm8, %v8828_v55, %v8827_v40  ;;  %v8831_v0 = vsel %vm8746_vm2, %v8830_v30, %v23763_v32  ;;  %23764 = vst [vmem:[#allocation48_spill] sm:$0xff] %v19932_v50  ;;  %v19940_v35 = vpop.permute.xlu0 %10552 }
 0x366   : > { %v19912_v42 = vadd.bf16 %v23761_v53, %v19802_v9  ;;  %23762 = vst [vmem:[#allocation49_spill] sm:$0xff] %v19914_v16  ;;  %v19923_v46 = vadd.bf16 %v5096_v57, %v19818_v33  ;;  %v19926_v48 = vadd.bf16 %v5101_v28, %v19827_v31  ;;  %v19929_v9 = vadd.bf16 %v5106_v20, %v19734_v43 }
 0x367   : > { %v3662_v47 = vcombine.high %v3640_v8, %v3640_v8  ;;  %10308 = vrot.lane.b32.xlu0 %v10295_v11, %s23594_s16  ;;  %v8705_v22 = vunpack.c.l.b16 %v8098_v39  ;;  %v3663_v58 = vcombine.high %v3647_v12, %v3647_v12  ;;  %v2576_v55 = vrot.slane %v2554_v4, %v16497_v23  ;;  %11122 = vrot.lane.b32.xlu1 %v10295_v11, %s23597_s17  ;;  %v23767_v4 = vld [vmem:[#allocation17_spill] sm:$0xff] }
 0x368   : > { %v2583_v30 = vrot.slane %v2555_v49, %v16497_v23  ;;  %v6006_v33 = vshrl.u32 %v3640_v8, 16  ;;  %v2584_v57 = vcombine.high %v2562_v63, %v2562_v63  ;;  %v5126_v31 = vshrl.u32 %v2562_v63, 16  ;;  %23766 = vst [vmem:[#allocation96_spill] sm:$0xff] %v19940_v35 }
 0x369   : > { %v19937_v28 = vpack.c.b16 %v8831_v0, %v8829_v56  ;;  %v8848_v43 = vrot.slane %v19914_v16, 7  ;;  %v3665_v20 = vcombine.high %v3661_v60, %v3661_v60  ;;  %v6026_v40 = vshrl.u32 %v3647_v12, 16 }
 0x36a   : > { %v5146_v53 = vshrl.u32 %v2569_v29, 16  ;;  %v19943_v39 = vadd.bf16 %v5111_v38, %v19710_v7  ;;  %v6011_v50 = vshrl.u32 %v23767_v4, 16  ;;  %v6016_v49 = vshrl.u32 %v3662_v47, 16  ;;  %v19951_v7 = vpop.permute.xlu1 %10570 }
 0x36b   : > { %23765 = vst [vmem:[#allocation94_spill] sm:$0xff] %v19937_v28  ;;  %v6031_v27 = vshrl.u32 %v3661_v60, 16  ;;  %12030 = vrot.lane.b32.xlu0 %v19937_v28, %s23594_s16  ;;  %v2585_v41 = vcombine.high %v2569_v29, %v2569_v29  ;;  %v2586_v56 = vcombine.high %v2576_v55, %v2576_v55  ;;  %v2587_v0 = vcombine.high %v2583_v30, %v2583_v30 }
 0x36c   : > { %v5131_v21 = vshrl.u32 %v2576_v55, 16  ;;  %10715 = vrot.lane.b32.xlu1 %v10295_v11, %s23212_s22  ;;  %v6036_v44 = vshrl.u32 %v3663_v58, 16  ;;  %v19949_v15 = vadd.bf16 %v6006_v33, %v3640_v8  ;;  %v5136_v35 = vshrl.u32 %v2584_v57, 16  ;;  %23768 = vst [vmem:[#allocation36_spill] sm:$0xff] %v19951_v7  ;;  %v23775_v7 = vld [vmem:[#allocation33_spill] sm:$0xff] }
 0x36d   : > { %v6741_v19 = vadd.bf16 %v5126_v31, %v2562_v63  ;;  %v19954_v38 = vsel %vm8746_vm2, %v8848_v43, %v8705_v22  ;;  %v6041_v16 = vshrl.u32 %v3665_v20, 16  ;;  %v19956_v17 = vadd.bf16 %v6026_v40, %v3647_v12  ;;  %v19967_v43 = vpop.permute.xlu0 %10499 }
 0x36e   : > { %23769 = vst [vmem:[#allocation41_spill] sm:$0xff] %v19954_v38  ;;  %v6745_v51 = vadd.bf16 %v5146_v53, %v2569_v29  ;;  %v19959_v6 = vadd.bf16 %v6011_v50, %v23767_v4  ;;  %v19961_v3 = vadd.bf16 %v6016_v49, %v3662_v47  ;;  %v19963_v11 = vadd.bf16 %v6031_v27, %v3661_v60  ;;  %v23772_v29 = vld [vmem:[#allocation59_spill] sm:$0xff]  ;;  %v23773_v53 = vld [vmem:[#allocation9_spill] sm:$0xff] }
 0x36f   : > { %v5151_v8 = vshrl.u32 %v2583_v30, 16  ;;  %10505 = vrot.lane.b32.xlu0 %v19937_v28, %s23170_s13  ;;  %v5141_v63 = vshrl.u32 %v2586_v56, 16  ;;  %v5156_v33 = vshrl.u32 %v2585_v41, 16  ;;  %v5161_v31 = vshrl.u32 %v2587_v0, 16  ;;  %23771 = vst [vmem:[#allocation51_spill] sm:$0xff] %v19967_v43  ;;  %v23774_v49 = vld [vmem:[#allocation23_spill] sm:$0xff] }
 0x370   : > { %23770 = vst [vmem:[#allocation98_spill] sm:$0xff] %v19963_v11  ;;  %v6742_v22 = vadd.bf16 %v5131_v21, %v2576_v55  ;;  %v19969_v12 = vadd.bf16 %v6036_v44, %v3663_v58  ;;  %v6743_v40 = vadd.bf16 %v5136_v35, %v2584_v57  ;;  %v7035_v47 = vadd.bf16 %v6741_v19, %v19714_v36  ;;  %v23776_v58 = vld [vmem:[#allocation70_spill] sm:$0xff]  ;;  %v23777_v35 = vld [vmem:[#allocation92_spill] sm:$0xff]  ;;  %v19989_v36 = vpop.permute.xlu1 %12201 }
 0x371   : > { %v19974_v27 = vadd.bf16 %v6041_v16, %v3665_v20  ;;  %v7039_v60 = vadd.bf16 %v6745_v51, %v19744_v2  ;;  %v1018_v4 = vadd.f32 %v19685_v25, %v23773_v53  ;;  %v1021_v21 = vadd.f32 %v19685_v25, %v23774_v49  ;;  %23779 = vst [vmem:[#allocation38_spill] sm:$0xff] %v19989_v36 }
 0x372   : > { %v6746_v55 = vadd.bf16 %v5151_v8, %v2583_v30  ;;  %v1194_v44 = vadd.f32 %v19685_v25, %v23775_v7  ;;  %v1197_v50 = vadd.f32 %v19685_v25, %v23776_v58  ;;  %v23778_v19 = vrot.slane %v23750_v1, 7 }
 0x373   : > { %v6744_v2 = vadd.bf16 %v5141_v63, %v2586_v56  ;;  %v6747_v51 = vadd.bf16 %v5156_v33, %v2585_v41  ;;  %v6748_v57 = vadd.bf16 %v5161_v31, %v2587_v0  ;;  %v7036_v20 = vadd.bf16 %v6742_v22, %v19741_v26  ;;  %v20000_v41 = vpop.permute.xlu0 %10605  ;;  %v23782_v33 = vld [vmem:[#allocation65_spill] sm:$0xff] }
 0x374   : > { %v9147_v16 = vsel %vm8746_vm2, %v23778_v19, %v23777_v35  ;;  %v7037_v30 = vadd.bf16 %v6743_v40, %v19717_v10  ;;  %v8119_v8 = vrot.slane %v7035_v47, %v16497_v23  ;;  %v23780_v7 = vrot.slane %v23748_v61, 6  ;;  %23781 = vst [vmem:[#allocation17_spill] sm:$0xff] %v20000_v41  ;;  %v23783_v22 = vld [vmem:[#allocation77_spill] sm:$0xff] }
 0x375   : > { %v9150_v49 = vrot.slane %v23752_v14, 5  ;;  %v8175_v1 = vrot.slane %v7039_v60, %v16497_v23  ;;  %v1264_v58 = vmax.f32 %v1018_v4, 0.0  ;;  %v1265_v35 = vmax.f32 %v1021_v21, 0.0  ;;  %v23784_v60 = vld [vmem:[#allocation47_spill] sm:$0xff]  ;;  %v23785_v4 = vld [vmem:[#allocation14_spill] sm:$0xff] }
 0x376   : > { %v9149_v53 = vsel %vm8749_vm3, %v23780_v7, %v9147_v16  ;;  %v9152_v56 = vrot.slane %v23754_v18, 4  ;;  %v7040_v26 = vadd.bf16 %v6746_v55, %v19754_v34  ;;  %v1308_v0 = vmax.f32 %v1194_v44, 0.0  ;;  %v20018_v44 = vpop.permute.xlu1 %10623 }
 0x377   : > { %v1309_v10 = vmax.f32 %v1197_v50, 0.0  ;;  %v9151_v63 = vsel %vm8752_vm4, %v9150_v49, %v9149_v53  ;;  %v7041_v47 = vadd.bf16 %v6747_v51, %v19897_v52  ;;  %v20012_v21 = vsel %vm643_vm1, %v23785_v4, %v23784_v60  ;;  %23787 = vst [vmem:[#allocation9_spill] sm:$0xff] %v20018_v44 }
 0x378   : > { %23786 = vst [vmem:[#allocation59_spill] sm:$0xff] %v20012_v21  ;;  %v7038_v19 = vadd.bf16 %v6744_v2, %v19728_v13  ;;  %v7042_v34 = vadd.bf16 %v6748_v57, %v19912_v42  ;;  %v8133_v50 = vrot.slane %v7036_v20, %v16497_v23  ;;  %v8147_v55 = vrot.slane %v7037_v30, %v16497_v23  ;;  %v23788_v20 = vld [vmem:[#allocation62_spill] sm:$0xff] }
 0x379   : > { %v8126_v16 = vrot.slane %v8119_v8, %v16497_v23  ;;  %v8182_v7 = vrot.slane %v8175_v1, %v16497_v23  ;;  %v1338_v52 = vpack.c.bf16 %v1265_v35, %v1264_v58  ;;  %v9153_v51 = vsel %vm23226_vm5, %v9152_v56, %v9151_v63  ;;  %v20029_v8 = vpop.permute.xlu0 %10658 }
 0x37a   : > { %v8189_v53 = vrot.slane %v7040_v26, %v16497_v23  ;;  %v1360_v49 = vpack.c.bf16 %v1309_v10, %v1308_v0  ;;  %v15177_v60 = vpack.c.bf16 %v1309_v10, %v1309_v10  ;;  %v9154_v13 = vrot.slane %v23755_v5, 3  ;;  %23789 = vst [vmem:[#allocation23_spill] sm:$0xff] %v20029_v8  ;;  %v20043_v31 = vpop.permute.xlu1 %10676 }
 0x37b   : > { %v8203_v42 = vrot.slane %v7041_v47, %v16497_v23  ;;  %v9156_v2 = vrot.slane %v23757_v62, 2  ;;  %v9158_v57 = vrot.slane %v23763_v32, 1  ;;  %v9160_v30 = vrot.slane %v23788_v20, 7  ;;  %23790 = vst [vmem:[#allocation33_spill] sm:$0xff] %v20043_v31 }
 0x37c   : > { %v8140_v1 = vrot.slane %v8133_v50, %v16497_v23  ;;  %v8154_v58 = vrot.slane %v8147_v55, %v16497_v23  ;;  %v8161_v56 = vrot.slane %v7038_v19, %v16497_v23  ;;  %v9155_v26 = vsel %vm23222_vm6, %v9154_v13, %v9153_v51 }
 0x37d   : > { %v8217_v0 = vrot.slane %v7042_v34, %v16497_v23  ;;  %v2595_v10 = vrot.slane %v1338_v52, %v16497_v23  ;;  %v9157_v63 = vsel %vm8761_vm7, %v9156_v2, %v9155_v26  ;;  %v9161_v47 = vsel %vm8746_vm2, %v9160_v30, %v23758_v37 }
 0x37e   : > { %v3673_v4 = vrot.slane %v1360_v49, %v16497_v23  ;;  %v3680_v40 = vrot.slane %v15177_v60, %v16497_v23  ;;  %v15155_v50 = vpack.c.bf16 %v1265_v35, %v1265_v35  ;;  %v9159_v55 = vsel %vm8764_vm8, %v9158_v57, %v9157_v63  ;;  %v23794_v49 = vld [vmem:[#allocation35_spill] sm:$0xff]  ;;  %v23795_v35 = vld [vmem:[#allocation81_spill] sm:$0xff]  ;;  %v20075_v36 = vpop.permute.xlu1 %12254 }
 0x37f   : > { %v8196_v19 = vrot.slane %v8189_v53, %v16497_v23  ;;  %v8210_v34 = vrot.slane %v8203_v42, %v16497_v23  ;;  %v2611_v52 = vrot.slane %v2595_v10, %v16497_v23  ;;  %v20048_v51 = vpack.c.b16 %v9161_v47, %v9159_v55  ;;  %23801 = vst [vmem:[#allocation81_spill] sm:$0xff] %v20075_v36 }
 0x380   : > { %v20050_v13 = vunpack.c.l.b16 %v8126_v16  ;;  %v20052_v2 = vunpack.c.l.b16 %v8182_v7  ;;  %v1202_v60 = vadd.f32 %v19685_v25, %v23794_v49  ;;  %v1205_v57 = vadd.f32 %v19685_v25, %v23795_v35  ;;  %v20066_v16 = vpop.permute.xlu0 %12042 }
 0x381   : > { %23791 = vst [vmem:[#allocation70_spill] sm:$0xff] %v20048_v51  ;;  %v8168_v30 = vrot.slane %v8161_v56, %v16497_v23  ;;  %v8224_v53 = vrot.slane %v8217_v0, %v16497_v23  ;;  %v20060_v26 = vunpack.c.l.b16 %v8140_v1  ;;  %v20062_v42 = vunpack.c.l.b16 %v8154_v58  ;;  %12083 = vrot.lane.b32.xlu0 %v20048_v51, %s23170_s13  ;;  %23798 = vst [vmem:[#allocation14_spill] sm:$0xff] %v20066_v16  ;;  %s23846_s13 = smov 8  }
 0x382   : > { %23792 = vst [vmem:[#allocation92_spill] sm:$0xff] %v20050_v13  ;;  %23793 = vst [vmem:[#allocation65_spill] sm:$0xff] %v20052_v2  ;;  %v3681_v7 = vcombine.high %v3673_v4, %v3673_v4  ;;  %v3682_v63 = vcombine.high %v3680_v40, %v3680_v40  ;;  %v2602_v47 = vrot.slane %v15155_v50, %v16497_v23  ;;  %v20069_v49 = vunpack.c.l.b16 %v8196_v19 }
 0x383   : > { %23796 = vst [vmem:[#allocation77_spill] sm:$0xff] %v20060_v26  ;;  %23797 = vst [vmem:[#allocation47_spill] sm:$0xff] %v20062_v42  ;;  %v2603_v55 = vcombine.high %v2595_v10, %v2595_v10  ;;  %v20071_v35 = vunpack.c.l.b16 %v8210_v34  ;;  %v3689_v56 = vrot.slane %v3673_v4, %v16497_v23  ;;  %v5166_v1 = vshrl.u32 %v2611_v52, 16 }
 0x384   : > { %23799 = vst [vmem:[#allocation62_spill] sm:$0xff] %v20069_v49  ;;  %v2633_v0 = vcombine.high %v2611_v52, %v2611_v52  ;;  %v1310_v31 = vmax.f32 %v1202_v60, 0.0  ;;  %v1311_v44 = vmax.f32 %v1205_v57, 0.0  ;;  %v20077_v16 = vunpack.c.l.b16 %v8168_v30  ;;  %v20090_v36 = vpop.permute.xlu0 %11331  ;;  %v20100_v30 = vpop.permute.xlu1 %11847 }
 0x385   : > { %23800 = vst [vmem:[#allocation35_spill] sm:$0xff] %v20071_v35  ;;  %v9528_v10 = vrot.slane %v20060_v26, 7  ;;  %v3696_v50 = vrot.slane %v3680_v40, %v16497_v23  ;;  %10558 = vrot.lane.b32.xlu0 %v20048_v51, %s23803_s14  ;;  %v3703_v4 = vrot.slane %v3681_v7, %v16497_v23  ;;  %v3710_v19 = vrot.slane %v3682_v63, %v16497_v23 }
 0x386   : > { %23802 = vst [vmem:[#allocation120_spill] sm:$0xff] %v20077_v16  ;;  %v2604_v34 = vcombine.high %v2602_v47, %v2602_v47  ;;  %v2625_v60 = vrot.slane %v2603_v55, %v16497_v23  ;;  %v20087_v57 = vunpack.c.l.b16 %v8224_v53  ;;  %v3711_v58 = vcombine.high %v3689_v56, %v3689_v56  ;;  %23805 = vst [vmem:[#allocation122_spill] sm:$0xff] %v20090_v36 }
 0x387   : > { %v6749_v8 = vadd.bf16 %v5166_v1, %v2611_v52  ;;  %v5176_v40 = vshrl.u32 %v2633_v0, 16  ;;  %v1361_v21 = vpack.c.bf16 %v1311_v44, %v1310_v31  ;;  %v15178_v43 = vpack.c.bf16 %v1311_v44, %v1311_v44  ;;  %23808 = vst [vmem:[#allocation124_spill] sm:$0xff] %v20100_v30 }
 0x388   : > { %23804 = vst [vmem:[#allocation121_spill] sm:$0xff] %v20087_v57  ;;  %v5171_v41 = vshrl.u32 %v2625_v60, 16  ;;  %v20094_v7 = vsel %vm8746_vm2, %v9528_v10, %v20050_v13  ;;  %v3712_v63 = vcombine.high %v3696_v50, %v3696_v50  ;;  %v6046_v35 = vshrl.u32 %v3689_v56, 16 }
 0x389   : > { %23806 = vst [vmem:[#allocation123_spill] sm:$0xff] %v20094_v7  ;;  %v6066_v49 = vshrl.u32 %v3696_v50, 16  ;;  %10965 = vrot.lane.b32.xlu0 %v20048_v51, %s23807_s15  ;;  %v3713_v53 = vcombine.high %v3703_v4, %v3703_v4  ;;  %v3714_v55 = vcombine.high %v3710_v19, %v3710_v19  ;;  %v2618_v52 = vrot.slane %v2602_v47, %v16497_v23 }
 0x38a   : > { %v2632_v1 = vrot.slane %v2604_v34, %v16497_v23  ;;  %v6051_v31 = vshrl.u32 %v3703_v4, 16  ;;  %v6056_v44 = vshrl.u32 %v3711_v58, 16  ;;  %v2635_v36 = vcombine.high %v2625_v60, %v2625_v60  ;;  %v20109_v34 = vpop.permute.xlu0 %10924 }
 0x38b   : > { %v7043_v10 = vadd.bf16 %v6749_v8, %v19923_v46  ;;  %v6750_v7 = vadd.bf16 %v5171_v41, %v2625_v60  ;;  %v6751_v57 = vadd.bf16 %v5176_v40, %v2633_v0  ;;  %v3722_v2 = vrot.slane %v1361_v21, %v16497_v23  ;;  %23810 = vst [vmem:[#allocation126_spill] sm:$0xff] %v20109_v34 }
 0x38c   : > { %v3729_v16 = vrot.slane %v15178_v43, %v16497_v23  ;;  %v6071_v42 = vshrl.u32 %v3710_v19, 16  ;;  %v6076_v13 = vshrl.u32 %v3712_v63, 16  ;;  %v20105_v38 = vadd.bf16 %v6046_v35, %v3689_v56  ;;  %v20118_v56 = vpop.permute.xlu1 %10729 }
 0x38d   : > { %v20107_v47 = vadd.bf16 %v6066_v49, %v3696_v50  ;;  %v6061_v30 = vshrl.u32 %v3713_v53, 16  ;;  %v6081_v26 = vshrl.u32 %v3714_v55, 16  ;;  %v2634_v51 = vcombine.high %v2618_v52, %v2618_v52  ;;  %23812 = vst [vmem:[#allocation128_spill] sm:$0xff] %v20118_v56 }
 0x38e   : > { %v2636_v28 = vcombine.high %v2632_v1, %v2632_v1  ;;  %v20111_v11 = vadd.bf16 %v6051_v31, %v3703_v4  ;;  %v20113_v46 = vadd.bf16 %v6056_v44, %v3711_v58  ;;  %v5181_v41 = vshrl.u32 %v2635_v36, 16 }
 0x38f   : > { %23809 = vst [vmem:[#allocation125_spill] sm:$0xff] %v20107_v47  ;;  %v9022_v21 = vrot.slane %v7043_v10, %v16497_v23  ;;  %v7044_v43 = vadd.bf16 %v6750_v7, %v19926_v48  ;;  %v7045_v8 = vadd.bf16 %v6751_v57, %v19929_v9  ;;  %v3730_v35 = vcombine.high %v3722_v2, %v3722_v2  ;;  %v20131_v7 = vpop.permute.xlu0 %12148 }
 0x390   : > { %23811 = vst [vmem:[#allocation127_spill] sm:$0xff] %v20113_v46  ;;  %v3731_v49 = vcombine.high %v3729_v16, %v3729_v16  ;;  %v20120_v0 = vadd.bf16 %v6071_v42, %v3710_v19  ;;  %v5186_v50 = vshrl.u32 %v2618_v52, 16  ;;  %v5191_v60 = vshrl.u32 %v2632_v1, 16  ;;  %23817 = vst [vmem:[#allocation133_spill] sm:$0xff] %v20131_v7 }
 0x391   : > { %v3738_v4 = vrot.slane %v3722_v2, %v16497_v23  ;;  %v20123_v40 = vadd.bf16 %v6061_v30, %v3713_v53  ;;  %v20125_v58 = vadd.bf16 %v6076_v13, %v3712_v63  ;;  %v5196_v31 = vshrl.u32 %v2634_v51, 16 }
 0x392   : > { %23813 = vst [vmem:[#allocation129_spill] sm:$0xff] %v20120_v0  ;;  %v5201_v44 = vshrl.u32 %v2636_v28, 16  ;;  %v20127_v10 = vadd.bf16 %v6081_v26, %v3714_v55  ;;  %v6752_v48 = vadd.bf16 %v5181_v41, %v2635_v36  ;;  %v9029_v9 = vrot.slane %v9022_v21, %v16497_v23  ;;  %v23818_v36 = vld [vmem:[#allocation80_spill] sm:$0xff]  ;;  %v23819_v41 = vld [vmem:[#allocation43_spill] sm:$0xff] }
 0x393   : > { %23814 = vst [vmem:[#allocation130_spill] sm:$0xff] %v20123_v40  ;;  %23815 = vst [vmem:[#allocation131_spill] sm:$0xff] %v20125_v58  ;;  %v3745_v57 = vrot.slane %v3729_v16, %v16497_v23  ;;  %v9372_v42 = vrot.slane %v7044_v43, %v16497_v23  ;;  %v20135_v19 = vrot.slane %v7045_v8, %v16497_v23  ;;  %v9856_v40 = vrot.slane %v23758_v37, 2 }
 0x394   : > { %23816 = vst [vmem:[#allocation132_spill] sm:$0xff] %v20127_v10  ;;  %v3752_v2 = vrot.slane %v3730_v35, %v16497_v23  ;;  %v3759_v13 = vrot.slane %v3731_v49, %v16497_v23  ;;  %v20139_v30 = vadd.bf16 %v5186_v50, %v2618_v52  ;;  %v20141_v26 = vadd.bf16 %v5191_v60, %v2632_v1  ;;  %v20155_v52 = vpop.permute.xlu1 %10501 }
 0x395   : > { %v1026_v63 = vadd.f32 %v19685_v25, %v23818_v36  ;;  %v3760_v53 = vcombine.high %v3738_v4, %v3738_v4  ;;  %v20145_v16 = vadd.bf16 %v5196_v31, %v2634_v51  ;;  %v20147_v55 = vadd.bf16 %v5201_v44, %v2636_v28  ;;  %23821 = vst [vmem:[#allocation80_spill] sm:$0xff] %v20155_v52 }
 0x396   : > { %v1029_v21 = vadd.f32 %v19685_v25, %v23819_v41  ;;  %v23820_v43 = vadd.bf16 %v19959_v6, %v23782_v33  ;;  %v7046_v1 = vadd.bf16 %v6752_v48, %v19943_v39  ;;  %v20158_v35 = vunpack.c.l.b16 %v9029_v9  ;;  %v23822_v41 = vld [vmem:[#allocation89_spill] sm:$0xff]  ;;  %v20168_v39 = vpop.permute.xlu0 %11741 }
 0x397   : > { %v3761_v49 = vcombine.high %v3745_v57, %v3745_v57  ;;  %v6106_v50 = vshrl.u32 %v3745_v57, 16  ;;  %v9379_v51 = vrot.slane %v9372_v42, %v16497_v23  ;;  %v3762_v60 = vcombine.high %v3752_v2, %v3752_v2  ;;  %23823 = vst [vmem:[#allocation43_spill] sm:$0xff] %v20168_v39 }
 0x398   : > { %v11701_v8 = vrot.slane %v23820_v43, %v16497_v23  ;;  %v3763_v31 = vcombine.high %v3759_v13, %v3759_v13  ;;  %v1266_v44 = vmax.f32 %v1026_v63, 0.0  ;;  %v6096_v36 = vshrl.u32 %v3760_v53, 16  ;;  %v20183_v0 = vpop.permute.xlu1 %10554 }
 0x399   : > { %v20165_v6 = vadd.f32 %v19685_v25, %v23822_v41  ;;  %v11710_v33 = vrot.slane %v19787_v24, 7  ;;  %v6086_v48 = vshrl.u32 %v3738_v4, 16  ;;  %v20170_v9 = vmax.f32 %v1029_v21, 0.0  ;;  %23825 = vst [vmem:[#allocation89_spill] sm:$0xff] %v20183_v0 }
 0x39a   : > { %v23824_v42 = vadd.bf16 %v19949_v15, %v23772_v29  ;;  %v11708_v28 = vrot.slane %v11701_v8, %v16497_v23  ;;  %v6091_v63 = vshrl.u32 %v3752_v2, 16  ;;  %v6111_v56 = vshrl.u32 %v3759_v13, 16  ;;  %v20208_v29 = vpop.permute.xlu0 %11794 }
 0x39b   : > { %v6116_v34 = vshrl.u32 %v3761_v49, 16  ;;  %v20177_v7 = vadd.bf16 %v6106_v50, %v3745_v57  ;;  %v20180_v41 = vrot.slane %v7046_v1, %v16497_v23  ;;  %v6101_v52 = vshrl.u32 %v3762_v60, 16  ;;  %23829 = vst [vmem:[#allocation137_spill] sm:$0xff] %v20208_v29 }
 0x39c   : > { %v11668_v43 = vrot.slane %v23824_v42, %v16497_v23  ;;  %v6121_v39 = vshrl.u32 %v3763_v31, 16  ;;  %v11712_v21 = vrot.slane %v19789_v59, 6  ;;  %v20185_v10 = vunpack.c.l.b16 %v9379_v51 }
 0x39d   : > { %v20187_v15 = vadd.bf16 %v6096_v36, %v3760_v53  ;;  %v11711_v8 = vsel %vm8746_vm2, %v11710_v33, %v19776_v54  ;;  %v20192_v57 = vadd.bf16 %v6086_v48, %v3738_v4  ;;  %v20195_v1 = vpack.c.bf16 %v20170_v9, %v1266_v44  ;;  %v23839_v36 = vld [vmem:[#allocation100_spill] sm:$0xff] }
 0x39e   : > { %v11675_v50 = vrot.slane %v11668_v43, %v16497_v23  ;;  %v20198_v42 = vunpack.c.l.b16 %v11708_v28  ;;  %v20200_v47 = vadd.bf16 %v6091_v63, %v3752_v2  ;;  %v20202_v51 = vadd.bf16 %v6111_v56, %v3759_v13  ;;  %v23832_v56 = vld [vmem:[#allocation67_spill] sm:$0xff]  ;;  %v23834_v43 = vld [vmem:[#allocation117_spill] sm:$0xff] }
 0x39f   : > { %23826 = vst [vmem:[#allocation134_spill] sm:$0xff] %v20192_v57  ;;  %v20204_v53 = vadd.bf16 %v6116_v34, %v3761_v49  ;;  %v20210_v4 = vadd.bf16 %v6101_v52, %v3762_v60  ;;  %v20212_v33 = vadd.bf16 %v6121_v39, %v3763_v31  ;;  %v23830_v44 = vrot.slane %v19758_v45, %v16497_v23  ;;  %v23833_v49 = vld [vmem:[#allocation113_spill] sm:$0xff]  ;;  %v23836_v60 = vld [vmem:[#allocation118_spill] sm:$0xff] }
 0x3a0   : > { %23827 = vst [vmem:[#allocation135_spill] sm:$0xff] %v20198_v42  ;;  %23828 = vst [vmem:[#allocation136_spill] sm:$0xff] %v20200_v47  ;;  %v11713_v2 = vsel %vm8749_vm3, %v11712_v21, %v11711_v8  ;;  %v11714_v13 = vrot.slane %v23832_v56, 5  ;;  %v11716_v48 = vrot.slane %v23833_v49, 4  ;;  %v11718_v63 = vrot.slane %v23834_v43, 3  ;;  %v23838_v8 = vld [vmem:[#allocation101_spill] sm:$0xff] }
 0x3a1   : > { %v20217_v28 = vunpack.c.l.b16 %v23830_v44  ;;  %v20225_v52 = vunpack.c.l.b16 %v11675_v50  ;;  %v11720_v31 = vrot.slane %v23836_v60, 2  ;;  %v11724_v45 = vrot.slane %v20198_v42, 7  ;;  %v20230_v44 = vpop.permute.xlu1 %10607 }
 0x3a2   : > { %23837 = vst [vmem:[#allocation140_spill] sm:$0xff] %v20230_v44  ;;  %v11715_v21 = vsel %vm8752_vm4, %v11714_v13, %v11713_v2  ;;  %v9351_v34 = vrot.slane %v23838_v8, %v16497_v23  ;;  %v23840_v29 = vrot.slane %v23839_v36, %v16497_v23  ;;  %v9846_v50 = vrot.slane %v23752_v14, 7  ;;  %v20252_v8 = vpop.permute.xlu0 %10908 }
 0x3a3   : > { %23831 = vst [vmem:[#allocation138_spill] sm:$0xff] %v20217_v28  ;;  %23835 = vst [vmem:[#allocation139_spill] sm:$0xff] %v20225_v52  ;;  %v11722_v39 = vrot.slane %v20217_v28, 1  ;;  %v11717_v57 = vsel %vm23226_vm5, %v11716_v48, %v11715_v21  ;;  %v11725_v54 = vsel %vm8746_vm2, %v11724_v45, %v20225_v52  ;;  %v9848_v0 = vrot.slane %v23754_v18, 6 }
 0x3a4   : > { %v20238_v47 = vunpack.c.l.b16 %v23840_v29  ;;  %v9850_v44 = vrot.slane %v23755_v5, 5  ;;  %v11719_v2 = vsel %vm23222_vm6, %v11718_v63, %v11717_v57  ;;  %v20247_v13 = vunpack.c.l.b16 %v9351_v34  ;;  %23841 = vst [vmem:[#allocation101_spill] sm:$0xff] %v20252_v8 }
 0x3a5   : > { %v9847_v36 = vsel %vm8746_vm2, %v9846_v50, %v23748_v61  ;;  %v9852_v29 = vrot.slane %v23757_v62, 4  ;;  %v11721_v48 = vsel %vm8761_vm7, %v11720_v31, %v11719_v2  ;;  %v9854_v45 = vrot.slane %v23763_v32, 3 }
 0x3a6   : > { %v9849_v21 = vsel %vm8749_vm3, %v9848_v0, %v9847_v36  ;;  %v11723_v58 = vsel %vm8764_vm8, %v11722_v39, %v11721_v48  ;;  %v9858_v34 = vrot.slane %v23788_v20, 1  ;;  %v9860_v61 = vrot.slane %v20238_v47, 7  ;;  %v20271_v36 = vpop.permute.xlu1 %10660  ;;  %v23845_v39 = vld [vmem:[#allocation90_spill] sm:$0xff] }
 0x3a7   : > { %v9851_v57 = vsel %vm8752_vm4, %v9850_v44, %v9849_v21  ;;  %v15156_v63 = vpack.c.bf16 %v20170_v9, %v20170_v9  ;;  %v20264_v50 = vpack.c.b16 %v11725_v54, %v11723_v58  ;;  %v23843_v0 = vadd.bf16 %v19961_v3, %v23783_v22  ;;  %23844 = vst [vmem:[#allocation141_spill] sm:$0xff] %v20271_v36 }
 0x3a8   : > { %v9853_v31 = vsel %vm23226_vm5, %v9852_v29, %v9851_v57  ;;  %v20275_v44 = vadd.f32 %v19685_v25, %v23845_v39  ;;  %v9861_v9 = vsel %vm8746_vm2, %v9860_v61, %v20247_v13  ;;  %v11763_v54 = vrot.slane %v19789_v59, 7  ;;  %v23886_v59 = vld [vmem:[#allocation56_spill] sm:$0xff] }
 0x3a9   : > { %23842 = vst [vmem:[#allocation100_spill] sm:$0xff] %v20264_v50  ;;  %v11754_v2 = vrot.slane %v23843_v0, %v16497_v23  ;;  %v9855_v48 = vsel %vm23222_vm6, %v9854_v45, %v9853_v31  ;;  %11745 = vrot.lane.b32.xlu1 %v20264_v50, %s23846_s13  ;;  %v11765_v22 = vrot.slane %v23832_v56, 6  ;;  %v11767_v29 = vrot.slane %v23833_v49, 5  ;;  %v20292_v31 = vpop.permute.xlu0 %9256 }
 0x3aa   : > { %v9857_v58 = vsel %vm8761_vm7, %v9856_v40, %v9855_v48  ;;  %v11764_v45 = vsel %vm8746_vm2, %v11763_v54, %v19787_v24  ;;  %v11769_v57 = vrot.slane %v23834_v43, 4  ;;  %v11771_v61 = vrot.slane %v23836_v60, 3  ;;  %23847 = vst [vmem:[#allocation90_spill] sm:$0xff] %v20292_v31  ;;  %v23849_v48 = vld [vmem:[#allocation95_spill] sm:$0xff] }
 0x3ab   : > { %v11761_v3 = vrot.slane %v11754_v2, %v16497_v23  ;;  %v9859_v21 = vsel %vm8764_vm8, %v9858_v34, %v9857_v58  ;;  %v11766_v2 = vsel %vm8749_vm3, %v11765_v22, %v11764_v45  ;;  %v11773_v39 = vrot.slane %v20217_v28, 2  ;;  %v20311_v45 = vpop.permute.xlu1 %9606 }
 0x3ac   : > { %v20294_v0 = vpack.c.b16 %v9861_v9, %v9859_v21  ;;  %v1037_v34 = vadd.f32 %v19685_v25, %v23849_v48  ;;  %v11768_v58 = vsel %vm8752_vm4, %v11767_v29, %v11766_v2  ;;  %v11775_v54 = vrot.slane %v20225_v52, 1  ;;  %23850 = vst [vmem:[#allocation95_spill] sm:$0xff] %v20311_v45  ;;  %v23851_v29 = vld [vmem:[#allocation99_spill] sm:$0xff] }
 0x3ad   : > { %v20296_v40 = vunpack.c.l.b16 %v11761_v3  ;;  %v9498_v50 = vrot.slane %v23752_v14, 6  ;;  %v11770_v9 = vsel %vm23226_vm5, %v11769_v57, %v11768_v58  ;;  %v9500_v22 = vrot.slane %v23754_v18, 5  ;;  %v20330_v28 = vpop.permute.xlu0 %10961 }
 0x3ae   : > { %11782 = vrot.lane.b32.xlu0 %v20294_v0, %s23203_s8  ;;  %v9502_v21 = vrot.slane %v23755_v5, 4  ;;  %v11772_v25 = vsel %vm23222_vm6, %v11771_v61, %v11770_v9  ;;  %v9504_v48 = vrot.slane %v23757_v62, 3  ;;  %v9506_v31 = vrot.slane %v23763_v32, 2  ;;  %23853 = vst [vmem:[#allocation99_spill] sm:$0xff] %v20330_v28 }
 0x3af   : > { %23848 = vst [vmem:[#allocation142_spill] sm:$0xff] %v20296_v40  ;;  %v11777_v3 = vrot.slane %v20296_v40, 7  ;;  %v9499_v2 = vsel %vm8749_vm3, %v9498_v50, %v23851_v29  ;;  %v11774_v52 = vsel %vm8761_vm7, %v11773_v39, %v11772_v25  ;;  %v9508_v40 = vrot.slane %v23758_v37, 1 }
 0x3b0   : > { %v9501_v58 = vsel %vm8752_vm4, %v9500_v22, %v9499_v2  ;;  %v23852_v61 = vadd.bf16 %v20177_v7, %v19969_v12  ;;  %v11776_v50 = vsel %vm8764_vm8, %v11775_v54, %v11774_v52  ;;  %v9510_v45 = vrot.slane %v20247_v13, 7  ;;  %v23855_v12 = vld [vmem:[#allocation98_spill] sm:$0xff] }
 0x3b1   : > { %v11778_v57 = vsel %vm8746_vm2, %v11777_v3, %v20198_v42  ;;  %v9503_v29 = vsel %vm23226_vm5, %v9502_v21, %v9501_v58  ;;  %v7134_v39 = vadd.bf16 %v20202_v51, %v19974_v27  ;;  %v7135_v3 = vadd.bf16 %v20204_v53, %v20105_v38 }
 0x3b2   : > { %v11897_v9 = vrot.slane %v23852_v61, %v16497_v23  ;;  %v20336_v22 = vpack.c.b16 %v11778_v57, %v11776_v50  ;;  %v9505_v25 = vsel %vm23222_vm6, %v9504_v48, %v9503_v29  ;;  %v7132_v7 = vadd.bf16 %v20210_v4, %v23855_v12  ;;  %v20354_v4 = vpop.permute.xlu1 %9956 }
 0x3b3   : > { %v2644_v52 = vrot.slane %v20195_v1, %v16497_v23  ;;  %v9507_v54 = vsel %vm8761_vm7, %v9506_v31, %v9505_v25  ;;  %v9511_v21 = vsel %vm8746_vm2, %v9510_v45, %v23788_v20  ;;  %v7136_v27 = vadd.bf16 %v20212_v33, %v20111_v11  ;;  %23856 = vst [vmem:[#allocation98_spill] sm:$0xff] %v20354_v4 }
 0x3b4   : > { %23854 = vst [vmem:[#allocation143_spill] sm:$0xff] %v20336_v22  ;;  %v1268_v38 = vmax.f32 %v20275_v44, 0.0  ;;  %v20349_v51 = vmax.f32 %v1037_v34, 0.0  ;;  %11798 = vrot.lane.b32.xlu1 %v20336_v22, %s23203_s8  ;;  %v9509_v53 = vsel %vm8764_vm8, %v9508_v40, %v9507_v54  ;;  %v23857_v1 = vadd.bf16 %v20187_v15, %v19956_v17  ;;  %v23858_v34 = vld [vmem:[#allocation102_spill] sm:$0xff] }
 0x3b5   : > { %v11904_v45 = vrot.slane %v11897_v9, %v16497_v23  ;;  %v2651_v11 = vrot.slane %v15156_v63, %v16497_v23  ;;  %v20362_v33 = vpack.c.b16 %v9511_v21, %v9509_v53  ;;  %v11911_v44 = vrot.slane %v7134_v39, %v16497_v23  ;;  %v20374_v63 = vpop.permute.xlu0 %11014  ;;  %v23860_v9 = vld [vmem:[#allocation94_spill] sm:$0xff]  ;;  %v23864_v53 = vld [vmem:[#allocation103_spill] sm:$0xff] }
 0x3b6   : > { %v11869_v31 = vrot.slane %v23857_v1, %v16497_v23  ;;  %v10051_v2 = vrot.slane %v23858_v34, %v16497_v23  ;;  %v10196_v40 = vrot.slane %v23754_v18, 7  ;;  %v10198_v48 = vrot.slane %v23755_v5, 6  ;;  %23859 = vst [vmem:[#allocation102_spill] sm:$0xff] %v20374_v63  ;;  %v23865_v1 = vld [vmem:[#allocation44_spill] sm:$0xff] }
 0x3b7   : > { %v11925_v57 = vrot.slane %v7135_v3, %v16497_v23  ;;  %v2652_v58 = vcombine.high %v2644_v52, %v2644_v52  ;;  %12136 = vrot.lane.b32.xlu0 %v20362_v33, %s23803_s14  ;;  %v10200_v17 = vrot.slane %v23757_v62, 5  ;;  %v10202_v15 = vrot.slane %v23763_v32, 4 }
 0x3b8   : > { %v1340_v61 = vpack.c.bf16 %v20349_v51, %v1268_v38  ;;  %11319 = vrot.lane.b32.xlu1 %v23860_v9, %s23716_s29  ;;  %v10126_v18 = vunpack.c.l.b16 %v10051_v2  ;;  %v10197_v5 = vsel %vm8746_vm2, %v10196_v40, %v23752_v14  ;;  %v10204_v50 = vrot.slane %v23758_v37, 3  ;;  %v20393_v14 = vpop.permute.xlu1 %12097 }
 0x3b9   : > { %v11876_v29 = vrot.slane %v11869_v31, %v16497_v23  ;;  %v20384_v39 = vrot.slane %v7132_v7, %v16497_v23  ;;  %v10199_v32 = vsel %vm8749_vm3, %v10198_v48, %v10197_v5  ;;  %v10206_v62 = vrot.slane %v23788_v20, 2  ;;  %23863 = vst [vmem:[#allocation146_spill] sm:$0xff] %v20393_v14  ;;  %v23879_v14 = vld [vmem:[#allocation10_spill] sm:$0xff] }
 0x3ba   : > { %v20389_v3 = vrot.slane %v7136_v27, %v16497_v23  ;;  %v10201_v25 = vsel %vm8752_vm4, %v10200_v17, %v10199_v32  ;;  %v10208_v12 = vrot.slane %v20247_v13, 1  ;;  %v10210_v54 = vrot.slane %v10126_v18, 7 }
 0x3bb   : > { %23861 = vst [vmem:[#allocation144_spill] sm:$0xff] %v20384_v39  ;;  %v11918_v37 = vrot.slane %v11911_v44, %v16497_v23  ;;  %v11932_v21 = vrot.slane %v11925_v57, %v16497_v23  ;;  %v2653_v7 = vcombine.high %v2651_v11, %v2651_v11  ;;  %12189 = vrot.lane.b32.xlu0 %v20294_v0, %s23194_s20  ;;  %v23866_v31 = vrot.slane %v23865_v1, 7  ;;  %v20416_v57 = vpop.permute.xlu0 %11067 }
 0x3bc   : > { %23862 = vst [vmem:[#allocation145_spill] sm:$0xff] %v20389_v3  ;;  %v10203_v20 = vsel %vm23226_vm5, %v10202_v15, %v10201_v25  ;;  %v2693_v27 = vrot.slane %v1340_v61, %v16497_v23  ;;  %10912 = vrot.lane.b32.xlu1 %v23860_v9, %s23210_s18  ;;  %v10211_v38 = vsel %vm8746_vm2, %v10210_v54, %v20238_v47  ;;  %v20410_v34 = vunpack.c.l.b16 %v11904_v45  ;;  %v23868_v61 = vld [vmem:[#allocation105_spill] sm:$0xff]  ;;  %v20445_v54 = vpop.permute.xlu1 %10306 }
 0x3bd   : > { %v10205_v13 = vsel %vm23222_vm6, %v10204_v50, %v10203_v20  ;;  %v9163_v44 = vsel %vm8746_vm2, %v23866_v31, %v23864_v53  ;;  %v2660_v2 = vrot.slane %v2644_v52, %v16497_v23  ;;  %v15157_v40 = vpack.c.bf16 %v20349_v51, %v20349_v51  ;;  %23867 = vst [vmem:[#allocation103_spill] sm:$0xff] %v20416_v57  ;;  %v23869_v51 = vld [vmem:[#allocation88_spill] sm:$0xff]  ;;  %v23876_v53 = vld [vmem:[#allocation29_spill] sm:$0xff] }
 0x3be   : > { %v10207_v48 = vsel %vm8761_vm7, %v10206_v62, %v10205_v13  ;;  %v20421_v47 = vrot.slane %v2651_v11, %v16497_v23  ;;  %v9166_v45 = vrot.slane %v23868_v61, 5  ;;  %v20426_v18 = vrot.slane %v2652_v58, %v16497_v23  ;;  %23873 = vst [vmem:[#allocation105_spill] sm:$0xff] %v20445_v54 }
 0x3bf   : > { %v10209_v15 = vsel %vm8764_vm8, %v10208_v12, %v10207_v48  ;;  %10611 = vrot.lane.b32.xlu0 %v20362_v33, %s23194_s20  ;;  %v23870_v5 = vrot.slane %v23869_v51, 6  ;;  %v9514_v32 = vrot.slane %v23868_v61, 6  ;;  %v20438_v62 = vunpack.c.l.b16 %v11876_v29  ;;  %v23872_v12 = vld [vmem:[#allocation70_spill] sm:$0xff]  ;;  %v20470_v11 = vpop.permute.xlu0 %10713  ;;  %s23908_s20 = smov 40  }
 0x3c0   : > { %v20430_v52 = vpack.c.b16 %v10211_v38, %v10209_v15  ;;  %v20441_v25 = vrot.slane %v2653_v7, %v16497_v23  ;;  %v2701_v58 = vcombine.high %v2693_v27, %v2693_v27  ;;  %9260 = vrot.lane.b32.xlu1 %v23872_v12, %s23846_s13  ;;  %v20447_v20 = vunpack.c.l.b16 %v11918_v37  ;;  %23878 = vst [vmem:[#allocation29_spill] sm:$0xff] %v20470_v11  ;;  %v23888_v12 = vld [vmem:[#allocation57_spill] sm:$0xff] }
 0x3c1   : > { %v9165_v50 = vsel %vm8749_vm3, %v23870_v5, %v9163_v44  ;;  %23871 = vst [vmem:[#allocation44_spill] sm:$0xff] %v20438_v62  ;;  %v20449_v13 = vunpack.c.l.b16 %v11932_v21  ;;  %v2700_v38 = vrot.slane %v15157_v40, %v16497_v23  ;;  %v9168_v31 = vrot.slane %v23876_v53, 4  ;;  %v23877_v40 = vld [vmem:[#allocation75_spill] sm:$0xff] }
 0x3c2   : > { %23874 = vst [vmem:[#allocation88_spill] sm:$0xff] %v20447_v20  ;;  %v20453_v44 = vcombine.high %v2660_v2, %v2660_v2  ;;  %v20457_v29 = vcombine.high %v20421_v47, %v20421_v47  ;;  %v9167_v7 = vsel %vm8752_vm4, %v9166_v45, %v9165_v50  ;;  %v9516_v48 = vrot.slane %v23876_v53, 5  ;;  %v20492_v20 = vpop.permute.xlu1 %12044 }
 0x3c3   : > { %23875 = vst [vmem:[#allocation147_spill] sm:$0xff] %v20449_v13  ;;  %v20463_v37 = vcombine.high %v20426_v18, %v20426_v18  ;;  %v5206_v21 = vshrl.u32 %v2660_v2, 16  ;;  %v5226_v15 = vshrl.u32 %v20421_v47, 16  ;;  %10664 = vrot.lane.b32.xlu0 %v20294_v0, %s23192_s21  ;;  %v9515_v5 = vsel %vm8749_vm3, %v9514_v32, %v23877_v40  ;;  %23880 = vst [vmem:[#allocation75_spill] sm:$0xff] %v20492_v20 }
 0x3c4   : > { %v20474_v45 = vcombine.high %v20441_v25, %v20441_v25  ;;  %v5211_v50 = vshrl.u32 %v20426_v18, 16  ;;  %v20478_v17 = vrot.slane %v2701_v58, %v16497_v23  ;;  %11729 = vrot.lane.b32.xlu1 %v20362_v33, %s23846_s13  ;;  %v9170_v22 = vrot.slane %v23879_v14, 3 }
 0x3c5   : > { %v2702_v9 = vcombine.high %v2700_v38, %v2700_v38  ;;  %v20484_v54 = vrot.slane %v2693_v27, %v16497_v23  ;;  %v9169_v32 = vsel %vm23226_vm5, %v9168_v31, %v9167_v7  ;;  %v9518_v40 = vrot.slane %v23879_v14, 4  ;;  %v23881_v27 = vld [vmem:[#allocation37_spill] sm:$0xff]  ;;  %v23882_v7 = vld [vmem:[#allocation19_spill] sm:$0xff] }
 0x3c6   : > { %v9517_v58 = vsel %vm8752_vm4, %v9516_v48, %v9515_v5  ;;  %v8836_v42 = vrot.slane %v23869_v51, 5  ;;  %v2716_v24 = vrot.slane %v2700_v38, %v16497_v23  ;;  %v9172_v31 = vrot.slane %v23881_v27, 2 }
 0x3c7   : > { %9960 = vrot.lane.b32.xlu0 %v20294_v0, %s23214_s9  ;;  %v23883_v4 = vrot.slane %v23865_v1, 6  ;;  %v20503_v60 = vadd.bf16 %v5206_v21, %v2660_v2  ;;  %v2733_v48 = vcombine.high %v20478_v17, %v20478_v17  ;;  %v9171_v38 = vsel %vm23222_vm6, %v9170_v22, %v9169_v32  ;;  %v20516_v2 = vpop.permute.xlu0 %11120 }
 0x3c8   : > { %9610 = vrot.lane.b32.xlu1 %v20362_v33, %s23203_s8  ;;  %v9520_v5 = vrot.slane %v23881_v27, 3  ;;  %v2730_v62 = vrot.slane %v2702_v9, %v16497_v23  ;;  %v2731_v20 = vcombine.high %v20484_v54, %v20484_v54  ;;  %v9519_v1 = vsel %vm23226_vm5, %v9518_v40, %v9517_v58  ;;  %23884 = vst [vmem:[#allocation10_spill] sm:$0xff] %v20516_v2  ;;  %v23889_v2 = vld [vmem:[#allocation58_spill] sm:$0xff] }
 0x3c9   : > { %v8835_v13 = vsel %vm8749_vm3, %v23883_v4, %v23882_v7  ;;  %v8838_v4 = vrot.slane %v23868_v61, 4  ;;  %v23885_v7 = vld [vmem:[#allocation61_spill] sm:$0xff]  ;;  %v9176_v49 = vrot.slane %v23886_v59, 7  ;;  %v2732_v9 = vcombine.high %v2716_v24, %v2716_v24 }
 0x3ca   : > { %v9174_v43 = vrot.slane %v23885_v7, 1  ;;  %v8837_v22 = vsel %vm8752_vm4, %v8836_v42, %v8835_v13  ;;  %v9173_v40 = vsel %vm8761_vm7, %v9172_v31, %v9171_v38  ;;  %v9522_v58 = vrot.slane %v23885_v7, 2  ;;  %v20534_v13 = vpop.permute.xlu1 %12150 }
 0x3cb   : > { %11071 = vrot.lane.b32.xlu0 %v20294_v0, %s23199_s23  ;;  %v20528_v56 = vadd.bf16 %v5211_v50, %v20426_v18  ;;  %v5261_v21 = vshrl.u32 %v2733_v48, 16  ;;  %v9521_v11 = vsel %vm23222_vm6, %v9520_v5, %v9519_v1  ;;  %v8840_v42 = vrot.slane %v23876_v53, 3  ;;  %23887 = vst [vmem:[#allocation37_spill] sm:$0xff] %v20534_v13  ;;  %v20546_v63 = vpop.permute.xlu0 %11743 }
 0x3cc   : > { %11018 = vrot.lane.b32.xlu1 %v20362_v33, %s23201_s19  ;;  %v2734_v32 = vcombine.high %v2730_v62, %v2730_v62  ;;  %v5256_v36 = vshrl.u32 %v2731_v20, 16  ;;  %v5271_v0 = vshrl.u32 %v2730_v62, 16  ;;  %v8839_v31 = vsel %vm23226_vm5, %v8838_v4, %v8837_v22  ;;  %23890 = vst [vmem:[#allocation19_spill] sm:$0xff] %v20546_v63 }
 0x3cd   : > { %v9175_v38 = vsel %vm8764_vm8, %v9174_v43, %v9173_v40  ;;  %v9177_v18 = vsel %vm8746_vm2, %v9176_v49, %v23888_v12  ;;  %v9524_v50 = vrot.slane %v23888_v12, 1  ;;  %v9526_v33 = vrot.slane %v23889_v2, 7 }
 0x3ce   : > { %v5266_v57 = vshrl.u32 %v2716_v24, 16  ;;  %v5276_v5 = vshrl.u32 %v2732_v9, 16  ;;  %v9523_v1 = vsel %vm8761_vm7, %v9522_v58, %v9521_v11  ;;  %v8842_v13 = vrot.slane %v23879_v14, 2 }
 0x3cf   : > { %12242 = vrot.lane.b32.xlu0 %v20430_v52, %s23192_s21  ;;  %v20549_v43 = vadd.bf16 %v5226_v15, %v20421_v47  ;;  %v6768_v4 = vadd.bf16 %v5261_v21, %v2733_v48  ;;  %v8841_v49 = vsel %vm23222_vm6, %v8840_v42, %v8839_v31  ;;  %v9862_v22 = vrot.slane %v23868_v61, 7  ;;  %v20562_v48 = vpop.permute.xlu1 %12203  ;;  %v23893_v31 = vld [vmem:[#allocation97_spill] sm:$0xff]  ;;  %s23928_s21 = smov 56  }
 0x3d0   : > { %11835 = vrot.lane.b32.xlu1 %v20430_v52, %s23214_s9  ;;  %v5281_v40 = vshrl.u32 %v2734_v32, 16  ;;  %v6767_v28 = vadd.bf16 %v5256_v36, %v2731_v20  ;;  %v6770_v8 = vadd.bf16 %v5271_v0, %v2730_v62  ;;  %v20555_v46 = vpack.c.b16 %v9177_v18, %v9175_v38  ;;  %23892 = vst [vmem:[#allocation56_spill] sm:$0xff] %v20562_v48  ;;  %v20572_v0 = vld [vmem:[%s22981_s2] ss:$0 sm:$0xff]  ;;  %v23894_v18 = vld [vmem:[#allocation15_spill] sm:$0xff] }
 0x3d1   : > { %v9525_v11 = vsel %vm8764_vm8, %v9524_v50, %v9523_v1  ;;  %v9527_v58 = vsel %vm8746_vm2, %v9526_v33, %v23886_v59  ;;  %v8844_v47 = vrot.slane %v23881_v27, 1  ;;  %v8846_v15 = vrot.slane %v23888_v12, 7 }
 0x3d2   : > { %23891 = vst [vmem:[#allocation61_spill] sm:$0xff] %v20555_v46  ;;  %v6769_v21 = vadd.bf16 %v5266_v57, %v2716_v24  ;;  %v6771_v42 = vadd.bf16 %v5276_v5, %v2732_v9  ;;  %v8843_v36 = vsel %vm8761_vm7, %v8842_v13, %v8841_v49  ;;  %v9864_v62 = vrot.slane %v23876_v53, 6  ;;  %v20590_v5 = vpop.permute.xlu0 %11796 }
 0x3d3   : > { %9262 = vrot.lane.b32.xlu0 %v20555_v46, %s23846_s13  ;;  %v7048_v20 = vadd.bf16 %v6768_v4, %v20141_v26  ;;  %v1042_v38 = vadd.f32 %v20572_v0, %v23893_v31  ;;  %v1045_v24 = vadd.f32 %v20572_v0, %v23894_v18  ;;  %v9863_v57 = vsel %vm8746_vm2, %v9862_v22, %v23869_v51  ;;  %v23897_v22 = vld [vmem:[#allocation91_spill] sm:$0xff] }
 0x3d4   : > { %10717 = vrot.lane.b32.xlu1 %v20430_v52, %s23212_s22  ;;  %v23895_v26 = vshrl.u32 %v20453_v44, 16  ;;  %v6772_v13 = vadd.bf16 %v5281_v40, %v2734_v32  ;;  %v7050_v50 = vadd.bf16 %v6770_v8, %v20147_v55  ;;  %v20588_v33 = vpack.c.b16 %v9527_v58, %v9525_v11  ;;  %23896 = vst [vmem:[#allocation57_spill] sm:$0xff] %v20590_v5  ;;  %v23920_v5 = vld [vmem:[#allocation30_spill] sm:$0xff] }
 0x3d5   : > { %v7047_v1 = vadd.bf16 %v6767_v28, %v20139_v30  ;;  %v8845_v4 = vsel %vm8764_vm8, %v8844_v47, %v8843_v36  ;;  %v8847_v49 = vsel %vm8746_vm2, %v8846_v15, %v23885_v7  ;;  %v9866_v51 = vrot.slane %v23879_v14, 5 }
 0x3d6   : > { %v20585_v9 = vadd.bf16 %v23895_v26, %v20453_v44  ;;  %v1213_v44 = vadd.f32 %v20572_v0, %v23897_v22  ;;  %v7049_v32 = vadd.bf16 %v6769_v21, %v20145_v16  ;;  %v7051_v55 = vadd.bf16 %v6771_v42, %v20503_v60  ;;  %v20612_v16 = vpop.permute.xlu1 %12256 }
 0x3d7   : > { %11731 = vrot.lane.b32.xlu0 %v20588_v33, %s23846_s13  ;;  %v9865_v8 = vsel %vm8749_vm3, %v9864_v62, %v9863_v57  ;;  %v23898_v30 = vshrl.u32 %v20441_v25, 16  ;;  %v8245_v40 = vrot.slane %v7048_v20, %v16497_v23  ;;  %v1270_v11 = vmax.f32 %v1042_v38, 0.0  ;;  %23899 = vst [vmem:[#allocation58_spill] sm:$0xff] %v20612_v16 }
 0x3d8   : > { %v1271_v58 = vmax.f32 %v1045_v24, 0.0  ;;  %10310 = vrot.lane.b32.xlu1 %v20430_v52, %s23594_s16  ;;  %v23900_v60 = vshrl.u32 %v20457_v29, 16  ;;  %v8273_v15 = vrot.slane %v7050_v50, %v16497_v23  ;;  %v20620_v21 = vpack.c.b16 %v8847_v49, %v8845_v4 }
 0x3d9   : > { %v20607_v28 = vadd.bf16 %v23898_v30, %v20441_v25  ;;  %v9868_v25 = vrot.slane %v23881_v27, 4  ;;  %v23902_v42 = vshrl.u32 %v20463_v37, 16  ;;  %v7052_v62 = vadd.bf16 %v6772_v13, %v20528_v56 }
 0x3da   : > { %v20617_v47 = vadd.bf16 %v23900_v60, %v20457_v29  ;;  %23901 = vst [vmem:[#allocation97_spill] sm:$0xff] %v20620_v21  ;;  %v8231_v20 = vrot.slane %v7047_v1, %v16497_v23  ;;  %v9867_v31 = vsel %vm8752_vm4, %v9866_v51, %v9865_v8  ;;  %v23903_v29 = vshrl.u32 %v20474_v45, 16  ;;  %v20660_v8 = vpop.permute.xlu1 %10963 }
 0x3db   : > { %v20626_v36 = vadd.bf16 %v23902_v42, %v20463_v37  ;;  %v20636_v18 = vmax.f32 %v1213_v44, 0.0  ;;  %v8259_v24 = vrot.slane %v7049_v32, %v16497_v23  ;;  %v8287_v57 = vrot.slane %v7051_v55, %v16497_v23  ;;  %10914 = vrot.lane.b32.xlu0 %v20620_v21, %s23210_s18  ;;  %v20642_v37 = vpop.permute.xlu0 %9258  ;;  %v23905_v32 = vld [vmem:[#allocation16_spill] sm:$0xff]  ;;  %23907 = vst [vmem:[#allocation91_spill] sm:$0xff] %v20660_v8 }
 0x3dc   : > { %v20634_v38 = vadd.bf16 %v23903_v29, %v20474_v45  ;;  %23904 = vst [vmem:[#allocation15_spill] sm:$0xff] %v20642_v37  ;;  %v8252_v56 = vrot.slane %v8245_v40, %v16497_v23  ;;  %v1341_v26 = vpack.c.bf16 %v1271_v58, %v1270_v11  ;;  %11124 = vrot.lane.b32.xlu1 %v20430_v52, %s23597_s17  ;;  %v9870_v45 = vrot.slane %v23885_v7, 3  ;;  %v23921_v37 = vld [vmem:[#allocation47_spill] sm:$0xff] }
 0x3dd   : > { %v10212_v13 = vrot.slane %v23876_v53, 7  ;;  %v5246_v50 = vshrl.u32 %v20484_v54, 16  ;;  %v8280_v1 = vrot.slane %v8273_v15, %v16497_v23  ;;  %v15158_v4 = vpack.c.bf16 %v1271_v58, %v1271_v58 }
 0x3de   : > { %v9869_v49 = vsel %vm23226_vm5, %v9868_v25, %v9867_v31  ;;  %v5251_v51 = vshrl.u32 %v20478_v17, 16  ;;  %v8238_v22 = vrot.slane %v8231_v20, %v16497_v23  ;;  %v8301_v44 = vrot.slane %v7052_v62, %v16497_v23 }
 0x3df   : > { %v23906_v52 = vrot.slane %v23905_v32, %v16497_v23  ;;  %v8266_v53 = vrot.slane %v8259_v24, %v16497_v23  ;;  %v8294_v30 = vrot.slane %v8287_v57, %v16497_v23  ;;  %10507 = vrot.lane.b32.xlu0 %v20620_v21, %s23908_s20  ;;  %v9872_v40 = vrot.slane %v23888_v12, 2  ;;  %v20687_v29 = vpop.permute.xlu0 %11727 }
 0x3e0   : > { %v10214_v11 = vrot.slane %v23879_v14, 6  ;;  %v20668_v58 = vunpack.c.l.b16 %v8252_v56  ;;  %v2742_v60 = vrot.slane %v1341_v26, %v16497_v23  ;;  %12085 = vrot.lane.b32.xlu1 %v20555_v46, %s23908_s20  ;;  %v9871_v15 = vsel %vm23222_vm6, %v9870_v45, %v9869_v49  ;;  %23911 = vst [vmem:[#allocation148_spill] sm:$0xff] %v20687_v29  ;;  %v23922_v29 = vld [vmem:[#allocation53_spill] sm:$0xff] }
 0x3e1   : > { %v20658_v55 = vunpack.c.l.b16 %v23906_v52  ;;  %v10213_v25 = vsel %vm8746_vm2, %v10212_v13, %v23868_v61  ;;  %v23909_v42 = vmax.f32 %v20165_v6, 0.0  ;;  %v20682_v20 = vadd.bf16 %v5246_v50, %v20484_v54  ;;  %v23913_v52 = vld [vmem:[#allocation12_spill] sm:$0xff] }
 0x3e2   : > { %v20684_v14 = vunpack.c.l.b16 %v8280_v1  ;;  %v2749_v31 = vrot.slane %v15158_v4, %v16497_v23  ;;  %v20690_v24 = vadd.bf16 %v5251_v51, %v20478_v17  ;;  %v9874_v57 = vrot.slane %v23886_v59, 1 }
 0x3e3   : > { %v20679_v62 = vpack.c.bf16 %v20636_v18, %v23909_v42  ;;  %v9876_v61 = vrot.slane %v20658_v55, 7  ;;  %v10216_v6 = vrot.slane %v23881_v27, 5  ;;  %v8308_v56 = vrot.slane %v8301_v44, %v16497_v23  ;;  %11020 = vrot.lane.b32.xlu0 %v20588_v33, %s23201_s19  ;;  %v20707_v27 = vpop.permute.xlu1 %10556  ;;  %s23976_s19 = smov 80  }
 0x3e4   : > { %v20696_v26 = vunpack.c.l.b16 %v8266_v53  ;;  %v9873_v54 = vsel %vm8761_vm7, %v9872_v40, %v9871_v15  ;;  %v10215_v45 = vsel %vm8749_vm3, %v10214_v11, %v10213_v25  ;;  %v8715_v13 = vunpack.c.l.b16 %v8238_v22  ;;  %10967 = vrot.lane.b32.xlu1 %v20555_v46, %s23807_s15  ;;  %23912 = vst [vmem:[#allocation149_spill] sm:$0xff] %v20707_v27 }
 0x3e5   : > { %23910 = vst [vmem:[#allocation16_spill] sm:$0xff] %v20679_v62  ;;  %v20702_v17 = vunpack.c.l.b16 %v8294_v30  ;;  %v8864_v50 = vrot.slane %v20668_v58, 7  ;;  %v2750_v1 = vcombine.high %v2742_v60, %v2742_v60  ;;  %v9544_v4 = vrot.slane %v20684_v14, 7 }
 0x3e6   : > { %v2751_v49 = vcombine.high %v2749_v31, %v2749_v31  ;;  %v2758_v51 = vrot.slane %v2742_v60, %v16497_v23  ;;  %v10218_v44 = vrot.slane %v23885_v7, 4  ;;  %v9875_v32 = vsel %vm8764_vm8, %v9874_v57, %v9873_v54  ;;  %v20725_v7 = vpop.permute.xlu0 %9608 }
 0x3e7   : > { %v9877_v22 = vsel %vm8746_vm2, %v9876_v61, %v23889_v2  ;;  %v10065_v53 = vrot.slane %v23913_v52, %v16497_v23  ;;  %v10217_v30 = vsel %vm8752_vm4, %v10216_v6, %v10215_v45  ;;  %v20718_v40 = vunpack.c.l.b16 %v8308_v56  ;;  %9612 = vrot.lane.b32.xlu0 %v20588_v33, %s23203_s8  ;;  %23914 = vst [vmem:[#allocation12_spill] sm:$0xff] %v20725_v7  ;;  %v20743_v52 = vpop.permute.xlu1 %10910 }
 0x3e8   : > { %v2765_v60 = vrot.slane %v2749_v31, %v16497_v23  ;;  %v20728_v25 = vsel %vm8746_vm2, %v8864_v50, %v8715_v13  ;;  %v2772_v57 = vrot.slane %v2750_v1, %v16497_v23  ;;  %10560 = vrot.lane.b32.xlu1 %v20555_v46, %s23803_s14  ;;  %v10220_v61 = vrot.slane %v23888_v12, 3  ;;  %23915 = vst [vmem:[#allocation150_spill] sm:$0xff] %v20743_v52  ;;  %v23916_v1 = vld [vmem:[#allocation77_spill] sm:$0xff] }
 0x3e9   : > { %v2779_v6 = vrot.slane %v2751_v49, %v16497_v23  ;;  %v2780_v31 = vcombine.high %v2758_v51, %v2758_v51  ;;  %v20736_v56 = vpack.c.b16 %v9877_v22, %v9875_v32  ;;  %v10219_v54 = vsel %vm23226_vm5, %v10218_v44, %v10217_v30  ;;  %v23917_v49 = vld [vmem:[#allocation41_spill] sm:$0xff]  ;;  %v23918_v32 = vld [vmem:[#allocation92_spill] sm:$0xff] }
 0x3ea   : > { %v20741_v45 = vsel %vm8746_vm2, %v9544_v4, %v20696_v26  ;;  %v5286_v13 = vshrl.u32 %v2758_v51, 16  ;;  %v10127_v50 = vunpack.c.l.b16 %v10065_v53  ;;  %v8852_v11 = vrot.slane %v23916_v1, 5  ;;  %v20759_v46 = vpop.permute.xlu0 %11317 }
 0x3eb   : > { %v2781_v42 = vcombine.high %v2765_v60, %v2765_v60  ;;  %v5306_v15 = vshrl.u32 %v2765_v60, 16  ;;  %11784 = vrot.lane.b32.xlu0 %v20736_v56, %s23203_s8  ;;  %v10222_v12 = vrot.slane %v23886_v59, 2  ;;  %v23919_v44 = vrot.slane %v23918_v32, 6  ;;  %s23968_s8 = smov 24  }
 0x3ec   : > { %v2782_v4 = vcombine.high %v2772_v57, %v2772_v57  ;;  %v5291_v30 = vshrl.u32 %v2772_v57, 16  ;;  %v1050_v53 = vadd.f32 %v20572_v0, %v23920_v5  ;;  %12032 = vrot.lane.b32.xlu1 %v20620_v21, %s23594_s16  ;;  %v10221_v63 = vsel %vm23222_vm6, %v10220_v61, %v10219_v54 }
 0x3ed   : > { %v8851_v22 = vsel %vm8749_vm3, %v23919_v44, %v23917_v49  ;;  %v2783_v16 = vcombine.high %v2779_v6, %v2779_v6  ;;  %v5296_v48 = vshrl.u32 %v2780_v31, 16  ;;  %v5311_v7 = vshrl.u32 %v2779_v6, 16 }
 0x3ee   : > { %v8854_v59 = vrot.slane %v23921_v37, 4  ;;  %v6773_v27 = vadd.bf16 %v5286_v13, %v2758_v51  ;;  %v10224_v49 = vrot.slane %v23889_v2, 1  ;;  %v10226_v44 = vrot.slane %v10127_v50, 7  ;;  %v23923_v2 = vld [vmem:[#allocation120_spill] sm:$0xff]  ;;  %v20771_v13 = vpop.permute.xlu1 %11016 }
 0x3ef   : > { %v8853_v8 = vsel %vm8752_vm4, %v8852_v11, %v8851_v22  ;;  %v5316_v52 = vshrl.u32 %v2781_v42, 16  ;;  %v6777_v5 = vadd.bf16 %v5306_v15, %v2765_v60  ;;  %v1053_v3 = vadd.f32 %v20572_v0, %v23922_v29  ;;  %11073 = vrot.lane.b32.xlu0 %v20736_v56, %s23199_s23  ;;  %23924 = vst [vmem:[#allocation77_spill] sm:$0xff] %v20771_v13  ;;  %v23925_v22 = vld [vmem:[#allocation20_spill] sm:$0xff]  ;;  %s23940_s23 = smov 64  }
 0x3f0   : > { %v10223_v61 = vsel %vm8761_vm7, %v10222_v12, %v10221_v63  ;;  %v5301_v54 = vshrl.u32 %v2782_v4, 16  ;;  %v6774_v39 = vadd.bf16 %v5291_v30, %v2772_v57  ;;  %v1272_v62 = vmax.f32 %v1050_v53, 0.0  ;;  %12138 = vrot.lane.b32.xlu1 %v20588_v33, %s23803_s14 }
 0x3f1   : > { %v8856_v51 = vrot.slane %v23923_v2, 3  ;;  %v5321_v11 = vshrl.u32 %v2783_v16, 16  ;;  %v6775_v15 = vadd.bf16 %v5296_v48, %v2780_v31  ;;  %v6778_v60 = vadd.bf16 %v5311_v7, %v2779_v6  ;;  %v23926_v48 = vld [vmem:[#allocation65_spill] sm:$0xff] }
 0x3f2   : > { %v8855_v29 = vsel %vm23226_vm5, %v8854_v59, %v8853_v8  ;;  %v7053_v50 = vadd.bf16 %v6773_v27, %v20585_v9  ;;  %v20777_v63 = vadd.f32 %v20572_v0, %v23925_v22  ;;  %v10225_v57 = vsel %vm8764_vm8, %v10224_v49, %v10223_v61  ;;  %v20788_v9 = vpop.permute.xlu0 %9958  ;;  %v23932_v49 = vld [vmem:[#allocation121_spill] sm:$0xff] }
 0x3f3   : > { %v10227_v12 = vsel %vm8746_vm2, %v10226_v44, %v20658_v55  ;;  %v6779_v30 = vadd.bf16 %v5316_v52, %v2781_v42  ;;  %v7057_v53 = vadd.bf16 %v6777_v5, %v20617_v47  ;;  %v20783_v13 = vmax.f32 %v1053_v3, 0.0  ;;  %9962 = vrot.lane.b32.xlu0 %v20736_v56, %s23214_s9  ;;  %23927 = vst [vmem:[#allocation41_spill] sm:$0xff] %v20788_v9  ;;  %v23929_v42 = vld [vmem:[#allocation49_spill] sm:$0xff]  ;;  %v20805_v44 = vpop.permute.xlu1 %10503 }
 0x3f4   : > { %v8858_v8 = vrot.slane %v23926_v48, 2  ;;  %v6776_v27 = vadd.bf16 %v5301_v54, %v2782_v4  ;;  %v7054_v7 = vadd.bf16 %v6774_v39, %v20626_v36  ;;  %10613 = vrot.lane.b32.xlu1 %v20588_v33, %s23928_s21  ;;  %v8857_v55 = vsel %vm23222_vm6, %v8856_v51, %v8855_v29  ;;  %v23931_v39 = vld [vmem:[#allocation62_spill] sm:$0xff]  ;;  %23933 = vst [vmem:[#allocation92_spill] sm:$0xff] %v20805_v44 }
 0x3f5   : > { %v23930_v47 = vrot.slane %v23918_v32, 7  ;;  %v6780_v6 = vadd.bf16 %v5321_v11, %v2783_v16  ;;  %v7055_v31 = vadd.bf16 %v6775_v15, %v20549_v43  ;;  %v7058_v52 = vadd.bf16 %v6778_v60, %v20634_v38 }
 0x3f6   : > { %v20800_v59 = vpack.c.b16 %v10227_v12, %v10225_v57  ;;  %v8315_v4 = vrot.slane %v7053_v50, %v16497_v23  ;;  %v8860_v36 = vrot.slane %v23931_v39, 1  ;;  %v8862_v33 = vrot.slane %v23932_v49, 7  ;;  %v20825_v22 = vpop.permute.xlu0 %11833  ;;  %v23935_v12 = vld [vmem:[#allocation35_spill] sm:$0xff] }
 0x3f7   : > { %v9179_v3 = vsel %vm8746_vm2, %v23930_v47, %v23929_v42  ;;  %v9182_v5 = vrot.slane %v23921_v37, 5  ;;  %v9036_v32 = vrot.slane %v7057_v53, %v16497_v23  ;;  %v8859_v43 = vsel %vm8761_vm7, %v8858_v8, %v8857_v55 }
 0x3f8   : > { %11126 = vrot.lane.b32.xlu0 %v20800_v59, %s23597_s17  ;;  %v23934_v16 = vrot.slane %v23916_v1, 6  ;;  %v9530_v61 = vrot.slane %v23921_v37, 6  ;;  %v7059_v54 = vadd.bf16 %v6779_v30, %v20682_v20  ;;  %v8329_v51 = vrot.slane %v7054_v7, %v16497_v23  ;;  %11321 = vrot.lane.b32.xlu1 %v20620_v21, %s23716_s29 }
 0x3f9   : > { %v1342_v11 = vpack.c.bf16 %v20783_v13, %v1272_v62  ;;  %v7056_v60 = vadd.bf16 %v6776_v27, %v20607_v28  ;;  %v7060_v29 = vadd.bf16 %v6780_v6, %v20690_v24  ;;  %v8343_v50 = vrot.slane %v7055_v31, %v16497_v23  ;;  %v23936_v27 = vld [vmem:[#allocation123_spill] sm:$0xff] }
 0x3fa   : > { %v9181_v38 = vsel %vm8749_vm3, %v23934_v16, %v9179_v3  ;;  %v9184_v57 = vrot.slane %v23923_v2, 4  ;;  %v8861_v20 = vsel %vm8764_vm8, %v8860_v36, %v8859_v43  ;;  %v8863_v62 = vsel %vm8746_vm2, %v8862_v33, %v23935_v12  ;;  %v20848_v3 = vpop.permute.xlu1 %10609 }
 0x3fb   : > { %v9183_v30 = vsel %vm8752_vm4, %v9182_v5, %v9181_v38  ;;  %v9532_v53 = vrot.slane %v23923_v2, 5  ;;  %v8322_v8 = vrot.slane %v8315_v4, %v16497_v23  ;;  %v9043_v28 = vrot.slane %v9036_v32, %v16497_v23  ;;  %23937 = vst [vmem:[#allocation30_spill] sm:$0xff] %v20848_v3 }
 0x3fc   : > { %v9386_v24 = vrot.slane %v7058_v52, %v16497_v23  ;;  %10312 = vrot.lane.b32.xlu0 %v20800_v59, %s23594_s16  ;;  %v9531_v7 = vsel %vm8749_vm3, %v9530_v61, %v23936_v27  ;;  %v8336_v55 = vrot.slane %v8329_v51, %v16497_v23  ;;  %v20842_v42 = vrot.slane %v7059_v54, %v16497_v23  ;;  %v20870_v54 = vpop.permute.xlu0 %10308 }
 0x3fd   : > { %v15159_v47 = vpack.c.bf16 %v20783_v13, %v20783_v13  ;;  %12191 = vrot.lane.b32.xlu1 %v20736_v56, %s23928_s21  ;;  %v9186_v6 = vrot.slane %v23926_v48, 3  ;;  %v8357_v31 = vrot.slane %v7056_v60, %v16497_v23  ;;  %v20852_v52 = vpack.c.b16 %v8863_v62, %v8861_v20  ;;  %23939 = vst [vmem:[#allocation53_spill] sm:$0xff] %v20870_v54 }
 0x3fe   : > { %v9185_v4 = vsel %vm23226_vm5, %v9184_v57, %v9183_v30  ;;  %v9534_v36 = vrot.slane %v23926_v48, 4  ;;  %v8350_v33 = vrot.slane %v8343_v50, %v16497_v23  ;;  %v20858_v5 = vrot.slane %v7060_v29, %v16497_v23 }
 0x3ff   : > { %23938 = vst [vmem:[#allocation47_spill] sm:$0xff] %v20852_v52  ;;  %v2791_v13 = vrot.slane %v1342_v11, %v16497_v23  ;;  %v9533_v32 = vsel %vm8752_vm4, %v9532_v53, %v9531_v7  ;;  %v20862_v43 = vunpack.c.l.b16 %v8322_v8  ;;  %v20864_v16 = vunpack.c.l.b16 %v9043_v28  ;;  %v20888_v28 = vpop.permute.xlu1 %11780 }
 0x400   : > { %v9393_v38 = vrot.slane %v9386_v24, %v16497_v23  ;;  %12034 = vrot.lane.b32.xlu0 %v20852_v52, %s23594_s16  ;;  %v9188_v61 = vrot.slane %v23931_v39, 2  ;;  %v9187_v11 = vsel %vm23222_vm6, %v9186_v6, %v9185_v4  ;;  %v9536_v60 = vrot.slane %v23931_v39, 3 }
 0x401   : > { %10666 = vrot.lane.b32.xlu1 %v20736_v56, %s23940_s23  ;;  %v9878_v29 = vrot.slane %v23921_v37, 7  ;;  %v8364_v50 = vrot.slane %v8357_v31, %v16497_v23  ;;  %v2798_v57 = vrot.slane %v15159_v47, %v16497_v23  ;;  %v9192_v20 = vrot.slane %v20158_v35, 7 }
 0x402   : > { %v9535_v62 = vsel %vm23226_vm5, %v9534_v36, %v9533_v32  ;;  %v20883_v30 = vunpack.c.l.b16 %v8336_v55  ;;  %v20885_v53 = vunpack.c.l.b16 %v8350_v33  ;;  %v2799_v8 = vcombine.high %v2791_v13, %v2791_v13  ;;  %v23941_v55 = vld [vmem:[#allocation54_spill] sm:$0xff] }
 0x403   : > { %v9190_v56 = vrot.slane %v23935_v12, 1  ;;  %v2807_v24 = vrot.slane %v2791_v13, %v16497_v23  ;;  %v9189_v27 = vsel %vm8761_vm7, %v9188_v61, %v9187_v11  ;;  %v9538_v7 = vrot.slane %v23935_v12, 2  ;;  %v20910_v11 = vpop.permute.xlu0 %12030 }
 0x404   : > { %11323 = vrot.lane.b32.xlu0 %v20852_v52, %s23716_s29  ;;  %v9880_v47 = vrot.slane %v23923_v2, 6  ;;  %v1061_v6 = vadd.f32 %v20572_v0, %v23941_v55  ;;  %v9537_v31 = vsel %vm23222_vm6, %v9536_v60, %v9535_v62  ;;  %v9879_v4 = vsel %vm8746_vm2, %v9878_v29, %v23916_v1 }
 0x405   : > { %12244 = vrot.lane.b32.xlu1 %v20800_v59, %s23940_s23  ;;  %v10228_v36 = vrot.slane %v23923_v2, 7  ;;  %v20904_v33 = vunpack.c.l.b16 %v8364_v50  ;;  %v20906_v13 = vunpack.c.l.b16 %v9393_v38  ;;  %v2800_v32 = vcombine.high %v2798_v57, %v2798_v57 }
 0x406   : > { %v9193_v61 = vsel %vm8746_vm2, %v9192_v20, %v23932_v49  ;;  %v9191_v55 = vsel %vm8764_vm8, %v9190_v56, %v9189_v27  ;;  %v9540_v51 = vrot.slane %v23932_v49, 1  ;;  %v9542_v60 = vrot.slane %v20185_v10, 7  ;;  %v16070_v20 = vld [vmem:[%s22982_s3 + $0x38] sm:$0xff]   ;;  %v20934_v27 = vpop.permute.xlu1 %11069 }
 0x407   : > { %v9882_v1 = vrot.slane %v23926_v48, 5  ;;  %v20917_v2 = vrot.slane %v2798_v57, %v16497_v23  ;;  %v9539_v38 = vsel %vm8761_vm7, %v9538_v7, %v9537_v31  ;;  %v9881_v29 = vsel %vm8749_vm3, %v9880_v47, %v9879_v4 }
 0x408   : > { %10509 = vrot.lane.b32.xlu0 %v20852_v52, %s23908_s20  ;;  %v10230_v50 = vrot.slane %v23926_v48, 6  ;;  %v20928_v62 = vrot.slane %v2799_v8, %v16497_v23  ;;  %v20930_v56 = vcombine.high %v2807_v24, %v2807_v24  ;;  %v1275_v57 = vmax.f32 %v1061_v6, 0.0 }
 0x409   : > { %11837 = vrot.lane.b32.xlu1 %v20800_v59, %s23214_s9  ;;  %v10229_v7 = vsel %vm8746_vm2, %v10228_v36, %v23921_v37  ;;  %v5326_v47 = vshrl.u32 %v2807_v24, 16  ;;  %v20938_v48 = vpack.c.b16 %v9193_v61, %v9191_v55  ;;  %v9884_v31 = vrot.slane %v23931_v39, 4 }
 0x40a   : > { %v9541_v4 = vsel %vm8764_vm8, %v9540_v51, %v9539_v38  ;;  %v9543_v8 = vsel %vm8746_vm2, %v9542_v60, %v20158_v35  ;;  %v9883_v6 = vsel %vm8752_vm4, %v9882_v1, %v9881_v29  ;;  %v10232_v15 = vrot.slane %v23931_v39, 5  ;;  %v20957_v51 = vpop.permute.xlu0 %10505  ;;  %v16071_v39 = vld [vmem:[%s22982_s3 + $0x30] sm:$0xff]  }
 0x40b   : > { %23942 = vst [vmem:[#allocation120_spill] sm:$0xff] %v20938_v48  ;;  %v23206_v54 = vmov 0   ;;  %v20948_v9 = vrot.slane %v2800_v32, %v16497_v23  ;;  %v20952_v37 = vcombine.high %v20917_v2, %v20917_v2  ;;  %v5346_v36 = vshrl.u32 %v20917_v2, 16  ;;  %23943 = vst [vmem:[#allocation20_spill] sm:$0xff] %v20957_v51 }
 0x40c   : > { %13410 = vmatprep.subr.bf16.mxu1 %v23206_v54  ;;  %10562 = vrot.lane.b32.xlu0 %v20938_v48, %s23803_s14  ;;  %v10231_v61 = vsel %vm8749_vm3, %v10230_v50, %v10229_v7  ;;  %v20965_v32 = vcombine.high %v20928_v62, %v20928_v62  ;;  %v5331_v55 = vshrl.u32 %v20928_v62, 16  ;;  %v15160_v60 = vpack.c.bf16 %v1275_v57, %v1275_v57 }
 0x40d   : > { %13411 = vmatpush1.bf16.msra.mxu1 %v16070_v20  ;;  %10719 = vrot.lane.b32.xlu1 %v20800_v59, %s23212_s22  ;;  %v9886_v1 = vrot.slane %v23935_v12, 3  ;;  %v20972_v38 = vpack.c.b16 %v9543_v8, %v9541_v4  ;;  %v23944_v29 = vrot.slane %v20135_v19, %v16497_v23  ;;  %v9885_v20 = vsel %vm23226_vm5, %v9884_v31, %v9883_v6  ;;  %v20984_v59 = vpop.permute.xlu1 %10662  ;;  %v23946_v31 = vld [vmem:[#allocation85_spill] sm:$0xff] }
 0x40e   : > { %13412 = vmatprep.subr.bf16.mxu1 %v23206_v54  ;;  %v10234_v7 = vrot.slane %v23935_v12, 4  ;;  %v5336_v51 = vshrl.u32 %v20930_v56, 16  ;;  %v20982_v21 = vadd.bf16 %v5326_v47, %v2807_v24  ;;  %23945 = vst [vmem:[#allocation65_spill] sm:$0xff] %v20984_v59  ;;  %v10079_v54 = vrot.slane %v20180_v41, %v16497_v23  ;;  %v16072_v41 = vld [vmem:[%s22982_s3 + $0x28] sm:$0xff]  }
 0x40f   : > { %v20977_v50 = vunpack.c.l.b16 %v23944_v29  ;;  %v10233_v4 = vsel %vm8752_vm4, %v10232_v15, %v10231_v61  ;;  %v20991_v19 = vcombine.high %v20948_v9, %v20948_v9  ;;  %v1066_v12 = vadd.f32 %v20572_v0, %v23946_v31  ;;  %v23947_v15 = vld [vmem:[#allocation86_spill] sm:$0xff] }
 0x410   : > { %11733 = vrot.lane.b32.xlu0 %v20972_v38, %s23846_s13  ;;  %v9888_v24 = vrot.slane %v23932_v49, 2  ;;  %v1069_v47 = vadd.f32 %v20572_v0, %v23947_v15  ;;  %v9887_v6 = vsel %vm23222_vm6, %v9886_v1, %v9885_v20  ;;  %v10236_v61 = vrot.slane %v23932_v49, 3  ;;  %v21016_v0 = vpop.permute.xlu0 %12083 }
 0x411   : > { %13413 = vmatpush1.bf16.msra.mxu1 %v16071_v39  ;;  %10916 = vrot.lane.b32.xlu1 %v20852_v52, %s23210_s18  ;;  %v23948_v29 = vrot.slane %v20696_v26, 7  ;;  %v23949_v39 = vmov 0   ;;  %v23950_v8 = vmax.f32 %v20777_v63, 0.0  ;;  %v2847_v3 = vrot.slane %v15160_v60, %v16497_v23  ;;  %s23958_s18 = smov 16  }
 0x412   : > { %13414 = vmatprep.subr.bf16.mxu1 %v23949_v39  ;;  %v9892_v15 = vrot.slane %v20977_v50, 7  ;;  %v10235_v1 = vsel %vm23226_vm5, %v10234_v7, %v10233_v4  ;;  %v9890_v20 = vrot.slane %v20158_v35, 1  ;;  %v10128_v52 = vunpack.c.l.b16 %v10079_v54  ;;  %v16073_v54 = vld [vmem:[%s22982_s3 + $0x20] sm:$0xff]  }
 0x413   : > { %v9195_v31 = vsel %vm8746_vm2, %v23948_v29, %v20668_v58  ;;  %v1343_v59 = vpack.c.bf16 %v1275_v57, %v23950_v8  ;;  %v9198_v58 = vrot.slane %v20702_v17, 5  ;;  %v21024_v29 = vadd.bf16 %v5346_v36, %v20917_v2  ;;  %v21039_v8 = vpop.permute.xlu1 %11122 }
 0x414   : > { %12140 = vrot.lane.b32.xlu0 %v20972_v38, %s23803_s14  ;;  %v9889_v63 = vsel %vm8761_vm7, %v9888_v24, %v9887_v6  ;;  %v10238_v57 = vrot.slane %v20158_v35, 2  ;;  %v23951_v60 = vrot.slane %v20684_v14, 6  ;;  %v5341_v4 = vshrl.u32 %v20965_v32, 16  ;;  %23952 = vst [vmem:[#allocation49_spill] sm:$0xff] %v21039_v8 }
 0x415   : > { %13415 = vmatpush1.bf16.msra.mxu1 %v16072_v41  ;;  %v1276_v2 = vmax.f32 %v1066_v12, 0.0  ;;  %v1277_v36 = vmax.f32 %v1069_v47, 0.0  ;;  %12087 = vrot.lane.b32.xlu1 %v20938_v48, %s23908_s20  ;;  %v10237_v35 = vsel %vm23222_vm6, %v10236_v61, %v10235_v1  ;;  %v2840_v24 = vrot.slane %v1343_v59, %v16497_v23  ;;  %v21058_v59 = vpop.permute.xlu0 %10558 }
 0x416   : > { %v9197_v7 = vsel %vm8749_vm3, %v23951_v60, %v9195_v31  ;;  %13416 = vmatprep.subr.bf16.mxu1 %v23949_v39  ;;  %v2849_v41 = vcombine.high %v2847_v3, %v2847_v3  ;;  %v9893_v6 = vsel %vm8746_vm2, %v9892_v15, %v20185_v10  ;;  %v9200_v31 = vrot.slane %v20718_v40, 4  ;;  %23953 = vst [vmem:[#allocation62_spill] sm:$0xff] %v21058_v59 }
 0x417   : > { %v9891_v12 = vsel %vm8764_vm8, %v9890_v20, %v9889_v63  ;;  %v10240_v47 = vrot.slane %v20185_v10, 1  ;;  %v10242_v60 = vrot.slane %v10128_v52, 7  ;;  %v9199_v49 = vsel %vm8752_vm4, %v9198_v58, %v9197_v7  ;;  %v16074_v10 = vld [vmem:[%s22982_s3 + $0x18] sm:$0xff]  }
 0x418   : > { %v21051_v44 = vadd.bf16 %v5331_v55, %v20928_v62  ;;  %v21054_v61 = vrot.slane %v2847_v3, %v16497_v23  ;;  %10615 = vrot.lane.b32.xlu0 %v20972_v38, %s23928_s21  ;;  %v10239_v15 = vsel %vm8761_vm7, %v10238_v57, %v10237_v35  ;;  %v9546_v1 = vrot.slane %v20702_v17, 6  ;;  %v21080_v57 = vpop.permute.xlu1 %10715 }
 0x419   : > { %13417 = vmatpush1.bf16.msra.mxu1 %v16073_v54  ;;  %v21066_v52 = vadd.bf16 %v5336_v51, %v20930_v56  ;;  %v1344_v62 = vpack.c.bf16 %v1277_v36, %v1276_v2  ;;  %v15161_v3 = vpack.c.bf16 %v1277_v36, %v1277_v36  ;;  %9264 = vrot.lane.b32.xlu1 %v20938_v48, %s23846_s13  ;;  %v9202_v55 = vrot.slane %v20862_v43, 3 }
 0x41a   : > { %13418 = vmatprep.subr.bf16.mxu1 %v23949_v39  ;;  %v21073_v20 = vrot.slane %v2849_v41, %v16497_v23  ;;  %v2879_v58 = vcombine.high %v21054_v61, %v21054_v61  ;;  %v21077_v63 = vpack.c.b16 %v9893_v6, %v9891_v12  ;;  %v9201_v56 = vsel %vm23226_vm5, %v9200_v31, %v9199_v49 }
 0x41b   : > { %v2848_v51 = vcombine.high %v2840_v24, %v2840_v24  ;;  %23954 = vst [vmem:[#allocation121_spill] sm:$0xff] %v21080_v57  ;;  %v10241_v7 = vsel %vm8764_vm8, %v10240_v47, %v10239_v15  ;;  %v10243_v54 = vsel %vm8746_vm2, %v10242_v60, %v20977_v50  ;;  %v9548_v2 = vrot.slane %v20718_v40, 5  ;;  %v16075_v50 = vld [vmem:[%s22982_s3 + $0x10] sm:$0xff]  }
 0x41c   : > { %v23955_v36 = vshrl.u32 %v20948_v9, 16  ;;  %v2881_v41 = vcombine.high %v21073_v20, %v21073_v20  ;;  %10668 = vrot.lane.b32.xlu0 %v21077_v63, %s23940_s23  ;;  %v9204_v49 = vrot.slane %v20883_v30, 2  ;;  %v9547_v6 = vsel %vm8749_vm3, %v9546_v1, %v20741_v45  ;;  %v21115_v1 = vpop.permute.xlu0 %10965 }
 0x41d   : > { %13419 = vmatpush1.bf16.msra.mxu1 %v16074_v10  ;;  %v5361_v31 = vshrl.u32 %v20991_v19, 16  ;;  %v2889_v12 = vrot.slane %v1344_v62, %v16497_v23  ;;  %10969 = vrot.lane.b32.xlu1 %v20938_v48, %s23807_s15  ;;  %v9203_v47 = vsel %vm23222_vm6, %v9202_v55, %v9201_v56  ;;  %v5396_v45 = vshrl.u32 %v2879_v58, 16  ;;  %23956 = vst [vmem:[#allocation35_spill] sm:$0xff] %v21115_v1  ;;  %v16076_v48 = vld [vmem:[%s22982_s3 + $0x8] sm:$0xff]  }
 0x41e   : > { %v21089_v35 = vadd.bf16 %v23955_v36, %v20948_v9  ;;  %v21103_v9 = vrot.slane %v2840_v24, %v16497_v23  ;;  %13420 = vmatprep.subr.bf16.mxu1 %v23949_v39  ;;  %v21111_v60 = vrot.slane %v15161_v3, %v16497_v23  ;;  %v21113_v15 = vpack.c.b16 %v10243_v54, %v10241_v7 }
 0x41f   : > { %v9550_v24 = vrot.slane %v20862_v43, 4  ;;  %v21119_v10 = vrot.slane %v2848_v51, %v16497_v23  ;;  %v9206_v62 = vrot.slane %v20885_v53, 1  ;;  %v9208_v36 = vrot.slane %v20864_v16, 7 }
 0x420   : > { %v9549_v55 = vsel %vm8752_vm4, %v9548_v2, %v9547_v6  ;;  %v21125_v56 = vadd.bf16 %v5341_v4, %v20965_v32  ;;  %v23957_v3 = vshrl.u32 %v20952_v37, 16  ;;  %v5401_v54 = vshrl.u32 %v2881_v41, 16  ;;  %11839 = vrot.lane.b32.xlu0 %v21113_v15, %s23214_s9  ;;  %v23961_v6 = vld [vmem:[#allocation109_spill] sm:$0xff] }
 0x421   : > { %v9205_v51 = vsel %vm8761_vm7, %v9204_v49, %v9203_v47  ;;  %13421 = vmatpush1.bf16.msra.mxu1 %v16075_v50  ;;  %v21139_v2 = vadd.bf16 %v5361_v31, %v20991_v19  ;;  %v5371_v32 = vshrl.u32 %v21119_v10, 16  ;;  %11786 = vrot.lane.b32.xlu1 %v21077_v63, %s23958_s18  ;;  %v9552_v4 = vrot.slane %v20883_v30, 3  ;;  %v23960_v49 = vld [vmem:[#allocation34_spill] sm:$0xff] }
 0x422   : > { %v21130_v7 = vadd.bf16 %v23957_v3, %v20952_v37  ;;  %v21144_v37 = vpop.permute.xlu1 %11745  ;;  %13422 = vmatprep.subr.bf16.mxu1 %v23949_v39  ;;  %v23962_v50 = vrot.slane %v23961_v6, 7  ;;  %v21156_v19 = vcombine.high %v21103_v9, %v21103_v9  ;;  %v6795_v31 = vadd.bf16 %v5396_v45, %v2879_v58  ;;  %v21168_v58 = vpop.permute.xlu0 %11782 }
 0x423   : > { %23959 = vst [vmem:[#allocation123_spill] sm:$0xff] %v21144_v37  ;;  %v2897_v3 = vcombine.high %v2889_v12, %v2889_v12  ;;  %v9551_v59 = vsel %vm23226_vm5, %v9550_v24, %v9549_v55  ;;  %v2898_v37 = vcombine.high %v21111_v60, %v21111_v60  ;;  %v9207_v1 = vsel %vm8764_vm8, %v9206_v62, %v9205_v51 }
 0x424   : > { %v21152_v47 = vsel %vm8746_vm2, %v23962_v50, %v23960_v49  ;;  %v9209_v57 = vsel %vm8746_vm2, %v9208_v36, %v20904_v33  ;;  %v8868_v6 = vrot.slane %v20684_v14, 5  ;;  %v6796_v49 = vadd.bf16 %v5401_v54, %v2881_v41  ;;  %10721 = vrot.lane.b32.xlu0 %v21113_v15, %s23212_s22  ;;  %v16077_v36 = vld [vmem:[%s22982_s3] sm:$0xff]   ;;  %s23970_s22 = smov 96  }
 0x425   : > { %23963 = vst [vmem:[#allocation54_spill] sm:$0xff] %v21152_v47  ;;  %v2905_v50 = vrot.slane %v2889_v12, %v16497_v23  ;;  %v9554_v45 = vrot.slane %v20885_v53, 2  ;;  %v23964_v24 = vrot.slane %v20696_v26, 6  ;;  %13423 = vmatpush1.bf16.msra.mxu1 %v16076_v48  ;;  %v21179_v41 = vadd.bf16 %v5371_v32, %v21119_v10  ;;  %12193 = vrot.lane.b32.xlu1 %v21077_v63, %s23928_s21 }
 0x426   : > { %v21183_v12 = vrot.slane %v21111_v60, %v16497_v23  ;;  %v9553_v55 = vsel %vm23222_vm6, %v9552_v4, %v9551_v59  ;;  %v9894_v26 = vrot.slane %v20702_v17, 7  ;;  %13424 = vmatprep.subr.bf16.mxu1 %v23949_v39  ;;  %v7061_v48 = vadd.bf16 %v6795_v31, %v20982_v21  ;;  %v21198_v32 = vpop.permute.xlu1 %11798 }
 0x427   : > { %v8867_v62 = vsel %vm8749_vm3, %v23964_v24, %v20728_v25  ;;  %v16078_v25 = vld [vmem:[%s22982_s3 + $0x60] ss:$0 sps:$4 sm:$0xff]   ;;  %v21194_v54 = vpack.c.b16 %v9209_v57, %v9207_v1  ;;  %v8870_v60 = vrot.slane %v20702_v17, 4  ;;  %v2919_v51 = vrot.slane %v2897_v3, %v16497_v23  ;;  %23966 = vst [vmem:[#allocation86_spill] sm:$0xff] %v21198_v32 }
 0x428   : > { %v9556_v59 = vrot.slane %v20904_v33, 1  ;;  %v9558_v4 = vrot.slane %v20906_v13, 7  ;;  %v8869_v24 = vsel %vm8752_vm4, %v8868_v6, %v8867_v62  ;;  %v7062_v47 = vadd.bf16 %v6796_v49, %v21051_v44 }
 0x429   : > { %23965 = vst [vmem:[#allocation85_spill] sm:$0xff] %v21194_v54  ;;  %v5406_v8 = vshrl.u32 %v2905_v50, 16  ;;  %12089 = vrot.lane.b32.xlu0 %v21194_v54, %s23908_s20  ;;  %v9555_v21 = vsel %vm8761_vm7, %v9554_v45, %v9553_v55  ;;  %v9896_v57 = vrot.slane %v20718_v40, 6  ;;  %13425 = vmatpush1.bf16.msra.mxu1 %v16077_v36  ;;  %v8872_v1 = vrot.slane %v20718_v40, 3  ;;  %v21222_v62 = vpop.permute.xlu0 %12136 }
 0x42a   : > { %9614 = vrot.lane.b32.xlu1 %v20972_v38, %s23958_s18  ;;  %v9895_v31 = vsel %vm8746_vm2, %v9894_v26, %v20684_v14  ;;  %v10244_v6 = vrot.slane %v20718_v40, 7  ;;  %13432 = vmatprep.subr.bf16.mxu1 %v23949_v39  ;;  %v13408_v44 = vsel %vm13406_vm12, %v16078_v25, 0  ;;  %v21217_v3 = vrot.slane %v7061_v48, %v16497_v23  ;;  %v21227_v14 = vpop.permute.xlu1 %11319 }
 0x42b   : > { %v21220_v49 = vrot.slane %v2898_v37, %v16497_v23  ;;  %v2927_v45 = vcombine.high %v2905_v50, %v2905_v50  ;;  %v8871_v36 = vsel %vm23226_vm5, %v8870_v60, %v8869_v24  ;;  %v21225_v55 = vcombine.high %v2919_v51, %v2919_v51  ;;  %23967 = vst [vmem:[#allocation34_spill] sm:$0xff] %v21227_v14 }
 0x42c   : > { %v9557_v40 = vsel %vm8764_vm8, %v9556_v59, %v9555_v21  ;;  %v9559_v26 = vsel %vm8746_vm2, %v9558_v4, %v20864_v16  ;;  %v9898_v25 = vrot.slane %v20862_v43, 5  ;;  %v5411_v48 = vshrl.u32 %v2919_v51, 16  ;;  %v16079_v59 = vld [vmem:[%s22982_s3 + $0x58] sm:$0xff]  }
 0x42d   : > { %9266 = vrot.lane.b32.xlu0 %v21194_v54, %s23846_s13  ;;  %v8874_v37 = vrot.slane %v20862_v43, 2  ;;  %v9897_v32 = vsel %vm8749_vm3, %v9896_v57, %v9895_v31  ;;  %v10246_v60 = vrot.slane %v20862_v43, 6  ;;  %13433 = vmatpush2.bf16.msra.mxu1 %v13408_v44  ;;  %v6797_v4 = vadd.bf16 %v5406_v8, %v2905_v50  ;;  %v21251_v31 = vpop.permute.xlu0 %12189 }
 0x42e   : > { %9964 = vrot.lane.b32.xlu1 %v21077_v63, %s23968_s8  ;;  %v8873_v21 = vsel %vm23222_vm6, %v8872_v1, %v8871_v36  ;;  %v10245_v14 = vsel %vm8746_vm2, %v10244_v6, %v20702_v17  ;;  %13434 = vmatprep.subr.bf16.mxu1 %v23949_v39  ;;  %v21249_v43 = vrot.slane %v7062_v47, %v16497_v23  ;;  %v5416_v57 = vshrl.u32 %v2927_v45, 16  ;;  %v21256_v50 = vpop.permute.xlu1 %10912 }
 0x42f   : > { %v21253_v44 = vpack.c.b16 %v9559_v26, %v9557_v40  ;;  %v9900_v8 = vrot.slane %v20883_v30, 4  ;;  %23969 = vst [vmem:[#allocation151_spill] sm:$0xff] %v21256_v50  ;;  %v8876_v24 = vrot.slane %v20883_v30, 1  ;;  %v8878_v1 = vrot.slane %v20904_v33, 7  ;;  %v16080_v50 = vld [vmem:[%s22982_s3 + $0x50] sm:$0xff]  }
 0x430   : > { %v9899_v17 = vsel %vm8752_vm4, %v9898_v25, %v9897_v32  ;;  %v10248_v6 = vrot.slane %v20883_v30, 5  ;;  %v5366_v47 = vshrl.u32 %v21103_v9, 16  ;;  %v6798_v36 = vadd.bf16 %v5411_v48, %v2919_v51 }
 0x431   : > { %12142 = vrot.lane.b32.xlu0 %v21253_v44, %s23803_s14  ;;  %v8875_v40 = vsel %vm8761_vm7, %v8874_v37, %v8873_v21  ;;  %v10247_v26 = vsel %vm8749_vm3, %v10246_v60, %v10245_v14  ;;  %13435 = vmatpush2.bf16.msra.mxu1 %v16079_v59  ;;  %v21272_v32 = vcombine.high %v21183_v12, %v21183_v12  ;;  %v5421_v30 = vshrl.u32 %v21225_v55, 16  ;;  %v21280_v48 = vpop.permute.xlu0 %10611 }
 0x432   : > { %v7063_v51 = vadd.bf16 %v6797_v4, %v21066_v52  ;;  %11022 = vrot.lane.b32.xlu1 %v20972_v38, %s23970_s22  ;;  %v9902_v25 = vrot.slane %v20885_v53, 3  ;;  %13436 = vmatprep.subr.bf16.mxu1 %v23949_v39  ;;  %v6799_v14 = vadd.bf16 %v5416_v57, %v2927_v45  ;;  %23971 = vst [vmem:[#allocation152_spill] sm:$0xff] %v21280_v48  ;;  %v10250_v21 = vrot.slane %v20885_v53, 4  ;;  %v21289_v52 = vpop.permute.xlu1 %9260 }
 0x433   : > { %v23972_v37 = vrot.slane %v20842_v42, %v16497_v23  ;;  %v9901_v59 = vsel %vm23226_vm5, %v9900_v8, %v9899_v17  ;;  %v8877_v38 = vsel %vm8764_vm8, %v8876_v24, %v8875_v40  ;;  %v8879_v4 = vsel %vm8746_vm2, %v8878_v1, %v20885_v53 }
 0x434   : > { %v10093_v45 = vrot.slane %v20858_v5, %v16497_v23  ;;  %v10249_v57 = vsel %vm8752_vm4, %v10248_v6, %v10247_v26  ;;  %v8392_v42 = vrot.slane %v21249_v43, %v16497_v23  ;;  %v2930_v8 = vcombine.high %v21220_v49, %v21220_v49  ;;  %v16081_v5 = vld [vmem:[%s22982_s3 + $0x48] sm:$0xff]  }
 0x435   : > { %v21285_v60 = vunpack.c.l.b16 %v23972_v37  ;;  %v7064_v17 = vadd.bf16 %v6798_v36, %v21125_v56  ;;  %9616 = vrot.lane.b32.xlu0 %v21253_v44, %s23958_s18  ;;  %v9904_v24 = vrot.slane %v20904_v33, 2  ;;  %13437 = vmatpush2.bf16.msra.mxu1 %v16080_v50  ;;  %v5426_v53 = vshrl.u32 %v21183_v12, 16  ;;  %v21317_v36 = vpop.permute.xlu0 %10664 }
 0x436   : > { %v8399_v1 = vrot.slane %v7063_v51, %v16497_v23  ;;  %11075 = vrot.lane.b32.xlu1 %v21077_v63, %s23973_s0  ;;  %v9903_v43 = vsel %vm23222_vm6, %v9902_v25, %v9901_v59  ;;  %v10252_v56 = vrot.slane %v20904_v33, 3  ;;  %13438 = vmatprep.subr.bf16.mxu1 %v23949_v39  ;;  %v6800_v6 = vadd.bf16 %v5421_v30, %v21225_v55  ;;  %v21324_v63 = vpop.permute.xlu1 %11729 }
 0x437   : > { %v7065_v50 = vadd.bf16 %v6799_v14, %v21024_v29  ;;  %23974 = vst [vmem:[#allocation153_spill] sm:$0xff] %v21317_v36  ;;  %v21319_v40 = vpack.c.b16 %v8879_v4, %v8877_v38  ;;  %v10251_v26 = vsel %vm23226_vm5, %v10250_v21, %v10249_v57  ;;  %v8378_v51 = vrot.slane %v21217_v3, %v16497_v23  ;;  %v16082_v3 = vld [vmem:[%s22982_s3 + $0x40] sm:$0xff]  }
 0x438   : > { %v9906_v25 = vrot.slane %v20864_v16, 1  ;;  %v9908_v33 = vrot.slane %v21285_v60, 7  ;;  %v10129_v37 = vunpack.c.l.b16 %v10093_v45  ;;  %v5431_v55 = vshrl.u32 %v21220_v49, 16 }
 0x439   : > { %23975 = vst [vmem:[#allocation154_spill] sm:$0xff] %v21319_v40  ;;  %v8413_v29 = vrot.slane %v7064_v17, %v16497_v23  ;;  %10918 = vrot.lane.b32.xlu0 %v21319_v40, %s23976_s19  ;;  %v9905_v30 = vsel %vm8761_vm7, %v9904_v24, %v9903_v43  ;;  %v10254_v14 = vrot.slane %v20864_v16, 2  ;;  %13439 = vmatpush2.bf16.msra.mxu1 %v16081_v5  ;;  %v5441_v59 = vshrl.u32 %v2930_v8, 16  ;;  %v21346_v24 = vpop.permute.xlu0 %9960 }
 0x43a   : > { %v6801_v21 = vadd.bf16 %v5426_v53, %v21183_v12  ;;  %v8406_v38 = vrot.slane %v8399_v1, %v16497_v23  ;;  %12246 = vrot.lane.b32.xlu1 %v21113_v15, %s23940_s23  ;;  %v10253_v4 = vsel %vm23222_vm6, %v10252_v56, %v10251_v26  ;;  %13440 = vmatprep.subr.bf16.mxu1 %v23949_v39  ;;  %v8726_v45 = vunpack.c.l.b16 %v8392_v42  ;;  %v21348_v5 = vpop.permute.xlu1 %9610 }
 0x43b   : > { %v5436_v16 = vshrl.u32 %v21272_v32, 16  ;;  %v7066_v57 = vadd.bf16 %v6800_v6, %v21089_v35  ;;  %v8427_v17 = vrot.slane %v7065_v50, %v16497_v23  ;;  %23977 = vst [vmem:[#allocation155_spill] sm:$0xff] %v21346_v24  ;;  %v9907_v12 = vsel %vm8764_vm8, %v9906_v25, %v9905_v30 }
 0x43c   : > { %v9909_v53 = vsel %vm8746_vm2, %v9908_v33, %v20906_v13  ;;  %v10256_v1 = vrot.slane %v20906_v13, 1  ;;  %v10258_v43 = vrot.slane %v10129_v37, 7  ;;  %v8725_v56 = vunpack.c.l.b16 %v8378_v51 }
 0x43d   : > { %v6802_v42 = vadd.bf16 %v5431_v55, %v21220_v49  ;;  %v8420_v26 = vrot.slane %v8413_v29, %v16497_v23  ;;  %11024 = vrot.lane.b32.xlu0 %v21253_v44, %s23970_s22  ;;  %v10255_v35 = vsel %vm8761_vm7, %v10254_v14, %v10253_v4  ;;  %13441 = vmatpush2.bf16.msra.mxu1 %v16082_v3  ;;  %v8880_v6 = vrot.slane %v8726_v45, 7  ;;  %v21369_v33 = vpop.permute.xlu0 %11071 }
 0x43e   : > { %v6804_v50 = vadd.bf16 %v5441_v59, %v2930_v8  ;;  %v7067_v25 = vadd.bf16 %v6801_v21, %v21130_v7  ;;  %v21360_v30 = vunpack.c.l.b16 %v8406_v38  ;;  %10314 = vrot.lane.b32.xlu1 %v21113_v15, %s23594_s16  ;;  %v5376_v13 = vshrl.u32 %v21156_v19, 16  ;;  %23978 = vst [vmem:[#allocation156_spill] sm:$0xff] %v21369_v33  ;;  %v21375_v55 = vpop.permute.xlu1 %11018 }
 0x43f   : > { %v6789_v49 = vadd.bf16 %v5366_v47, %v21103_v9  ;;  %v8441_v51 = vrot.slane %v7066_v57, %v16497_v23  ;;  %v21371_v37 = vpack.c.b16 %v9909_v53, %v9907_v12  ;;  %v6803_v8 = vadd.bf16 %v5436_v16, %v21272_v32  ;;  %23979 = vst [vmem:[#allocation157_spill] sm:$0xff] %v21375_v55 }
 0x440   : > { %v8434_v7 = vrot.slane %v8427_v17, %v16497_v23  ;;  %v10257_v29 = vsel %vm8764_vm8, %v10256_v1, %v10255_v35  ;;  %v10259_v14 = vsel %vm8746_vm2, %v10258_v43, %v21285_v60  ;;  %v15179_v9 = vpack.c.bf16 %v20636_v18, %v20636_v18  ;;  %v23981_v35 = vld [vmem:[#allocation144_spill] sm:$0xff] }
 0x441   : > { %v7068_v47 = vadd.bf16 %v6802_v42, %v21139_v2  ;;  %v21383_v3 = vunpack.c.l.b16 %v8420_v26  ;;  %v8882_v59 = vrot.slane %v21360_v30, 6  ;;  %12195 = vrot.lane.b32.xlu0 %v21371_v37, %s23928_s21  ;;  %v8881_v32 = vsel %vm8746_vm2, %v8880_v6, %v8725_v56  ;;  %v23980_v2 = vld [vmem:[#allocation16_spill] sm:$0xff]  ;;  %v21398_v57 = vpop.permute.xlu0 %12242 }
 0x442   : > { %v7070_v21 = vadd.bf16 %v6804_v50, %v21179_v41  ;;  %v8455_v38 = vrot.slane %v7067_v25, %v16497_v23  ;;  %v9210_v60 = vrot.slane %v21360_v30, 7  ;;  %11128 = vrot.lane.b32.xlu1 %v21113_v15, %s23597_s17  ;;  %v3771_v4 = vrot.slane %v23980_v2, %v16497_v23  ;;  %v21405_v1 = vpop.permute.xlu1 %11835 }
 0x443   : > { %v8448_v16 = vrot.slane %v8441_v51, %v16497_v23  ;;  %v21400_v17 = vpack.c.b16 %v10259_v14, %v10257_v29  ;;  %v6791_v41 = vadd.bf16 %v5376_v13, %v21156_v19  ;;  %v7069_v12 = vadd.bf16 %v6803_v8, %v6789_v49  ;;  %v23983_v49 = vld [vmem:[#allocation145_spill] sm:$0xff] }
 0x444   : > { %v21403_v53 = vunpack.c.l.b16 %v8434_v7  ;;  %v8884_v15 = vrot.slane %v21383_v3, 5  ;;  %v3778_v43 = vrot.slane %v15179_v9, %v16497_v23  ;;  %v8469_v56 = vrot.slane %v7068_v47, %v16497_v23  ;;  %v23986_v47 = vld [vmem:[#allocation6_spill] sm:$0xff] }
 0x445   : > { %v9212_v42 = vrot.slane %v21383_v3, 6  ;;  %12248 = vrot.lane.b32.xlu0 %v21400_v17, %s23940_s23  ;;  %v8883_v26 = vsel %vm8749_vm3, %v8882_v59, %v8881_v32  ;;  %v23982_v19 = vrot.slane %v23981_v35, %v16497_v23  ;;  %v8462_v50 = vrot.slane %v8455_v38, %v16497_v23  ;;  %v21431_v14 = vpop.permute.xlu0 %9262 }
 0x446   : > { %v8497_v25 = vrot.slane %v7070_v21, %v16497_v23  ;;  %10564 = vrot.lane.b32.xlu1 %v21194_v54, %s23803_s14  ;;  %v9211_v13 = vsel %vm8746_vm2, %v9210_v60, %v8726_v45  ;;  %v23984_v51 = vrot.slane %v23983_v49, %v16497_v23  ;;  %v3779_v7 = vcombine.high %v3771_v4, %v3771_v4  ;;  %v21436_v21 = vpop.permute.xlu1 %10717 }
 0x447   : > { %v21417_v6 = vunpack.c.l.b16 %v23982_v19  ;;  %v21429_v29 = vunpack.c.l.b16 %v8448_v16  ;;  %23985 = vst [vmem:[#allocation16_spill] sm:$0xff] %v21431_v14  ;;  %v8886_v9 = vrot.slane %v21403_v53, 4  ;;  %v7071_v59 = vadd.bf16 %v23986_v47, %v6791_v41  ;;  %23987 = vst [vmem:[#allocation144_spill] sm:$0xff] %v21436_v21 }
 0x448   : > { %v21427_v8 = vunpack.c.l.b16 %v23984_v51  ;;  %v8483_v32 = vrot.slane %v7069_v12, %v16497_v23  ;;  %v8885_v45 = vsel %vm8752_vm4, %v8884_v15, %v8883_v26  ;;  %v9214_v38 = vrot.slane %v21403_v53, 5 }
 0x449   : > { %v3780_v60 = vcombine.high %v3778_v43, %v3778_v43  ;;  %v3787_v2 = vrot.slane %v3771_v4, %v16497_v23  ;;  %v8476_v16 = vrot.slane %v8469_v56, %v16497_v23  ;;  %11841 = vrot.lane.b32.xlu0 %v21400_v17, %s23968_s8  ;;  %v9213_v35 = vsel %vm8749_vm3, %v9212_v42, %v9211_v13  ;;  %v21455_v26 = vpop.permute.xlu0 %11731 }
 0x44a   : > { %v2880_v41 = vcombine.high %v21119_v10, %v21119_v10  ;;  %v8504_v12 = vrot.slane %v8497_v25, %v16497_v23  ;;  %v21448_v19 = vunpack.c.l.b16 %v8462_v50  ;;  %10971 = vrot.lane.b32.xlu1 %v21194_v54, %s23807_s15  ;;  %v8888_v15 = vrot.slane %v21429_v29, 3  ;;  %23988 = vst [vmem:[#allocation145_spill] sm:$0xff] %v21455_v26  ;;  %v21462_v49 = vpop.permute.xlu1 %10310 }
 0x44b   : > { %v3794_v56 = vrot.slane %v3778_v43, %v16497_v23  ;;  %v8887_v42 = vsel %vm23226_vm5, %v8886_v9, %v8885_v45  ;;  %v9216_v13 = vrot.slane %v21429_v29, 4  ;;  %v3801_v10 = vrot.slane %v3779_v7, %v16497_v23  ;;  %23989 = vst [vmem:[#allocation6_spill] sm:$0xff] %v21462_v49 }
 0x44c   : > { %v9050_v50 = vrot.slane %v7071_v59, %v16497_v23  ;;  %v8490_v25 = vrot.slane %v8483_v32, %v16497_v23  ;;  %v9215_v51 = vsel %vm8752_vm4, %v9214_v38, %v9213_v35  ;;  %v3808_v47 = vrot.slane %v3780_v60, %v16497_v23 }
 0x44d   : > { %v3809_v18 = vcombine.high %v3787_v2, %v3787_v2  ;;  %v21466_v43 = vunpack.c.l.b16 %v8476_v16  ;;  %10723 = vrot.lane.b32.xlu0 %v21400_v17, %s23990_s1  ;;  %v8890_v9 = vrot.slane %v21448_v19, 2  ;;  %v5381_v45 = vshrl.u32 %v2880_v41, 16  ;;  %v21477_v16 = vpop.permute.xlu0 %10914 }
 0x44e   : > { %v21471_v7 = vunpack.c.l.b16 %v8504_v12  ;;  %12036 = vrot.lane.b32.xlu1 %v21319_v40, %s23594_s16  ;;  %v8889_v59 = vsel %vm23222_vm6, %v8888_v15, %v8887_v42  ;;  %v9218_v32 = vrot.slane %v21448_v19, 3  ;;  %v3810_v38 = vcombine.high %v3794_v56, %v3794_v56  ;;  %23991 = vst [vmem:[#allocation158_spill] sm:$0xff] %v21477_v16  ;;  %v21483_v12 = vpop.permute.xlu1 %11124 }
 0x44f   : > { %v6126_v60 = vshrl.u32 %v3787_v2, 16  ;;  %v6146_v35 = vshrl.u32 %v3794_v56, 16  ;;  %v9217_v4 = vsel %vm23226_vm5, %v9216_v13, %v9215_v51  ;;  %v9057_v39 = vrot.slane %v9050_v50, %v16497_v23  ;;  %23992 = vst [vmem:[#allocation159_spill] sm:$0xff] %v21483_v12 }
 0x450   : > { %v21481_v54 = vunpack.c.l.b16 %v8490_v25  ;;  %v8892_v21 = vrot.slane %v21466_v43, 1  ;;  %v8894_v36 = vrot.slane %v21471_v7, 7  ;;  %v3811_v15 = vcombine.high %v3801_v10, %v3801_v10 }
 0x451   : > { %v3812_v42 = vcombine.high %v3808_v47, %v3808_v47  ;;  %10316 = vrot.lane.b32.xlu0 %v21400_v17, %s23594_s16  ;;  %v8891_v48 = vsel %vm8761_vm7, %v8890_v9, %v8889_v59  ;;  %v9220_v16 = vrot.slane %v21466_v43, 2  ;;  %v6131_v13 = vshrl.u32 %v3801_v10, 16  ;;  %v21497_v26 = vpop.permute.xlu0 %10507 }
 0x452   : > { %v6792_v51 = vadd.bf16 %v5381_v45, %v2880_v41  ;;  %v9560_v50 = vrot.slane %v21383_v3, 7  ;;  %11735 = vrot.lane.b32.xlu1 %v21253_v44, %s23846_s13  ;;  %v9219_v25 = vsel %vm23222_vm6, %v9218_v32, %v9217_v4  ;;  %v6136_v12 = vshrl.u32 %v3809_v18, 16  ;;  %23993 = vst [vmem:[#allocation160_spill] sm:$0xff] %v21497_v26  ;;  %v21501_v9 = vpop.permute.xlu1 %12085  ;;  %v23994_v26 = vld [vmem:[#allocation5_spill] sm:$0xff] }
 0x453   : > { %v6151_v33 = vshrl.u32 %v3808_v47, 16  ;;  %v6156_v14 = vshrl.u32 %v3810_v38, 16  ;;  %v21495_v55 = vadd.bf16 %v6126_v60, %v3787_v2  ;;  %v21499_v49 = vunpack.c.l.b16 %v9057_v39 }
 0x454   : > { %v8893_v41 = vsel %vm8764_vm8, %v8892_v21, %v8891_v48  ;;  %v8895_v45 = vsel %vm8746_vm2, %v8894_v36, %v21481_v54  ;;  %v9222_v59 = vrot.slane %v21481_v54, 1  ;;  %v6141_v24 = vshrl.u32 %v3811_v15, 16 }
 0x455   : > { %v21507_v4 = vadd.bf16 %v6146_v35, %v3794_v56  ;;  %11130 = vrot.lane.b32.xlu0 %v21400_v17, %s23597_s17  ;;  %v9221_v2 = vsel %vm8761_vm7, %v9220_v16, %v9219_v25  ;;  %v9562_v39 = vrot.slane %v21403_v53, 6  ;;  %v6161_v32 = vshrl.u32 %v3812_v42, 16  ;;  %v21525_v35 = vpop.permute.xlu0 %11020 }
 0x456   : > { %v21513_v60 = vadd.bf16 %v6131_v13, %v3801_v10  ;;  %v7072_v48 = vadd.bf16 %v23994_v26, %v6792_v51  ;;  %v9561_v36 = vsel %vm8746_vm2, %v9560_v50, %v21360_v30  ;;  %10511 = vrot.lane.b32.xlu1 %v21319_v40, %s23908_s20  ;;  %v21520_v21 = vadd.bf16 %v6136_v12, %v3809_v18  ;;  %v21529_v10 = vpop.permute.xlu1 %10967  ;;  %v23998_v18 = vld [vmem:[#allocation127_spill] sm:$0xff] }
 0x457   : > { %v21522_v56 = vadd.bf16 %v6151_v33, %v3808_v47  ;;  %v5386_v17 = vshrl.u32 %v21054_v61, 16  ;;  %23995 = vst [vmem:[#allocation5_spill] sm:$0xff] %v21525_v35  ;;  %v21527_v16 = vpack.c.b16 %v8895_v45, %v8893_v41  ;;  %23997 = vst [vmem:[#allocation162_spill] sm:$0xff] %v21529_v10  ;;  %v9223_v26 = vsel %vm8764_vm8, %v9222_v59, %v9221_v2  ;;  %v23999_v47 = vld [vmem:[#allocation51_spill] sm:$0xff]  ;;  %v24008_v35 = vld [vmem:[#allocation148_spill] sm:$0xff] }
 0x458   : > { %v9224_v30 = vrot.slane %v21499_v49, 7  ;;  %v9564_v13 = vrot.slane %v21429_v29, 5  ;;  %v21534_v51 = vadd.bf16 %v6156_v14, %v3810_v38  ;;  %v24000_v12 = vld [vmem:[#allocation59_spill] sm:$0xff]  ;;  %v9563_v25 = vsel %vm8749_vm3, %v9562_v39, %v9561_v36 }
 0x459   : > { %23996 = vst [vmem:[#allocation161_spill] sm:$0xff] %v21527_v16  ;;  %v11432_v50 = vsel %vm11430_vm13, %v24000_v12, %v23999_v47  ;;  %12038 = vrot.lane.b32.xlu0 %v21527_v16, %s23594_s16  ;;  %v24001_v41 = vld [vmem:[#allocation131_spill] sm:$0xff]  ;;  %v9400_v59 = vrot.slane %v7072_v48, %v16497_v23  ;;  %v6793_v38 = vadd.bf16 %v5386_v17, %v21054_v61  ;;  %v21552_v2 = vpop.permute.xlu0 %9612  ;;  %v9566_v39 = vrot.slane %v21448_v19, 4  ;;  %v24004_v12 = vld [vmem:[#allocation96_spill] sm:$0xff]  ;;  %v24005_v61 = vld [vmem:[#allocation93_spill] sm:$0xff] }
 0x45a   : > { %10617 = vrot.lane.b32.xlu1 %v21253_v44, %s23928_s21  ;;  %v9225_v14 = vsel %vm8746_vm2, %v9224_v30, %v21471_v7  ;;  %24002 = vst [vmem:[#allocation127_spill] sm:$0xff] %v21552_v2  ;;  %v21557_v36 = vadd.bf16 %v6141_v24, %v3811_v15  ;;  %v11453_v48 = vsel %vm11451_vm15, %v11432_v50, %v24004_v12  ;;  %v21561_v45 = vpop.permute.xlu1 %10560  ;;  %v24006_v17 = vld [vmem:[#allocation52_spill] sm:$0xff]  ;;  %vm23221_vm12 = vcmask 588800  }
 0x45b   : > { %v21554_v47 = vpack.c.b16 %v9225_v14, %v9223_v26  ;;  %v9565_v44 = vsel %vm8752_vm4, %v9564_v13, %v9563_v25  ;;  %v21564_v30 = vadd.bf16 %v6161_v32, %v3812_v42  ;;  %v11343_v33 = vsel %vm23218_vm9, %v24006_v17, %v24005_v61  ;;  %v24007_v26 = vld [vmem:[#allocation17_spill] sm:$0xff]  ;;  %v24009_v24 = vld [vmem:[#allocation8_spill] sm:$0xff]  ;;  %v24013_v17 = vld [vmem:[#allocation130_spill] sm:$0xff] }
 0x45c   : > { %v11474_v14 = vsel %vm23228_vm14, %v11453_v48, %v24007_v26  ;;  %v12264_v15 = vsel %vm23218_vm9, %v24009_v24, %v24008_v35  ;;  %v9407_v50 = vrot.slane %v9400_v59, %v16497_v23  ;;  %v9568_v32 = vrot.slane %v21466_v43, 3  ;;  %v24010_v25 = vld [vmem:[#allocation40_spill] sm:$0xff]  ;;  %v24011_v48 = vld [vmem:[#allocation23_spill] sm:$0xff]  ;;  %v24014_v26 = vld [vmem:[#allocation125_spill] sm:$0xff] }
 0x45d   : > { %24003 = vst [vmem:[#allocation51_spill] sm:$0xff] %v21554_v47  ;;  %12091 = vrot.lane.b32.xlu0 %v21554_v47, %s23908_s20  ;;  %v12293_v42 = vsel %vm23220_vm10, %v12264_v15, %v20888_v28  ;;  %v9910_v13 = vrot.slane %v21403_v53, 7  ;;  %v7073_v12 = vadd.bf16 %v24010_v25, %v6793_v38  ;;  %v11495_v35 = vsel %vm23227_vm0, %v11474_v14, %v24011_v48  ;;  %v21586_v61 = vpop.permute.xlu0 %11784  ;;  %v24015_v15 = vld [vmem:[#allocation112_spill] sm:$0xff]  ;;  %v24016_v25 = vld [vmem:[#allocation42_spill] sm:$0xff] }
 0x45e   : > { %11325 = vrot.lane.b32.xlu1 %v21319_v40, %s23716_s29  ;;  %24012 = vst [vmem:[#allocation59_spill] sm:$0xff] %v21586_v61  ;;  %v9567_v59 = vsel %vm23226_vm5, %v9566_v39, %v9565_v44  ;;  %v11372_v10 = vsel %vm23220_vm10, %v11343_v33, %v24015_v15  ;;  %vm23224_vm9 = vcmask 654336   ;;  %v21595_v2 = vpop.permute.xlu1 %12032  ;;  %v5391_v38 = vshrl.u32 %v21073_v20, 16  ;;  %v24017_v24 = vld [vmem:[#allocation114_spill] sm:$0xff]  ;;  %v24018_v61 = vld [vmem:[#allocation101_spill] sm:$0xff] }
 0x45f   : > { %v12313_v14 = vsel %vm23223_vm11, %v12293_v42, %v20825_v22  ;;  %v9570_v39 = vrot.slane %v21481_v54, 2  ;;  %v9912_v44 = vrot.slane %v21429_v29, 6  ;;  %v11516_v48 = vsel %vm23221_vm12, %v11495_v35, %v24016_v25 }
 0x460   : > { %v21608_v33 = vunpack.c.l.b16 %v9407_v50  ;;  %v9569_v15 = vsel %vm23222_vm6, %v9568_v32, %v9567_v59  ;;  %v9911_v22 = vsel %vm8746_vm2, %v9910_v13, %v21383_v3  ;;  %v21614_v42 = vrot.slane %v7073_v12, %v16497_v23  ;;  %v24020_v59 = vld [vmem:[#allocation99_spill] sm:$0xff] }
 0x461   : > { %10973 = vrot.lane.b32.xlu0 %v21554_v47, %s23807_s15  ;;  %v11393_v28 = vsel %vm23223_vm11, %v11372_v10, %v24017_v24  ;;  %v11537_v40 = vsel %vm23224_vm9, %v11516_v48, %v24018_v61  ;;  %vm11556_vm10 = vcmask 719872   ;;  %v21620_v35 = vpop.permute.xlu0 %11073  ;;  %vm11577_vm12 = vcmask 785408   ;;  %v24022_v48 = vld [vmem:[#allocation103_spill] sm:$0xff] }
 0x462   : > { %11788 = vrot.lane.b32.xlu1 %v21371_v37, %s23958_s18  ;;  %24019 = vst [vmem:[#allocation131_spill] sm:$0xff] %v21620_v35  ;;  %v12333_v50 = vsel %vm643_vm1, %v12313_v14, %v20910_v11  ;;  %v21624_v32 = vpop.permute.xlu1 %12138  ;;  %v9572_v3 = vrot.slane %v21471_v7, 1  ;;  %v9914_v13 = vrot.slane %v21448_v19, 5  ;;  %vm11598_vm6 = vcmask 850944   ;;  %v24095_v35 = vld [vmem:[#allocation142_spill] sm:$0xff] }
 0x463   : > { %v12353_v10 = vsel %vm11430_vm13, %v12333_v50, %v21016_v0  ;;  %v9571_v12 = vsel %vm8761_vm7, %v9570_v39, %v9569_v15  ;;  %v9913_v61 = vsel %vm8749_vm3, %v9912_v44, %v9911_v22  ;;  %v11558_v11 = vsel %vm11556_vm10, %v11537_v40, %v24020_v59  ;;  %v24021_v0 = vld [vmem:[#allocation102_spill] sm:$0xff]  ;;  %v24023_v59 = vld [vmem:[#allocation132_spill] sm:$0xff] }
 0x464   : > { %vm11619_vm11 = vcmask 916480   ;;  %v12373_v24 = vsel %vm11451_vm15, %v12353_v10, %v21222_v62  ;;  %v9574_v14 = vrot.slane %v21608_v33, 7  ;;  %v11579_v25 = vsel %vm11577_vm12, %v11558_v11, %v24021_v0 }
 0x465   : > { %10566 = vrot.lane.b32.xlu0 %v21554_v47, %s23803_s14  ;;  %vm23225_vm9 = vcmask 982016   ;;  %v12393_v39 = vsel %vm23228_vm14, %v12373_v24, %v21251_v31  ;;  %v21645_v44 = vpop.permute.xlu0 %9962  ;;  %v9916_v40 = vrot.slane %v21466_v43, 4  ;;  %v11600_v15 = vsel %vm11598_vm6, %v11579_v25, %v24022_v48  ;;  %v24025_v25 = vld [vmem:[#allocation10_spill] sm:$0xff] }
 0x466   : > { %10670 = vrot.lane.b32.xlu1 %v21371_v37, %s23940_s23  ;;  %v21652_v62 = vsel %vm23227_vm0, %v12393_v39, %v21398_v57  ;;  %v21654_v22 = vpop.permute.xlu1 %10613  ;;  %v9573_v50 = vsel %vm8764_vm8, %v9572_v3, %v9571_v12  ;;  %v9915_v10 = vsel %vm8752_vm4, %v9914_v13, %v9913_v61  ;;  %v7142_v31 = vadd.bf16 %v21522_v56, %v24023_v59  ;;  %v24026_v3 = vld [vmem:[#allocation119_spill] sm:$0xff]  ;;  %v24028_v61 = vld [vmem:[#allocation129_spill] sm:$0xff]  ;;  %v24030_v59 = vld [vmem:[#allocation80_spill] sm:$0xff] }
 0x467   : > { %v24024_v11 = vadd.bf16 %v21495_v55, %v23998_v18  ;;  %v6794_v0 = vadd.bf16 %v5391_v38, %v21073_v20  ;;  %v11621_v57 = vsel %vm11619_vm11, %v11600_v15, %v24025_v25  ;;  %v11413_v13 = vsel %vm643_vm1, %v11393_v28, %v24026_v3  ;;  %v24034_v25 = vld [vmem:[#allocation140_spill] sm:$0xff]  ;;  %v24038_v3 = vld [vmem:[#allocation7_spill] sm:$0xff] }
 0x468   : > { %v21675_v56 = vsel %vm23225_vm9, %v11621_v57, %v20759_v46  ;;  %v9575_v55 = vsel %vm8746_vm2, %v9574_v14, %v21499_v49  ;;  %v9918_v20 = vrot.slane %v21481_v54, 3  ;;  %v9917_v28 = vsel %vm23226_vm5, %v9916_v40, %v9915_v10 }
 0x469   : > { %v21664_v24 = vrot.slane %v24024_v11, %v16497_v23  ;;  %9268 = vrot.lane.b32.xlu0 %v21554_v47, %s23846_s13  ;;  %v12452_v18 = vcombine.low %v21675_v56, %v21652_v62  ;;  %v21686_v12 = vpack.c.b16 %v9575_v55, %v9573_v50  ;;  %v10260_v46 = vrot.slane %v21429_v29, 7  ;;  %v24039_v55 = vld [vmem:[#allocation141_spill] sm:$0xff] }
 0x46a   : > { %9966 = vrot.lane.b32.xlu1 %v21371_v37, %s23968_s8  ;;  %v21684_v38 = vpop.permute.xlu0 %11126  ;;  %v7140_v39 = vadd.bf16 %v21557_v36, %v24028_v61  ;;  %v24029_v14 = vadd.bf16 %v21507_v4, %v24001_v41  ;;  %v9757_v15 = vrot.slane %v21614_v42, %v16497_v23  ;;  %v11434_v50 = vsel %vm11430_vm13, %v11413_v13, %v24030_v59  ;;  %v21702_v11 = vpop.permute.xlu1 %11321  ;;  %v24033_v36 = vld [vmem:[#allocation89_spill] sm:$0xff] }
 0x46b   : > { %24027 = vst [vmem:[#allocation96_spill] sm:$0xff] %v21684_v38  ;;  %v24031_v29 = vadd.bf16 %v21513_v60, %v24013_v17  ;;  %v24032_v4 = vadd.bf16 %v21520_v21, %v24014_v26  ;;  %v11455_v42 = vsel %vm11451_vm15, %v11434_v50, %v24033_v36  ;;  %v9920_v10 = vrot.slane %v21471_v7, 2  ;;  %v24035_v60 = vld [vmem:[#allocation70_spill] sm:$0xff] }
 0x46c   : > { %v21696_v48 = vrot.slane %v24029_v14, %v16497_v23  ;;  %v11476_v57 = vsel %vm23228_vm14, %v11455_v42, %v24034_v25  ;;  %vm24036_vm9 = vcmask 64512   ;;  %vm24037_vm5 = vcmask 1045509   ;;  %v24046_v25 = vld [vmem:[#allocation91_spill] sm:$0xff] }
 0x46d   : > { %v21708_v40 = vrot.slane %v24031_v29, %v16497_v23  ;;  %v21714_v41 = vrot.slane %v24032_v4, %v16497_v23  ;;  %12144 = vrot.lane.b32.xlu0 %v21686_v12, %s23803_s14  ;;  %v12267_v17 = vsel %vm24036_vm9, %v24035_v60, %v21324_v63  ;;  %v9919_v21 = vsel %vm24037_vm5, %v9918_v20, %v9917_v28  ;;  %v24042_v29 = vld [vmem:[#allocation150_spill] sm:$0xff] }
 0x46e   : > { %11077 = vrot.lane.b32.xlu1 %v21371_v37, %s23973_s0  ;;  %v10262_v26 = vrot.slane %v21448_v19, 6  ;;  %v7074_v13 = vadd.bf16 %v24038_v3, %v6794_v0  ;;  %v11497_v61 = vsel %vm23227_vm0, %v11476_v57, %v24039_v55  ;;  %v12460_v14 = vrot.slane %v12452_v18, %v16497_v23  ;;  %v21734_v59 = vpop.permute.xlu0 %10312  ;;  %v24040_v19 = vld [vmem:[#allocation29_spill] sm:$0xff] }
 0x46f   : > { %v10261_v50 = vsel %vm8746_vm2, %v10260_v46, %v21403_v53  ;;  %v11960_v63 = vrot.slane %v21664_v24, %v16497_v23  ;;  %v12064_v37 = vrot.slane %v21696_v48, %v16497_v23  ;;  %v21742_v20 = vunpack.c.l.b16 %v9757_v15  ;;  %v12192_v28 = vpop.permute.xlu1 %12191 }
 0x470   : > { %vm24041_vm5 = vcmask 588800   ;;  %vm24043_vm9 = vcmask 654336   ;;  %vm24044_vm0 = vcmask 130048   ;;  %v9921_v53 = vsel %vm8761_vm7, %v9920_v10, %v9919_v21 }
 0x471   : > { %v11518_v0 = vsel %vm24041_vm5, %v11497_v61, %v24040_v19  ;;  %v12295_v4 = vsel %vm24044_vm0, %v12267_v17, %v21168_v58  ;;  %11737 = vrot.lane.b32.xlu0 %v21686_v12, %s23846_s13  ;;  %v10264_v24 = vrot.slane %v21466_v43, 5  ;;  %v21755_v46 = vrot.slane %v7142_v31, %v16497_v23 }
 0x472   : > { %v11539_v18 = vsel %vm24043_vm9, %v11518_v0, %v24042_v29  ;;  %vm24045_vm14 = vcmask 195584   ;;  %10920 = vrot.lane.b32.xlu1 %v21527_v16, %s23976_s19  ;;  %v9922_v15 = vrot.slane %v21499_v49, 1  ;;  %v10263_v58 = vsel %vm8749_vm3, %v10262_v26, %v10261_v50  ;;  %v21768_v31 = vpop.permute.xlu0 %12034  ;;  %v24048_v50 = vld [vmem:[#allocation49_spill] sm:$0xff] }
 0x473   : > { %v12315_v48 = vsel %vm24045_vm14, %v12295_v4, %v21405_v1  ;;  %v11974_v36 = vrot.slane %v21708_v40, %v16497_v23  ;;  %v10100_v42 = vrot.slane %v7074_v13, %v16497_v23  ;;  %v12468_v10 = vcombine.high %v12460_v14, %v12460_v14  ;;  %v21772_v57 = vpop.permute.xlu1 %10666  ;;  %v24068_v40 = vld [vmem:[#allocation54_spill] sm:$0xff] }
 0x474   : > { %v12335_v43 = vsel %vm643_vm1, %v12315_v48, %v21595_v2  ;;  %v11560_v1 = vsel %vm11556_vm10, %v11539_v18, %v24046_v25  ;;  %v9923_v60 = vsel %vm8764_vm8, %v9922_v15, %v9921_v53  ;;  %v9924_v17 = vrot.slane %v21742_v20, 7  ;;  %v24047_v2 = vld [vmem:[#allocation77_spill] sm:$0xff] }
 0x475   : > { %v10266_v21 = vrot.slane %v21481_v54, 4  ;;  %v21780_v26 = vrot.slane %v7140_v39, %v16497_v23  ;;  %v11581_v3 = vsel %vm11577_vm12, %v11560_v1, %v24047_v2  ;;  %9618 = vrot.lane.b32.xlu0 %v21686_v12, %s23958_s18  ;;  %v10265_v13 = vsel %vm8752_vm4, %v10264_v24, %v10263_v58  ;;  %v24052_v24 = vld [vmem:[#allocation34_spill] sm:$0xff]  ;;  %v24055_v58 = vld [vmem:[#allocation67_spill] sm:$0xff] }
 0x476   : > { %v11602_v55 = vsel %vm11598_vm6, %v11581_v3, %v20934_v27  ;;  %v12453_v54 = vcombine.high %v21675_v56, %v21652_v62  ;;  %v12355_v61 = vsel %vm11430_vm13, %v12335_v43, %v21501_v9  ;;  %10513 = vrot.lane.b32.xlu1 %v21527_v16, %s23908_s20  ;;  %v9925_v39 = vsel %vm8746_vm2, %v9924_v17, %v21608_v33  ;;  %v21802_v29 = vpop.permute.xlu0 %11323 }
 0x477   : > { %v11623_v19 = vsel %vm11619_vm11, %v11602_v55, %v24048_v50  ;;  %v12489_v0 = vrot.slane %v12468_v10, %v16497_v23  ;;  %v12375_v27 = vsel %vm11451_vm15, %v12355_v61, %v21624_v32  ;;  %24049 = vst [vmem:[#allocation93_spill] sm:$0xff] %v21802_v29  ;;  %v21804_v62 = vpack.c.b16 %v9925_v39, %v9923_v60  ;;  %v12245_v56 = vpop.permute.xlu1 %12244  ;;  %v24058_v39 = vld [vmem:[#allocation116_spill] sm:$0xff] }
 0x478   : > { %vm24050_vm14 = vcmask 457728   ;;  %v10107_v18 = vrot.slane %v10100_v42, %v16497_v23  ;;  %vm24051_vm0 = vcmask 1044484   ;;  %v10268_v53 = vrot.slane %v21471_v7, 3 }
 0x479   : > { %v12395_v9 = vsel %vm24050_vm14, %v12375_v27, %v12192_v28  ;;  %v10267_v4 = vsel %vm24051_vm0, %v10266_v21, %v10265_v13  ;;  %vm24053_vm5 = vcmask 982016   ;;  %v12475_v15 = vrot.slane %v12460_v14, %v16497_v23  ;;  %11790 = vrot.lane.b32.xlu0 %v21804_v62, %s23958_s18  ;;  %v24057_v13 = vld [vmem:[#allocation113_spill] sm:$0xff] }
 0x47a   : > { %v11644_v48 = vsel %vm24053_vm5, %v11623_v19, %v24052_v24  ;;  %vm24054_vm9 = vcmask 523264   ;;  %v11816_v10 = vrot.slane %v24055_v58, 7  ;;  %v21817_v28 = vunpack.c.l.b16 %v11960_v63  ;;  %11327 = vrot.lane.b32.xlu1 %v21527_v16, %s23716_s29  ;;  %v21826_v17 = vpop.permute.xlu0 %10509 }
 0x47b   : > { %v12415_v32 = vsel %vm24054_vm9, %v12395_v9, %v12245_v56  ;;  %v12467_v42 = vrot.slane %v12453_v54, %v16497_v23  ;;  %v21824_v14 = vunpack.c.l.b16 %v12064_v37  ;;  %v12884_v1 = vcombine.low %v12475_v15, %v12489_v0  ;;  %v21831_v2 = vpop.permute.xlu1 %11837  ;;  %vm24080_vm9 = vmmov %vm24051_vm0 }
 0x47c   : > { %v12492_v43 = vcombine.low %v11644_v48, %v12415_v32  ;;  %v12493_v25 = vcombine.high %v11644_v48, %v12415_v32  ;;  %v15573_v60 = vcombine.high %v12475_v15, %v12489_v0  ;;  %v21828_v21 = vunpack.c.l.b16 %v11974_v36 }
 0x47d   : > { %vm24056_vm14 = vcmask 1045509   ;;  %v11818_v55 = vrot.slane %v24057_v13, 6  ;;  %11079 = vrot.lane.b32.xlu0 %v21804_v62, %s23973_s0  ;;  %v10130_v54 = vunpack.c.l.b16 %v10107_v18  ;;  %v10270_v37 = vrot.slane %v21499_v49, 2  ;;  %v24059_v18 = vld [vmem:[#allocation117_spill] sm:$0xff] }
 0x47e   : > { %v12500_v63 = vrot.slane %v12492_v43, %v16497_v23  ;;  %v10269_v3 = vsel %vm24056_vm14, %v10268_v53, %v10267_v4  ;;  %v10272_v61 = vrot.slane %v21608_v33, 1  ;;  %v11817_v36 = vsel %vm8746_vm2, %v11816_v10, %v24058_v39  ;;  %11026 = vrot.lane.b32.xlu1 %v21686_v12, %s23970_s22  ;;  %v21848_v49 = vpop.permute.xlu0 %10562  ;;  %v24060_v10 = vld [vmem:[#allocation109_spill] sm:$0xff]  ;;  %vm24079_vm5 = vmmov %vm24056_vm14 }
 0x47f   : > { %v12482_v50 = vrot.slane %v12467_v42, %v16497_v23  ;;  %v12507_v19 = vrot.slane %v12493_v25, %v16497_v23  ;;  %v12894_v9 = vrot.slane %v12884_v1, %v16497_v23  ;;  %v12901_v56 = vrot.slane %v15573_v60, %v16497_v23  ;;  %v21853_v15 = vpop.permute.xlu1 %10719  ;;  %v24061_v42 = vld [vmem:[#allocation63_spill] sm:$0xff]  ;;  %v24063_v60 = vld [vmem:[#allocation32_spill] sm:$0xff] }
 0x480   : > { %v12508_v0 = vcombine.high %v12500_v63, %v12500_v63  ;;  %v12515_v27 = vrot.slane %v12500_v63, %v16497_v23  ;;  %v10271_v33 = vsel %vm8761_vm7, %v10270_v37, %v10269_v3  ;;  %v11820_v4 = vrot.slane %v24059_v18, 5  ;;  %v24064_v63 = vld [vmem:[#allocation18_spill] sm:$0xff] }
 0x481   : > { %v11819_v32 = vsel %vm8749_vm3, %v11818_v55, %v11817_v36  ;;  %v24062_v43 = vrot.slane %v24061_v42, 7  ;;  %10672 = vrot.lane.b32.xlu0 %v21804_v62, %s23940_s23  ;;  %v10274_v1 = vrot.slane %v10130_v54, 7  ;;  %v24065_v3 = vadd.bf16 %v24063_v60, %v24064_v63 }
 0x482   : > { %v12529_v53 = vrot.slane %v12508_v0, %v16497_v23  ;;  %v12530_v24 = vcombine.high %v12515_v27, %v12515_v27  ;;  %v12886_v48 = vcombine.low %v12482_v50, %v12515_v27  ;;  %v24066_v0 = vld [vmem:[#allocation118_spill] sm:$0xff]  ;;  %v12522_v27 = vrot.slane %v12507_v19, %v16497_v23  ;;  %10619 = vrot.lane.b32.xlu1 %v21686_v12, %s23928_s21 }
 0x483   : > { %v11678_v25 = vsel %vm8746_vm2, %v24062_v43, %v24060_v10  ;;  %v11807_v37 = vrot.slane %v24065_v3, %v16497_v23  ;;  %v11822_v50 = vrot.slane %v24066_v0, 4  ;;  %v10273_v36 = vsel %vm8764_vm8, %v10272_v61, %v10271_v33  ;;  %v21871_v43 = vpop.permute.xlu0 %11733  ;;  %v24070_v3 = vld [vmem:[#allocation115_spill] sm:$0xff]  ;;  %v21883_v12 = vpop.permute.xlu1 %10916 }
 0x484   : > { %v12531_v7 = vcombine.high %v12529_v53, %v12529_v53  ;;  %v12887_v55 = vcombine.low %v12529_v53, %v12530_v24  ;;  %v12916_v10 = vcombine.low %v12894_v9, %v12901_v56  ;;  %24067 = vst [vmem:[#allocation52_spill] sm:$0xff] %v21871_v43  ;;  %v11821_v54 = vsel %vm8752_vm4, %v11820_v4, %v11819_v32 }
 0x485   : > { %v24069_v60 = vrot.slane %v24061_v42, 6  ;;  %v11304_v16 = vrot.slane %v24070_v3, 5  ;;  %v12908_v19 = vrot.slane %v12886_v48, %v16497_v23  ;;  %v12917_v61 = vcombine.high %v12894_v9, %v12901_v56  ;;  %9968 = vrot.lane.b32.xlu0 %v21804_v62, %s23968_s8  ;;  %v24072_v9 = vld [vmem:[#allocation138_spill] sm:$0xff] }
 0x486   : > { %v12915_v53 = vrot.slane %v12887_v55, %v16497_v23  ;;  %v21881_v24 = vcombine.low %v12531_v7, %v12522_v27  ;;  %v11679_v33 = vrot.slane %v24070_v3, 6  ;;  %v11681_v4 = vrot.slane %v24058_v39, 5  ;;  %12197 = vrot.lane.b32.xlu1 %v21804_v62, %s23928_s21 }
 0x487   : > { %v11303_v63 = vsel %vm8749_vm3, %v24069_v60, %v24068_v40  ;;  %v10275_v40 = vsel %vm8746_vm2, %v10274_v1, %v21742_v20  ;;  %v11814_v32 = vrot.slane %v11807_v37, %v16497_v23  ;;  %v11824_v56 = vrot.slane %v24072_v9, 3  ;;  %v21897_v27 = vpop.permute.xlu0 %12140  ;;  %v24073_v20 = vld [vmem:[#allocation44_spill] sm:$0xff]  ;;  %v21906_v47 = vpop.permute.xlu1 %12087 }
 0x488   : > { %24071 = vst [vmem:[#allocation17_spill] sm:$0xff] %v21881_v24  ;;  %v12918_v48 = vcombine.low %v12908_v19, %v12915_v53  ;;  %v21894_v7 = vpack.c.b16 %v10275_v40, %v10273_v36  ;;  %v12919_v42 = vcombine.high %v12908_v19, %v12915_v53  ;;  %v11823_v55 = vsel %vm24051_vm0, %v11822_v50, %v11821_v54  ;;  %vm24088_vm0 = vmmov %vm24079_vm5 }
 0x489   : > { %v11305_v60 = vsel %vm8752_vm4, %v11304_v16, %v11303_v63  ;;  %v11306_v3 = vrot.slane %v24058_v39, 4  ;;  %v24074_v1 = vrot.slane %v21417_v6, 7  ;;  %v12933_v62 = vrot.slane %v12917_v61, %v16497_v23  ;;  %v24075_v39 = vld [vmem:[#allocation139_spill] sm:$0xff]  ;;  %v24076_v63 = vld [vmem:[#allocation88_spill] sm:$0xff] }
 0x48a   : > { %v12947_v36 = vrot.slane %v12919_v42, %v16497_v23  ;;  %v12926_v19 = vrot.slane %v12916_v10, %v16497_v23  ;;  %v12940_v53 = vrot.slane %v12918_v48, %v16497_v23  ;;  %v11680_v50 = vsel %vm8749_vm3, %v11679_v33, %v11678_v25  ;;  %11843 = vrot.lane.b32.xlu0 %v21894_v7, %s23968_s8 }
 0x48b   : > { %v12014_v37 = vsel %vm8746_vm2, %v24074_v1, %v24073_v20  ;;  %v11815_v16 = vunpack.c.l.b16 %v11814_v32  ;;  %v11826_v54 = vrot.slane %v24075_v39, 2  ;;  %v12017_v40 = vrot.slane %v24076_v63, 5  ;;  %12250 = vrot.lane.b32.xlu1 %v21894_v7, %s23940_s23  ;;  %v21929_v1 = vpop.permute.xlu0 %10615 }
 0x48c   : > { %v12949_v61 = vcombine.low %v12933_v62, %v12947_v36  ;;  %v12948_v20 = vcombine.low %v12926_v19, %v12940_v53  ;;  %v11308_v42 = vrot.slane %v24055_v58, 3  ;;  %v24077_v10 = vrot.slane %v20410_v34, 6  ;;  %v21935_v19 = vpop.permute.xlu1 %9264 }
 0x48d   : > { %v24078_v25 = vrot.slane %v21714_v41, %v16497_v23  ;;  %v11683_v32 = vrot.slane %v24055_v58, 4  ;;  %v11825_v24 = vsel %vm24079_vm5, %v11824_v56, %v11823_v55  ;;  %v11307_v62 = vsel %vm24080_vm9, %v11306_v3, %v11305_v60  ;;  %v24084_v58 = vld [vmem:[#allocation25_spill] sm:$0xff]  ;;  %vm24089_vm5 = vmmov %vm24080_vm9 }
 0x48e   : > { %v12016_v48 = vsel %vm8749_vm3, %v24077_v10, %v12014_v37  ;;  %v11682_v36 = vsel %vm8752_vm4, %v11681_v4, %v11680_v50  ;;  %vm24081_vm14 = vcmask 588800   ;;  %v24082_v37 = vld [vmem:[#allocation135_spill] sm:$0xff]  ;;  %11849 = vrot.lane.b32.xlu0 %v24084_v58, %s23968_s8  ;;  %v11830_v29 = vrot.slane %v11815_v16, 7  ;;  %vm24091_vm9 = vmmov %vm24089_vm5 }
 0x48f   : > { %v21926_v33 = vunpack.c.l.b16 %v24078_v25  ;;  %15591 = vmatprep.mubr.msk.bf16.mxu1 %vm24081_vm14, %v12949_v61  ;;  %v11828_v53 = vrot.slane %v24082_v37, 1  ;;  %v24083_v10 = vld [vmem:[#allocation147_spill] sm:$0xff]  ;;  %v12068_v25 = vrot.slane %v24076_v63, 6  ;;  %v11310_v56 = vrot.slane %v24057_v13, 2 }
 0x490   : > { %v12019_v41 = vrot.slane %v24083_v10, 4  ;;  %13443 = vmatmul.mubr.bf16.vlgmr.msra.gmra.mxu1 %v12948_v20  ;;  %v12018_v55 = vsel %vm8752_vm4, %v12017_v40, %v12016_v48  ;;  %v24085_v4 = vrot.slane %v20410_v34, 7  ;;  %v24086_v3 = vrot.slane %v21780_v26, %v16497_v23  ;;  %v24087_v37 = vld [vmem:[#allocation31_spill] sm:$0xff]  ;;  %v21959_v48 = vpop.permute.xlu0 %10668 }
 0x491   : > { %v11685_v61 = vrot.slane %v24057_v13, 3  ;;  %10926 = vrot.lane.b32.xlu1 %v24087_v37, %s23976_s19  ;;  %v11827_v16 = vsel %vm8761_vm7, %v11826_v54, %v11825_v24  ;;  %v11309_v20 = vsel %vm24088_vm0, %v11308_v42, %v11307_v62  ;;  %v11684_v40 = vsel %vm24089_vm5, %v11683_v32, %v11682_v36  ;;  %24090 = vst [vmem:[#allocation148_spill] sm:$0xff] %v21959_v48  ;;  %v24092_v42 = vld [vmem:[#allocation90_spill] sm:$0xff]  ;;  %vm24097_vm5 = vmmov %vm24088_vm0 }
 0x492   : > { %v12067_v60 = vsel %vm8746_vm2, %v24085_v4, %v21417_v6  ;;  %v21951_v50 = vunpack.c.l.b16 %v24086_v3  ;;  %v12021_v6 = vrot.slane %v21427_v8, 3  ;;  %v12070_v4 = vrot.slane %v24083_v10, 5  ;;  %v21964_v3 = vpop.permute.xlu1 %10969  ;;  %v24093_v32 = vld [vmem:[#allocation66_spill] sm:$0xff]  ;;  %10725 = vrot.lane.b32.xlu0 %v21894_v7, %s23990_s1 }
 0x493   : > { %v12119_v26 = vrot.slane %v24076_v63, 7  ;;  %v11312_v13 = vrot.slane %v24059_v18, 1  ;;  %v11314_v38 = vrot.slane %v24072_v9, 7  ;;  %v12020_v24 = vsel %vm24091_vm9, %v12019_v41, %v12018_v55 }
 0x494   : > { %v12069_v54 = vsel %vm8749_vm3, %v12068_v25, %v12067_v60  ;;  %vm24094_vm14 = vcmask 64512   ;;  %v11829_v36 = vsel %vm8764_vm8, %v11828_v53, %v11827_v16  ;;  %v11831_v43 = vsel %vm8746_vm2, %v11830_v29, %v24095_v35 }
 0x495   : > { %v11346_v62 = vsel %vm24094_vm14, %v24093_v32, %v24092_v42  ;;  %v11311_v48 = vsel %vm8761_vm7, %v11310_v56, %v11309_v20  ;;  %v11687_v37 = vrot.slane %v24059_v18, 2  ;;  %11132 = vrot.lane.b32.xlu1 %v21894_v7, %s23597_s17  ;;  %v12023_v41 = vrot.slane %v21817_v28, 2  ;;  %v21986_v42 = vpop.permute.xlu0 %11839 }
 0x496   : > { %v12072_v25 = vrot.slane %v21427_v8, 4  ;;  %v12121_v55 = vrot.slane %v24083_v10, 6  ;;  %v11686_v60 = vsel %vm24088_vm0, %v11685_v61, %v11684_v40  ;;  %24096 = vst [vmem:[#allocation8_spill] sm:$0xff] %v21986_v42  ;;  %v12022_v53 = vsel %vm24097_vm5, %v12021_v6, %v12020_v24  ;;  %v21992_v18 = vpop.permute.xlu1 %11786  ;;  %v24099_v6 = vld [vmem:[#allocation46_spill] sm:$0xff] }
 0x497   : > { %v12071_v35 = vsel %vm8752_vm4, %v12070_v4, %v12069_v54  ;;  %v12120_v29 = vsel %vm8746_vm2, %v12119_v26, %v20410_v34  ;;  %v21994_v56 = vpack.c.b16 %v11831_v43, %v11829_v36  ;;  %v11313_v16 = vsel %vm8764_vm8, %v11312_v13, %v11311_v48  ;;  %10977 = vrot.lane.b32.xlu0 %v24099_v6, %s23807_s15  ;;  %v24100_v13 = vld [vmem:[#allocation134_spill] sm:$0xff]  ;;  %v24101_v54 = vld [vmem:[#allocation95_spill] sm:$0xff] }
 0x498   : > { %v11315_v20 = vsel %vm8746_vm2, %v11314_v38, %v24066_v0  ;;  %v12027_v61 = vrot.slane %v21951_v50, 7  ;;  %v11689_v40 = vrot.slane %v24066_v0, 1  ;;  %v12025_v4 = vrot.slane %v21828_v21, 1  ;;  %v24103_v42 = vld [vmem:[#allocation98_spill] sm:$0xff] }
 0x499   : > { %24098 = vst [vmem:[#allocation40_spill] sm:$0xff] %v21994_v56  ;;  %v12074_v34 = vrot.slane %v21817_v28, 3  ;;  %v12123_v26 = vrot.slane %v21427_v8, 5  ;;  %v11691_v43 = vrot.slane %v24075_v39, 7  ;;  %11851 = vrot.lane.b32.xlu1 %v21994_v56, %s23968_s8  ;;  %v12024_v38 = vsel %vm8761_vm7, %v12023_v41, %v12022_v53  ;;  %v22017_v6 = vpop.permute.xlu0 %10721 }
 0x49a   : > { %v12073_v48 = vsel %vm24091_vm9, %v12072_v25, %v12071_v35  ;;  %v12122_v0 = vsel %vm8749_vm3, %v12121_v55, %v12120_v29  ;;  %v7143_v24 = vadd.bf16 %v21534_v51, %v24100_v13  ;;  %vm24102_vm14 = vcmask 130048   ;;  %v22023_v41 = vpop.permute.xlu1 %12193  ;;  %v24105_v29 = vld [vmem:[#allocation68_spill] sm:$0xff] }
 0x49b   : > { %v11374_v32 = vsel %vm24102_vm14, %v11346_v62, %v24101_v54  ;;  %v11688_v36 = vsel %vm8761_vm7, %v11687_v37, %v11686_v60  ;;  %v22019_v39 = vpack.c.b16 %v11315_v20, %v11313_v16  ;;  %vm24104_vm0 = vcmask 195584  }
 0x49c   : > { %v11395_v56 = vsel %vm24104_vm0, %v11374_v32, %v24103_v42  ;;  %v12028_v25 = vsel %vm8746_vm2, %v12027_v61, %v21926_v33  ;;  %v12076_v55 = vrot.slane %v21828_v21, 2  ;;  %v12125_v51 = vrot.slane %v21817_v28, 4  ;;  %v24106_v61 = vld [vmem:[#allocation105_spill] sm:$0xff] }
 0x49d   : > { %12046 = vrot.lane.b32.xlu0 %v22019_v39, %s23594_s16  ;;  %v12026_v37 = vsel %vm8764_vm8, %v12025_v4, %v12024_v38  ;;  %v12075_v62 = vsel %vm24097_vm5, %v12074_v34, %v12073_v48  ;;  %v12117_v60 = vrot.slane %v21755_v46, %v16497_v23  ;;  %v12124_v42 = vsel %vm8752_vm4, %v12123_v26, %v12122_v0  ;;  %v24107_v34 = vld [vmem:[#allocation94_spill] sm:$0xff]  ;;  %v22048_v26 = vpop.permute.xlu0 %12089 }
 0x49e   : > { %v11690_v53 = vsel %vm8764_vm8, %v11689_v40, %v11688_v36  ;;  %v11692_v35 = vsel %vm8746_vm2, %v11691_v43, %v24072_v9  ;;  %10979 = vrot.lane.b32.xlu1 %v24105_v29, %s23807_s15  ;;  %v12080_v16 = vrot.slane %v21824_v14, 7  ;;  %v12172_v20 = vrot.slane %v24083_v10, 7  ;;  %v9615_v38 = vpop.permute.xlu1 %9614  ;;  %s16194_s15 = smov [#allocation2]  }
 0x49f   : > { %v11415_v4 = vsel %vm643_vm1, %v11395_v56, %v24106_v61  ;;  %vm24108_vm9 = vcmask 64512   ;;  %v12078_v40 = vrot.slane %v21926_v33, 1  ;;  %v12127_v9 = vrot.slane %v21828_v21, 3  ;;  %v24110_v56 = vld [vmem:[#allocation92_spill] sm:$0xff] }
 0x4a0   : > { %v11352_v46 = vsel %vm24108_vm9, %v24107_v34, %v21289_v52  ;;  %v12029_v48 = vpack.c.b16 %v12028_v25, %v12026_v37  ;;  %v12077_v0 = vsel %vm8761_vm7, %v12076_v55, %v12075_v62  ;;  %vm24109_vm0 = vcmask 1044484   ;;  %v24111_v52 = vld [vmem:[#allocation24_spill] sm:$0xff]  ;;  %v24112_v37 = vld [vmem:[#allocation155_spill] sm:$0xff] }
 0x4a1   : > { %v11378_v43 = vsel %vm24102_vm14, %v11352_v46, %v21348_v5  ;;  %v12126_v13 = vsel %vm24109_vm0, %v12125_v51, %v12124_v42  ;;  %v11436_v54 = vsel %vm11430_vm13, %v11415_v4, %v24110_v56  ;;  %v22058_v32 = vpack.c.b16 %v11692_v35, %v11690_v53  ;;  %11030 = vrot.lane.b32.xlu0 %v24111_v52, %s23970_s22  ;;  %v9267_v53 = vpop.permute.xlu0 %9266  ;;  %v24120_v56 = vld [vmem:[#allocation64_spill] sm:$0xff] }
 0x4a2   : > { %v22062_v36 = vunpack.c.l.b16 %v12117_v60  ;;  %v12174_v61 = vrot.slane %v21427_v8, 6  ;;  %12048 = vrot.lane.b32.xlu1 %v12029_v48, %s23594_s16  ;;  %v12081_v5 = vsel %vm8746_vm2, %v12080_v16, %v21951_v50  ;;  %v12129_v25 = vrot.slane %v21926_v33, 2  ;;  %v24114_v60 = vld [vmem:[#allocation47_spill] sm:$0xff]  ;;  %v24116_v16 = vld [vmem:[#allocation6_spill] sm:$0xff]  ;;  %v9965_v46 = vpop.permute.xlu1 %9964 }
 0x4a3   : > { %v12163_v55 = vrot.slane %v7143_v24, %v16497_v23  ;;  %v12173_v51 = vsel %vm8746_vm2, %v12172_v20, %v24076_v63  ;;  %vm24113_vm5 = vcmask 195584   ;;  %v11358_v42 = vsel %vm24108_vm9, %v24114_v60, %v21935_v19 }
 0x4a4   : > { %v11399_v62 = vsel %vm24113_vm5, %v11378_v43, %v24112_v37  ;;  %v12079_v35 = vsel %vm8764_vm8, %v12078_v40, %v12077_v0  ;;  %vm24115_vm14 = vcmask 1045509   ;;  %vm24117_vm0 = vcmask 130048   ;;  %v24118_v43 = vld [vmem:[#allocation160_spill] sm:$0xff] }
 0x4a5   : > { %v12128_v4 = vsel %vm24115_vm14, %v12127_v9, %v12126_v13  ;;  %v11419_v34 = vsel %vm643_vm1, %v11399_v62, %v24116_v16  ;;  %v11382_v24 = vsel %vm24117_vm0, %v11358_v42, %v9615_v38  ;;  %v12131_v63 = vrot.slane %v21951_v50, 1  ;;  %12099 = vrot.lane.b32.xlu0 %v22058_v32, %s23908_s20  ;;  %v24119_v0 = vld [vmem:[#allocation136_spill] sm:$0xff]  ;;  %v24121_v62 = vld [vmem:[#allocation149_spill] sm:$0xff] }
 0x4a6   : > { %v12176_v20 = vrot.slane %v21817_v28, 5  ;;  %v11440_v48 = vsel %vm11430_vm13, %v11419_v34, %v24118_v43  ;;  %v22087_v19 = vsel %vm24113_vm5, %v11382_v24, %v9965_v46  ;;  %v12133_v40 = vrot.slane %v22062_v36, 7  ;;  %11032 = vrot.lane.b32.xlu1 %v24120_v56, %s23970_s22  ;;  %v24129_v46 = vld [vmem:[#allocation26_spill] sm:$0xff] }
 0x4a7   : > { %v12175_v9 = vsel %vm8749_vm3, %v12174_v61, %v12173_v51  ;;  %v7144_v38 = vadd.bf16 %v21564_v30, %v24119_v0  ;;  %v11461_v13 = vsel %vm11451_vm15, %v11440_v48, %v21561_v45  ;;  %v12130_v52 = vsel %vm8761_vm7, %v12129_v25, %v12128_v4  ;;  %v22105_v61 = vpop.permute.xlu0 %12142  ;;  %v24123_v45 = vld [vmem:[#allocation30_spill] sm:$0xff]  ;;  %v11023_v4 = vpop.permute.xlu1 %11022  ;;  %v24134_v0 = vld [vmem:[#allocation145_spill] sm:$0xff] }
 0x4a8   : > { %v12170_v37 = vrot.slane %v12163_v55, %v16497_v23  ;;  %v11457_v60 = vsel %vm11451_vm15, %v11436_v54, %v24121_v62  ;;  %vm24122_vm9 = vcmask 457728   ;;  %v12178_v30 = vrot.slane %v21828_v21, 4  ;;  %v24126_v54 = vld [vmem:[#allocation65_spill] sm:$0xff]  ;;  %v24131_v48 = vld [vmem:[#allocation154_spill] sm:$0xff]  ;;  %v24138_v62 = vld [vmem:[#allocation59_spill] sm:$0xff] }
 0x4a9   : > { %v11482_v42 = vsel %vm24122_vm9, %v11461_v13, %v21654_v22  ;;  %v12225_v51 = vrot.slane %v21427_v8, 7  ;;  %vm24124_vm14 = vmmov %vm24122_vm9  ;;  %vm24125_vm0 = vcmask 523264   ;;  %v12082_v55 = vpack.c.b16 %v12081_v5, %v12079_v35  ;;  %11083 = vrot.lane.b32.xlu0 %v24129_v46, %s23973_s0  ;;  %v24135_v13 = vld [vmem:[#allocation61_spill] sm:$0xff] }
 0x4aa   : > { %v11478_v16 = vsel %vm24124_vm14, %v11457_v60, %v24123_v45  ;;  %v11503_v25 = vsel %vm24125_vm0, %v11482_v42, %v21772_v57  ;;  %v12177_v34 = vsel %vm8752_vm4, %v12176_v20, %v12175_v9  ;;  %vm24127_vm5 = vmmov %vm24125_vm0  ;;  %vm24128_vm9 = vcmask 588800   ;;  %v24140_v42 = vld [vmem:[#allocation100_spill] sm:$0xff] }
 0x4ab   : > { %v11499_v24 = vsel %vm24127_vm5, %v11478_v16, %v24126_v54  ;;  %v11524_v22 = vsel %vm24128_vm9, %v11503_v25, %v21853_v15  ;;  %v12132_v8 = vsel %vm8764_vm8, %v12131_v63, %v12130_v52  ;;  %v12134_v43 = vsel %vm8746_vm2, %v12133_v40, %v21824_v14  ;;  %12101 = vrot.lane.b32.xlu1 %v12082_v55, %s23908_s20  ;;  %v9617_v9 = vpop.permute.xlu0 %9616  ;;  %v24144_v25 = vld [vmem:[#allocation104_spill] sm:$0xff]  ;;  %s16117_s20 = sshll.u32 %s16194_s15, 4  ;;  %s16118_s20 = int_to_ptr.vmem [resolvable:$false] %s16117_s20 }
 0x4ac   : > { %vm24130_vm14 = vcmask 654336   ;;  %v22126_v5 = vunpack.c.l.b16 %v12170_v37  ;;  %v12180_v35 = vrot.slane %v21926_v33, 3  ;;  %v12227_v20 = vrot.slane %v21817_v28, 6  ;;  %v11076_v37 = vpop.permute.xlu1 %11075 }
 0x4ad   : > { %v11545_v57 = vsel %vm24130_vm14, %v11524_v22, %v21883_v12  ;;  %vm24132_vm0 = vcmask 64512   ;;  %vm24133_vm5 = vcmask 1044484   ;;  %v12226_v12 = vsel %vm8746_vm2, %v12225_v51, %v24083_v10  ;;  %12152 = vrot.lane.b32.xlu0 %v24140_v42, %s23803_s14  ;;  %v24141_v51 = vld [vmem:[#allocation121_spill] sm:$0xff] }
 0x4ae   : > { %v11566_v15 = vsel %vm11556_vm10, %v11545_v57, %v21964_v3  ;;  %v11361_v63 = vsel %vm24132_vm0, %v24131_v48, %v9267_v53  ;;  %v12179_v40 = vsel %vm24133_vm5, %v12178_v30, %v12177_v34  ;;  %vm24136_vm9 = vmmov %vm24132_vm0  ;;  %vm24137_vm14 = vcmask 130048   ;;  %v24146_v34 = vld [vmem:[#allocation151_spill] sm:$0xff]  ;;  %v24157_v42 = vld [vmem:[#allocation97_spill] sm:$0xff] }
 0x4af   : > { %v12270_v56 = vsel %vm24136_vm9, %v24135_v13, %v24134_v0  ;;  %v11587_v52 = vsel %vm11577_vm12, %v11566_v15, %v11023_v4  ;;  %v22142_v28 = vsel %vm24137_vm14, %v11361_v63, %v9617_v9  ;;  %v12182_v3 = vrot.slane %v21951_v50, 2  ;;  %vm24139_vm0 = vmmov %vm24137_vm14  ;;  %11085 = vrot.lane.b32.xlu1 %v24144_v25, %s23973_s0  ;;  %v22162_v22 = vpop.permute.xlu0 %10918  ;;  %v24150_v9 = vld [vmem:[#allocation157_spill] sm:$0xff] }
 0x4b0   : > { %v12297_v53 = vsel %vm24139_vm0, %v12270_v56, %v24138_v62  ;;  %v11608_v60 = vsel %vm11598_vm6, %v11587_v52, %v11076_v37  ;;  %v12216_v10 = vrot.slane %v7144_v38, %v16497_v23  ;;  %v12229_v30 = vrot.slane %v21828_v21, 5  ;;  %v12247_v38 = vpop.permute.xlu1 %12246  ;;  %v24152_v37 = vld [vmem:[#allocation15_spill] sm:$0xff] }
 0x4b1   : > { %vm24142_vm5 = vcmask 588800   ;;  %vm24143_vm9 = vcmask 195584   ;;  %vm24145_vm14 = vcmask 1045509   ;;  %v12228_v55 = vsel %vm8749_vm3, %v12227_v20, %v12226_v12 }
 0x4b2   : > { %v11520_v45 = vsel %vm24142_vm5, %v11499_v24, %v24141_v51  ;;  %v12317_v16 = vsel %vm24143_vm9, %v12297_v53, %v21831_v2  ;;  %v12181_v4 = vsel %vm24145_vm14, %v12180_v35, %v12179_v40  ;;  %vm24147_vm0 = vcmask 654336   ;;  %v24148_v35 = vld [vmem:[#allocation55_spill] sm:$0xff] }
 0x4b3   : > { %v11541_v54 = vsel %vm24147_vm0, %v11520_v45, %v24146_v34  ;;  %v12135_v21 = vpack.c.b16 %v12134_v43, %v12132_v8  ;;  %v12184_v46 = vrot.slane %v21824_v14, 1  ;;  %v12186_v24 = vrot.slane %v22126_v5, 7  ;;  %11136 = vrot.lane.b32.xlu0 %v24148_v35, %s23597_s17  ;;  %v24149_v43 = vld [vmem:[#allocation35_spill] sm:$0xff]  ;;  %v22179_v63 = vpop.permute.xlu0 %11024 }
 0x4b4   : > { %v12231_v2 = vrot.slane %v21926_v33, 4  ;;  %v12337_v57 = vsel %vm643_vm1, %v12317_v16, %v21768_v31  ;;  %v12183_v20 = vsel %vm8761_vm7, %v12182_v3, %v12181_v4  ;;  %v12223_v15 = vrot.slane %v12216_v10, %v16497_v23  ;;  %v10315_v12 = vpop.permute.xlu1 %10314  ;;  %v24153_v3 = vld [vmem:[#allocation39_spill] sm:$0xff]  ;;  %v24159_v10 = vld [vmem:[#allocation156_spill] sm:$0xff] }
 0x4b5   : > { %v12230_v48 = vsel %vm8752_vm4, %v12229_v30, %v12228_v55  ;;  %v12357_v8 = vsel %vm11430_vm13, %v12337_v57, %v21906_v47  ;;  %12154 = vrot.lane.b32.xlu1 %v12135_v21, %s23803_s14  ;;  %v11562_v33 = vsel %vm11556_vm10, %v11541_v54, %v24149_v43  ;;  %v12233_v31 = vrot.slane %v21951_v50, 3 }
 0x4b6   : > { %v11583_v40 = vsel %vm11577_vm12, %v11562_v33, %v24150_v9  ;;  %v12185_v0 = vsel %vm8764_vm8, %v12184_v46, %v12183_v20  ;;  %vm24151_vm3 = vcmask 1044484   ;;  %v12377_v47 = vsel %vm11451_vm15, %v12357_v8, %v21897_v27  ;;  %v24167_v46 = vld [vmem:[#allocation143_spill] sm:$0xff]  ;;  %v24173_v33 = vld [vmem:[#allocation20_spill] sm:$0xff] }
 0x4b7   : > { %v12232_v13 = vsel %vm24151_vm3, %v12231_v2, %v12230_v48  ;;  %v22190_v56 = vsel %vm643_vm1, %v22087_v19, %v10315_v12  ;;  %10318 = vrot.lane.b32.xlu0 %v21894_v7, %s23594_s16  ;;  %v12187_v50 = vsel %vm8746_vm2, %v12186_v24, %v22062_v36  ;;  %v12224_v52 = vunpack.c.l.b16 %v12223_v15  ;;  %v24156_v19 = vld [vmem:[#allocation16_spill] sm:$0xff]  ;;  %v22212_v45 = vpop.permute.xlu0 %12195  ;;  %v24172_v48 = vld [vmem:[#allocation53_spill] sm:$0xff] }
 0x4b8   : > { %vm24154_vm4 = vcmask 64512   ;;  %vm24155_vm5 = vcmask 457728   ;;  %v12235_v27 = vrot.slane %v21824_v14, 2  ;;  %v11604_v30 = vsel %vm11598_vm6, %v11583_v40, %v24159_v10  ;;  %v11129_v4 = vpop.permute.xlu1 %11128  ;;  %v24168_v2 = vld [vmem:[#allocation12_spill] sm:$0xff]  ;;  %v24175_v40 = vld [vmem:[#allocation31_spill] sm:$0xff] }
 0x4b9   : > { %v11349_v62 = vsel %vm24154_vm4, %v24153_v3, %v24152_v37  ;;  %v12397_v53 = vsel %vm24155_vm5, %v12377_v47, %v22023_v41  ;;  %11138 = vrot.lane.b32.xlu1 %v24084_v58, %s23597_s17  ;;  %vm24158_vm9 = vmmov %vm24154_vm4  ;;  %vm24160_vm14 = vcmask 523264   ;;  %vm24161_vm0 = vcmask 1045509   ;;  %v24162_v41 = vld [vmem:[#allocation159_spill] sm:$0xff]  ;;  %v24177_v47 = vld [vmem:[#allocation148_spill] sm:$0xff] }
 0x4ba   : > { %v11355_v7 = vsel %vm24158_vm9, %v24157_v42, %v24156_v19  ;;  %v22210_v51 = vsel %vm24160_vm14, %v12397_v53, %v12247_v38  ;;  %v12234_v16 = vsel %vm24161_vm0, %v12233_v31, %v12232_v13  ;;  %v11625_v25 = vsel %vm11619_vm11, %v11604_v30, %v24162_v41  ;;  %v24163_v58 = vld [vmem:[#allocation127_spill] sm:$0xff]  ;;  %v24184_v53 = vld [vmem:[#allocation52_spill] sm:$0xff] }
 0x4bb   : > { %vm24164_vm3 = vcmask 130048   ;;  %v12188_v55 = vpack.c.b16 %v12187_v50, %v12185_v0  ;;  %v12237_v34 = vrot.slane %v22062_v36, 1  ;;  %vm24165_vm4 = vcmask 195584   ;;  %12205 = vrot.lane.b32.xlu0 %v24167_v46, %s23928_s21  ;;  %v12249_v15 = vpop.permute.xlu0 %12248  ;;  %v24176_v0 = vld [vmem:[#allocation62_spill] sm:$0xff]  ;;  %v24188_v10 = vld [vmem:[#allocation144_spill] sm:$0xff] }
 0x4bc   : > { %v11380_v14 = vsel %vm24164_vm3, %v11355_v7, %v24163_v58  ;;  %vm24166_vm5 = vcmask 982016   ;;  %v22225_v21 = vsel %vm11619_vm11, %v11608_v60, %v11129_v4  ;;  %v12239_v24 = vrot.slane %v12224_v52, 7  ;;  %vm24169_vm9 = vmmov %vm24164_vm3  ;;  %v24191_v41 = vld [vmem:[#allocation40_spill] sm:$0xff]  ;;  %v24194_v4 = vld [vmem:[#allocation162_spill] sm:$0xff] }
 0x4bd   : > { %v11401_v54 = vsel %vm24165_vm4, %v11380_v14, %v21645_v44  ;;  %v11646_v38 = vsel %vm24166_vm5, %v11625_v25, %v21702_v11  ;;  %v11376_v57 = vsel %vm24169_vm9, %v11349_v62, %v24168_v2  ;;  %12207 = vrot.lane.b32.xlu1 %v12188_v55, %s23928_s21  ;;  %v12236_v44 = vsel %vm8761_vm7, %v12235_v27, %v12234_v16  ;;  %v24170_v11 = vld [vmem:[#allocation41_spill] sm:$0xff]  ;;  %vm24171_vm14 = vmmov %vm24165_vm4  ;;  %v24185_v27 = vld [vmem:[#allocation120_spill] sm:$0xff]  ;;  %s16119_s21 = scalar_lea.vmem %s16118_s20, 32 }
 0x4be   : > { %v11421_v35 = vsel %vm643_vm1, %v11401_v54, %v21734_v59  ;;  %v12532_v36 = vcombine.low %v11646_v38, %v22210_v51  ;;  %v11397_v60 = vsel %vm24171_vm14, %v11376_v57, %v24170_v11  ;;  %v10565_v59 = vpop.permute.xlu1 %10564  ;;  %vm24174_vm0 = vcmask 457728   ;;  %v24192_v25 = vld [vmem:[#allocation158_spill] sm:$0xff]  ;;  %v24197_v57 = vld [vmem:[#allocation5_spill] sm:$0xff] }
 0x4bf   : > { %v11442_v20 = vsel %vm11430_vm13, %v11421_v35, %v21826_v17  ;;  %v11417_v8 = vsel %vm643_vm1, %v11397_v60, %v24172_v48  ;;  %11333 = vrot.lane.b32.xlu0 %v24175_v40, %s23716_s29  ;;  %v12238_v12 = vsel %vm8764_vm8, %v12237_v34, %v12236_v44  ;;  %v12240_v17 = vsel %vm8746_vm2, %v12239_v24, %v22126_v5  ;;  %vm24180_vm3 = vmmov %vm24174_vm0  ;;  %v22264_v3 = vpop.permute.xlu0 %11841  ;;  %v24182_v5 = vld [vmem:[#allocation153_spill] sm:$0xff]  ;;  %v24198_v44 = vld [vmem:[#allocation131_spill] sm:$0xff] }
 0x4c0   : > { %v11463_v43 = vsel %vm11451_vm15, %v11442_v20, %v21848_v49  ;;  %v11438_v31 = vsel %vm11430_vm13, %v11417_v8, %v24173_v33  ;;  %vm24178_vm7 = vcmask 523264   ;;  %v12540_v50 = vrot.slane %v12532_v36, %v16497_v23  ;;  %v24199_v48 = vld [vmem:[#allocation96_spill] sm:$0xff]  ;;  %v24200_v33 = vld [vmem:[#allocation93_spill] sm:$0xff] }
 0x4c1   : > { %v11484_v9 = vsel %vm24174_vm0, %v11463_v43, %v21929_v1  ;;  %v11459_v13 = vsel %vm11451_vm15, %v11438_v31, %v24176_v0  ;;  %11335 = vrot.lane.b32.xlu1 %v22019_v39, %s23716_s29  ;;  %v24179_v1 = vld [vmem:[#allocation152_spill] sm:$0xff]  ;;  %vm24181_vm4 = vcmask 588800   ;;  %vm24183_vm2 = vmmov %vm24178_vm7  ;;  %vm24186_vm8 = vcmask 64512  }
 0x4c2   : > { %v11505_v49 = vsel %vm24178_vm7, %v11484_v9, %v24177_v47  ;;  %v11480_v52 = vsel %vm24180_vm3, %v11459_v13, %v24179_v1  ;;  %v12273_v19 = vsel %vm24186_vm8, %v24185_v27, %v24184_v53  ;;  %vm24187_vm5 = vcmask 654336   ;;  %v10972_v7 = vpop.permute.xlu1 %10971  ;;  %vm24189_vm9 = vmmov %vm24181_vm4 }
 0x4c3   : > { %v11526_v37 = vsel %vm24181_vm4, %v11505_v49, %v22017_v6  ;;  %v11501_v62 = vsel %vm24183_vm2, %v11480_v52, %v24182_v5  ;;  %v12241_v39 = vpack.c.b16 %v12240_v17, %v12238_v12  ;;  %vm24190_vm14 = vcmask 130048   ;;  %12258 = vrot.lane.b32.xlu0 %v24191_v41, %s23940_s23  ;;  %vm24193_vm0 = vmmov %vm24187_vm5  ;;  %v10724_v34 = vpop.permute.xlu0 %10723  ;;  %v24202_v52 = vld [vmem:[#allocation17_spill] sm:$0xff] }
 0x4c4   : > { %v11547_v42 = vsel %vm24187_vm5, %v11526_v37, %v22162_v22  ;;  %v11522_v30 = vsel %vm24189_vm9, %v11501_v62, %v24188_v10  ;;  %v12299_v6 = vsel %vm24190_vm14, %v12273_v19, %v21992_v18  ;;  %v12548_v14 = vcombine.high %v12540_v50, %v12540_v50  ;;  %v24195_v18 = vld [vmem:[#allocation8_spill] sm:$0xff]  ;;  %vm24203_vm8 = vmmov %vm24189_vm9 }
 0x4c5   : > { %v11568_v16 = vsel %vm11556_vm10, %v11547_v42, %v10972_v7  ;;  %v11543_v58 = vsel %vm24193_vm0, %v11522_v30, %v24192_v25  ;;  %12260 = vrot.lane.b32.xlu1 %v12241_v39, %s23940_s23  ;;  %vm24196_vm7 = vcmask 195584   ;;  %v12533_v24 = vcombine.high %v11646_v38, %v22210_v51  ;;  %vm24204_vm5 = vmmov %vm24180_vm3 }
 0x4c6   : > { %v22285_v22 = vsel %vm11577_vm12, %v11568_v16, %v22179_v63  ;;  %v11564_v55 = vsel %vm11556_vm10, %v11543_v58, %v24194_v4  ;;  %v12319_v54 = vsel %vm24196_vm7, %v12299_v6, %v24195_v18  ;;  %v12037_v46 = vpop.permute.xlu1 %12036  ;;  %v12569_v36 = vrot.slane %v12548_v14, %v16497_v23  ;;  %vm24205_vm9 = vmmov %vm24183_vm2 }
 0x4c7   : > { %v12339_v2 = vsel %vm643_vm1, %v12319_v54, %v12037_v46  ;;  %v11585_v35 = vsel %vm11577_vm12, %v11564_v55, %v24197_v57  ;;  %v22302_v20 = vpop.permute.xlu0 %10316  ;;  %v12555_v38 = vrot.slane %v12540_v50, %v16497_v23  ;;  %vm24201_vm4 = vcmask 982016   ;;  %vm24206_vm14 = vmmov %vm24203_vm8 }
 0x4c8   : > { %v12359_v63 = vsel %vm11430_vm13, %v12339_v2, %v22048_v26  ;;  %v11606_v11 = vsel %vm11598_vm6, %v11585_v35, %v24198_v44  ;;  %v12547_v31 = vrot.slane %v12533_v24, %v16497_v23  ;;  %v12960_v37 = vrot.slane %v24202_v52, %v16497_v23 }
 0x4c9   : > { %v12379_v60 = vsel %vm11451_vm15, %v12359_v63, %v22105_v61  ;;  %v11627_v51 = vsel %vm11619_vm11, %v11606_v11, %v24199_v48  ;;  %v12951_v61 = vcombine.low %v12555_v38, %v12569_v36  ;;  %v15574_v47 = vcombine.high %v12555_v38, %v12569_v36  ;;  %v24208_v38 = vld [vmem:[#allocation22_spill] sm:$0xff] }
 0x4ca   : > { %v12399_v8 = vsel %vm24180_vm3, %v12379_v60, %v22212_v45  ;;  %v11736_v43 = vpop.permute.xlu1 %11735  ;;  %v22311_v26 = vsel %vm24201_vm4, %v11627_v51, %v24200_v33  ;;  %v12562_v0 = vrot.slane %v12547_v31, %v16497_v23  ;;  %v24207_v51 = vld [vmem:[#allocation71_spill] sm:$0xff]  ;;  %vm24209_vm0 = vcmask 64512   ;;  %v24210_v33 = vld [vmem:[#allocation108_spill] sm:$0xff] }
 0x4cb   : > { %v22315_v9 = vsel %vm24183_vm2, %v12399_v8, %v12249_v15  ;;  %v22319_v12 = vpop.permute.xlu0 %11130  ;;  %v12967_v49 = vrot.slane %v12951_v61, %v16497_v23  ;;  %v12974_v53 = vrot.slane %v15574_v47, %v16497_v23  ;;  %v12282_v8 = vsel %vm24209_vm0, %v24208_v38, %v24207_v51  ;;  %v24212_v61 = vld [vmem:[#allocation85_spill] sm:$0xff]  ;;  %vm24213_vm3 = vmmov %vm24209_vm0  ;;  %v24216_v47 = vld [vmem:[#allocation43_spill] sm:$0xff] }
 0x4cc   : > { %v12572_v40 = vcombine.low %v22311_v26, %v22315_v9  ;;  %vm24211_vm7 = vcmask 130048   ;;  %vm24215_vm4 = vcmask 195584   ;;  %vm24218_vm2 = vmmov %vm24209_vm0  ;;  %v24232_v38 = vld [vmem:[#allocation146_spill] sm:$0xff] }
 0x4cd   : > { %v12983_v27 = vcombine.high %v12960_v37, %v12967_v49  ;;  %v12982_v19 = vcombine.low %v12960_v37, %v12967_v49  ;;  %v24217_v49 = vld [vmem:[#allocation46_spill] sm:$0xff]  ;;  %vm24229_vm0 = vmmov %vm24215_vm4 }
 0x4ce   : > { %v22322_v17 = vrot.slane %v12572_v40, %v16497_v23  ;;  %v10512_v45 = vpop.permute.xlu1 %10511  ;;  %v12276_v40 = vsel %vm24213_vm3, %v24212_v61, %v11736_v43  ;;  %v12573_v43 = vcombine.high %v22311_v26, %v22315_v9  ;;  %vm24234_vm3 = vmmov %vm24218_vm2 }
 0x4cf   : > { %v11444_v13 = vsel %vm11430_vm13, %v22190_v56, %v10512_v45  ;;  %v12039_v1 = vpop.permute.xlu0 %12038  ;;  %v12992_v6 = vrot.slane %v12982_v19, %v16497_v23 }
 0x4d0   : > { %v22330_v15 = vrot.slane %v22322_v17, %v16497_v23  ;;  %v11465_v50 = vsel %vm11451_vm15, %v11444_v13, %v10565_v59  ;;  %v12999_v59 = vrot.slane %v12983_v27, %v16497_v23  ;;  %v12588_v52 = vcombine.high %v22322_v17, %v22322_v17  ;;  %v24225_v17 = vld [vmem:[#allocation124_spill] sm:$0xff] }
 0x4d1   : > { %v12587_v26 = vrot.slane %v12573_v43, %v16497_v23 }
 0x4d2   : > { %v10618_v5 = vpop.permute.xlu1 %10617  ;;  %v12953_v62 = vcombine.low %v12562_v0, %v22330_v15  ;;  %v24214_v0 = vld [vmem:[#allocation79_spill] sm:$0xff] }
 0x4d3   : > { %v12092_v42 = vpop.permute.xlu0 %12091  ;;  %v11486_v55 = vsel %vm24204_vm5, %v11465_v50, %v10618_v5  ;;  %v12285_v50 = vsel %vm24218_vm2, %v24217_v49, %v24216_v47  ;;  %v24220_v5 = vld [vmem:[#allocation14_spill] sm:$0xff]  ;;  %vm24222_vm5 = vmmov %vm24211_vm7  ;;  %vm24236_vm2 = vcmask 654336  }
 0x4d4   : > { %v12981_v56 = vrot.slane %v12953_v62, %v16497_v23 }
 0x4d6   : > { %v22338_v7 = vpop.permute.xlu1 %11325  ;;  %v12985_v39 = vcombine.high %v12974_v53, %v12981_v56  ;;  %v12984_v10 = vcombine.low %v12974_v53, %v12981_v56  ;;  %v24221_v53 = vld [vmem:[#allocation137_spill] sm:$0xff] }
 0x4d7   : > { %v22344_v41 = vpop.permute.xlu0 %10973  ;;  %v12307_v56 = vsel %vm24222_vm5, %v12285_v50, %v24221_v53 }
 0x4d8   : > { %v13013_v30 = vrot.slane %v12985_v39, %v16497_v23  ;;  %v13006_v16 = vrot.slane %v12984_v10, %v16497_v23  ;;  %v24224_v10 = vld [vmem:[#allocation48_spill] sm:$0xff] }
 0x4da   : > { %v11789_v25 = vpop.permute.xlu1 %11788  ;;  %v13015_v58 = vcombine.low %v12999_v59, %v13013_v30  ;;  %v13014_v14 = vcombine.low %v12992_v6, %v13006_v16  ;;  %v12609_v6 = vrot.slane %v12588_v52, %v16497_v23  ;;  %v24227_v16 = vld [vmem:[#allocation133_spill] sm:$0xff] }
 0x4db   : > { %v22347_v4 = vpop.permute.xlu0 %10566 }
 0x4dc   : > { %15592 = vmatprep.mubr.msk.bf16.mxu1 %vm24203_vm8, %v13015_v58  ;;  %vm24219_vm8 = vmmov %vm24211_vm7  ;;  %v24228_v58 = vld [vmem:[#allocation75_spill] sm:$0xff] }
 0x4dd   : > { %13451 = vmatmul.mubr.bf16.gmra.mxu1 %v13014_v14  ;;  %v12301_v37 = vsel %vm24219_vm8, %v12276_v40, %v11789_v25  ;;  %v24233_v40 = vld [vmem:[#allocation51_spill] sm:$0xff] }
 0x4de   : > { %v10671_v18 = vpop.permute.xlu1 %10670 }
 0x4df   : > { %v11507_v54 = vsel %vm24205_vm9, %v11486_v55, %v10671_v18  ;;  %v22352_v24 = vpop.permute.xlu0 %9268  ;;  %vm24223_vm9 = vmmov %vm24215_vm4 }
 0x4e0   : > { %v11528_v46 = vsel %vm24206_vm14, %v11507_v54, %v10724_v34  ;;  %v12305_v34 = vsel %vm24211_vm7, %v12282_v8, %v24210_v33  ;;  %v12321_v19 = vsel %vm24223_vm9, %v12301_v37, %v22264_v3  ;;  %vm24226_vm14 = vmmov %vm24215_vm4  ;;  %v24230_v54 = vld [vmem:[#allocation38_spill] sm:$0xff]  ;;  %vm24231_vm7 = vcmask 457728  }
 0x4e1   : > { %v12325_v13 = vsel %vm24215_vm4, %v12305_v34, %v24214_v0  ;;  %v12327_v30 = vsel %vm24226_vm14, %v12307_v56, %v24225_v17  ;;  %v12341_v9 = vsel %vm643_vm1, %v12321_v19, %v12039_v1  ;;  %v12611_v33 = vcombine.high %v12609_v6, %v12609_v6  ;;  %vm24235_vm4 = vmmov %vm24222_vm5 }
 0x4e2   : > { %v9967_v2 = vpop.permute.xlu1 %9966  ;;  %v12345_v62 = vsel %vm643_vm1, %v12325_v13, %v24220_v5  ;;  %v12347_v14 = vsel %vm643_vm1, %v12327_v30, %v24228_v58  ;;  %v12602_v34 = vrot.slane %v12587_v26, %v16497_v23  ;;  %v12361_v61 = vsel %vm11430_vm13, %v12341_v9, %v12092_v42  ;;  %vm24237_vm8 = vmmov %vm24231_vm7  ;;  %v24251_v58 = vld [vmem:[#allocation56_spill] sm:$0xff]  ;;  %v24253_v9 = vld [vmem:[#allocation81_spill] sm:$0xff] }
 0x4e3   : > { %v12145_v57 = vpop.permute.xlu0 %12144  ;;  %v12365_v59 = vsel %vm11430_vm13, %v12345_v62, %v24224_v10  ;;  %v11405_v55 = vsel %vm24229_vm0, %v22142_v28, %v9967_v2  ;;  %v12367_v8 = vsel %vm11430_vm13, %v12347_v14, %v24232_v38  ;;  %v12610_v0 = vcombine.high %v22330_v15, %v22330_v15  ;;  %vm24238_vm5 = vmmov %vm24229_vm0  ;;  %v24245_v10 = vld [vmem:[#allocation111_spill] sm:$0xff] }
 0x4e4   : > { %v12385_v25 = vsel %vm11451_vm15, %v12365_v59, %v24227_v16  ;;  %v12381_v28 = vsel %vm11451_vm15, %v12361_v61, %v12145_v57  ;;  %v11425_v13 = vsel %vm643_vm1, %v11405_v55, %v22302_v20  ;;  %vm24239_vm9 = vcmask 982016   ;;  %vm24244_vm0 = vmmov %vm24231_vm7  ;;  %v24249_v16 = vld [vmem:[#allocation107_spill] sm:$0xff] }
 0x4e5   : > { %v12405_v51 = vsel %vm24231_vm7, %v12385_v25, %v24230_v54  ;;  %v11650_v57 = vsel %vm24239_vm9, %v22225_v21, %v22338_v7  ;;  %vm24241_vm14 = vcmask 523264   ;;  %v13016_v5 = vcombine.low %v12609_v6, %v12610_v0  ;;  %v24243_v7 = vld [vmem:[#allocation27_spill] sm:$0xff]  ;;  %vm24246_vm7 = vmmov %vm24244_vm0 }
 0x4e6   : > { %v11078_v35 = vpop.permute.xlu1 %11077  ;;  %v24257_v0 = vld [vmem:[#allocation11_spill] sm:$0xff] }
 0x4e7   : > { %v11738_v36 = vpop.permute.xlu0 %11737  ;;  %v11610_v2 = vsel %vm11598_vm6, %v22285_v22, %v11078_v35  ;;  %v24240_v22 = vld [vmem:[#allocation84_spill] sm:$0xff] }
 0x4e8   : > { %v12279_v1 = vsel %vm24234_vm3, %v24233_v40, %v11738_v36  ;;  %vm24248_vm3 = vmmov %vm24239_vm9  ;;  %vm24256_vm9 = vcmask 588800  }
 0x4ea   : > { %v10921_v63 = vpop.permute.xlu1 %10920 }
 0x4eb   : > { %v22354_v44 = vpop.permute.xlu0 %9618  ;;  %v11549_v50 = vsel %vm24236_vm2, %v11528_v46, %v10921_v63  ;;  %v11631_v46 = vsel %vm11619_vm11, %v11610_v2, %v22319_v12  ;;  %v24242_v63 = vld [vmem:[#allocation83_spill] sm:$0xff]  ;;  %vm24252_vm2 = vmmov %vm24244_vm0 }
 0x4ec   : > { %v11570_v62 = vsel %vm11556_vm10, %v11549_v50, %v22344_v41  ;;  %v24247_v41 = vld [vmem:[#allocation37_spill] sm:$0xff] }
 0x4ee   : > { %v10514_v11 = vpop.permute.xlu1 %10513 }
 0x4ef   : > { %v11791_v60 = vpop.permute.xlu0 %11790  ;;  %v11446_v42 = vsel %vm11430_vm13, %v11425_v13, %v10514_v11 }
 0x4f0   : > { %v12303_v47 = vsel %vm24235_vm4, %v12279_v1, %v11791_v60  ;;  %v13017_v60 = vcombine.low %v12611_v33, %v12602_v34  ;;  %v11467_v21 = vsel %vm11451_vm15, %v11446_v42, %v22347_v4  ;;  %v12387_v4 = vsel %vm11451_vm15, %v12367_v8, %v24247_v41  ;;  %vm24250_vm4 = vmmov %vm24241_vm14  ;;  %v24259_v42 = vld [vmem:[#allocation73_spill] sm:$0xff] }
 0x4f1   : > { %v13026_v8 = vrot.slane %v13016_v5, %v16497_v23 }
 0x4f2   : > { %v22356_v48 = vpop.permute.xlu1 %11327 }
 0x4f3   : > { %v22363_v31 = vpop.permute.xlu0 %11079  ;;  %v11652_v6 = vsel %vm24248_vm3, %v11631_v46, %v22356_v48 }
 0x4f6   : > { %v11027_v45 = vpop.permute.xlu1 %11026 }
 0x4f7   : > { %v10673_v27 = vpop.permute.xlu0 %10672  ;;  %v11591_v19 = vsel %vm11577_vm12, %v11570_v62, %v11027_v45  ;;  %v13033_v45 = vrot.slane %v13017_v60, %v16497_v23 }
 0x4f8   : > { %v11612_v48 = vsel %vm11598_vm6, %v11591_v19, %v22363_v31  ;;  %v24265_v19 = vld [vmem:[#allocation76_spill] sm:$0xff] }
 0x4f9   : > { %v13049_v2 = vcombine.high %v13026_v8, %v13033_v45 }
 0x4fa   : > { %v10620_v39 = vpop.permute.xlu1 %10619 }
 0x4fb   : > { %v22394_v3 = vpop.permute.xlu0 %9968  ;;  %v11488_v12 = vsel %vm24244_vm0, %v11467_v21, %v10620_v39  ;;  %v12407_v39 = vsel %vm24252_vm2, %v12387_v4, %v24251_v58  ;;  %vm24261_vm0 = vmmov %vm24248_vm3 }
 0x4fc   : > { %vm24268_vm3 = vmmov %vm24261_vm0 }
 0x4fe   : > { %v12198_v18 = vpop.permute.xlu1 %12197 }
 0x4ff   : > { %v11844_v49 = vpop.permute.xlu0 %11843  ;;  %v12401_v36 = vsel %vm24237_vm8, %v12381_v28, %v12198_v18  ;;  %vm24254_vm8 = vmmov %vm24250_vm4 }
 0x500   : > { %v12323_v52 = vsel %vm24238_vm5, %v12303_v47, %v11844_v49  ;;  %v12425_v55 = vsel %vm24254_vm8, %v12405_v51, %v24253_v9  ;;  %vm24255_vm5 = vmmov %vm24250_vm4  ;;  %vm24272_vm8 = vcmask 64512  }
 0x501   : > { %v12343_v35 = vsel %vm643_vm1, %v12323_v52, %v24240_v22  ;;  %v11509_v54 = vsel %vm24255_vm5, %v11488_v12, %v10673_v27  ;;  %v24260_v52 = vld [vmem:[#allocation28_spill] sm:$0xff]  ;;  %v13048_v22 = vcombine.low %v13026_v8, %v13033_v45  ;;  %vm24273_vm5 = vcmask 130048  }
 0x502   : > { %v12251_v15 = vpop.permute.xlu1 %12250  ;;  %v12363_v11 = vsel %vm11430_vm13, %v12343_v35, %v24242_v63 }
 0x503   : > { %v12421_v20 = vsel %vm24241_vm14, %v12401_v36, %v12251_v15  ;;  %v12383_v53 = vsel %vm11451_vm15, %v12363_v11, %v24243_v7  ;;  %v22434_v43 = vpop.permute.xlu0 %11849  ;;  %vm24258_vm14 = vcmask 654336   ;;  %v24263_v7 = vld [vmem:[#allocation58_spill] sm:$0xff] }
 0x504   : > { %v12612_v37 = vcombine.low %v11650_v57, %v12421_v20  ;;  %v12613_v56 = vcombine.high %v11650_v57, %v12421_v20  ;;  %v12403_v59 = vsel %vm24246_vm7, %v12383_v53, %v24245_v10  ;;  %vm24264_vm7 = vmmov %vm24250_vm4 }
 0x505   : > { %v12423_v25 = vsel %vm24250_vm4, %v12403_v59, %v24249_v16  ;;  %v12427_v53 = vsel %vm24264_vm7, %v12407_v39, %v24263_v7  ;;  %v13065_v16 = vrot.slane %v13049_v2, %v16497_v23  ;;  %vm24269_vm4 = vmmov %vm24256_vm9 }
 0x506   : > { %v12620_v17 = vrot.slane %v12612_v37, %v16497_v23  ;;  %v22441_v30 = vpop.permute.xlu1 %10926  ;;  %v12652_v14 = vcombine.low %v11652_v6, %v12423_v25  ;;  %v12627_v18 = vrot.slane %v12613_v56, %v16497_v23  ;;  %v12653_v51 = vcombine.high %v11652_v6, %v12423_v25  ;;  %v24262_v37 = vld [vmem:[#allocation60_spill] sm:$0xff]  ;;  %v24267_v25 = vld [vmem:[#allocation122_spill] sm:$0xff]  ;;  %vm24270_vm2 = vmmov %vm24269_vm4 }
 0x507   : > { %v10726_v38 = vpop.permute.xlu0 %10725  ;;  %vm24280_vm7 = vmmov %vm24273_vm5 }
 0x508   : > { %v12628_v26 = vcombine.high %v12620_v17, %v12620_v17  ;;  %v12635_v33 = vrot.slane %v12620_v17, %v16497_v23  ;;  %v12660_v61 = vrot.slane %v12652_v14, %v16497_v23  ;;  %v11530_v40 = vsel %vm24256_vm9, %v11509_v54, %v10726_v38  ;;  %v24266_v17 = vld [vmem:[#allocation78_spill] sm:$0xff]  ;;  %vm24276_vm9 = vmmov %vm24272_vm8 }
 0x509   : > { %v11551_v28 = vsel %vm24258_vm14, %v11530_v40, %v24257_v0  ;;  %v12642_v50 = vrot.slane %v12627_v18, %v16497_v23  ;;  %v12667_v56 = vrot.slane %v12653_v51, %v16497_v23  ;;  %v13058_v18 = vrot.slane %v13048_v22, %v16497_v23 }
 0x50a   : > { %v12649_v34 = vrot.slane %v12628_v26, %v16497_v23  ;;  %v11133_v1 = vpop.permute.xlu1 %11132  ;;  %v12668_v13 = vcombine.high %v12660_v61, %v12660_v61  ;;  %v12675_v31 = vrot.slane %v12660_v61, %v16497_v23  ;;  %v11572_v36 = vsel %vm11556_vm10, %v11551_v28, %v24259_v42 }
 0x50b   : > { %v11633_v27 = vsel %vm11619_vm11, %v11612_v48, %v11133_v1  ;;  %v22472_v57 = vpop.permute.xlu0 %10977  ;;  %v11593_v5 = vsel %vm11577_vm12, %v11572_v36, %v24262_v37  ;;  %v12682_v8 = vrot.slane %v12667_v56, %v16497_v23  ;;  %vm24277_vm14 = vcmask 195584  }
 0x50c   : > { %v13018_v47 = vcombine.low %v12635_v33, %v12649_v34  ;;  %v15575_v49 = vcombine.high %v12635_v33, %v12649_v34  ;;  %v11654_v15 = vsel %vm24261_vm0, %v11633_v27, %v24260_v52  ;;  %v12689_v35 = vrot.slane %v12668_v13, %v16497_v23  ;;  %vm24278_vm0 = vmmov %vm24270_vm2 }
 0x50d   : > { %v12690_v20 = vcombine.high %v12675_v31, %v12675_v31  ;;  %v13082_v11 = vcombine.low %v12642_v50, %v12675_v31  ;;  %v12692_v62 = vcombine.low %v11654_v15, %v12425_v55  ;;  %v12693_v21 = vcombine.high %v11654_v15, %v12425_v55 }
 0x50e   : > { %v13040_v60 = vrot.slane %v13018_v47, %v16497_v23  ;;  %v13047_v46 = vrot.slane %v15575_v49, %v16497_v23  ;;  %v22477_v63 = vpop.permute.xlu1 %11851  ;;  %v11614_v12 = vsel %vm11598_vm6, %v11593_v5, %v24265_v19  ;;  %v12691_v1 = vcombine.high %v12689_v35, %v12689_v35 }
 0x50f   : > { %v13083_v59 = vcombine.low %v12689_v35, %v12690_v20  ;;  %v11635_v41 = vsel %vm11619_vm11, %v11614_v12, %v24266_v17  ;;  %v12700_v4 = vrot.slane %v12692_v62, %v16497_v23  ;;  %v22489_v6 = vpop.permute.xlu0 %12046  ;;  %v12707_v58 = vrot.slane %v12693_v21, %v16497_v23 }
 0x510   : > { %v13051_v10 = vcombine.high %v13040_v60, %v13047_v46  ;;  %v11656_v45 = vsel %vm24268_vm3, %v11635_v41, %v24267_v25  ;;  %v13050_v26 = vcombine.low %v13040_v60, %v13047_v46  ;;  %v13092_v51 = vrot.slane %v13082_v11, %v16497_v23  ;;  %vm24282_vm3 = vmmov %vm24277_vm14 }
 0x511   : > { %v12732_v9 = vcombine.low %v11656_v45, %v12427_v53  ;;  %v12708_v55 = vcombine.high %v12700_v4, %v12700_v4  ;;  %v12733_v54 = vcombine.high %v11656_v45, %v12427_v53  ;;  %v12715_v33 = vrot.slane %v12700_v4, %v16497_v23 }
 0x512   : > { %v22495_v39 = vpop.permute.xlu1 %10979  ;;  %v13079_v14 = vrot.slane %v13051_v10, %v16497_v23  ;;  %v13072_v48 = vrot.slane %v13050_v26, %v16497_v23  ;;  %v12722_v0 = vrot.slane %v12707_v58, %v16497_v23  ;;  %v13099_v2 = vrot.slane %v13083_v59, %v16497_v23 }
 0x513   : > { %v12729_v34 = vrot.slane %v12708_v55, %v16497_v23  ;;  %v12740_v61 = vrot.slane %v12732_v9, %v16497_v23  ;;  %v22504_v40 = vpop.permute.xlu0 %11030  ;;  %v12747_v50 = vrot.slane %v12733_v54, %v16497_v23  ;;  %v13084_v42 = vcombine.low %v12691_v1, %v12682_v8  ;;  %v24271_v1 = vld [vmem:[#allocation161_spill] sm:$0xff] }
 0x514   : > { %v13081_v38 = vcombine.low %v13065_v16, %v13079_v14  ;;  %v13080_v27 = vcombine.low %v13058_v18, %v13072_v48  ;;  %v13115_v36 = vcombine.high %v13092_v51, %v13099_v2  ;;  %v13114_v52 = vcombine.low %v13092_v51, %v13099_v2 }
 0x515   : > { %v12748_v13 = vcombine.high %v12740_v61, %v12740_v61  ;;  %v12755_v31 = vrot.slane %v12740_v61, %v16497_v23  ;;  %v13085_v47 = vcombine.low %v12715_v33, %v12729_v34  ;;  %v15576_v49 = vcombine.high %v12715_v33, %v12729_v34 }
 0x516   : > { %v22508_v28 = vpop.permute.xlu1 %12048  ;;  %15593 = vmatprep.mubr.msk.bf16.mxu1 %vm24269_vm4, %v13081_v38  ;;  %v13106_v11 = vrot.slane %v13084_v42, %v16497_v23  ;;  %v12762_v7 = vrot.slane %v12747_v50, %v16497_v23  ;;  %v13131_v17 = vrot.slane %v13115_v36, %v16497_v23  ;;  %v13124_v4 = vrot.slane %v13114_v52, %v16497_v23  ;;  %v24279_v42 = vld [vmem:[#allocation69_spill] sm:$0xff] }
 0x517   : > { %13459 = vmatmul.mubr.bf16.gmra.mxu1 %v13080_v27  ;;  %v12770_v15 = vcombine.high %v12755_v31, %v12755_v31  ;;  %v13113_v22 = vrot.slane %v13085_v47, %v16497_v23  ;;  %v13149_v35 = vcombine.low %v12722_v0, %v12755_v31  ;;  %v13158_v20 = vrot.slane %v15576_v49, %v16497_v23  ;;  %v22516_v60 = vpop.permute.xlu0 %12099  ;;  %v24275_v31 = vld [vmem:[#allocation21_spill] sm:$0xff] }
 0x518   : > { %v12769_v5 = vrot.slane %v12748_v13, %v16497_v23  ;;  %v11364_v51 = vsel %vm24272_vm8, %v24271_v1, %v22352_v24  ;;  %v24274_v13 = vld [vmem:[#allocation45_spill] sm:$0xff]  ;;  %vm24288_vm4 = vcmask 457728  }
 0x519   : > { %v13165_v37 = vrot.slane %v13149_v35, %v16497_v23  ;;  %v13117_v62 = vcombine.high %v13106_v11, %v13113_v22  ;;  %v13116_v21 = vcombine.low %v13106_v11, %v13113_v22  ;;  %v11386_v2 = vsel %vm24273_vm5, %v11364_v51, %v22354_v44  ;;  %v24283_v44 = vld [vmem:[#allocation72_spill] sm:$0xff]  ;;  %vm24293_vm8 = vmmov %vm24288_vm4 }
 0x51a   : > { %v22518_v46 = vpop.permute.xlu1 %11032  ;;  %v12771_v56 = vcombine.high %v12769_v5, %v12769_v5  ;;  %v13150_v19 = vcombine.low %v12769_v5, %v12770_v15  ;;  %v11367_v47 = vsel %vm24276_vm9, %v24275_v31, %v24274_v13  ;;  %v11407_v49 = vsel %vm24277_vm14, %v11386_v2, %v22394_v3  ;;  %v24281_v15 = vld [vmem:[#allocation106_spill] sm:$0xff]  ;;  %v24285_v3 = vld [vmem:[#allocation87_spill] sm:$0xff]  ;;  %vm24295_vm5 = vmmov %vm24276_vm9 }
 0x51b   : > { %v22524_v53 = vpop.permute.xlu0 %11083  ;;  %v13181_v12 = vcombine.high %v13158_v20, %v13165_v37  ;;  %v13180_v10 = vcombine.low %v13158_v20, %v13165_v37  ;;  %v13145_v41 = vrot.slane %v13117_v62, %v16497_v23  ;;  %v13138_v16 = vrot.slane %v13116_v21, %v16497_v23  ;;  %v24284_v20 = vld [vmem:[#allocation110_spill] sm:$0xff]  ;;  %vm24297_vm9 = vmmov %vm24278_vm0  ;;  %v24306_v51 = vld [vmem:[#allocation128_spill] sm:$0xff] }
 0x51c   : > { %v13151_v25 = vcombine.low %v12771_v56, %v12762_v7  ;;  %v13172_v26 = vrot.slane %v13150_v19, %v16497_v23  ;;  %v11388_v36 = vsel %vm24280_vm7, %v11367_v47, %v24279_v42  ;;  %v24286_v5 = vld [vmem:[#allocation74_spill] sm:$0xff]  ;;  %v24289_v19 = vld [vmem:[#allocation36_spill] sm:$0xff] }
 0x51d   : > { %v13147_v45 = vcombine.low %v13131_v17, %v13145_v41  ;;  %v13146_v58 = vcombine.low %v13124_v4, %v13138_v16  ;;  %v13197_v38 = vrot.slane %v13181_v12, %v16497_v23  ;;  %v13190_v33 = vrot.slane %v13180_v10, %v16497_v23  ;;  %v24287_v21 = vld [vmem:[#allocation82_spill] sm:$0xff]  ;;  %v24290_v10 = vld [vmem:[#allocation13_spill] sm:$0xff] }
 0x51e   : > { %v22526_v59 = vpop.permute.xlu1 %12101  ;;  %v13179_v9 = vrot.slane %v13151_v25, %v16497_v23  ;;  %v11409_v22 = vsel %vm24282_vm3, %v11388_v36, %v24281_v15  ;;  %v24292_v4 = vld [vmem:[#allocation9_spill] sm:$0xff]  ;;  %v24294_v25 = vld [vmem:[#allocation19_spill] sm:$0xff]  ;;  %vm24305_vm3 = vcmask 654336  }
 0x51f   : > { %v12153_v14 = vpop.permute.xlu0 %12152  ;;  %15594 = vmatprep.mubr.msk.bf16.mxu1 %vm24270_vm2, %v13147_v45  ;;  %v11429_v11 = vsel %vm643_vm1, %v11409_v22, %v24284_v20  ;;  %vm24291_vm2 = vcmask 523264   ;;  %v12288_v45 = vsel %vm24295_vm5, %v24105_v29, %v24294_v25  ;;  %v24308_v29 = vld [vmem:[#allocation86_spill] sm:$0xff] }
 0x520   : > { %13467 = vmatmul.mubr.bf16.gmra.mxu1 %v13146_v58  ;;  %v13183_v18 = vcombine.high %v13172_v26, %v13179_v9  ;;  %v13182_v54 = vcombine.low %v13172_v26, %v13179_v9  ;;  %v11450_v62 = vsel %vm11430_vm13, %v11429_v11, %v24286_v5  ;;  %v24296_v58 = vld [vmem:[#allocation50_spill] sm:$0xff]  ;;  %v24298_v9 = vld [vmem:[#allocation33_spill] sm:$0xff]  ;;  %vm24299_vm14 = vmmov %vm24291_vm2 }
 0x521   : > { %v11471_v12 = vsel %vm11451_vm15, %v11450_v62, %v24289_v19 }
 0x522   : > { %v11086_v55 = vpop.permute.xlu1 %11085  ;;  %v13211_v48 = vrot.slane %v13183_v18, %v16497_v23  ;;  %v13204_v34 = vrot.slane %v13182_v54, %v16497_v23  ;;  %v11492_v16 = vsel %vm24293_vm8, %v11471_v12, %v24292_v4  ;;  %v24300_v54 = vld [vmem:[#allocation57_spill] sm:$0xff]  ;;  %vm24310_vm8 = vcmask 195584  }
 0x523   : > { %v11513_v18 = vsel %vm24299_vm14, %v11492_v16, %v24298_v9  ;;  %vm24314_vm14 = vcmask 982016  }
 0x524   : > { %v13213_v0 = vcombine.low %v13197_v38, %v13211_v48  ;;  %v13212_v27 = vcombine.low %v13190_v33, %v13204_v34  ;;  %v24302_v48 = vld [vmem:[#allocation123_spill] sm:$0xff]  ;;  %v24304_v34 = vld [vmem:[#allocation126_spill] sm:$0xff] }
 0x525   : > { %v11137_v8 = vpop.permute.xlu0 %11136 }
 0x526   : > { %15595 = vmatprep.mubr.msk.bf16.mxu1 %vm24278_vm0, %v13213_v0  ;;  %vm24301_vm0 = vmmov %vm24280_vm7 }
 0x527   : > { %v12155_v61 = vpop.permute.xlu1 %12154  ;;  %v12309_v38 = vsel %vm24301_vm0, %v12288_v45, %v24300_v54  ;;  %vm24303_vm7 = vmmov %vm24295_vm5 }
 0x528   : > { %13475 = vmatmul.mubr.bf16.gmra.mxu1 %v13212_v27  ;;  %v12291_v33 = vsel %vm24303_vm7, %v22058_v32, %v24302_v48  ;;  %v12329_v2 = vsel %vm24310_vm8, %v12309_v38, %v22434_v43  ;;  %vm24311_vm5 = vmmov %vm24305_vm3  ;;  %vm24316_vm7 = vcmask 523264  }
 0x529   : > { %v10319_v50 = vpop.permute.xlu0 %10318 }
 0x52a   : > { %v11427_v24 = vsel %vm643_vm1, %v11407_v49, %v10319_v50  ;;  %v12349_v49 = vsel %vm643_vm1, %v12329_v2, %v22489_v6 }
 0x52b   : > { %v11139_v52 = vpop.permute.xlu1 %11138  ;;  %v11448_v35 = vsel %vm11430_vm13, %v11427_v24, %v24283_v44  ;;  %v12369_v36 = vsel %vm11430_vm13, %v12349_v49, %v22516_v60  ;;  %v22650_v49 = vld [vmem:[%s22983_s4] ss:$0 sm:$0xff] }
 0x52c   : > { %v11469_v37 = vsel %vm11451_vm15, %v11448_v35, %v24285_v3 }
 0x52d   : > { %v11490_v7 = vsel %vm24288_vm4, %v11469_v37, %v24287_v21  ;;  %v12206_v56 = vpop.permute.xlu0 %12205  ;;  %vm24307_vm4 = vmmov %vm24297_vm9 }
 0x52e   : > { %v11511_v17 = vsel %vm24291_vm2, %v11490_v7, %v24290_v10  ;;  %v11534_v0 = vsel %vm24307_vm4, %v11513_v18, %v24306_v51  ;;  %vm24309_vm2 = vmmov %vm24301_vm0 }
 0x52f   : > { %v12208_v41 = vpop.permute.xlu1 %12207  ;;  %v11532_v26 = vsel %vm24297_vm9, %v11511_v17, %v24296_v58  ;;  %v12311_v27 = vsel %vm24309_vm2, %v12291_v33, %v24308_v29  ;;  %v11555_v47 = vsel %vm24311_vm5, %v11534_v0, %v22441_v30  ;;  %vm24312_vm9 = vmmov %vm24310_vm8 }
 0x530   : > { %v11553_v1 = vsel %vm24305_vm3, %v11532_v26, %v24304_v34  ;;  %v12331_v32 = vsel %vm24312_vm9, %v12311_v27, %v22477_v63  ;;  %v11576_v43 = vsel %vm11556_vm10, %v11555_v47, %v22495_v39  ;;  %vm24318_vm3 = vmmov %vm24316_vm7  ;;  %vm24323_vm9 = vcmask 654336  }
 0x531   : > { %v11574_v13 = vsel %vm11556_vm10, %v11553_v1, %v22472_v57  ;;  %v11334_v31 = vpop.permute.xlu0 %11333  ;;  %v12351_v57 = vsel %vm643_vm1, %v12331_v32, %v22508_v28  ;;  %v11597_v63 = vsel %vm11577_vm12, %v11576_v43, %v22518_v46  ;;  %vm24313_vm10 = vcmask 457728   ;;  %vm24321_vm8 = vmmov %vm24309_vm2 }
 0x532   : > { %v11595_v50 = vsel %vm11577_vm12, %v11574_v13, %v22504_v40  ;;  %v12371_v6 = vsel %vm11430_vm13, %v12351_v57, %v22526_v59  ;;  %v12389_v40 = vsel %vm11451_vm15, %v12369_v36, %v12153_v14  ;;  %v11618_v39 = vsel %vm11598_vm6, %v11597_v63, %v11086_v55  ;;  %vm24315_vm0 = vmmov %vm24313_vm10 }
 0x533   : > { %v11336_v42 = vpop.permute.xlu1 %11335  ;;  %v11616_v30 = vsel %vm11598_vm6, %v11595_v50, %v22524_v53  ;;  %v12391_v28 = vsel %vm11451_vm15, %v12371_v6, %v12155_v61  ;;  %v12409_v15 = vsel %vm24313_vm10, %v12389_v40, %v12206_v56  ;;  %v11639_v53 = vsel %vm11619_vm11, %v11618_v39, %v11139_v52  ;;  %vm24317_vm13 = vmmov %vm24314_vm14 }
 0x534   : > { %v11637_v24 = vsel %vm11619_vm11, %v11616_v30, %v11137_v8  ;;  %v12411_v46 = vsel %vm24315_vm0, %v12391_v28, %v12208_v41  ;;  %v11660_v14 = vsel %vm24317_vm13, %v11639_v53, %v11336_v42  ;;  %vm24319_vm6 = vmmov %vm24307_vm4 }
 0x535   : > { %v11658_v60 = vsel %vm24314_vm14, %v11637_v24, %v11334_v31  ;;  %v12259_v22 = vpop.permute.xlu0 %12258  ;;  %vm24322_vm5 = vmmov %vm24318_vm3 }
 0x536   : > { %v12429_v44 = vsel %vm24316_vm7, %v12409_v15, %v12259_v22  ;;  %vm24324_vm10 = vmmov %vm24318_vm3 }
 0x537   : > { %v12261_v59 = vpop.permute.xlu1 %12260  ;;  %v12772_v35 = vcombine.low %v11658_v60, %v12429_v44  ;;  %v12773_v8 = vcombine.high %v11658_v60, %v12429_v44  ;;  %vm24325_vm14 = vmmov %vm24323_vm9 }
 0x538   : > { %v12431_v55 = vsel %vm24318_vm3, %v12411_v46, %v12261_v59  ;;  %vm24326_vm0 = vmmov %vm24309_vm2 }
 0x539   : > { %v12812_v20 = vcombine.low %v11660_v14, %v12431_v55  ;;  %v12813_v61 = vcombine.high %v11660_v14, %v12431_v55  ;;  %v12780_v11 = vrot.slane %v12772_v35, %v16497_v23  ;;  %v12787_v3 = vrot.slane %v12773_v8, %v16497_v23  ;;  %vm24327_vm7 = vmmov %vm24326_vm0 }
 0x53a   : > { %vm24328_vm13 = vmmov %vm24318_vm3 }
 0x53b   : > { %v12820_v37 = vrot.slane %v12812_v20, %v16497_v23  ;;  %v12788_v52 = vcombine.high %v12780_v11, %v12780_v11  ;;  %v12802_v5 = vrot.slane %v12787_v3, %v16497_v23  ;;  %v12827_v62 = vrot.slane %v12813_v61, %v16497_v23  ;;  %vm24329_vm3 = vmmov %vm24323_vm9 }
 0x53c   : > { %v12795_v56 = vrot.slane %v12780_v11, %v16497_v23 }
 0x53d   : > { %v12828_v21 = vcombine.high %v12820_v37, %v12820_v37  ;;  %v12835_v7 = vrot.slane %v12820_v37, %v16497_v23  ;;  %v12809_v19 = vrot.slane %v12788_v52, %v16497_v23  ;;  %v12842_v16 = vrot.slane %v12827_v62, %v16497_v23 }
 0x53f   : > { %v12849_v12 = vrot.slane %v12828_v21, %v16497_v23  ;;  %v12850_v10 = vcombine.high %v12835_v7, %v12835_v7  ;;  %v13216_v17 = vcombine.low %v12802_v5, %v12835_v7  ;;  %v13214_v41 = vcombine.low %v12795_v56, %v12809_v19 }
 0x540   : > { %v15577_v4 = vcombine.high %v12795_v56, %v12809_v19 }
 0x541   : > { %v12851_v25 = vcombine.high %v12849_v12, %v12849_v12  ;;  %v13217_v45 = vcombine.low %v12849_v12, %v12850_v10  ;;  %v13224_v58 = vrot.slane %v13214_v41, %v16497_v23  ;;  %v13238_v9 = vrot.slane %v13216_v17, %v16497_v23 }
 0x542   : > { %v13231_v26 = vrot.slane %v15577_v4, %v16497_v23 }
 0x543   : > { %v13245_v18 = vrot.slane %v13217_v45, %v16497_v23  ;;  %v13280_v54 = vcombine.low %v12851_v25, %v12842_v16 }
 0x544   : > { %v13247_v38 = vcombine.high %v13224_v58, %v13231_v26  ;;  %v13246_v48 = vcombine.low %v13224_v58, %v13231_v26 }
 0x545   : > { %v13287_v33 = vrot.slane %v13280_v54, %v16497_v23  ;;  %v13249_v34 = vcombine.high %v13238_v9, %v13245_v18  ;;  %v13248_v1 = vcombine.low %v13238_v9, %v13245_v18 }
 0x546   : > { %v13263_v51 = vrot.slane %v13247_v38, %v16497_v23  ;;  %v13256_v29 = vrot.slane %v13246_v48, %v16497_v23 }
 0x547   : > { %v13277_v0 = vrot.slane %v13249_v34, %v16497_v23  ;;  %v13270_v27 = vrot.slane %v13248_v1, %v16497_v23  ;;  %v13288_v2 = vcombine.high %v13287_v33, %v13287_v33  ;;  %v13295_v32 = vrot.slane %v13287_v33, %v16497_v23 }
 0x549   : > { %v13279_v13 = vcombine.low %v13263_v51, %v13277_v0  ;;  %v13278_v31 = vcombine.low %v13256_v29, %v13270_v27  ;;  %v13302_v47 = vrot.slane %v13288_v2, %v16497_v23 }
 0x54b   : > { %15596 = vmatprep.mubr.msk.bf16.mxu1 %vm24319_vm6, %v13279_v13 }
 0x54c   : > { %13483 = vmatmul.mubr.bf16.gmra.mxu1 %v13278_v31 }
 0x54d   : > { %15597 = vmatprep.mubr.msk.bf16.mxu1 %vm24307_vm4, %v13302_v47 }
 0x550   : > { %v13444_v50 = vpop.f32.mrf.mxu1 }
 0x551   : > { %v13445_v43 = vadd.f32 %v22650_v49, %v13444_v50 }
 0x552   : > { %v13446_v42 = vpop.f32.mrf.mxu1 }
 0x553   : > { %v13498_v63 = vmax.f32 %v13445_v43, 0.0 }
 0x554   : > { %13491 = vmatmul.mubr.bf16.gmra.mxu1 %v13295_v32  ;;  %v13447_v57 = vpop.f32.mrf.mxu1 }
 0x555   : > { %v13448_v36 = vadd.f32 %v22650_v49, %v13447_v57 }
 0x556   : > { %v13449_v30 = vpop.f32.mrf.mxu1 }
 0x557   : > { %v13499_v6 = vmax.f32 %v13448_v36, 0.0 }
 0x559   : > { %v13511_v40 = vpack.c.bf16 %v13499_v6, %v13498_v63  ;;  %v15598_v24 = vpack.c.bf16 %v13499_v6, %v13499_v6 }
 0x55b   : > { %v13532_v39 = vrot.slane %v13511_v40, %v16497_v23  ;;  %v13539_v28 = vrot.slane %v15598_v24, %v16497_v23 }
 0x55d   : > { %v13540_v15 = vcombine.high %v13532_v39, %v13532_v39  ;;  %v13541_v60 = vcombine.high %v13539_v28, %v13539_v28  ;;  %v13548_v22 = vrot.slane %v13532_v39, %v16497_v23  ;;  %v13555_v53 = vrot.slane %v13539_v28, %v16497_v23  ;;  %v16083_v28 = vld [vmem:[%s22984_s5 + $0x78] sm:$0xff]  }
 0x55e   : > { %15734 = vmatprep.subr.bf16.mxu1 %v16083_v28 }
 0x55f   : > { %v13562_v46 = vrot.slane %v13540_v15, %v16497_v23  ;;  %v13569_v44 = vrot.slane %v13541_v60, %v16497_v23  ;;  %v13570_v59 = vcombine.high %v13548_v22, %v13548_v22  ;;  %v13571_v14 = vcombine.high %v13555_v53, %v13555_v53  ;;  %v16084_v15 = vld [vmem:[%s22984_s5 + $0x38] sm:$0xff]   ;;  %v16085_v60 = vld [vmem:[%s22984_s5 + $0x70] sm:$0xff]  }
 0x560   : > { %v13892_v21 = vshrl.u32 %v13548_v22, 16  ;;  %v13912_v2 = vshrl.u32 %v13555_v53, 16  ;;  %15735 = vmatpush3.bf16.msra.mxu1 %v16084_v15 }
 0x561   : > { %v13573_v35 = vcombine.high %v13569_v44, %v13569_v44  ;;  %v13897_v8 = vshrl.u32 %v13562_v46, 16  ;;  %v13902_v55 = vshrl.u32 %v13570_v59, 16  ;;  %v13922_v20 = vshrl.u32 %v13571_v14, 16  ;;  %15736 = vmatprep.subr.bf16.mxu1 %v16085_v60 }
 0x562   : > { %v13917_v7 = vshrl.u32 %v13569_v44, 16  ;;  %v22661_v19 = vadd.bf16 %v13892_v21, %v13548_v22  ;;  %v13572_v33 = vcombine.high %v13562_v46, %v13562_v46  ;;  %v14195_v30 = vadd.bf16 %v13912_v2, %v13555_v53 }
 0x563   : > { %v14192_v61 = vadd.bf16 %v13897_v8, %v13562_v46  ;;  %v13927_v11 = vshrl.u32 %v13573_v35, 16  ;;  %v14197_v3 = vadd.bf16 %v13922_v20, %v13571_v14  ;;  %v14193_v37 = vadd.bf16 %v13902_v55, %v13570_v59  ;;  %v16086_v14 = vld [vmem:[%s22984_s5 + $0x30] sm:$0xff]   ;;  %v16088_v20 = vld [vmem:[%s22984_s5 + $0x28] sm:$0xff]  }
 0x564   : > { %v22663_v12 = vadd.bf16 %v13917_v7, %v13569_v44  ;;  %v13907_v27 = vshrl.u32 %v13572_v33, 16  ;;  %15737 = vmatpush3.bf16.msra.mxu1 %v16086_v14 }
 0x565   : > { %v14198_v52 = vadd.bf16 %v13927_v11, %v13573_v35  ;;  %v14242_v5 = vadd.bf16 %v14197_v3, %v14192_v61  ;;  %v16087_v35 = vld [vmem:[%s22984_s5 + $0x68] sm:$0xff]   ;;  %v16089_v61 = vld [vmem:[%s22984_s5 + $0x60] sm:$0xff]  }
 0x566   : > { %v14241_v41 = vadd.bf16 %v22663_v12, %v22661_v19  ;;  %v14194_v36 = vadd.bf16 %v13907_v27, %v13572_v33  ;;  %15738 = vmatprep.subr.bf16.mxu1 %v16087_v35  ;;  %v16090_v3 = vld [vmem:[%s22984_s5 + $0x20] sm:$0xff]  }
 0x567   : > { %v14243_v62 = vadd.bf16 %v14198_v52, %v14193_v37  ;;  %v14273_v56 = vrot.slane %v14242_v5, %v16497_v23 }
 0x568   : > { %15739 = vmatpush3.bf16.msra.mxu1 %v16088_v20 }
 0x569   : > { %v14280_v10 = vrot.slane %v14273_v56, %v16497_v23  ;;  %v14290_v17 = vrot.slane %v14243_v62, %v16497_v23  ;;  %15740 = vmatprep.subr.bf16.mxu1 %v16089_v61 }
 0x56b   : > { %14281 = vrot.lane.b32.xlu1 %v14280_v10, %s23958_s18  ;;  %v14297_v4 = vrot.slane %v14290_v17, %v16497_v23 }
 0x56c   : > { %15741 = vmatpush3.bf16.msra.mxu1 %v16090_v3 }
 0x56f   : > { %14298 = vrot.lane.b32.xlu1 %v14297_v4, %s23594_s16 }
 0x59d   : > { %v13452_v16 = vpop.f32.mrf.mxu1 }
 0x59e   : > { %v13453_v45 = vadd.f32 %v22650_v49, %v13452_v16 }
 0x59f   : > { %v13454_v25 = vpop.f32.mrf.mxu1 }
 0x5a0   : > { %v13500_v18 = vmax.f32 %v13453_v45, 0.0 }
 0x5a1   : > { %v13455_v58 = vpop.f32.mrf.mxu1 }
 0x5a2   : > { %v13456_v26 = vadd.f32 %v22650_v49, %v13455_v58 }
 0x5a3   : > { %v13457_v9 = vpop.f32.mrf.mxu1 }
 0x5a4   : > { %v13501_v54 = vmax.f32 %v13456_v26, 0.0 }
 0x5a6   : > { %v13512_v38 = vpack.c.bf16 %v13501_v54, %v13500_v18  ;;  %v15599_v48 = vpack.c.bf16 %v13501_v54, %v13501_v54 }
 0x5a8   : > { %v13581_v34 = vrot.slane %v13512_v38, %v16497_v23  ;;  %v13588_v1 = vrot.slane %v15599_v48, %v16497_v23 }
 0x5aa   : > { %v13589_v51 = vcombine.high %v13581_v34, %v13581_v34  ;;  %v13590_v0 = vcombine.high %v13588_v1, %v13588_v1  ;;  %v13597_v29 = vrot.slane %v13581_v34, %v16497_v23  ;;  %v13604_v17 = vrot.slane %v13588_v1, %v16497_v23  ;;  %v16091_v1 = vld [vmem:[%s22984_s5 + $0x58] sm:$0xff]  }
 0x5ab   : > { %15742 = vmatprep.subr.bf16.mxu1 %v16091_v1 }
 0x5ac   : > { %v13611_v13 = vrot.slane %v13589_v51, %v16497_v23  ;;  %v22679_v31 = vrot.slane %v13590_v0, %v16497_v23  ;;  %v13619_v47 = vcombine.high %v13597_v29, %v13597_v29  ;;  %v13932_v32 = vshrl.u32 %v13597_v29, 16  ;;  %v16092_v0 = vld [vmem:[%s22984_s5 + $0x18] sm:$0xff]  }
 0x5ad   : > { %v13620_v9 = vcombine.high %v13604_v17, %v13604_v17  ;;  %v13952_v18 = vshrl.u32 %v13604_v17, 16  ;;  %15743 = vmatpush3.bf16.msra.mxu1 %v16092_v0  ;;  %v16095_v0 = vld [vmem:[%s22984_s5 + $0x48] sm:$0xff]  }
 0x5ae   : > { %v13622_v50 = vcombine.high %v22679_v31, %v22679_v31  ;;  %v13937_v42 = vshrl.u32 %v13611_v13, 16  ;;  %v13942_v43 = vshrl.u32 %v13619_v47, 16  ;;  %v14199_v57 = vadd.bf16 %v13932_v32, %v13597_v29 }
 0x5af   : > { %v13621_v25 = vcombine.high %v13611_v13, %v13611_v13  ;;  %v13962_v32 = vshrl.u32 %v13620_v9, 16 }
 0x5b0   : > { %v14200_v63 = vadd.bf16 %v13937_v42, %v13611_v13  ;;  %v13967_v6 = vshrl.u32 %v13622_v50, 16  ;;  %v14244_v40 = vadd.bf16 %v14199_v57, %v14194_v36  ;;  %v14201_v53 = vadd.bf16 %v13942_v43, %v13619_v47 }
 0x5b1   : > { %v13947_v51 = vshrl.u32 %v13621_v25, 16 }
 0x5b2   : > { %v14245_v24 = vadd.bf16 %v14200_v63, %v14195_v30  ;;  %v14206_v39 = vadd.bf16 %v13967_v6, %v13622_v50  ;;  %v14307_v22 = vrot.slane %v14244_v40, %v16497_v23  ;;  %v14203_v50 = vadd.bf16 %v13952_v18, %v13604_v17 }
 0x5b3   : > { %v14202_v6 = vadd.bf16 %v13947_v51, %v13621_v25 }
 0x5b4   : > { %v14314_v46 = vrot.slane %v14307_v22, %v16497_v23  ;;  %v14324_v44 = vrot.slane %v14245_v24, %v16497_v23  ;;  %v14246_v59 = vadd.bf16 %v14206_v39, %v14201_v53 }
 0x5b6   : > { %14315 = vrot.lane.b32.xlu1 %v14314_v46, %s23803_s14  ;;  %v14331_v8 = vrot.slane %v14324_v44, %v16497_v23  ;;  %v14341_v55 = vrot.slane %v14246_v59, %v16497_v23  ;;  %v14205_v59 = vadd.bf16 %v13962_v32, %v13620_v9 }
 0x5b8   : > { %v14348_v11 = vrot.slane %v14341_v55, %v16497_v23 }
 0x5ba   : > { %14332 = vrot.lane.b32.xlu1 %v14331_v8, %s23940_s23 }
 0x5be   : > { %14349 = vrot.lane.b32.xlu1 %v14348_v11, %s23976_s19 }
 0x5d7   : > { %v13460_v37 = vpop.f32.mrf.mxu1 }
 0x5d8   : > { %v13461_v5 = vadd.f32 %v22650_v49, %v13460_v37 }
 0x5d9   : > { %v13462_v52 = vpop.f32.mrf.mxu1 }
 0x5da   : > { %v13502_v56 = vmax.f32 %v13461_v5, 0.0  ;;  %v16093_v52 = vld [vmem:[%s22984_s5 + $0x50] sm:$0xff]  }
 0x5db   : > { %v13463_v62 = vpop.f32.mrf.mxu1  ;;  %v16094_v5 = vld [vmem:[%s22984_s5 + $0x10] sm:$0xff]   ;;  %15744 = vmatprep.subr.bf16.mxu1 %v16093_v52 }
 0x5dc   : > { %v13464_v21 = vadd.f32 %v22650_v49, %v13463_v62  ;;  %15745 = vmatpush3.bf16.msra.mxu1 %v16094_v5 }
 0x5dd   : > { %v13465_v7 = vpop.f32.mrf.mxu1  ;;  %15746 = vmatprep.subr.bf16.mxu1 %v16095_v0 }
 0x5de   : > { %v13503_v10 = vmax.f32 %v13464_v21, 0.0 }
 0x5e0   : > { %v13513_v4 = vpack.c.bf16 %v13503_v10, %v13502_v56  ;;  %v15600_v16 = vpack.c.bf16 %v13503_v10, %v13503_v10  ;;  %v13468_v26 = vpop.f32.mrf.mxu1 }
 0x5e1   : > { %v13469_v34 = vadd.f32 %v22650_v49, %v13468_v26 }
 0x5e2   : > { %v13630_v45 = vrot.slane %v13513_v4, %v16497_v23  ;;  %v13637_v58 = vrot.slane %v15600_v16, %v16497_v23  ;;  %v13470_v33 = vpop.f32.mrf.mxu1 }
 0x5e3   : > { %v13504_v30 = vmax.f32 %v13469_v34, 0.0 }
 0x5e4   : > { %v13638_v54 = vcombine.high %v13630_v45, %v13630_v45  ;;  %v13639_v38 = vcombine.high %v13637_v58, %v13637_v58  ;;  %v22722_v48 = vrot.slane %v13630_v45, %v16497_v23  ;;  %v13471_v13 = vpop.f32.mrf.mxu1  ;;  %v13653_v40 = vrot.slane %v13637_v58, %v16497_v23 }
 0x5e5   : > { %v13472_v47 = vadd.f32 %v22650_v49, %v13471_v13 }
 0x5e6   : > { %v13660_v29 = vrot.slane %v13638_v54, %v16497_v23  ;;  %v22733_v27 = vrot.slane %v13639_v38, %v16497_v23  ;;  %v13972_v2 = vshrl.u32 %v22722_v48, 16  ;;  %v13473_v57 = vpop.f32.mrf.mxu1  ;;  %v13992_v20 = vshrl.u32 %v13653_v40, 16 }
 0x5e7   : > { %v13505_v63 = vmax.f32 %v13472_v47, 0.0 }
 0x5e8   : > { %v13670_v42 = vcombine.high %v13660_v29, %v13660_v29  ;;  %v13977_v43 = vshrl.u32 %v13660_v29, 16  ;;  %v14207_v36 = vadd.bf16 %v13972_v2, %v22722_v48  ;;  %v13671_v24 = vcombine.high %v22733_v27, %v22733_v27  ;;  %v13476_v39 = vpop.f32.mrf.mxu1 }
 0x5e9   : > { %v13514_v60 = vpack.c.bf16 %v13505_v63, %v13504_v30  ;;  %v15601_v22 = vpack.c.bf16 %v13505_v63, %v13505_v63  ;;  %v13477_v61 = vadd.f32 %v22650_v49, %v13476_v39  ;;  %v13997_v33 = vshrl.u32 %v22733_v27, 16 }
 0x5ea   : > { %v14208_v28 = vadd.bf16 %v13977_v43, %v13660_v29  ;;  %v13987_v15 = vshrl.u32 %v13670_v42, 16  ;;  %v14247_v53 = vadd.bf16 %v14207_v36, %v14202_v6  ;;  %v13478_v46 = vpop.f32.mrf.mxu1  ;;  %v14007_v37 = vshrl.u32 %v13671_v24, 16 }
 0x5eb   : > { %v13679_v35 = vrot.slane %v13514_v60, %v16497_v23  ;;  %v13686_v8 = vrot.slane %v15601_v22, %v16497_v23  ;;  %v13506_v18 = vmax.f32 %v13477_v61, 0.0  ;;  %v14211_v34 = vadd.bf16 %v13992_v20, %v13653_v40 }
 0x5ec   : > { %v14248_v44 = vadd.bf16 %v14208_v28, %v14203_v50  ;;  %v14210_v14 = vadd.bf16 %v13987_v15, %v13670_v42  ;;  %v14358_v55 = vrot.slane %v14247_v53, %v16497_v23  ;;  %v13479_v11 = vpop.f32.mrf.mxu1  ;;  %v14214_v47 = vadd.bf16 %v14007_v37, %v13671_v24  ;;  %v16096_v24 = vld [vmem:[%s22984_s5 + $0x8] sm:$0xff]  }
 0x5ed   : > { %v13687_v62 = vcombine.high %v13679_v35, %v13679_v35  ;;  %v13688_v21 = vcombine.high %v13686_v8, %v13686_v8  ;;  %v13695_v7 = vrot.slane %v13679_v35, %v16497_v23  ;;  %v13702_v56 = vrot.slane %v13686_v8, %v16497_v23  ;;  %15747 = vmatpush3.bf16.msra.mxu1 %v16096_v24 }
 0x5ee   : > { %v14250_v3 = vadd.bf16 %v14210_v14, %v14205_v59  ;;  %v13480_v10 = vadd.f32 %v22650_v49, %v13479_v11  ;;  %v13481_v17 = vpop.f32.mrf.mxu1  ;;  %v14365_v4 = vrot.slane %v14358_v55, %v16497_v23  ;;  %v14375_v16 = vrot.slane %v14248_v44, %v16497_v23  ;;  %v16097_v55 = vld [vmem:[%s22984_s5 + $0x40] sm:$0xff]  }
 0x5ef   : > { %v13709_v45 = vrot.slane %v13687_v62, %v16497_v23  ;;  %v22759_v58 = vrot.slane %v13688_v21, %v16497_v23  ;;  %v13717_v26 = vcombine.high %v13695_v7, %v13695_v7  ;;  %v14032_v9 = vshrl.u32 %v13702_v56, 16  ;;  %15748 = vmatprep.subr.bf16.mxu1 %v16097_v55 }
 0x5f0   : > { %v14392_v25 = vrot.slane %v14250_v3, %v16497_v23  ;;  %v13507_v54 = vmax.f32 %v13480_v10, 0.0  ;;  %14366 = vrot.lane.b32.xlu1 %v14365_v4, %s23970_s22  ;;  %v14382_v13 = vrot.slane %v14375_v16, %v16497_v23  ;;  %v13669_v63 = vcombine.high %v13653_v40, %v13653_v40 }
 0x5f1   : > { %v14017_v51 = vshrl.u32 %v13709_v45, 16  ;;  %v14022_v1 = vshrl.u32 %v13717_v26, 16  ;;  %v14219_v29 = vadd.bf16 %v14032_v9, %v13702_v56  ;;  %v13719_v32 = vcombine.high %v13709_v45, %v13709_v45 }
 0x5f2   : > { %v14399_v38 = vrot.slane %v14392_v25, %v16497_v23  ;;  %v13515_v2 = vpack.c.bf16 %v13507_v54, %v13506_v18  ;;  %v14037_v50 = vshrl.u32 %v22759_v58, 16  ;;  %v15602_v42 = vpack.c.bf16 %v13507_v54, %v13507_v54 }
 0x5f3   : > { %v14216_v43 = vadd.bf16 %v14017_v51, %v13709_v45  ;;  %v14254_v36 = vadd.bf16 %v14219_v29, %v14214_v47  ;;  %v14217_v30 = vadd.bf16 %v14022_v1, %v13717_v26  ;;  %v14012_v6 = vshrl.u32 %v13695_v7, 16 }
 0x5f4   : > { %14400 = vrot.lane.b32.xlu0 %v14399_v38, %s23958_s18  ;;  %v13728_v57 = vrot.slane %v13515_v2, %v16497_v23  ;;  %14383 = vrot.lane.b32.xlu1 %v14382_v13, %s23597_s17  ;;  %v13735_v39 = vrot.slane %v15602_v42, %v16497_v23  ;;  %v14212_v22 = vadd.bf16 %v13997_v33, %v22733_v27  ;;  %v14027_v40 = vshrl.u32 %v13719_v32, 16  ;;  %v16098_v27 = vld [vmem:[%s22984_s5] sm:$0xff]  }
 0x5f5   : > { %v14251_v28 = vadd.bf16 %v14216_v43, %v14211_v34  ;;  %v14460_v60 = vrot.slane %v14254_v36, %v16497_v23  ;;  %v14220_v44 = vadd.bf16 %v14037_v50, %v22759_v58  ;;  %v14002_v20 = vshrl.u32 %v13669_v63, 16  ;;  %15749 = vmatpush3.bf16.msra.mxu1 %v16098_v27 }
 0x5f6   : > { %v13736_v15 = vcombine.high %v13728_v57, %v13728_v57  ;;  %v13737_v53 = vcombine.high %v13735_v39, %v13735_v39  ;;  %v22779_v46 = vrot.slane %v13735_v39, %v16497_v23  ;;  %v14252_v8 = vadd.bf16 %v14217_v30, %v14212_v22 }
 0x5f7   : > { %v14467_v14 = vrot.slane %v14460_v60, %v16497_v23  ;;  %v14409_v35 = vrot.slane %v14251_v28, %v16497_v23  ;;  %v14215_v61 = vadd.bf16 %v14012_v6, %v13695_v7  ;;  %v13957_v3 = vshrl.u32 %v22679_v31, 16 }
 0x5f8   : > { %v13758_v59 = vrot.slane %v13736_v15, %v16497_v23  ;;  %v13767_v11 = vcombine.high %v22779_v46, %v22779_v46  ;;  %v13718_v37 = vcombine.high %v13702_v56, %v13702_v56  ;;  %v13668_v62 = vcombine.high %v22722_v48, %v22722_v48 }
 0x5f9   : > { %14468 = vrot.lane.b32.xlu0 %v14467_v14, %s23976_s19  ;;  %v13765_v21 = vrot.slane %v13737_v53, %v16497_v23  ;;  %v14255_v17 = vadd.bf16 %v14220_v44, %v14215_v61  ;;  %v14218_v4 = vadd.bf16 %v14027_v40, %v13719_v32  ;;  %v14416_v7 = vrot.slane %v14409_v35, %v16497_v23 }
 0x5fa   : > { %v13768_v52 = vcombine.high %v13758_v59, %v13758_v59  ;;  %v14057_v5 = vshrl.u32 %v13758_v59, 16  ;;  %v14082_v10 = vshrl.u32 %v13767_v11, 16  ;;  %v14426_v16 = vrot.slane %v14252_v8, %v16497_v23 }
 0x5fb   : > { %v24320_v45 = vmov 0   ;;  %v13744_v26 = vrot.slane %v13728_v57, %v16497_v23  ;;  %v14042_v18 = vshrl.u32 %v13718_v37, 16  ;;  %v14213_v48 = vadd.bf16 %v14002_v20, %v13669_v63 }
 0x5fc   : > { %v14224_v25 = vadd.bf16 %v14057_v5, %v13758_v59  ;;  %v14067_v56 = vshrl.u32 %v13768_v52, 16  ;;  %14915 = vmatprep.subr.bf16.mxu1 %v24320_v45  ;;  %v14229_v9 = vadd.bf16 %v14082_v10, %v13767_v11  ;;  %v13982_v54 = vshrl.u32 %v13668_v62, 16 }
 0x5fd   : > { %14417 = vrot.lane.b32.xlu0 %v14416_v7, %s23594_s16  ;;  %v22804_v38 = vadd.bf16 %v13957_v3, %v22679_v31  ;;  %v13769_v33 = vcombine.high %v13765_v21, %v13765_v21  ;;  %v14077_v34 = vshrl.u32 %v13765_v21, 16  ;;  %v14477_v1 = vrot.slane %v14255_v17, %v16497_v23 }
 0x5fe   : > { %v14259_v51 = vadd.bf16 %v14229_v9, %v14224_v25  ;;  %v14433_v0 = vrot.slane %v14426_v16, %v16497_v23  ;;  %v14253_v29 = vadd.bf16 %v14218_v4, %v14213_v48  ;;  %v14226_v2 = vadd.bf16 %v14067_v56, %v13768_v52 }
 0x5ff   : > { %v22808_v13 = vadd.bf16 %v13982_v54, %v13668_v62  ;;  %v14052_v47 = vshrl.u32 %v13744_v26, 16  ;;  %v13766_v50 = vcombine.high %v13744_v26, %v13744_v26  ;;  %v14221_v42 = vadd.bf16 %v14042_v18, %v13718_v37 }
 0x600   : > { %v14560_v32 = vrot.slane %v14259_v51, %v16497_v23  ;;  %v14484_v57 = vrot.slane %v14477_v1, %v16497_v23  ;;  %v14228_v36 = vadd.bf16 %v14077_v34, %v13765_v21  ;;  %v14087_v30 = vshrl.u32 %v13769_v33, 16 }
 0x601   : > { %14434 = vrot.lane.b32.xlu0 %v14433_v0, %s23803_s14  ;;  %v14249_v31 = vadd.bf16 %v22808_v13, %v22804_v38  ;;  %v14443_v63 = vrot.slane %v14253_v29, %v16497_v23  ;;  %v14256_v6 = vadd.bf16 %v14226_v2, %v14221_v42  ;;  %v13720_v39 = vcombine.high %v22759_v58, %v22759_v58 }
 0x602   : > { %v14567_v43 = vrot.slane %v14560_v32, %v16497_v23  ;;  %v14072_v28 = vshrl.u32 %v22779_v46, 16  ;;  %v14223_v24 = vadd.bf16 %v14052_v47, %v13744_v26  ;;  %v14062_v15 = vshrl.u32 %v13766_v50, 16 }
 0x603   : > { %v14047_v60 = vshrl.u32 %v13720_v39, 16  ;;  %v14450_v44 = vrot.slane %v14443_v63, %v16497_v23  ;;  %v14494_v59 = vrot.slane %v14256_v6, %v16497_v23  ;;  %v14230_v14 = vadd.bf16 %v14087_v30, %v13769_v33 }
 0x604   : > { %14568 = vrot.lane.b32.xlu1 %v14567_v43, %s23594_s16  ;;  %v22823_v22 = vadd.bf16 %v14072_v28, %v22779_v46  ;;  %v14258_v53 = vadd.bf16 %v14228_v36, %v14223_v24  ;;  %v14225_v8 = vadd.bf16 %v14062_v15, %v13766_v50  ;;  %s269_s16 = sand.u32 1, %s16165_s25  }
 0x605   : > { %14485 = vrot.lane.b32.xlu0 %v14484_v57, %s23970_s22  ;;  %v22827_v58 = vadd.bf16 %v14047_v60, %v13720_v39  ;;  %v14501_v46 = vrot.slane %v14494_v59, %v16497_v23  ;;  %s14958_s13 = scalar_lea.sflag [#allocation3], %s269_s16 }
 0x606   : > { %v14543_v61 = vrot.slane %v14258_v53, %v16497_v23  ;;  %v14260_v11 = vadd.bf16 %v14230_v14, %v14225_v8 }
 0x607   : > { %v14257_v55 = vadd.bf16 %v22823_v22, %v22827_v58  ;;  %v16107_v22 = vld [vmem:[%s22984_s5 + $0xc0] sm:$0xff]  }
 0x608   : > { %v14550_v62 = vrot.slane %v14543_v61, %v16497_v23  ;;  %v14577_v10 = vrot.slane %v14260_v11, %v16497_v23 }
 0x609   : > { %14451 = vrot.lane.b32.xlu0 %v14450_v44, %s23940_s23 }
 0x60a   : > { %v14584_v9 = vrot.slane %v14577_v10, %v16497_v23 }
 0x60c   : > { %v13484_v40 = vpop.f32.mrf.mxu1 }
 0x60d   : > { %v13485_v27 = vadd.f32 %v22650_v49, %v13484_v40  ;;  %14502 = vrot.lane.b32.xlu0 %v14501_v46, %s23597_s17 }
 0x60e   : > { %v13486_v35 = vpop.f32.mrf.mxu1 }
 0x60f   : > { %v13508_v52 = vmax.f32 %v13485_v27, 0.0 }
 0x610   : > { %v13487_v20 = vpop.f32.mrf.mxu1 }
 0x611   : > { %v13488_v3 = vadd.f32 %v22650_v49, %v13487_v20  ;;  %14551 = vrot.lane.b32.xlu0 %v14550_v62, %s23958_s18 }
 0x612   : > { %v13489_v37 = vpop.f32.mrf.mxu1 }
 0x613   : > { %v13509_v5 = vmax.f32 %v13488_v3, 0.0 }
 0x614   : > { %v13492_v21 = vpop.f32.mrf.mxu1 }
 0x615   : > { %v13516_v17 = vpack.c.bf16 %v13509_v5, %v13508_v52  ;;  %v15603_v4 = vpack.c.bf16 %v13509_v5, %v13509_v5  ;;  %v13493_v7 = vadd.f32 %v22650_v49, %v13492_v21  ;;  %14585 = vrot.lane.b32.xlu0 %v14584_v9, %s23803_s14 }
 0x616   : > { %v13494_v16 = vpop.f32.mrf.mxu1 }
 0x617   : > { %v13777_v25 = vrot.slane %v13516_v17, %v16497_v23  ;;  %v13784_v56 = vrot.slane %v15603_v4, %v16497_v23  ;;  %v13510_v26 = vmax.f32 %v13493_v7, 0.0 }
 0x618   : > { %v13495_v18 = vpop.f32.mrf.mxu1 }
 0x619   : > { %v13785_v48 = vcombine.high %v13777_v25, %v13777_v25  ;;  %v13786_v54 = vcombine.high %v13784_v56, %v13784_v56  ;;  %v13793_v33 = vrot.slane %v13777_v25, %v16497_v23  ;;  %v13800_v34 = vrot.slane %v13784_v56, %v16497_v23  ;;  %v14282_v56 = vpop.permute.xlu1 %14281 }
 0x61a   : > { %v13517_v51 = vpack.c.bf16 %v13510_v26, %v13510_v26  ;;  %v13496_v49 = vpop.f32.mrf.mxu1 }
 0x61b   : > { %v13807_v1 = vrot.slane %v13785_v48, %v16497_v23  ;;  %v13814_v0 = vrot.slane %v13786_v54, %v16497_v23  ;;  %v13815_v29 = vcombine.high %v13793_v33, %v13793_v33  ;;  %v13816_v2 = vcombine.high %v13800_v34, %v13800_v34 }
 0x61c   : > { %v14092_v47 = vshrl.u32 %v13793_v33, 16  ;;  %v13825_v32 = vrot.slane %v13517_v51, %v16497_v23  ;;  %v14112_v40 = vshrl.u32 %v13800_v34, 16 }
 0x61d   : > { %v13818_v50 = vcombine.high %v13814_v0, %v13814_v0  ;;  %v14097_v42 = vshrl.u32 %v13807_v1, 16  ;;  %v14102_v43 = vshrl.u32 %v13815_v29, 16  ;;  %v14117_v57 = vshrl.u32 %v13814_v0, 16  ;;  %v14299_v26 = vpop.permute.xlu1 %14298 }
 0x61e   : > { %v14122_v36 = vshrl.u32 %v13816_v2, 16  ;;  %v14231_v30 = vadd.bf16 %v14092_v47, %v13793_v33  ;;  %v13817_v63 = vcombine.high %v13807_v1, %v13807_v1  ;;  %v13826_v6 = vcombine.high %v13825_v32, %v13825_v32 }
 0x61f   : > { %v13833_v39 = vrot.slane %v13825_v32, %v16497_v23  ;;  %v14236_v28 = vadd.bf16 %v14117_v57, %v13814_v0  ;;  %v14232_v24 = vadd.bf16 %v14097_v42, %v13807_v1  ;;  %v14127_v15 = vshrl.u32 %v13818_v50, 16 }
 0x620   : > { %v13840_v60 = vrot.slane %v13826_v6, %v16497_v23  ;;  %v14107_v53 = vshrl.u32 %v13817_v63, 16  ;;  %v14237_v44 = vadd.bf16 %v14122_v36, %v13816_v2  ;;  %v14233_v35 = vadd.bf16 %v14102_v43, %v13815_v29  ;;  %v16101_v6 = vld [vmem:[%s22984_s5 + $0xa8] sm:$0xff]  }
 0x621   : > { %v14132_v59 = vshrl.u32 %v13833_v39, 16  ;;  %v14261_v14 = vadd.bf16 %v14236_v28, %v14231_v30  ;;  %v14238_v8 = vadd.bf16 %v14127_v15, %v13818_v50  ;;  %v14235_v52 = vadd.bf16 %v14112_v40, %v13800_v34  ;;  %v16103_v28 = vld [vmem:[%s22984_s5 + $0x98] sm:$0xff]   ;;  %v16104_v15 = vld [vmem:[%s22984_s5 + $0x90] sm:$0xff]  }
 0x622   : > { %v14137_v27 = vshrl.u32 %v13840_v60, 16  ;;  %v14234_v46 = vadd.bf16 %v14107_v53, %v13817_v63  ;;  %v14262_v20 = vadd.bf16 %v14237_v44, %v14232_v24  ;;  %v14506_v29 = vsel %vm24321_vm8, %v14241_v41, %v14282_v56  ;;  %v16099_v41 = vld [vmem:[%s22984_s5 + $0xb8] sm:$0xff]   ;;  %v16100_v63 = vld [vmem:[%s22984_s5 + $0xb0] sm:$0xff]   ;;  %v16105_v53 = vld [vmem:[%s22984_s5 + $0x88] sm:$0xff]  }
 0x623   : > { %v14239_v61 = vadd.bf16 %v14132_v59, %v13833_v39  ;;  %v14594_v11 = vrot.slane %v14261_v14, %v16497_v23  ;;  %v14263_v3 = vadd.bf16 %v14238_v8, %v14233_v35  ;;  %v14508_v32 = vsel %vm643_vm1, %v14506_v29, %v14299_v26  ;;  %v16102_v39 = vld [vmem:[%s22984_s5 + $0xa0] sm:$0xff]  }
 0x624   : > { %v14611_v37 = vrot.slane %v14262_v20, %v16497_v23  ;;  %v14240_v5 = vadd.bf16 %v14137_v27, %v13840_v60  ;;  %v16106_v14 = vld [vmem:[%s22984_s5 + $0x80] sm:$0xff]  }
 0x625   : > { %v14264_v62 = vadd.bf16 %v14239_v61, %v14234_v46  ;;  %v14601_v21 = vrot.slane %v14594_v11, %v16497_v23  ;;  %v14628_v10 = vrot.slane %v14263_v3, %v16497_v23 }
 0x626   : > { %v14618_v17 = vrot.slane %v14611_v37, %v16497_v23  ;;  %v14265_v4 = vadd.bf16 %v14240_v5, %v14235_v52 }
 0x627   : > { %14602 = vrot.lane.b32.xlu1 %v14601_v21, %s23940_s23  ;;  %v14645_v7 = vrot.slane %v14264_v62, %v16497_v23  ;;  %v14635_v16 = vrot.slane %v14628_v10, %v16497_v23 }
 0x628   : > { %14619 = vrot.lane.b32.xlu0 %v14618_v17, %s23976_s19  ;;  %v14316_v18 = vpop.permute.xlu1 %14315  ;;  %s270_s19 = scalar_lea.vmem [#allocation2], %s269_s16 }
 0x629   : > { %v14652_v25 = vrot.slane %v14645_v7, %v16497_v23  ;;  %v14510_v42 = vsel %vm11451_vm15, %v14508_v32, %v14316_v18  ;;  %s14970_s9 = sshll.u32 %s270_s19, 4  ;;  %s22940_s9 = int_to_ptr.vmem [resolvable:$true] %s14970_s9 }
 0x62a   : > { %p16120_p0 = scmp.lt.s32.totalorder %s22940_s9, %s16118_s20 }
 0x62b   : > { %14636 = vrot.lane.b32.xlu1 %v14635_v16, %s23970_s22  ;;  %s15680_s22 = sshll.u32 %s16256_s28, 4  ;;  %s16113_s28 = scalar_lea.vmem %s22940_s9, 16 }
 0x62c   : > { %14653 = vrot.lane.b32.xlu0 %v14652_v25, %s23597_s17  ;;  %v14333_v54 = vpop.permute.xlu1 %14332  ;;  %s22938_s29 = scalar_lea.hbm %s22986_s7, %s15680_s22  ;;  %p16114_p11 = scmp.ne.s32.totalorder %s22940_s9, %s16113_s28 }
 0x62d   : > { %v14512_v13 = vsel %vm24324_vm10, %v14510_v42, %v14333_v54  ;;  %p16121_p1 = scmp.lt.s32.totalorder %s16119_s21, %s16113_s28 }
 0x62e   : > { %p16115_p12 = pnand %p16114_p11, %p16273_p5 }
 0x62f   : > { %p16122_p2 = por %p16121_p1, %p16120_p0 }
 0x630   : > { %v14350_v51 = vpop.permute.xlu1 %14349  ;;  %p16116_p13 = pneg %p16115_p12 }
 0x631   : > { %v14514_v19 = vsel %vm24325_vm14, %v14512_v13, %v14350_v51 }
 0x632   : > { %p16123_p3 = pnand %p16122_p2, %p16116_p13 }
 0x662   : > { %v14367_v1 = vpop.permute.xlu1 %14366 }
 0x663   : > { %v14516_v57 = vsel %vm11577_vm12, %v14514_v19, %v14367_v1 }
 0x666   : > { %v14401_v9 = vpop.permute.xlu0 %14400 }
 0x667   : > { %v14522_v23 = vsel %vm24309_vm2, %v14249_v31, %v14401_v9  ;;  %v14384_v31 = vpop.permute.xlu1 %14383 }
 0x668   : > { %v14518_v30 = vsel %vm11619_vm11, %v14516_v57, %v14384_v31 }
 0x66b   : > { %v14469_v48 = vpop.permute.xlu0 %14468 }
 0x66f   : > { %v14418_v33 = vpop.permute.xlu0 %14417 }
 0x670   : > { %v14524_v0 = vsel %vm643_vm1, %v14522_v23, %v14418_v33 }
 0x673   : > { %v14435_v34 = vpop.permute.xlu0 %14434 }
 0x674   : > { %v14526_v2 = vsel %vm11451_vm15, %v14524_v0, %v14435_v34 }
 0x676   : > { %v14569_v60 = vpop.permute.xlu1 %14568 }
 0x677   : > { %v14486_v49 = vpop.permute.xlu0 %14485 }
 0x67b   : > { %v14452_v47 = vpop.permute.xlu0 %14451 }
 0x67c   : > { %v14528_v50 = vsel %vm24322_vm5, %v14526_v2, %v14452_v47 }
 0x67d   : > { %v14530_v38 = vsel %vm24323_vm9, %v14528_v50, %v14469_v48 }
 0x67e   : > { %v14532_v43 = vsel %vm11577_vm12, %v14530_v38, %v14486_v49 }
 0x67f   : > { %v14503_v12 = vpop.permute.xlu0 %14502 }
 0x680   : > { %v14534_v36 = vsel %vm11619_vm11, %v14532_v43, %v14503_v12 }
 0x681   : > { %14907 = vmatprep.mubr.bf16.mxu1 %v14534_v36 }
 0x682   : > { %14908 = vmatmul.mubr.bf16.vlgmr.msra.gmra.mxu1 %v14518_v30 }
 0x683   : > { %14916 = vmatpush1.bf16.msra.mxu1 %v16099_v41  ;;  %15679 = vmatprep.mubr.msk.bf16.mxu1 %vm24326_vm0, %v14265_v4  ;;  %v14552_v24 = vpop.permute.xlu0 %14551 }
 0x684   : > { %14917 = vmatprep.subr.bf16.mxu1 %v24320_v45  ;;  %v14657_v40 = vsel %vm24327_vm7, %v14257_v55, %v14552_v24 }
 0x685   : > { %v14659_v35 = vsel %vm643_vm1, %v14657_v40, %v14569_v60 }
 0x687   : > { %14918 = vmatpush1.bf16.msra.mxu1 %v16100_v63  ;;  %v14586_v44 = vpop.permute.xlu0 %14585 }
 0x688   : > { %14919 = vmatprep.subr.bf16.mxu1 %v24320_v45  ;;  %v14661_v27 = vsel %vm11451_vm15, %v14659_v35, %v14586_v44 }
 0x68b   : > { %14920 = vmatpush1.bf16.msra.mxu1 %v16101_v6 }
 0x68c   : > { %14921 = vmatprep.subr.bf16.mxu1 %v24320_v45 }
 0x68f   : > { %14922 = vmatpush1.bf16.msra.mxu1 %v16102_v39 }
 0x690   : > { %14923 = vmatprep.subr.bf16.mxu1 %v24320_v45 }
 0x693   : > { %14924 = vmatpush1.bf16.msra.mxu1 %v16103_v28 }
 0x694   : > { %14925 = vmatprep.subr.bf16.mxu1 %v24320_v45 }
 0x697   : > { %14926 = vmatpush1.bf16.msra.mxu1 %v16104_v15 }
 0x698   : > { %14927 = vmatprep.subr.bf16.mxu1 %v24320_v45 }
 0x699   : > { %v14603_v59 = vpop.permute.xlu1 %14602 }
 0x69a   : > { %v14620_v8 = vpop.permute.xlu0 %14619  ;;  %v14663_v46 = vsel %vm24328_vm13, %v14661_v27, %v14603_v59 }
 0x69b   : > { %14928 = vmatpush1.bf16.msra.mxu1 %v16105_v53  ;;  %v14665_v58 = vsel %vm24329_vm3, %v14663_v46, %v14620_v8 }
 0x69c   : > { %14929 = vmatprep.subr.bf16.mxu1 %v24320_v45 }
 0x69d   : > { %v14637_v20 = vpop.permute.xlu1 %14636 }
 0x69e   : > { %v14667_v55 = vsel %vm11577_vm12, %v14665_v58, %v14637_v20  ;;  %v14654_v61 = vpop.permute.xlu0 %14653 }
 0x69f   : > { %14930 = vmatpush1.bf16.msra.mxu1 %v16106_v14  ;;  %v14669_v11 = vsel %vm11619_vm11, %v14667_v55, %v14654_v61 }
 0x6a0   : > { %14945 = vmatprep.subr.bf16.mxu1 %v24320_v45  ;;  %v14721_v45 = vld [vmem:[%s22985_s6] sm:$0x1] }
 0x6a3   : > { %14946 = vmatpush2.bf16.msra.mxu1 %v16107_v22 }
 0x6a6   : > { %14948 = vmatmul.mubr.bf16.vlgmr.msra.gmra.mxu1 %v14669_v11 }
 0x742   : > { %v15750_v3 = vpop.f32.mrf.mxu1 }
 0x744   : > { %v15751_v37 = vpop.f32.mrf.mxu1 }
 0x745   : > { %v15752_v62 = vadd.f32 %v15751_v37, %v15750_v3 }
 0x746   : > { %v15753_v52 = vpop.f32.mrf.mxu1 }
 0x747   : > { %v14910_v21 = vadd.f32 %v15752_v62, %v14721_v45 }
 0x748   : > { %v15754_v5 = vpop.f32.mrf.mxu1 }
 0x766   : > { %v14949_v10 = vpop.f32.mrf.mxu1 }
 0x767   : > { %v14950_v17 = vadd.f32 %v14949_v10, %v14910_v21 }
 0x768   : > { %v14951_v4 = vpop.f32.mrf.mxu1 }
 0x769   : > { %v14955_v7 = vmax.f32 %v14950_v17, 0.0 }
 0x76a   : > { %v14952_v16 = vpop.f32.mrf.mxu1 }
 0x76b   : > { %14956 = vst [vmem:[%s270_s19] sm:$0x1] %v14955_v7 }
 0x76c   : > { %v14953_v25 = vpop.f32.mrf.mxu1 }
 0x76d   : > { %16126 = shalt.err (!%p16123_p3)
}
 0x76e   : > { %s16127_s8 = scalar_lea.hbm %s22938_s29, 16  ;;  %s16131_s16 = scalar_lea.hbm %s22986_s7, 32 }
 0x76f   : > { %p16128_p4 = scmp.ne.s32.totalorder %s22938_s29, %s16127_s8  ;;  %p16132_p9 = scmp.lt.s32.totalorder %s22938_s29, %s22986_s7 }
 0x770   : > { %p16133_p10 = scmp.lt.s32.totalorder %s16131_s16, %s16127_s8 }
 0x771   : > { %p16129_p7 = pnand %p16128_p4, %p16273_p5 }
 0x772   : > { %p16134_p11 = por %p16133_p10, %p16132_p9 }
 0x773   : > { %p16130_p8 = pneg %p16129_p7 }
 0x775   : > { %p16135_p12 = pnand %p16134_p11, %p16130_p8 }
 0x777   : > { %16138 = shalt.err (!%p16135_p12)
}
 0x778   : > { %15961 = dma.vmem_to_hbm [thread:$0]  (%p16273_p5), %s22940_s9, 16, %s22938_s29, %s14958_s13  }
 0x779 PF: > { %p15967_p13 = scmp.ge.s32.totalorder %s16173_s27, 2  ;;  %s14982_s22 = sand.u32 1, %s16161_s24  }
 0x77a   : > { %s14983_s19 = scalar_lea.sflag [#allocation3], %s14982_s22 }
 0x77b   : > { %p15964_p0 = pnand %p15967_p13, %p16277_p6 }
 0x77d   : > { %p15965_p1 = pneg %p15964_p0 }
 0x77f   : > { %16156 = dma.done.wait (%p15965_p1), %s14983_s19, 16  }
 0x780   : > { %16158 = vsyncadd (%p15965_p1), %s14983_s19, 4294967280  ;;  %p17_p2 = scmp.ge.s32.totalorder %s16260_s30, 4   ;;  %s24330_s24 = smov %s16165_s25 }
 0x781   : > { %s24331_s25 = smov %s16169_s26  ;;  %s24332_s26 = smov %s16271_s10 }
 0x782   : > { %s24333_s27 = smov %s16260_s30  ;;  %19 = sbr.rel (!%p17_p2) target bundleno = 6 (0x6), region = 83 }
 0x787   :  { %14987 = vsyncpa [#allocation3], 1 }
 0x788   :  { %14989 = vsyncpa [#allocation3 + $0x1], 1 }

</bundles_post_ra>
